<compile_context>
chip_gen: v7x
topology: tpu7x:2x2x1
jax: 0.10.0
libtpu: 0.0.40
codegen_flags: <defaults>
</compile_context>

<pallas_src>
import functools

import numpy as np

import jax
import jax.numpy as jnp
from jax.experimental import pallas as pl
from jax.experimental.pallas import tpu as pltpu


# -----------------------------------------------------------------------------
# Generation-aware budgets
# -----------------------------------------------------------------------------
def _tpu_budget():
    """(vmem_limit_bytes, max_batch_tile) sized per TPU generation."""
    try:
        cap = getattr(pltpu.get_tpu_info(), "vmem_capacity_bytes", 0) or 0
    except Exception:
        cap = 0
    if cap >= 96 * 1024 * 1024:          # v5e / v6e: 128 MiB physical VMEM
        return 96 * 1024 * 1024, 256
    return 40 * 1024 * 1024, 128         # v7x (64 MiB physical) / unknown


VMEM_LIMIT_BYTES, TB_MAX = _tpu_budget()


def _round_up(x, m):
    return (x + m - 1) // m * m


def _conv_out(s, k, st):
    return (s - k) // st + 1


def _choose_batch_tile(n):
    """Batch tile + grid size; >=2 grid steps whenever n >= 2 (v7x megacore)."""
    tb = max(1, min(TB_MAX, -(-n // 2)))
    return tb, -(-n // tb)


# -----------------------------------------------------------------------------
# Fused forward kernel: one batch tile per grid step, everything in VMEM.
# Activations are kept in "planar" form: a list of per-spatial-row values of
# shape (TB, W*C) with columns ordered (w, c).  A conv output row oh is
#     relu( sum_kh  in_row[stride*oh + kh] @ Wfold[kh]  + bias_row )
# where Wfold folds the width taps + stride into a block-banded matrix.
# -----------------------------------------------------------------------------
def _fused_forward_kernel(x_ref, w1_ref, b1_ref, w2_ref, b2_ref, w3_ref, b3_ref,
                          wfc1_ref, bfc1_ref, wfc2_ref, bfc2_ref, o_ref,
                          *, oh1, kh1, oh2, kh2, oh3, kh3):
    f32 = jnp.float32
    bf16 = jnp.bfloat16

    def conv_rows(get_row, w_ref, b_ref, n_taps, n_out, stride):
        taps = [w_ref[k] for k in range(n_taps)]        # VMEM-resident weights
        bias = b_ref[...]                               # (1, OW*Co) f32
        rows = []
        for oh in range(n_out):                         # static, fully unrolled
            acc = jnp.dot(get_row(stride * oh), taps[0],
                          preferred_element_type=f32)
            for k in range(1, n_taps):
                acc = acc + jnp.dot(get_row(stride * oh + k), taps[k],
                                    preferred_element_type=f32)
            rows.append(jnp.maximum(acc + bias, 0.0).astype(bf16))
        return rows

    # conv1: k8/s4 on the raw input == k2/s1 on the space-to-depth(4) input.
    x_rows = [x_ref[:, r, :] for r in range(oh1 + kh1 - 1)]   # (TB, W1*16C) each
    rows1 = conv_rows(lambda r: x_rows[r], w1_ref, b1_ref, kh1, oh1, 1)

    # conv2: k4/s2 -- the row indices are static Python ints, so the stride
    # costs nothing (no strided memory access anywhere).
    rows2 = conv_rows(lambda r: rows1[r], w2_ref, b2_ref, kh2, oh2, 2)

    # conv3 (k3/s1) fused with fc1: accumulate fc1 row-blocks as each conv3
    # output row is produced, so no flatten / reshape is ever needed.
    taps3 = [w3_ref[k] for k in range(kh3)]
    b3 = b3_ref[...]
    h = bfc1_ref[...]                                   # (1, 512) f32
    for oh in range(oh3):
        acc = jnp.dot(rows2[oh], taps3[0], preferred_element_type=f32)
        for k in range(1, kh3):
            acc = acc + jnp.dot(rows2[oh + k], taps3[k],
                                preferred_element_type=f32)
        r3 = jnp.maximum(acc + b3, 0.0).astype(bf16)    # (TB, OW3*C3)
        h = h + jnp.dot(r3, wfc1_ref[oh], preferred_element_type=f32)

    h = jnp.maximum(h, 0.0).astype(bf16)                # relu(fc1), (TB, 512)
    q = jnp.dot(h, wfc2_ref[...], preferred_element_type=f32) + bfc2_ref[...]
    o_ref[0] = q                                        # (TB, A_pad) f32


# -----------------------------------------------------------------------------
# Parameter init (PyTorch layout, f32)
# -----------------------------------------------------------------------------
def init_params(key, in_channels, h, w, num_actions, depths=(32, 64, 64),
                final_layer=512):
    h1, w1 = _conv_out(h, 8, 4), _conv_out(w, 8, 4)
    h2, w2 = _conv_out(h1, 4, 2), _conv_out(w1, 4, 2)
    h3, w3 = _conv_out(h2, 3, 1), _conv_out(w2, 3, 1)
    n_flatten = depths[2] * h3 * w3

    keys = jax.random.split(key, 10)

    def u(k, shape, fan_in):
        bound = 1.0 / jnp.sqrt(fan_in)
        return jax.random.uniform(k, shape, jnp.float32, -bound, bound)

    params = {
        "conv1_w": u(keys[0], (depths[0], in_channels, 8, 8), in_channels * 64),
        "conv1_b": u(keys[1], (depths[0],), in_channels * 64),
        "conv2_w": u(keys[2], (depths[1], depths[0], 4, 4), depths[0] * 16),
        "conv2_b": u(keys[3], (depths[1],), depths[0] * 16),
        "conv3_w": u(keys[4], (depths[2], depths[1], 3, 3), depths[1] * 9),
        "conv3_b": u(keys[5], (depths[2],), depths[1] * 9),
        "fc1_w": u(keys[6], (final_layer, n_flatten), n_flatten),
        "fc1_b": u(keys[7], (final_layer,), n_flatten),
        "fc2_w": u(keys[8], (num_actions, final_layer), final_layer),
        "fc2_b": u(keys[9], (num_actions,), final_layer),
    }
    return params, n_flatten


# -----------------------------------------------------------------------------
# One-time relayout: fold width taps + stride into block-banded weight matrices
# (numpy, host-side, once) and cast GEMM operands to bf16.
# -----------------------------------------------------------------------------
def _fold_conv(wt, w_in, stride):
    """wt: (Co, Ci, KH, KW) f32 -> Wfold: (KH, w_in*Ci, OW*Co) f32."""
    co, ci, kh, kw = wt.shape
    ow = (w_in - kw) // stride + 1
    wf = np.zeros((kh, w_in * ci, ow * co), np.float32)
    for h in range(kh):
        for o in range(ow):
            for k in range(kw):
                wcol = stride * o + k
                wf[h, wcol * ci:(wcol + 1) * ci, o * co:(o + 1) * co] = wt[:, :, h, k].T
    return wf


def prepare_params(params, input_hw):
    h, w = input_hw
    assert h % 4 == 0 and w % 4 == 0, "spatial dims must be multiples of 4"

    w1 = np.asarray(params["conv1_w"], np.float32)   # (32, C, 8, 8)
    b1 = np.asarray(params["conv1_b"], np.float32)
    w2 = np.asarray(params["conv2_w"], np.float32)   # (64, 32, 4, 4)
    b2 = np.asarray(params["conv2_b"], np.float32)
    w3 = np.asarray(params["conv3_w"], np.float32)   # (64, 64, 3, 3)
    b3 = np.asarray(params["conv3_b"], np.float32)
    fc1_w = np.asarray(params["fc1_w"], np.float32)  # (512, n_flatten)
    fc1_b = np.asarray(params["fc1_b"], np.float32)
    fc2_w = np.asarray(params["fc2_w"], np.float32)  # (A, 512)
    fc2_b = np.asarray(params["fc2_b"], np.float32)

    c_out1, c_in = w1.shape[0], w1.shape[1]
    c3 = w3.shape[0]
    hidden = fc1_w.shape[0]
    num_actions = fc2_w.shape[0]
    a_pad = _round_up(num_actions, 128)

    h_s2d, w_s2d = h // 4, w // 4                    # space-to-depth(4) spatial
    oh1, ow1 = h_s2d - 1, w_s2d - 1                  # conv1 output spatial
    oh2, ow2 = (oh1 - 4) // 2 + 1, (ow1 - 4) // 2 + 1
    oh3, ow3 = oh2 - 2, ow2 - 2
    assert oh1 >= 1 and oh2 >= 1 and oh3 >= 1, "input too small for the conv stack"

    # conv1 weight with the 4x4 space-to-depth folded into channels:
    # w1s[co, rh*4C + rw*C + c, bh, bw] = w1[co, c, 4*bh+rh, 4*bw+rw]
    w1s = np.zeros((c_out1, 16 * c_in, 2, 2), np.float32)
    for bh in range(2):
        for rh in range(4):
            for bw in range(2):
                for rw in range(4):
                    ch0 = (rh * 4 + rw) * c_in
                    w1s[:, ch0:ch0 + c_in, bh, bw] = w1[:, :, 4 * bh + rh, 4 * bw + rw]

    # fc1 columns are in PyTorch NCHW-flatten order (c, h, w); permute once to
    # the (h, w, c) order produced by the planar conv pipeline, grouped by h so
    # fc1 can be accumulated per conv3 output row inside the kernel.
    wfc1 = (fc1_w.reshape(hidden, c3, oh3, ow3)
            .transpose(2, 3, 1, 0)
            .reshape(oh3, ow3 * c3, hidden))

    prepared = {
        "w1f": jnp.asarray(_fold_conv(w1s, w_s2d, 1), jnp.bfloat16),
        "b1r": jnp.asarray(np.tile(b1, ow1)[None, :], jnp.float32),
        "w2f": jnp.asarray(_fold_conv(w2, ow1, 2), jnp.bfloat16),
        "b2r": jnp.asarray(np.tile(b2, ow2)[None, :], jnp.float32),
        "w3f": jnp.asarray(_fold_conv(w3, ow2, 1), jnp.bfloat16),
        "b3r": jnp.asarray(np.tile(b3, ow3)[None, :], jnp.float32),
        "wfc1": jnp.asarray(wfc1, jnp.bfloat16),
        "bfc1": jnp.asarray(fc1_b[None, :], jnp.float32),
        "wfc2": jnp.asarray(
            np.pad(fc2_w.T, ((0, 0), (0, a_pad - num_actions))), jnp.bfloat16),
        "bfc2": jnp.asarray(
            np.pad(fc2_b, (0, a_pad - num_actions))[None, :], jnp.float32),
        "dims": dict(c_in=c_in, h=h, w=w, h_s2d=h_s2d, w_s2d=w_s2d,
                     l1=w_s2d * 16 * c_in, oh1=oh1, kh1=2, oh2=oh2, kh2=4,
                     oh3=oh3, kh3=3, num_actions=num_actions, a_pad=a_pad),
    }
    return prepared


# -----------------------------------------------------------------------------
# Network forward: one fused pallas_call over batch tiles.
# -----------------------------------------------------------------------------
def network_forward(prepared, x):
    """x: (N, C, H, W) float32 NCHW (PyTorch convention). Returns (N, A) f32."""
    d = prepared["dims"]
    n, c, h, w = x.shape
    assert (c, h, w) == (d["c_in"], d["h"], d["w"])
    h1, l1, a_pad = d["h_s2d"], d["l1"], d["a_pad"]

    # f32 NCHW -> bf16 space-to-depth(4) planar layout (N, H/4, (W/4)*16*C).
    # This single cheap op replaces the old cast + NCHW->NHWC transpose AND all
    # im2col patch materialization; it turns conv1 into a k2/s1 conv.
    y = (x.astype(jnp.bfloat16)
         .reshape(n, c, h1, 4, d["w_s2d"], 4)
         .transpose(0, 2, 4, 3, 5, 1)
         .reshape(n, h1, l1))

    tb, g = _choose_batch_tile(n)
    npad = g * tb
    if npad != n:
        y = jnp.pad(y, ((0, npad - n), (0, 0), (0, 0)))

    kernel = functools.partial(
        _fused_forward_kernel,
        oh1=d["oh1"], kh1=d["kh1"], oh2=d["oh2"], kh2=d["kh2"],
        oh3=d["oh3"], kh3=d["kh3"])

    const3 = lambda i: (0, 0, 0)
    const2 = lambda i: (0, 0)

    out = pl.pallas_call(
        kernel,
        out_shape=jax.ShapeDtypeStruct((g, tb, a_pad), jnp.float32),
        grid=(g,),
        in_specs=[
            pl.BlockSpec((tb, h1, l1), lambda i: (i, 0, 0)),      # input tile
            pl.BlockSpec(prepared["w1f"].shape, const3),
            pl.BlockSpec(prepared["b1r"].shape, const2),
            pl.BlockSpec(prepared["w2f"].shape, const3),
            pl.BlockSpec(prepared["b2r"].shape, const2),
            pl.BlockSpec(prepared["w3f"].shape, const3),
            pl.BlockSpec(prepared["b3r"].shape, const2),
            pl.BlockSpec(prepared["wfc1"].shape, const3),
            pl.BlockSpec(prepared["bfc1"].shape, const2),
            pl.BlockSpec(prepared["wfc2"].shape, const2),
            pl.BlockSpec(prepared["bfc2"].shape, const2),
        ],
        out_specs=pl.BlockSpec((1, tb, a_pad), lambda i: (i, 0, 0)),
        compiler_params=pltpu.CompilerParams(
            dimension_semantics=("parallel",),
            vmem_limit_bytes=VMEM_LIMIT_BYTES,
        ),
    )(y, prepared["w1f"], prepared["b1r"], prepared["w2f"], prepared["b2r"],
      prepared["w3f"], prepared["b3r"], prepared["wfc1"], prepared["bfc1"],
      prepared["wfc2"], prepared["bfc2"])

    return out.reshape(npad, a_pad)[:n, :d["num_actions"]]


# -----------------------------------------------------------------------------
# Pure-JAX f32 reference (correctness / layout-assumption regression guard)
# -----------------------------------------------------------------------------
def network_forward_ref(params, x):
    def conv(x, w, b, stride):
        y = jax.lax.conv_general_dilated(
            x, w, window_strides=(stride, stride), padding="VALID",
            dimension_numbers=("NCHW", "OIHW", "NCHW"))
        return jax.nn.relu(y + b[None, :, None, None])

    h = conv(x, params["conv1_w"], params["conv1_b"], 4)
    h = conv(h, params["conv2_w"], params["conv2_b"], 2)
    h = conv(h, params["conv3_w"], params["conv3_b"], 1)
    h = h.reshape(x.shape[0], -1)
    h = jax.nn.relu(h @ params["fc1_w"].T + params["fc1_b"])
    return h @ params["fc2_w"].T + params["fc2_b"]


if __name__ == "__main__":
    # NCHW observations: 4 frames, 36x36 spatial (valid for the 8/4, 4/2, 3/1
    # conv stack -> 1x1 final spatial), 6 discrete actions.
    N, C, H, W = 2, 4, 36, 36
    NUM_ACTIONS = 6

    key = jax.random.PRNGKey(0)
    k_params, k_x = jax.random.split(key)
    params, n_flatten = init_params(k_params, C, H, W, NUM_ACTIONS)
    prepared = prepare_params(params, (H, W))
    x = jax.random.uniform(k_x, (N, C, H, W), jnp.float32)

    fwd = jax.jit(functools.partial(network_forward, prepared))
    q = jax.block_until_ready(fwd(x))

    q_ref = jax.block_until_ready(network_forward_ref(params, x))
    assert q.shape == (N, NUM_ACTIONS)
    # bf16 MXU inputs with f32 accumulation -> relaxed tolerance vs f32 reference.
    assert jnp.allclose(q, q_ref, rtol=2e-2, atol=2e-2), "mismatch vs reference"

    print("KERNEL_OK")
</pallas_src>

<mosaic_0001>
module attributes {stable_mosaic.version = 11 : i64} {
  func.func @_fused_forward_kernel(%arg0: i32, %arg1: memref<1x9x576xbf16, #tpu.memory_space<vmem>>, %arg2: memref<2x576x256xbf16, #tpu.memory_space<vmem>>, %arg3: memref<1x256xf32, #tpu.memory_space<vmem>>, %arg4: memref<4x256x192xbf16, #tpu.memory_space<vmem>>, %arg5: memref<1x192xf32, #tpu.memory_space<vmem>>, %arg6: memref<3x192x64xbf16, #tpu.memory_space<vmem>>, %arg7: memref<1x64xf32, #tpu.memory_space<vmem>>, %arg8: memref<1x64x512xbf16, #tpu.memory_space<vmem>>, %arg9: memref<1x512xf32, #tpu.memory_space<vmem>>, %arg10: memref<512x128xbf16, #tpu.memory_space<vmem>>, %arg11: memref<1x128xf32, #tpu.memory_space<vmem>>, %arg12: memref<1x1x128xf32, #tpu.memory_space<vmem>>) attributes {dimension_semantics = [#tpu.dimension_semantics<parallel>], iteration_bounds = array<i64: 2>, scalar_prefetch = 0 : i64, scratch_operands = 0 : i64, tpu.core_type = #tpu.core_type<tc>, window_params = [{transform_indices = @transform_0, window_bounds = array<i64: 1, 9, 576>}, {pipeline_mode = #tpu.pipeline_mode<synchronous>, transform_indices = @transform_1, window_bounds = array<i64: 2, 576, 256>}, {pipeline_mode = #tpu.pipeline_mode<synchronous>, transform_indices = @transform_2, window_bounds = array<i64: 1, 256>}, {pipeline_mode = #tpu.pipeline_mode<synchronous>, transform_indices = @transform_3, window_bounds = array<i64: 4, 256, 192>}, {pipeline_mode = #tpu.pipeline_mode<synchronous>, transform_indices = @transform_4, window_bounds = array<i64: 1, 192>}, {pipeline_mode = #tpu.pipeline_mode<synchronous>, transform_indices = @transform_5, window_bounds = array<i64: 3, 192, 64>}, {pipeline_mode = #tpu.pipeline_mode<synchronous>, transform_indices = @transform_6, window_bounds = array<i64: 1, 64>}, {pipeline_mode = #tpu.pipeline_mode<synchronous>, transform_indices = @transform_7, window_bounds = array<i64: 1, 64, 512>}, {pipeline_mode = #tpu.pipeline_mode<synchronous>, transform_indices = @transform_8, window_bounds = array<i64: 1, 512>}, {pipeline_mode = #tpu.pipeline_mode<synchronous>, transform_indices = @transform_9, window_bounds = array<i64: 512, 128>}, {pipeline_mode = #tpu.pipeline_mode<synchronous>, transform_indices = @transform_10, window_bounds = array<i64: 1, 128>}, {transform_indices = @transform_11, window_bounds = array<i64: 1, 1, 128>}]} {
    %c0 = arith.constant 0 : index
    %c0_0 = arith.constant 0 : index
    %c0_1 = arith.constant 0 : index
    %0 = vector.load %arg1[%c0, %c0_0, %c0_1] : memref<1x9x576xbf16, #tpu.memory_space<vmem>>, vector<1x1x576xbf16>
    %1 = vector.shape_cast %0 : vector<1x1x576xbf16> to vector<1x576xbf16>
    %c0_2 = arith.constant 0 : index
    %c1 = arith.constant 1 : index
    %c0_3 = arith.constant 0 : index
    %2 = vector.load %arg1[%c0_2, %c1, %c0_3] : memref<1x9x576xbf16, #tpu.memory_space<vmem>>, vector<1x1x576xbf16>
    %3 = vector.shape_cast %2 : vector<1x1x576xbf16> to vector<1x576xbf16>
    %c0_4 = arith.constant 0 : index
    %c2 = arith.constant 2 : index
    %c0_5 = arith.constant 0 : index
    %4 = vector.load %arg1[%c0_4, %c2, %c0_5] : memref<1x9x576xbf16, #tpu.memory_space<vmem>>, vector<1x1x576xbf16>
    %5 = vector.shape_cast %4 : vector<1x1x576xbf16> to vector<1x576xbf16>
    %c0_6 = arith.constant 0 : index
    %c3 = arith.constant 3 : index
    %c0_7 = arith.constant 0 : index
    %6 = vector.load %arg1[%c0_6, %c3, %c0_7] : memref<1x9x576xbf16, #tpu.memory_space<vmem>>, vector<1x1x576xbf16>
    %7 = vector.shape_cast %6 : vector<1x1x576xbf16> to vector<1x576xbf16>
    %c0_8 = arith.constant 0 : index
    %c4 = arith.constant 4 : index
    %c0_9 = arith.constant 0 : index
    %8 = vector.load %arg1[%c0_8, %c4, %c0_9] : memref<1x9x576xbf16, #tpu.memory_space<vmem>>, vector<1x1x576xbf16>
    %9 = vector.shape_cast %8 : vector<1x1x576xbf16> to vector<1x576xbf16>
    %c0_10 = arith.constant 0 : index
    %c5 = arith.constant 5 : index
    %c0_11 = arith.constant 0 : index
    %10 = vector.load %arg1[%c0_10, %c5, %c0_11] : memref<1x9x576xbf16, #tpu.memory_space<vmem>>, vector<1x1x576xbf16>
    %11 = vector.shape_cast %10 : vector<1x1x576xbf16> to vector<1x576xbf16>
    %c0_12 = arith.constant 0 : index
    %c6 = arith.constant 6 : index
    %c0_13 = arith.constant 0 : index
    %12 = vector.load %arg1[%c0_12, %c6, %c0_13] : memref<1x9x576xbf16, #tpu.memory_space<vmem>>, vector<1x1x576xbf16>
    %13 = vector.shape_cast %12 : vector<1x1x576xbf16> to vector<1x576xbf16>
    %c0_14 = arith.constant 0 : index
    %c7 = arith.constant 7 : index
    %c0_15 = arith.constant 0 : index
    %14 = vector.load %arg1[%c0_14, %c7, %c0_15] : memref<1x9x576xbf16, #tpu.memory_space<vmem>>, vector<1x1x576xbf16>
    %15 = vector.shape_cast %14 : vector<1x1x576xbf16> to vector<1x576xbf16>
    %c0_16 = arith.constant 0 : index
    %c8 = arith.constant 8 : index
    %c0_17 = arith.constant 0 : index
    %16 = vector.load %arg1[%c0_16, %c8, %c0_17] : memref<1x9x576xbf16, #tpu.memory_space<vmem>>, vector<1x1x576xbf16>
    %17 = vector.shape_cast %16 : vector<1x1x576xbf16> to vector<1x576xbf16>
    %c0_18 = arith.constant 0 : index
    %c0_19 = arith.constant 0 : index
    %c0_20 = arith.constant 0 : index
    %18 = vector.load %arg2[%c0_18, %c0_19, %c0_20] : memref<2x576x256xbf16, #tpu.memory_space<vmem>>, vector<1x576x256xbf16>
    %19 = vector.shape_cast %18 : vector<1x576x256xbf16> to vector<576x256xbf16>
    %c1_21 = arith.constant 1 : index
    %c0_22 = arith.constant 0 : index
    %c0_23 = arith.constant 0 : index
    %20 = vector.load %arg2[%c1_21, %c0_22, %c0_23] : memref<2x576x256xbf16, #tpu.memory_space<vmem>>, vector<1x576x256xbf16>
    %21 = vector.shape_cast %20 : vector<1x576x256xbf16> to vector<576x256xbf16>
    %c0_24 = arith.constant 0 : index
    %c0_25 = arith.constant 0 : index
    %22 = vector.load %arg3[%c0_24, %c0_25] : memref<1x256xf32, #tpu.memory_space<vmem>>, vector<1x256xf32>
    %cst = arith.constant dense<0.000000e+00> : vector<1x256xf32>
    %23 = tpu.matmul %1, %19, %cst {dimension_numbers = #tpu.dot_dimension_numbers<[1], [0], [0], [1], [0, 0, 1, 1], [], []>} : vector<1x576xbf16>, vector<576x256xbf16>, vector<1x256xf32> -> vector<1x256xf32>
    %cst_26 = arith.constant dense<0.000000e+00> : vector<1x256xf32>
    %24 = tpu.matmul %3, %21, %cst_26 {dimension_numbers = #tpu.dot_dimension_numbers<[1], [0], [0], [1], [0, 0, 1, 1], [], []>} : vector<1x576xbf16>, vector<576x256xbf16>, vector<1x256xf32> -> vector<1x256xf32>
    %25 = arith.addf %23, %24 : vector<1x256xf32>
    %26 = arith.addf %25, %22 : vector<1x256xf32>
    %cst_27 = arith.constant 0.000000e+00 : f32
    %27 = vector.broadcast %cst_27 : f32 to vector<1x256xf32>
    %28 = arith.maximumf %26, %27 : vector<1x256xf32>
    %29 = arith.truncf %28 : vector<1x256xf32> to vector<1x256xbf16>
    %cst_28 = arith.constant dense<0.000000e+00> : vector<1x256xf32>
    %30 = tpu.matmul %3, %19, %cst_28 {dimension_numbers = #tpu.dot_dimension_numbers<[1], [0], [0], [1], [0, 0, 1, 1], [], []>} : vector<1x576xbf16>, vector<576x256xbf16>, vector<1x256xf32> -> vector<1x256xf32>
    %cst_29 = arith.constant dense<0.000000e+00> : vector<1x256xf32>
    %31 = tpu.matmul %5, %21, %cst_29 {dimension_numbers = #tpu.dot_dimension_numbers<[1], [0], [0], [1], [0, 0, 1, 1], [], []>} : vector<1x576xbf16>, vector<576x256xbf16>, vector<1x256xf32> -> vector<1x256xf32>
    %32 = arith.addf %30, %31 : vector<1x256xf32>
    %33 = arith.addf %32, %22 : vector<1x256xf32>
    %cst_30 = arith.constant 0.000000e+00 : f32
    %34 = vector.broadcast %cst_30 : f32 to vector<1x256xf32>
    %35 = arith.maximumf %33, %34 : vector<1x256xf32>
    %36 = arith.truncf %35 : vector<1x256xf32> to vector<1x256xbf16>
    %cst_31 = arith.constant dense<0.000000e+00> : vector<1x256xf32>
    %37 = tpu.matmul %5, %19, %cst_31 {dimension_numbers = #tpu.dot_dimension_numbers<[1], [0], [0], [1], [0, 0, 1, 1], [], []>} : vector<1x576xbf16>, vector<576x256xbf16>, vector<1x256xf32> -> vector<1x256xf32>
    %cst_32 = arith.constant dense<0.000000e+00> : vector<1x256xf32>
    %38 = tpu.matmul %7, %21, %cst_32 {dimension_numbers = #tpu.dot_dimension_numbers<[1], [0], [0], [1], [0, 0, 1, 1], [], []>} : vector<1x576xbf16>, vector<576x256xbf16>, vector<1x256xf32> -> vector<1x256xf32>
    %39 = arith.addf %37, %38 : vector<1x256xf32>
    %40 = arith.addf %39, %22 : vector<1x256xf32>
    %cst_33 = arith.constant 0.000000e+00 : f32
    %41 = vector.broadcast %cst_33 : f32 to vector<1x256xf32>
    %42 = arith.maximumf %40, %41 : vector<1x256xf32>
    %43 = arith.truncf %42 : vector<1x256xf32> to vector<1x256xbf16>
    %cst_34 = arith.constant dense<0.000000e+00> : vector<1x256xf32>
    %44 = tpu.matmul %7, %19, %cst_34 {dimension_numbers = #tpu.dot_dimension_numbers<[1], [0], [0], [1], [0, 0, 1, 1], [], []>} : vector<1x576xbf16>, vector<576x256xbf16>, vector<1x256xf32> -> vector<1x256xf32>
    %cst_35 = arith.constant dense<0.000000e+00> : vector<1x256xf32>
    %45 = tpu.matmul %9, %21, %cst_35 {dimension_numbers = #tpu.dot_dimension_numbers<[1], [0], [0], [1], [0, 0, 1, 1], [], []>} : vector<1x576xbf16>, vector<576x256xbf16>, vector<1x256xf32> -> vector<1x256xf32>
    %46 = arith.addf %44, %45 : vector<1x256xf32>
    %47 = arith.addf %46, %22 : vector<1x256xf32>
    %cst_36 = arith.constant 0.000000e+00 : f32
    %48 = vector.broadcast %cst_36 : f32 to vector<1x256xf32>
    %49 = arith.maximumf %47, %48 : vector<1x256xf32>
    %50 = arith.truncf %49 : vector<1x256xf32> to vector<1x256xbf16>
    %cst_37 = arith.constant dense<0.000000e+00> : vector<1x256xf32>
    %51 = tpu.matmul %9, %19, %cst_37 {dimension_numbers = #tpu.dot_dimension_numbers<[1], [0], [0], [1], [0, 0, 1, 1], [], []>} : vector<1x576xbf16>, vector<576x256xbf16>, vector<1x256xf32> -> vector<1x256xf32>
    %cst_38 = arith.constant dense<0.000000e+00> : vector<1x256xf32>
    %52 = tpu.matmul %11, %21, %cst_38 {dimension_numbers = #tpu.dot_dimension_numbers<[1], [0], [0], [1], [0, 0, 1, 1], [], []>} : vector<1x576xbf16>, vector<576x256xbf16>, vector<1x256xf32> -> vector<1x256xf32>
    %53 = arith.addf %51, %52 : vector<1x256xf32>
    %54 = arith.addf %53, %22 : vector<1x256xf32>
    %cst_39 = arith.constant 0.000000e+00 : f32
    %55 = vector.broadcast %cst_39 : f32 to vector<1x256xf32>
    %56 = arith.maximumf %54, %55 : vector<1x256xf32>
    %57 = arith.truncf %56 : vector<1x256xf32> to vector<1x256xbf16>
    %cst_40 = arith.constant dense<0.000000e+00> : vector<1x256xf32>
    %58 = tpu.matmul %11, %19, %cst_40 {dimension_numbers = #tpu.dot_dimension_numbers<[1], [0], [0], [1], [0, 0, 1, 1], [], []>} : vector<1x576xbf16>, vector<576x256xbf16>, vector<1x256xf32> -> vector<1x256xf32>
    %cst_41 = arith.constant dense<0.000000e+00> : vector<1x256xf32>
    %59 = tpu.matmul %13, %21, %cst_41 {dimension_numbers = #tpu.dot_dimension_numbers<[1], [0], [0], [1], [0, 0, 1, 1], [], []>} : vector<1x576xbf16>, vector<576x256xbf16>, vector<1x256xf32> -> vector<1x256xf32>
    %60 = arith.addf %58, %59 : vector<1x256xf32>
    %61 = arith.addf %60, %22 : vector<1x256xf32>
    %cst_42 = arith.constant 0.000000e+00 : f32
    %62 = vector.broadcast %cst_42 : f32 to vector<1x256xf32>
    %63 = arith.maximumf %61, %62 : vector<1x256xf32>
    %64 = arith.truncf %63 : vector<1x256xf32> to vector<1x256xbf16>
    %cst_43 = arith.constant dense<0.000000e+00> : vector<1x256xf32>
    %65 = tpu.matmul %13, %19, %cst_43 {dimension_numbers = #tpu.dot_dimension_numbers<[1], [0], [0], [1], [0, 0, 1, 1], [], []>} : vector<1x576xbf16>, vector<576x256xbf16>, vector<1x256xf32> -> vector<1x256xf32>
    %cst_44 = arith.constant dense<0.000000e+00> : vector<1x256xf32>
    %66 = tpu.matmul %15, %21, %cst_44 {dimension_numbers = #tpu.dot_dimension_numbers<[1], [0], [0], [1], [0, 0, 1, 1], [], []>} : vector<1x576xbf16>, vector<576x256xbf16>, vector<1x256xf32> -> vector<1x256xf32>
    %67 = arith.addf %65, %66 : vector<1x256xf32>
    %68 = arith.addf %67, %22 : vector<1x256xf32>
    %cst_45 = arith.constant 0.000000e+00 : f32
    %69 = vector.broadcast %cst_45 : f32 to vector<1x256xf32>
    %70 = arith.maximumf %68, %69 : vector<1x256xf32>
    %71 = arith.truncf %70 : vector<1x256xf32> to vector<1x256xbf16>
    %cst_46 = arith.constant dense<0.000000e+00> : vector<1x256xf32>
    %72 = tpu.matmul %15, %19, %cst_46 {dimension_numbers = #tpu.dot_dimension_numbers<[1], [0], [0], [1], [0, 0, 1, 1], [], []>} : vector<1x576xbf16>, vector<576x256xbf16>, vector<1x256xf32> -> vector<1x256xf32>
    %cst_47 = arith.constant dense<0.000000e+00> : vector<1x256xf32>
    %73 = tpu.matmul %17, %21, %cst_47 {dimension_numbers = #tpu.dot_dimension_numbers<[1], [0], [0], [1], [0, 0, 1, 1], [], []>} : vector<1x576xbf16>, vector<576x256xbf16>, vector<1x256xf32> -> vector<1x256xf32>
    %74 = arith.addf %72, %73 : vector<1x256xf32>
    %75 = arith.addf %74, %22 : vector<1x256xf32>
    %cst_48 = arith.constant 0.000000e+00 : f32
    %76 = vector.broadcast %cst_48 : f32 to vector<1x256xf32>
    %77 = arith.maximumf %75, %76 : vector<1x256xf32>
    %78 = arith.truncf %77 : vector<1x256xf32> to vector<1x256xbf16>
    %c0_49 = arith.constant 0 : index
    %c0_50 = arith.constant 0 : index
    %c0_51 = arith.constant 0 : index
    %79 = vector.load %arg4[%c0_49, %c0_50, %c0_51] : memref<4x256x192xbf16, #tpu.memory_space<vmem>>, vector<1x256x192xbf16>
    %80 = vector.shape_cast %79 : vector<1x256x192xbf16> to vector<256x192xbf16>
    %c1_52 = arith.constant 1 : index
    %c0_53 = arith.constant 0 : index
    %c0_54 = arith.constant 0 : index
    %81 = vector.load %arg4[%c1_52, %c0_53, %c0_54] : memref<4x256x192xbf16, #tpu.memory_space<vmem>>, vector<1x256x192xbf16>
    %82 = vector.shape_cast %81 : vector<1x256x192xbf16> to vector<256x192xbf16>
    %c2_55 = arith.constant 2 : index
    %c0_56 = arith.constant 0 : index
    %c0_57 = arith.constant 0 : index
    %83 = vector.load %arg4[%c2_55, %c0_56, %c0_57] : memref<4x256x192xbf16, #tpu.memory_space<vmem>>, vector<1x256x192xbf16>
    %84 = vector.shape_cast %83 : vector<1x256x192xbf16> to vector<256x192xbf16>
    %c3_58 = arith.constant 3 : index
    %c0_59 = arith.constant 0 : index
    %c0_60 = arith.constant 0 : index
    %85 = vector.load %arg4[%c3_58, %c0_59, %c0_60] : memref<4x256x192xbf16, #tpu.memory_space<vmem>>, vector<1x256x192xbf16>
    %86 = vector.shape_cast %85 : vector<1x256x192xbf16> to vector<256x192xbf16>
    %c0_61 = arith.constant 0 : index
    %c0_62 = arith.constant 0 : index
    %87 = vector.load %arg5[%c0_61, %c0_62] : memref<1x192xf32, #tpu.memory_space<vmem>>, vector<1x192xf32>
    %cst_63 = arith.constant dense<0.000000e+00> : vector<1x192xf32>
    %88 = tpu.matmul %29, %80, %cst_63 {dimension_numbers = #tpu.dot_dimension_numbers<[1], [0], [0], [1], [0, 0, 1, 1], [], []>} : vector<1x256xbf16>, vector<256x192xbf16>, vector<1x192xf32> -> vector<1x192xf32>
    %cst_64 = arith.constant dense<0.000000e+00> : vector<1x192xf32>
    %89 = tpu.matmul %36, %82, %cst_64 {dimension_numbers = #tpu.dot_dimension_numbers<[1], [0], [0], [1], [0, 0, 1, 1], [], []>} : vector<1x256xbf16>, vector<256x192xbf16>, vector<1x192xf32> -> vector<1x192xf32>
    %90 = arith.addf %88, %89 : vector<1x192xf32>
    %cst_65 = arith.constant dense<0.000000e+00> : vector<1x192xf32>
    %91 = tpu.matmul %43, %84, %cst_65 {dimension_numbers = #tpu.dot_dimension_numbers<[1], [0], [0], [1], [0, 0, 1, 1], [], []>} : vector<1x256xbf16>, vector<256x192xbf16>, vector<1x192xf32> -> vector<1x192xf32>
    %92 = arith.addf %90, %91 : vector<1x192xf32>
    %cst_66 = arith.constant dense<0.000000e+00> : vector<1x192xf32>
    %93 = tpu.matmul %50, %86, %cst_66 {dimension_numbers = #tpu.dot_dimension_numbers<[1], [0], [0], [1], [0, 0, 1, 1], [], []>} : vector<1x256xbf16>, vector<256x192xbf16>, vector<1x192xf32> -> vector<1x192xf32>
    %94 = arith.addf %92, %93 : vector<1x192xf32>
    %95 = arith.addf %94, %87 : vector<1x192xf32>
    %cst_67 = arith.constant 0.000000e+00 : f32
    %96 = vector.broadcast %cst_67 : f32 to vector<1x192xf32>
    %97 = arith.maximumf %95, %96 : vector<1x192xf32>
    %98 = arith.truncf %97 : vector<1x192xf32> to vector<1x192xbf16>
    %cst_68 = arith.constant dense<0.000000e+00> : vector<1x192xf32>
    %99 = tpu.matmul %43, %80, %cst_68 {dimension_numbers = #tpu.dot_dimension_numbers<[1], [0], [0], [1], [0, 0, 1, 1], [], []>} : vector<1x256xbf16>, vector<256x192xbf16>, vector<1x192xf32> -> vector<1x192xf32>
    %cst_69 = arith.constant dense<0.000000e+00> : vector<1x192xf32>
    %100 = tpu.matmul %50, %82, %cst_69 {dimension_numbers = #tpu.dot_dimension_numbers<[1], [0], [0], [1], [0, 0, 1, 1], [], []>} : vector<1x256xbf16>, vector<256x192xbf16>, vector<1x192xf32> -> vector<1x192xf32>
    %101 = arith.addf %99, %100 : vector<1x192xf32>
    %cst_70 = arith.constant dense<0.000000e+00> : vector<1x192xf32>
    %102 = tpu.matmul %57, %84, %cst_70 {dimension_numbers = #tpu.dot_dimension_numbers<[1], [0], [0], [1], [0, 0, 1, 1], [], []>} : vector<1x256xbf16>, vector<256x192xbf16>, vector<1x192xf32> -> vector<1x192xf32>
    %103 = arith.addf %101, %102 : vector<1x192xf32>
    %cst_71 = arith.constant dense<0.000000e+00> : vector<1x192xf32>
    %104 = tpu.matmul %64, %86, %cst_71 {dimension_numbers = #tpu.dot_dimension_numbers<[1], [0], [0], [1], [0, 0, 1, 1], [], []>} : vector<1x256xbf16>, vector<256x192xbf16>, vector<1x192xf32> -> vector<1x192xf32>
    %105 = arith.addf %103, %104 : vector<1x192xf32>
    %106 = arith.addf %105, %87 : vector<1x192xf32>
    %cst_72 = arith.constant 0.000000e+00 : f32
    %107 = vector.broadcast %cst_72 : f32 to vector<1x192xf32>
    %108 = arith.maximumf %106, %107 : vector<1x192xf32>
    %109 = arith.truncf %108 : vector<1x192xf32> to vector<1x192xbf16>
    %cst_73 = arith.constant dense<0.000000e+00> : vector<1x192xf32>
    %110 = tpu.matmul %57, %80, %cst_73 {dimension_numbers = #tpu.dot_dimension_numbers<[1], [0], [0], [1], [0, 0, 1, 1], [], []>} : vector<1x256xbf16>, vector<256x192xbf16>, vector<1x192xf32> -> vector<1x192xf32>
    %cst_74 = arith.constant dense<0.000000e+00> : vector<1x192xf32>
    %111 = tpu.matmul %64, %82, %cst_74 {dimension_numbers = #tpu.dot_dimension_numbers<[1], [0], [0], [1], [0, 0, 1, 1], [], []>} : vector<1x256xbf16>, vector<256x192xbf16>, vector<1x192xf32> -> vector<1x192xf32>
    %112 = arith.addf %110, %111 : vector<1x192xf32>
    %cst_75 = arith.constant dense<0.000000e+00> : vector<1x192xf32>
    %113 = tpu.matmul %71, %84, %cst_75 {dimension_numbers = #tpu.dot_dimension_numbers<[1], [0], [0], [1], [0, 0, 1, 1], [], []>} : vector<1x256xbf16>, vector<256x192xbf16>, vector<1x192xf32> -> vector<1x192xf32>
    %114 = arith.addf %112, %113 : vector<1x192xf32>
    %cst_76 = arith.constant dense<0.000000e+00> : vector<1x192xf32>
    %115 = tpu.matmul %78, %86, %cst_76 {dimension_numbers = #tpu.dot_dimension_numbers<[1], [0], [0], [1], [0, 0, 1, 1], [], []>} : vector<1x256xbf16>, vector<256x192xbf16>, vector<1x192xf32> -> vector<1x192xf32>
    %116 = arith.addf %114, %115 : vector<1x192xf32>
    %117 = arith.addf %116, %87 : vector<1x192xf32>
    %cst_77 = arith.constant 0.000000e+00 : f32
    %118 = vector.broadcast %cst_77 : f32 to vector<1x192xf32>
    %119 = arith.maximumf %117, %118 : vector<1x192xf32>
    %120 = arith.truncf %119 : vector<1x192xf32> to vector<1x192xbf16>
    %c0_78 = arith.constant 0 : index
    %c0_79 = arith.constant 0 : index
    %c0_80 = arith.constant 0 : index
    %121 = vector.load %arg6[%c0_78, %c0_79, %c0_80] : memref<3x192x64xbf16, #tpu.memory_space<vmem>>, vector<1x192x64xbf16>
    %122 = vector.shape_cast %121 : vector<1x192x64xbf16> to vector<192x64xbf16>
    %c1_81 = arith.constant 1 : index
    %c0_82 = arith.constant 0 : index
    %c0_83 = arith.constant 0 : index
    %123 = vector.load %arg6[%c1_81, %c0_82, %c0_83] : memref<3x192x64xbf16, #tpu.memory_space<vmem>>, vector<1x192x64xbf16>
    %124 = vector.shape_cast %123 : vector<1x192x64xbf16> to vector<192x64xbf16>
    %c2_84 = arith.constant 2 : index
    %c0_85 = arith.constant 0 : index
    %c0_86 = arith.constant 0 : index
    %125 = vector.load %arg6[%c2_84, %c0_85, %c0_86] : memref<3x192x64xbf16, #tpu.memory_space<vmem>>, vector<1x192x64xbf16>
    %126 = vector.shape_cast %125 : vector<1x192x64xbf16> to vector<192x64xbf16>
    %c0_87 = arith.constant 0 : index
    %c0_88 = arith.constant 0 : index
    %127 = vector.load %arg7[%c0_87, %c0_88] : memref<1x64xf32, #tpu.memory_space<vmem>>, vector<1x64xf32>
    %c0_89 = arith.constant 0 : index
    %c0_90 = arith.constant 0 : index
    %128 = vector.load %arg9[%c0_89, %c0_90] : memref<1x512xf32, #tpu.memory_space<vmem>>, vector<1x512xf32>
    %cst_91 = arith.constant dense<0.000000e+00> : vector<1x64xf32>
    %129 = tpu.matmul %98, %122, %cst_91 {dimension_numbers = #tpu.dot_dimension_numbers<[1], [0], [0], [1], [0, 0, 1, 1], [], []>} : vector<1x192xbf16>, vector<192x64xbf16>, vector<1x64xf32> -> vector<1x64xf32>
    %cst_92 = arith.constant dense<0.000000e+00> : vector<1x64xf32>
    %130 = tpu.matmul %109, %124, %cst_92 {dimension_numbers = #tpu.dot_dimension_numbers<[1], [0], [0], [1], [0, 0, 1, 1], [], []>} : vector<1x192xbf16>, vector<192x64xbf16>, vector<1x64xf32> -> vector<1x64xf32>
    %131 = arith.addf %129, %130 : vector<1x64xf32>
    %cst_93 = arith.constant dense<0.000000e+00> : vector<1x64xf32>
    %132 = tpu.matmul %120, %126, %cst_93 {dimension_numbers = #tpu.dot_dimension_numbers<[1], [0], [0], [1], [0, 0, 1, 1], [], []>} : vector<1x192xbf16>, vector<192x64xbf16>, vector<1x64xf32> -> vector<1x64xf32>
    %133 = arith.addf %131, %132 : vector<1x64xf32>
    %134 = arith.addf %133, %127 : vector<1x64xf32>
    %cst_94 = arith.constant 0.000000e+00 : f32
    %135 = vector.broadcast %cst_94 : f32 to vector<1x64xf32>
    %136 = arith.maximumf %134, %135 : vector<1x64xf32>
    %137 = arith.truncf %136 : vector<1x64xf32> to vector<1x64xbf16>
    %c0_95 = arith.constant 0 : index
    %c0_96 = arith.constant 0 : index
    %c0_97 = arith.constant 0 : index
    %138 = vector.load %arg8[%c0_95, %c0_96, %c0_97] : memref<1x64x512xbf16, #tpu.memory_space<vmem>>, vector<1x64x512xbf16>
    %139 = vector.shape_cast %138 : vector<1x64x512xbf16> to vector<64x512xbf16>
    %cst_98 = arith.constant dense<0.000000e+00> : vector<1x512xf32>
    %140 = tpu.matmul %137, %139, %cst_98 {dimension_numbers = #tpu.dot_dimension_numbers<[1], [0], [0], [1], [0, 0, 1, 1], [], []>} : vector<1x64xbf16>, vector<64x512xbf16>, vector<1x512xf32> -> vector<1x512xf32>
    %141 = arith.addf %128, %140 : vector<1x512xf32>
    %cst_99 = arith.constant 0.000000e+00 : f32
    %142 = vector.broadcast %cst_99 : f32 to vector<1x512xf32>
    %143 = arith.maximumf %141, %142 : vector<1x512xf32>
    %144 = arith.truncf %143 : vector<1x512xf32> to vector<1x512xbf16>
    %c0_100 = arith.constant 0 : index
    %c0_101 = arith.constant 0 : index
    %145 = vector.load %arg10[%c0_100, %c0_101] : memref<512x128xbf16, #tpu.memory_space<vmem>>, vector<512x128xbf16>
    %cst_102 = arith.constant dense<0.000000e+00> : vector<1x128xf32>
    %146 = tpu.matmul %144, %145, %cst_102 {dimension_numbers = #tpu.dot_dimension_numbers<[1], [0], [0], [1], [0, 0, 1, 1], [], []>} : vector<1x512xbf16>, vector<512x128xbf16>, vector<1x128xf32> -> vector<1x128xf32>
    %c0_103 = arith.constant 0 : index
    %c0_104 = arith.constant 0 : index
    %147 = vector.load %arg11[%c0_103, %c0_104] : memref<1x128xf32, #tpu.memory_space<vmem>>, vector<1x128xf32>
    %148 = arith.addf %146, %147 : vector<1x128xf32>
    %c0_105 = arith.constant 0 : index
    %c0_106 = arith.constant 0 : index
    %c0_107 = arith.constant 0 : index
    %149 = vector.load %arg12[%c0_105, %c0_106, %c0_107] : memref<1x1x128xf32, #tpu.memory_space<vmem>>, vector<1x1x128xf32>
    %150 = vector.shape_cast %149 : vector<1x1x128xf32> to vector<1x128xf32>
    %151 = vector.shape_cast %148 : vector<1x128xf32> to vector<1x1x128xf32>
    tpu.vector_store %arg12[%c0_105, %c0_106, %c0_107], %151 {strides = array<i32>} : memref<1x1x128xf32, #tpu.memory_space<vmem>>, vector<1x1x128xf32>,
    return
  }
  func.func @transform_0(%arg0: i32) -> (i32, i32, i32) {
    %c0_i32 = arith.constant 0 : i32
    %c0_i32_0 = arith.constant 0 : i32
    %c0_i32_1 = arith.constant 0 : i32
    return %arg0, %c0_i32, %c0_i32_0 : i32, i32, i32
  }
  func.func @transform_1(%arg0: i32) -> (i32, i32, i32) {
    %c0_i32 = arith.constant 0 : i32
    %c0_i32_0 = arith.constant 0 : i32
    %c0_i32_1 = arith.constant 0 : i32
    %c0_i32_2 = arith.constant 0 : i32
    return %c0_i32, %c0_i32_0, %c0_i32_1 : i32, i32, i32
  }
  func.func @transform_2(%arg0: i32) -> (i32, i32) {
    %c0_i32 = arith.constant 0 : i32
    %c0_i32_0 = arith.constant 0 : i32
    %c0_i32_1 = arith.constant 0 : i32
    return %c0_i32, %c0_i32_0 : i32, i32
  }
  func.func @transform_3(%arg0: i32) -> (i32, i32, i32) {
    %c0_i32 = arith.constant 0 : i32
    %c0_i32_0 = arith.constant 0 : i32
    %c0_i32_1 = arith.constant 0 : i32
    %c0_i32_2 = arith.constant 0 : i32
    return %c0_i32, %c0_i32_0, %c0_i32_1 : i32, i32, i32
  }
  func.func @transform_4(%arg0: i32) -> (i32, i32) {
    %c0_i32 = arith.constant 0 : i32
    %c0_i32_0 = arith.constant 0 : i32
    %c0_i32_1 = arith.constant 0 : i32
    return %c0_i32, %c0_i32_0 : i32, i32
  }
  func.func @transform_5(%arg0: i32) -> (i32, i32, i32) {
    %c0_i32 = arith.constant 0 : i32
    %c0_i32_0 = arith.constant 0 : i32
    %c0_i32_1 = arith.constant 0 : i32
    %c0_i32_2 = arith.constant 0 : i32
    return %c0_i32, %c0_i32_0, %c0_i32_1 : i32, i32, i32
  }
  func.func @transform_6(%arg0: i32) -> (i32, i32) {
    %c0_i32 = arith.constant 0 : i32
    %c0_i32_0 = arith.constant 0 : i32
    %c0_i32_1 = arith.constant 0 : i32
    return %c0_i32, %c0_i32_0 : i32, i32
  }
  func.func @transform_7(%arg0: i32) -> (i32, i32, i32) {
    %c0_i32 = arith.constant 0 : i32
    %c0_i32_0 = arith.constant 0 : i32
    %c0_i32_1 = arith.constant 0 : i32
    %c0_i32_2 = arith.constant 0 : i32
    return %c0_i32, %c0_i32_0, %c0_i32_1 : i32, i32, i32
  }
  func.func @transform_8(%arg0: i32) -> (i32, i32) {
    %c0_i32 = arith.constant 0 : i32
    %c0_i32_0 = arith.constant 0 : i32
    %c0_i32_1 = arith.constant 0 : i32
    return %c0_i32, %c0_i32_0 : i32, i32
  }
  func.func @transform_9(%arg0: i32) -> (i32, i32) {
    %c0_i32 = arith.constant 0 : i32
    %c0_i32_0 = arith.constant 0 : i32
    %c0_i32_1 = arith.constant 0 : i32
    return %c0_i32, %c0_i32_0 : i32, i32
  }
  func.func @transform_10(%arg0: i32) -> (i32, i32) {
    %c0_i32 = arith.constant 0 : i32
    %c0_i32_0 = arith.constant 0 : i32
    %c0_i32_1 = arith.constant 0 : i32
    return %c0_i32, %c0_i32_0 : i32, i32
  }
  func.func @transform_11(%arg0: i32) -> (i32, i32, i32) {
    %c0_i32 = arith.constant 0 : i32
    %c0_i32_0 = arith.constant 0 : i32
    %c0_i32_1 = arith.constant 0 : i32
    return %arg0, %c0_i32, %c0_i32_0 : i32, i32, i32
  }
}

</mosaic_0001>

<bundles_post_ra>
// kernel: network_forward.1
= control target key start
LH: loop header
LB: loop body
LE: loop exit
PB: predicated region body
PF: predicated region fallthrough
CT: control target
= control target key end

     0   :  { %16 = vsyncpa [#allocation3], 0  ;;  %s12779_s0 = inlined_call_operand.vmem [shape: bf16[2,9,576], index: 0, kind: input, shape index: {}]   ;;  %s12780_s1 = inlined_call_operand.vmem [shape: bf16[2,576,256], index: 1, kind: input, shape index: {}]   ;;  %s12781_s2 = inlined_call_operand.vmem [shape: f32[1,256], index: 2, kind: input, shape index: {}]   ;;  %s12782_s3 = inlined_call_operand.vmem [shape: bf16[4,256,192], index: 3, kind: input, shape index: {}]   ;;  %s12783_s4 = inlined_call_operand.vmem [shape: f32[1,192], index: 4, kind: input, shape index: {}]   ;;  %s12784_s5 = inlined_call_operand.vmem [shape: bf16[3,192,64], index: 5, kind: input, shape index: {}]   ;;  %s12785_s6 = inlined_call_operand.vmem [shape: f32[1,64], index: 6, kind: input, shape index: {}]   ;;  %s12786_s7 = inlined_call_operand.vmem [shape: bf16[1,64,512], index: 7, kind: input, shape index: {}]   ;;  %s12787_s8 = inlined_call_operand.vmem [shape: f32[1,512], index: 8, kind: input, shape index: {}]   ;;  %s12788_s9 = inlined_call_operand.vmem [shape: bf16[512,128], index: 9, kind: input, shape index: {}]   ;;  %s12789_s10 = inlined_call_operand.vmem [shape: f32[1,128], index: 10, kind: input, shape index: {}]   ;;  %s12790_s11 = inlined_call_operand.hbm [shape: f32[2,1,128], index: 11, kind: output, shape index: {}]  }
   0x1   :  { %18 = vsyncpa [#allocation3 + $0x1], 0  ;;  %s7633_s17 = smov 0   ;;  %s7635_s18 = smov 0  }
   0x2   :  { %s7637_s19 = smov 0   ;;  %s7639_s20 = smov 0  }
   0x3 LB: > { %13543 = sst [smem:[#allocation5_spill]] %s7564_s19  ;;  %s7654_s21 = sadd.s32 4294967295, %s7568_s20   ;;  %s7568_s20 = sphi %s7639_s20, %s14527_s20   ;;  %s7564_s19 = sphi %s7637_s19, %s14524_s19   ;;  %s7560_s18 = sphi %s7635_s18, %s14526_s18   ;;  %s7556_s17 = sphi %s7633_s17, %s14525_s17  }
   0x4   : > { %s5884_s22 = sadd.s32 4294967294, %s7568_s20   ;;  %s7658_s23 = sadd.s32 1, %s7568_s20  }
   0x5   : > { %s267_s24 = sadd.s32 1, %s7564_s19  ;;  %s264_s25 = ssub.s32 %s7568_s20, %s7658_s23 }
   0x6   : > { %p277_p0 = scmp.ne.s32.totalorder %s7564_s19, %s7560_s18  ;;  %p265_p1 = scmp.eq.s32.totalorder %s264_s25, 0 }
   0x7   : > { %p278_p2 = scmp.eq.s32.totalorder %s7654_s21, 1  ;;  %p283_p3 = scmp.ne.s32.totalorder %s7560_s18, %s7556_s17 }
   0x8   : > { %p284_p4 = scmp.eq.s32.totalorder %s5884_s22, 1  ;;  %p5887_p7 = scmp.ge.s32.totalorder %s7568_s20, 1 }
   0x9   : > { %s7669_s26 = scalar_select %p265_p1, %s7564_s19, %s267_s24  }
   0xa   : > { %p7671_p5 = por %p278_p2, %p277_p0  ;;  %p7675_p6 = por %p284_p4, %p283_p3 }
   0xb   : > { %13544 = sst [smem:[#allocation6_spill]] %s7669_s26  ;;  %p340_p8 = scmp.lt.s32.totalorder %s7568_s20, 3 }
   0xd   : > { %p341_p9 = pnand %p5887_p7, %p340_p8 }
   0xf   : > { %344 = sbr.rel (%p341_p9) target bundleno = 2482 (0x9b2), region = 64 }
  0x16   : > { %v6596_v0 = vld [vmem:[%s12780_s1 + $0x244] ss:$8 sps:$4 sm:$0xff]   ;;  %v6600_v2 = vld [vmem:[%s12780_s1 + $0x240] ss:$8 sps:$4 sm:$0xff]   ;;  %v6602_v4 = vld [vmem:[%s12780_s1 + $0x254] ss:$8 sps:$4 sm:$0xff]  }
  0x17   : > { %v6598_v1 = vld [vmem:[%s12780_s1 + $0x344] ss:$8 sps:$4 sm:$0xff]   ;;  %942 = vmatprep.subr.bf16.mxu0 %v6596_v0  ;;  %v6601_v3 = vld [vmem:[%s12780_s1 + $0x340] ss:$8 sps:$4 sm:$0xff]   ;;  %v6604_v5 = vld [vmem:[%s12780_s1 + $0x354] ss:$8 sps:$4 sm:$0xff]  }
  0x18   : > { %983 = vmatprep.subr.bf16.mxu1 %v6598_v1  ;;  %943 = vmatpush1.bf16.msra.mxu0 %v6600_v2  ;;  %v6606_v6 = vld [vmem:[%s12780_s1 + $0x250] ss:$8 sps:$4 sm:$0xff]   ;;  %v6608_v8 = vld [vmem:[%s12780_s1 + $0x264] ss:$8 sps:$4 sm:$0xff]   ;;  %v6612_v10 = vld [vmem:[%s12780_s1 + $0x260] ss:$8 sps:$4 sm:$0xff]  }
  0x19   : > { %984 = vmatpush1.bf16.msra.mxu1 %v6601_v3  ;;  %944 = vmatprep.subr.bf16.mxu0 %v6602_v4  ;;  %v6607_v7 = vld [vmem:[%s12780_s1 + $0x350] ss:$8 sps:$4 sm:$0xff]   ;;  %v6610_v9 = vld [vmem:[%s12780_s1 + $0x364] ss:$8 sps:$4 sm:$0xff]   ;;  %v6613_v11 = vld [vmem:[%s12780_s1 + $0x360] ss:$8 sps:$4 sm:$0xff]  }
  0x1a   : > { %985 = vmatprep.subr.bf16.mxu1 %v6604_v5  ;;  %v6614_v12 = vld [vmem:[%s12780_s1 + $0x274] ss:$8 sps:$4 sm:$0xff]   ;;  %v6618_v14 = vld [vmem:[%s12780_s1 + $0x270] ss:$8 sps:$4 sm:$0xff]   ;;  %v6620_v16 = vld [vmem:[%s12780_s1 + $0x284] ss:$8 sps:$4 sm:$0xff]  }
  0x1b   : > { %v6616_v13 = vld [vmem:[%s12780_s1 + $0x374] ss:$8 sps:$4 sm:$0xff]   ;;  %v6619_v15 = vld [vmem:[%s12780_s1 + $0x370] ss:$8 sps:$4 sm:$0xff]   ;;  %v6622_v17 = vld [vmem:[%s12780_s1 + $0x384] ss:$8 sps:$4 sm:$0xff]  }
  0x1c   : > { %945 = vmatpush1.bf16.msra.mxu0 %v6606_v6  ;;  %v6624_v18 = vld [vmem:[%s12780_s1 + $0x280] ss:$8 sps:$4 sm:$0xff]   ;;  %v6626_v20 = vld [vmem:[%s12780_s1 + $0x294] ss:$8 sps:$4 sm:$0xff]   ;;  %v6630_v22 = vld [vmem:[%s12780_s1 + $0x290] ss:$8 sps:$4 sm:$0xff]  }
  0x1d   : > { %986 = vmatpush1.bf16.msra.mxu1 %v6607_v7  ;;  %946 = vmatprep.subr.bf16.mxu0 %v6608_v8  ;;  %v6625_v19 = vld [vmem:[%s12780_s1 + $0x380] ss:$8 sps:$4 sm:$0xff]   ;;  %v6628_v21 = vld [vmem:[%s12780_s1 + $0x394] ss:$8 sps:$4 sm:$0xff]   ;;  %v6631_v23 = vld [vmem:[%s12780_s1 + $0x390] ss:$8 sps:$4 sm:$0xff]  }
  0x1e   : > { %987 = vmatprep.subr.bf16.mxu1 %v6610_v9  ;;  %v6632_v24 = vld [vmem:[%s12780_s1 + $0x2a4] ss:$8 sps:$4 sm:$0xff]   ;;  %v6636_v26 = vld [vmem:[%s12780_s1 + $0x2a0] ss:$8 sps:$4 sm:$0xff]   ;;  %v6638_v28 = vld [vmem:[%s12780_s1 + $0x2b4] ss:$8 sps:$4 sm:$0xff]  }
  0x1f   : > { %v6634_v25 = vld [vmem:[%s12780_s1 + $0x3a4] ss:$8 sps:$4 sm:$0xff]   ;;  %v6637_v27 = vld [vmem:[%s12780_s1 + $0x3a0] ss:$8 sps:$4 sm:$0xff]   ;;  %v6640_v29 = vld [vmem:[%s12780_s1 + $0x3b4] ss:$8 sps:$4 sm:$0xff]  }
  0x20   : > { %947 = vmatpush1.bf16.msra.mxu0 %v6612_v10  ;;  %v6642_v30 = vld [vmem:[%s12780_s1 + $0x2b0] ss:$8 sps:$4 sm:$0xff]   ;;  %p379_p10 = scmp.lt.s32.totalorder %s7654_s21, 1  ;;  %v6644_v32 = vld [vmem:[%s12780_s1 + $0x2c4] ss:$8 sps:$4 sm:$0xff]   ;;  %vm938_vm0 = vcmask 523264  }
  0x21   : > { %988 = vmatpush1.bf16.msra.mxu1 %v6613_v11  ;;  %948 = vmatprep.subr.bf16.mxu0 %v6614_v12  ;;  %v6643_v31 = vld [vmem:[%s12780_s1 + $0x3b0] ss:$8 sps:$4 sm:$0xff]   ;;  %v6646_v33 = vld [vmem:[%s12780_s1 + $0x3c4] ss:$8 sps:$4 sm:$0xff]   ;;  %v6648_v34 = vld [vmem:[%s12780_s1 + $0x2c0] ss:$8 sps:$4 sm:$0xff]  }
  0x22   : > { %989 = vmatprep.subr.bf16.mxu1 %v6616_v13  ;;  %v6649_v35 = vld [vmem:[%s12780_s1 + $0x3c0] ss:$8 sps:$4 sm:$0xff]   ;;  %s380_s12 = scalar_select %p379_p10, %s7654_s21, 1  ;;  %v6650_v36 = vld [vmem:[%s12780_s1 + $0x2d4] ss:$8 sps:$4 sm:$0xff]  }
  0x23   : > { %v6652_v37 = vld [vmem:[%s12780_s1 + $0x3d4] ss:$8 sps:$4 sm:$0xff]   ;;  %v6654_v38 = vld [vmem:[%s12780_s1 + $0x2d0] ss:$8 sps:$4 sm:$0xff]   ;;  %v6656_v40 = vld [vmem:[%s12780_s1 + $0x2e4] ss:$8 sps:$4 sm:$0xff]  }
  0x24   : > { %949 = vmatpush1.bf16.msra.mxu0 %v6618_v14  ;;  %s6554_s25 = smul.u32 40, %s380_s12  ;;  %v6655_v39 = vld [vmem:[%s12780_s1 + $0x3d0] ss:$8 sps:$4 sm:$0xff]   ;;  %v6658_v41 = vld [vmem:[%s12780_s1 + $0x3e4] ss:$8 sps:$4 sm:$0xff]   ;;  %s377_s30 = sand.u32 1, %s7560_s18  }
  0x25   : > { %990 = vmatpush1.bf16.msra.mxu1 %v6619_v15  ;;  %950 = vmatprep.subr.bf16.mxu0 %v6620_v16  ;;  %v6660_v42 = vld [vmem:[%s12780_s1 + $0x2e0] ss:$8 sps:$4 sm:$0xff]   ;;  %v6662_v44 = vld [vmem:[%s12780_s1 + $0x2f4] ss:$8 sps:$4 sm:$0xff]   ;;  %v6666_v46 = vld [vmem:[%s12780_s1 + $0x2f0] ss:$8 sps:$4 sm:$0xff]  }
  0x26   : > { %991 = vmatprep.subr.bf16.mxu1 %v6622_v17  ;;  %v6661_v43 = vld [vmem:[%s12780_s1 + $0x3e0] ss:$8 sps:$4 sm:$0xff]   ;;  %s7818_s19 = scalar_lea.vmem %s12779_s0, %s6554_s25  ;;  %v6664_v45 = vld [vmem:[%s12780_s1 + $0x3f4] ss:$8 sps:$4 sm:$0xff]   ;;  %v6667_v50 = vld [vmem:[%s12780_s1 + $0x3f0] ss:$8 sps:$4 sm:$0xff]  }
  0x27   : > { %v385_v47 = vld [vmem:[%s7818_s19] sm:$0x11]  ;;  %v386_v49 = vld [vmem:[%s7818_s19 + $0x8] sm:$0x11]  ;;  %v6674_v58 = vld [vmem:[%s12780_s1 + $0x314] ss:$8 sps:$4 sm:$0xff]  }
  0x28   : > { %951 = vmatpush1.bf16.msra.mxu0 %v6624_v18  ;;  %v7830_v48 = vcombine.high %v385_v47, %v385_v47  ;;  %v7836_v51 = vcombine.high %v386_v49, %v386_v49  ;;  %v6668_v52 = vld [vmem:[%s12780_s1 + $0x304] ss:$8 sps:$4 sm:$0xff]   ;;  %v6672_v56 = vld [vmem:[%s12780_s1 + $0x300] ss:$8 sps:$4 sm:$0xff]   ;;  %v6676_v59 = vld [vmem:[%s12780_s1 + $0x414] ss:$8 sps:$4 sm:$0xff]   ;;  %v7892_v6 = vcombine.low %v385_v47, %v385_v47  ;;  %v7894_v7 = vcombine.low %v386_v49, %v386_v49 }
  0x29   : > { %992 = vmatpush1.bf16.msra.mxu1 %v6625_v19  ;;  %952 = vmatprep.subr.bf16.mxu0 %v6626_v20  ;;  %v6670_v53 = vld [vmem:[%s12780_s1 + $0x404] ss:$8 sps:$4 sm:$0xff]   ;;  %v6673_v57 = vld [vmem:[%s12780_s1 + $0x400] ss:$8 sps:$4 sm:$0xff]   ;;  %v6678_v60 = vld [vmem:[%s12780_s1 + $0x310] ss:$8 sps:$4 sm:$0xff]  }
  0x2a   : > { %993 = vmatprep.subr.bf16.mxu1 %v6628_v21  ;;  %v12796_v54 = vshrl.u32 %v7830_v48, 16  ;;  %v12795_v55 = vshrl.u32 %v7836_v51, 16  ;;  %v6679_v61 = vld [vmem:[%s12780_s1 + $0x410] ss:$8 sps:$4 sm:$0xff]   ;;  %v6680_v62 = vld [vmem:[%s12780_s1 + $0x324] ss:$8 sps:$4 sm:$0xff]  }
  0x2b   : > { %v6682_v63 = vld [vmem:[%s12780_s1 + $0x424] ss:$8 sps:$4 sm:$0xff]   ;;  %v6684_v0 = vld [vmem:[%s12780_s1 + $0x320] ss:$8 sps:$4 sm:$0xff]   ;;  %v6686_v2 = vld [vmem:[%s12780_s1 + $0x334] ss:$8 sps:$4 sm:$0xff]  }
  0x2c   : > { %953 = vmatpush1.bf16.msra.mxu0 %v6630_v22  ;;  %974 = vmatprep.mubr.bf16.mxu0 %v12796_v54  ;;  %v6685_v1 = vld [vmem:[%s12780_s1 + $0x420] ss:$8 sps:$4 sm:$0xff]   ;;  %v6688_v3 = vld [vmem:[%s12780_s1 + $0x434] ss:$8 sps:$4 sm:$0xff]   ;;  %v6690_v4 = vld [vmem:[%s12780_s1 + $0x330] ss:$8 sps:$4 sm:$0xff]  }
  0x2d   : > { %994 = vmatpush1.bf16.msra.mxu1 %v6631_v23  ;;  %954 = vmatprep.subr.bf16.mxu0 %v6632_v24  ;;  %v6691_v5 = vld [vmem:[%s12780_s1 + $0x430] ss:$8 sps:$4 sm:$0xff]   ;;  %v6696_v8 = vld [vmem:[%s12780_s1 + $0x444] ss:$8 sps:$4 sm:$0xff]   ;;  %v12794_v10 = vshrl.u32 %v7892_v6, 16  ;;  %v12793_v11 = vshrl.u32 %v7894_v7, 16 }
  0x2e   : > { %995 = vmatprep.subr.bf16.mxu1 %v6634_v25  ;;  %1015 = vmatprep.mubr.bf16.mxu1 %v12795_v55  ;;  %v6698_v9 = vld [vmem:[%s12780_s1 + $0x4] ss:$8 sps:$4 sm:$0xff]   ;;  %v6700_v12 = vld [vmem:[%s12780_s1 + $0x440] ss:$8 sps:$4 sm:$0xff]   ;;  %v6702_v14 = vld [vmem:[%s12780_s1 + $0x454] ss:$8 sps:$4 sm:$0xff]  }
  0x2f   : > { %v6701_v13 = vld [vmem:[%s12780_s1] ss:$8 sps:$4 sm:$0xff]   ;;  %v6704_v15 = vld [vmem:[%s12780_s1 + $0x14] ss:$8 sps:$4 sm:$0xff]   ;;  %v6706_v16 = vld [vmem:[%s12780_s1 + $0x450] ss:$8 sps:$4 sm:$0xff]  }
  0x30   : > { %955 = vmatpush1.bf16.msra.mxu0 %v6636_v26  ;;  %v6707_v17 = vld [vmem:[%s12780_s1 + $0x10] ss:$8 sps:$4 sm:$0xff]   ;;  %v6708_v18 = vld [vmem:[%s12780_s1 + $0x464] ss:$8 sps:$4 sm:$0xff]   ;;  %v12797_v20 = vmov 0   ;;  %s6507_s14 = sshll.u32 %s7654_s21, 4 }
  0x31   : > { %996 = vmatpush1.bf16.msra.mxu1 %v6637_v27  ;;  %956 = vmatprep.subr.bf16.mxu0 %v6638_v28  ;;  %v6710_v19 = vld [vmem:[%s12780_s1 + $0x24] ss:$8 sps:$4 sm:$0xff]   ;;  %v6712_v21 = vld [vmem:[%s12780_s1 + $0x460] ss:$8 sps:$4 sm:$0xff]   ;;  %v6714_v23 = vld [vmem:[%s12780_s1 + $0x474] ss:$8 sps:$4 sm:$0xff]   ;;  %s12737_s25 = scalar_lea.hbm %s12790_s11, %s6507_s14 }
  0x32   : > { %997 = vmatprep.subr.bf16.mxu1 %v6640_v29  ;;  %v6713_v22 = vld [vmem:[%s12780_s1 + $0x20] ss:$8 sps:$4 sm:$0xff]   ;;  %v6716_v24 = vld [vmem:[%s12780_s1 + $0x34] ss:$8 sps:$4 sm:$0xff]   ;;  %v6718_v25 = vld [vmem:[%s12780_s1 + $0x470] ss:$8 sps:$4 sm:$0xff]  }
  0x33   : > { %v6719_v26 = vld [vmem:[%s12780_s1 + $0x30] ss:$8 sps:$4 sm:$0xff]   ;;  %v6721_v28 = vld [vmem:[%s12780_s1 + $0x44] ss:$8 sps:$4 sm:$0xff]   ;;  %v8019_v47 = vld [vmem:[%s12780_s1 + $0x80] ss:$8 sps:$4 sm:$0xff]  }
  0x34   : > { %957 = vmatpush1.bf16.msra.mxu0 %v6642_v30  ;;  %v7953_v27 = vld [vmem:[%s7818_s19 + $0x10] ss:$0 sps:$4 sm:$0x11]   ;;  %v6723_v29 = vld [vmem:[%s12780_s1 + $0x104] ss:$8 sps:$4 sm:$0xff]   ;;  %s378_s15 = scalar_lea.vmem [#allocation2], %s377_s30 }
  0x35   : > { %998 = vmatpush1.bf16.msra.mxu1 %v6643_v31  ;;  %958 = vmatprep.subr.bf16.mxu0 %v6644_v32  ;;  %v12792_v30 = vshrl.u32 %v7953_v27, 16  ;;  %v6725_v31 = vld [vmem:[%s12780_s1 + $0x40] ss:$8 sps:$4 sm:$0xff]   ;;  %v8341_v54 = vld [vmem:[%s12780_s1 + $0x254] ss:$8 sps:$4 sm:$0xff]   ;;  %s5829_s16 = sshll.u32 %s378_s15, 4  ;;  %s12739_s16 = int_to_ptr.vmem [resolvable:$true] %s5829_s16 }
  0x36   : > { %999 = vmatprep.subr.bf16.mxu1 %v6646_v33  ;;  %v6726_v32 = vld [vmem:[%s12780_s1 + $0x100] ss:$8 sps:$4 sm:$0xff]   ;;  %v6727_v33 = vld [vmem:[%s12780_s1 + $0x54] ss:$8 sps:$4 sm:$0xff]   ;;  %13548 = vst [vmem:[#allocation8_spill] sm:$0xff] %v8341_v54  ;;  %s5817_s12 = scalar_lea.sflag [#allocation3], %s377_s30 }
  0x37   : > { %v8024_v49 = vld [vmem:[%s12780_s1 + $0x140] ss:$8 sps:$4 sm:$0xff]   ;;  %s7506_s24 = scalar_lea.vmem %s12739_s16, 16  ;;  %s7572_s21 = smov [#allocation2]  }
  0x38   : > { %959 = vmatpush1.bf16.msra.mxu0 %v6648_v34  ;;  %v6729_v34 = vld [vmem:[%s12780_s1 + $0x114] ss:$8 sps:$4 sm:$0xff]   ;;  %v8335_v55 = vld [vmem:[%s12780_s1 + $0x340] ss:$8 sps:$4 sm:$0xff]   ;;  %p7507_p11 = scmp.ne.s32.totalorder %s12739_s16, %s7506_s24  ;;  %s7510_s29 = sshll.u32 %s7572_s21, 4  ;;  %s7511_s29 = int_to_ptr.vmem [resolvable:$false] %s7510_s29 }
  0x39   : > { %1000 = vmatpush1.bf16.msra.mxu1 %v6649_v35  ;;  %960 = vmatprep.subr.bf16.mxu0 %v6650_v36  ;;  %v6731_v35 = vld [vmem:[%s12780_s1 + $0x50] ss:$8 sps:$4 sm:$0xff]   ;;  %13547 = vst [vmem:[#allocation7_spill] sm:$0xff] %v8335_v55  ;;  %s7512_s26 = scalar_lea.vmem %s7511_s29, 32  ;;  %p7513_p0 = scmp.lt.s32.totalorder %s12739_s16, %s7511_s29 }
  0x3a   : > { %1001 = vmatprep.subr.bf16.mxu1 %v6652_v37  ;;  %v6732_v36 = vld [vmem:[%s12780_s1 + $0x110] ss:$8 sps:$4 sm:$0xff]   ;;  %v6733_v37 = vld [vmem:[%s12780_s1 + $0x64] ss:$8 sps:$4 sm:$0xff]   ;;  %p7508_p12 = pnand %p7507_p11, %p7671_p5  ;;  %p7514_p1 = scmp.lt.s32.totalorder %s7512_s26, %s7506_s24 }
  0x3c   : > { %961 = vmatpush1.bf16.msra.mxu0 %v6654_v38  ;;  %v6735_v38 = vld [vmem:[%s12780_s1 + $0x124] ss:$8 sps:$4 sm:$0xff]   ;;  %p7509_p13 = pneg %p7508_p12  ;;  %p7515_p2 = por %p7514_p1, %p7513_p0 }
  0x3d   : > { %1002 = vmatpush1.bf16.msra.mxu1 %v6655_v39  ;;  %962 = vmatprep.subr.bf16.mxu0 %v6656_v40  ;;  %v6737_v39 = vld [vmem:[%s12780_s1 + $0x60] ss:$8 sps:$4 sm:$0xff]  }
  0x3e   : > { %1003 = vmatprep.subr.bf16.mxu1 %v6658_v41  ;;  %v6738_v40 = vld [vmem:[%s12780_s1 + $0x120] ss:$8 sps:$4 sm:$0xff]   ;;  %v6739_v41 = vld [vmem:[%s12780_s1 + $0x74] ss:$8 sps:$4 sm:$0xff]   ;;  %p7516_p3 = pnand %p7515_p2, %p7509_p13 }
  0x40   : > { %963 = vmatpush1.bf16.msra.mxu0 %v6660_v42  ;;  %v6741_v42 = vld [vmem:[%s12780_s1 + $0x134] ss:$8 sps:$4 sm:$0xff]  }
  0x41   : > { %1004 = vmatpush1.bf16.msra.mxu1 %v6661_v43  ;;  %964 = vmatprep.subr.bf16.mxu0 %v6662_v44  ;;  %v6743_v43 = vld [vmem:[%s12780_s1 + $0x70] ss:$8 sps:$4 sm:$0xff]  }
  0x42   : > { %1005 = vmatprep.subr.bf16.mxu1 %v6664_v45  ;;  %v6744_v44 = vld [vmem:[%s12780_s1 + $0x130] ss:$8 sps:$4 sm:$0xff]   ;;  %v6745_v45 = vld [vmem:[%s12780_s1 + $0x84] ss:$8 sps:$4 sm:$0xff]  }
  0x44   : > { %965 = vmatpush1.bf16.msra.mxu0 %v6666_v46  ;;  %v8014_v46 = vld [vmem:[%s12780_s1 + $0x144] ss:$8 sps:$4 sm:$0xff]  }
  0x45   : > { %1006 = vmatpush1.bf16.msra.mxu1 %v6667_v50  ;;  %966 = vmatprep.subr.bf16.mxu0 %v6668_v52  ;;  %v8030_v50 = vld [vmem:[%s12780_s1 + $0x94] ss:$8 sps:$4 sm:$0xff]  }
  0x46   : > { %1007 = vmatprep.subr.bf16.mxu1 %v6670_v53  ;;  %v8035_v52 = vld [vmem:[%s12780_s1 + $0x154] ss:$8 sps:$4 sm:$0xff]   ;;  %v8040_v53 = vld [vmem:[%s12780_s1 + $0x90] ss:$8 sps:$4 sm:$0xff]  }
  0x48   : > { %967 = vmatpush1.bf16.msra.mxu0 %v6672_v56  ;;  %v8045_v56 = vld [vmem:[%s12780_s1 + $0x150] ss:$8 sps:$4 sm:$0xff]  }
  0x49   : > { %1008 = vmatpush1.bf16.msra.mxu1 %v6673_v57  ;;  %968 = vmatprep.subr.bf16.mxu0 %v6674_v58  ;;  %v8050_v57 = vld [vmem:[%s12780_s1 + $0xa4] ss:$8 sps:$4 sm:$0xff]  }
  0x4a   : > { %1009 = vmatprep.subr.bf16.mxu1 %v6676_v59  ;;  %v8055_v58 = vld [vmem:[%s12780_s1 + $0x164] ss:$8 sps:$4 sm:$0xff]   ;;  %v8064_v59 = vld [vmem:[%s12780_s1 + $0xa0] ss:$8 sps:$4 sm:$0xff]  }
  0x4c   : > { %969 = vmatpush1.bf16.msra.mxu0 %v6678_v60  ;;  %v8069_v60 = vld [vmem:[%s12780_s1 + $0x160] ss:$8 sps:$4 sm:$0xff]  }
  0x4d   : > { %1010 = vmatpush1.bf16.msra.mxu1 %v6679_v61  ;;  %970 = vmatprep.subr.bf16.mxu0 %v6680_v62  ;;  %v8074_v61 = vld [vmem:[%s12780_s1 + $0xb4] ss:$8 sps:$4 sm:$0xff]  }
  0x4e   : > { %1011 = vmatprep.subr.bf16.mxu1 %v6682_v63  ;;  %v8079_v62 = vld [vmem:[%s12780_s1 + $0x174] ss:$8 sps:$4 sm:$0xff]   ;;  %v8088_v63 = vld [vmem:[%s12780_s1 + $0xb0] ss:$8 sps:$4 sm:$0xff]  }
  0x50   : > { %971 = vmatpush1.bf16.msra.mxu0 %v6684_v0  ;;  %v8093_v0 = vld [vmem:[%s12780_s1 + $0x170] ss:$8 sps:$4 sm:$0xff]  }
  0x51   : > { %1012 = vmatpush1.bf16.msra.mxu1 %v6685_v1  ;;  %972 = vmatprep.subr.bf16.mxu0 %v6686_v2  ;;  %v8098_v1 = vld [vmem:[%s12780_s1 + $0xc4] ss:$8 sps:$4 sm:$0xff]  }
  0x52   : > { %1013 = vmatprep.subr.bf16.mxu1 %v6688_v3  ;;  %v8103_v2 = vld [vmem:[%s12780_s1 + $0x184] ss:$8 sps:$4 sm:$0xff]   ;;  %v8112_v3 = vld [vmem:[%s12780_s1 + $0xc0] ss:$8 sps:$4 sm:$0xff]  }
  0x54   : > { %973 = vmatpush1.bf16.msra.mxu0 %v6690_v4  ;;  %v8117_v4 = vld [vmem:[%s12780_s1 + $0x180] ss:$8 sps:$4 sm:$0xff]  }
  0x55   : > { %1014 = vmatpush1.bf16.msra.mxu1 %v6691_v5  ;;  %1024 = vmatprep.subr.bf16.mxu0 %v6696_v8  ;;  %v8122_v5 = vld [vmem:[%s12780_s1 + $0xd4] ss:$8 sps:$4 sm:$0xff]  }
  0x56   : > { %1431 = vmatprep.subr.bf16.mxu1 %v6698_v9  ;;  %v8127_v8 = vld [vmem:[%s12780_s1 + $0x194] ss:$8 sps:$4 sm:$0xff]   ;;  %v8136_v9 = vld [vmem:[%s12780_s1 + $0xd0] ss:$8 sps:$4 sm:$0xff]  }
  0x57   : > { %975 = vmatmul.mubr.bf16.vlgmr.msra.gmra.mrb[0].mxu0 %v12794_v10  ;;  %v8329_v10 = vld [vmem:[%s12780_s1 + $0x240] ss:$8 sps:$4 sm:$0xff]  }
  0x58   : > { %1016 = vmatmul.mubr.bf16.vlgmr.msra.gmra.mrb[0].mxu1 %v12793_v11  ;;  %1025 = vmatpush1.bf16.msra.mxu0 %v6700_v12  ;;  %v8141_v12 = vld [vmem:[%s12780_s1 + $0x190] ss:$8 sps:$4 sm:$0xff]   ;;  %v8320_v11 = vld [vmem:[%s12780_s1 + $0x344] ss:$8 sps:$4 sm:$0xff]  }
  0x59   : > { %1432 = vmatpush1.bf16.msra.mxu1 %v6701_v13  ;;  %1026 = vmatprep.subr.bf16.mxu0 %v6702_v14  ;;  %v8146_v13 = vld [vmem:[%s12780_s1 + $0xe4] ss:$8 sps:$4 sm:$0xff]  }
  0x5a   : > { %1433 = vmatprep.subr.bf16.mxu1 %v6704_v15  ;;  %1056 = vmatprep.mubr.bf16.mxu0 %v12797_v20  ;;  %v8151_v14 = vld [vmem:[%s12780_s1 + $0x1a4] ss:$8 sps:$4 sm:$0xff]   ;;  %v8160_v15 = vld [vmem:[%s12780_s1 + $0xe0] ss:$8 sps:$4 sm:$0xff]  }
  0x5b   : > { %1463 = vmatprep.mubr.bf16.mxu1 %v7830_v48 }
  0x5c   : > { %1027 = vmatpush1.bf16.msra.mxu0 %v6706_v16  ;;  %v8165_v16 = vld [vmem:[%s12780_s1 + $0x1a0] ss:$8 sps:$4 sm:$0xff]  }
  0x5d   : > { %1434 = vmatpush1.bf16.msra.mxu1 %v6707_v17  ;;  %1028 = vmatprep.subr.bf16.mxu0 %v6708_v18  ;;  %v8170_v17 = vld [vmem:[%s12780_s1 + $0xf4] ss:$8 sps:$4 sm:$0xff]  }
  0x5e   : > { %1435 = vmatprep.subr.bf16.mxu1 %v6710_v19  ;;  %v8175_v18 = vld [vmem:[%s12780_s1 + $0x1b4] ss:$8 sps:$4 sm:$0xff]   ;;  %v8184_v19 = vld [vmem:[%s12780_s1 + $0xf0] ss:$8 sps:$4 sm:$0xff]  }
  0x60   : > { %1029 = vmatpush1.bf16.msra.mxu0 %v6712_v21  ;;  %v8189_v21 = vld [vmem:[%s12780_s1 + $0x1b0] ss:$8 sps:$4 sm:$0xff]  }
  0x61   : > { %1436 = vmatpush1.bf16.msra.mxu1 %v6713_v22  ;;  %1030 = vmatprep.subr.bf16.mxu0 %v6714_v23  ;;  %v8194_v22 = vld [vmem:[%s12780_s1 + $0x1c4] ss:$8 sps:$4 sm:$0xff]  }
  0x62   : > { %1437 = vmatprep.subr.bf16.mxu1 %v6716_v24  ;;  %v8199_v23 = vld [vmem:[%s12780_s1 + $0x204] ss:$8 sps:$4 sm:$0xff]   ;;  %v8208_v24 = vld [vmem:[%s12780_s1 + $0x1c0] ss:$8 sps:$4 sm:$0xff]  }
  0x64   : > { %1031 = vmatpush1.bf16.msra.mxu0 %v6718_v25  ;;  %v8213_v25 = vld [vmem:[%s12780_s1 + $0x200] ss:$8 sps:$4 sm:$0xff]  }
  0x65   : > { %1438 = vmatpush1.bf16.msra.mxu1 %v6719_v26  ;;  %1472 = vmatprep.subr.bf16.mxu0 %v6723_v29  ;;  %v8218_v26 = vld [vmem:[%s12780_s1 + $0x1d4] ss:$8 sps:$4 sm:$0xff]   ;;  %v8232_v29 = vld [vmem:[%s12780_s1 + $0x1d0] ss:$8 sps:$4 sm:$0xff]  }
  0x66   : > { %1439 = vmatprep.subr.bf16.mxu1 %v6721_v28  ;;  %v8223_v28 = vld [vmem:[%s12780_s1 + $0x214] ss:$8 sps:$4 sm:$0xff]  }
  0x67   : > { %6038 = vmatmul.mubr.msk.bf16.vlgmr.msra.gmra.mrb[4].mxu0 %vm938_vm0, %v12792_v30  ;;  %v8314_v30 = vld [vmem:[%s12780_s1 + $0x244] ss:$8 sps:$4 sm:$0xff]  }
  0x68   : > { %1473 = vmatpush1.bf16.msra.mxu0 %v6726_v32  ;;  %1504 = vmatprep.mubr.bf16.mxu0 %v7836_v51  ;;  %v8243_v32 = vld [vmem:[%s12780_s1 + $0x1e4] ss:$8 sps:$4 sm:$0xff]  }
  0x69   : > { %1440 = vmatpush1.bf16.msra.mxu1 %v6725_v31  ;;  %1474 = vmatprep.subr.bf16.mxu0 %v6729_v34  ;;  %v8237_v31 = vld [vmem:[%s12780_s1 + $0x210] ss:$8 sps:$4 sm:$0xff]   ;;  %v8255_v34 = vld [vmem:[%s7818_s19] sm:$0x22] }
  0x6a   : > { %1441 = vmatprep.subr.bf16.mxu1 %v6727_v33  ;;  %v8248_v33 = vld [vmem:[%s12780_s1 + $0x224] ss:$8 sps:$4 sm:$0xff]  }
  0x6c   : > { %1475 = vmatpush1.bf16.msra.mxu0 %v6732_v36  ;;  %v8263_v36 = vld [vmem:[%s12780_s1 + $0x1e0] ss:$8 sps:$4 sm:$0xff]  }
  0x6d   : > { %1442 = vmatpush1.bf16.msra.mxu1 %v6731_v35  ;;  %1476 = vmatprep.subr.bf16.mxu0 %v6735_v38  ;;  %v8258_v35 = vld [vmem:[%s7818_s19 + $0x8] sm:$0x22]  ;;  %v8274_v38 = vld [vmem:[%s12780_s1 + $0x1f4] ss:$8 sps:$4 sm:$0xff]  }
  0x6e   : > { %1443 = vmatprep.subr.bf16.mxu1 %v6733_v37  ;;  %v8268_v37 = vld [vmem:[%s12780_s1 + $0x220] ss:$8 sps:$4 sm:$0xff]  }
  0x70   : > { %1477 = vmatpush1.bf16.msra.mxu0 %v6738_v40  ;;  %v8288_v40 = vld [vmem:[%s12780_s1 + $0x1f0] ss:$8 sps:$4 sm:$0xff]  }
  0x71   : > { %1444 = vmatpush1.bf16.msra.mxu1 %v6737_v39  ;;  %1478 = vmatprep.subr.bf16.mxu0 %v6741_v42  ;;  %v8279_v39 = vld [vmem:[%s12780_s1 + $0x234] ss:$8 sps:$4 sm:$0xff]   ;;  %v8297_v42 = vcombine.high %v8255_v34, %v8255_v34 }
  0x72   : > { %1445 = vmatprep.subr.bf16.mxu1 %v6739_v41  ;;  %v8293_v41 = vld [vmem:[%s12780_s1 + $0x230] ss:$8 sps:$4 sm:$0xff]  }
  0x74   : > { %1479 = vmatpush1.bf16.msra.mxu0 %v6744_v44  ;;  %v12802_v44 = vrot.slane %v8297_v42, 1 }
  0x75   : > { %1446 = vmatpush1.bf16.msra.mxu1 %v6743_v43  ;;  %1480 = vmatprep.subr.bf16.mxu0 %v8014_v46  ;;  %v8301_v43 = vcombine.high %v8258_v35, %v8258_v35 }
  0x76   : > { %1447 = vmatprep.subr.bf16.mxu1 %v6745_v45 }
  0x77   : > { %v12803_v45 = vrot.slane %v8301_v43, 1 }
  0x78   : > { %1481 = vmatpush1.bf16.msra.mxu0 %v8024_v49 }
  0x79   : > { %1448 = vmatpush1.bf16.msra.mxu1 %v8019_v47  ;;  %1482 = vmatprep.subr.bf16.mxu0 %v8035_v52 }
  0x7a   : > { %1449 = vmatprep.subr.bf16.mxu1 %v8030_v50 }
  0x7c   : > { %1483 = vmatpush1.bf16.msra.mxu0 %v8045_v56 }
  0x7d   : > { %1450 = vmatpush1.bf16.msra.mxu1 %v8040_v53  ;;  %1484 = vmatprep.subr.bf16.mxu0 %v8055_v58 }
  0x7e   : > { %1451 = vmatprep.subr.bf16.mxu1 %v8050_v57 }
  0x80   : > { %1485 = vmatpush1.bf16.msra.mxu0 %v8069_v60 }
  0x81   : > { %1452 = vmatpush1.bf16.msra.mxu1 %v8064_v59  ;;  %1486 = vmatprep.subr.bf16.mxu0 %v8079_v62 }
  0x82   : > { %1453 = vmatprep.subr.bf16.mxu1 %v8074_v61 }
  0x84   : > { %1487 = vmatpush1.bf16.msra.mxu0 %v8093_v0 }
  0x85   : > { %1454 = vmatpush1.bf16.msra.mxu1 %v8088_v63  ;;  %1488 = vmatprep.subr.bf16.mxu0 %v8103_v2 }
  0x86   : > { %1455 = vmatprep.subr.bf16.mxu1 %v8098_v1 }
  0x88   : > { %1489 = vmatpush1.bf16.msra.mxu0 %v8117_v4 }
  0x89   : > { %1456 = vmatpush1.bf16.msra.mxu1 %v8112_v3  ;;  %1490 = vmatprep.subr.bf16.mxu0 %v8127_v8 }
  0x8a   : > { %1457 = vmatprep.subr.bf16.mxu1 %v8122_v5 }
  0x8c   : > { %1491 = vmatpush1.bf16.msra.mxu0 %v8141_v12 }
  0x8d   : > { %1458 = vmatpush1.bf16.msra.mxu1 %v8136_v9  ;;  %1492 = vmatprep.subr.bf16.mxu0 %v8151_v14 }
  0x8e   : > { %1459 = vmatprep.subr.bf16.mxu1 %v8146_v13 }
  0x90   : > { %1493 = vmatpush1.bf16.msra.mxu0 %v8165_v16 }
  0x91   : > { %1460 = vmatpush1.bf16.msra.mxu1 %v8160_v15  ;;  %1494 = vmatprep.subr.bf16.mxu0 %v8175_v18 }
  0x92   : > { %1461 = vmatprep.subr.bf16.mxu1 %v8170_v17 }
  0x94   : > { %1495 = vmatpush1.bf16.msra.mxu0 %v8189_v21 }
  0x95   : > { %1462 = vmatpush1.bf16.msra.mxu1 %v8184_v19  ;;  %1496 = vmatprep.subr.bf16.mxu0 %v8194_v22 }
  0x96   : > { %1513 = vmatprep.subr.bf16.mxu1 %v8199_v23 }
  0x98   : > { %1464 = vmatmul.mubr.bf16.vlgmr.msra.gmra.mrb[4].mxu1 %v7892_v6  ;;  %1497 = vmatpush1.bf16.msra.mxu0 %v8208_v24 }
  0x99   : > { %1514 = vmatpush1.bf16.msra.mxu1 %v8213_v25  ;;  %1498 = vmatprep.subr.bf16.mxu0 %v8218_v26 }
  0x9a   : > { %1515 = vmatprep.subr.bf16.mxu1 %v8223_v28  ;;  %1545 = vmatprep.mubr.bf16.mxu1 %v12797_v20  ;;  %v8347_v20 = vld [vmem:[%s12780_s1 + $0x354] ss:$8 sps:$4 sm:$0xff]  }
  0x9b   : > { %13549 = vst [vmem:[#allocation9_spill] sm:$0xff] %v8347_v20 }
  0x9c   : > { %1499 = vmatpush1.bf16.msra.mxu0 %v8232_v29 }
  0x9d   : > { %1516 = vmatpush1.bf16.msra.mxu1 %v8237_v31  ;;  %1500 = vmatprep.subr.bf16.mxu0 %v8243_v32 }
  0x9e   : > { %1517 = vmatprep.subr.bf16.mxu1 %v8248_v33 }
  0xa0   : > { %1501 = vmatpush1.bf16.msra.mxu0 %v8263_v36 }
  0xa1   : > { %1518 = vmatpush1.bf16.msra.mxu1 %v8268_v37  ;;  %1502 = vmatprep.subr.bf16.mxu0 %v8274_v38 }
  0xa2   : > { %1519 = vmatprep.subr.bf16.mxu1 %v8279_v39 }
  0xa4   : > { %1503 = vmatpush1.bf16.msra.mxu0 %v8288_v40 }
  0xa5   : > { %1520 = vmatpush1.bf16.msra.mxu1 %v8293_v41  ;;  %1596 = vmatprep.subr.bf16.mxu0 %v8314_v30 }
  0xa6   : > { %1637 = vmatprep.subr.bf16.mxu1 %v8320_v11 }
  0xa7   : > { %1505 = vmatmul.mubr.bf16.vlgmr.msra.gmra.mrb[8].mxu0 %v7894_v7 }
  0xa8   : > { %6111 = vmatmul.mubr.msk.bf16.vlgmr.msra.gmra.mrb[8].mxu1 %vm938_vm0, %v7953_v27  ;;  %1597 = vmatpush1.bf16.msra.mxu0 %v8329_v10 }
  0xa9   : > { %1638 = vmatpush1.bf16.msra.mxu1 %v8335_v55  ;;  %1598 = vmatprep.subr.bf16.mxu0 %v8341_v54  ;;  %v8357_v55 = vld [vmem:[%s12780_s1 + $0x250] ss:$8 sps:$4 sm:$0xff]  }
  0xaa   : > { %1639 = vmatprep.subr.bf16.mxu1 %v8347_v20  ;;  %1628 = vmatprep.mubr.bf16.mxu0 %v12802_v44  ;;  %13550 = vst [vmem:[#allocation10_spill] sm:$0xff] %v8357_v55  ;;  %v8363_v54 = vld [vmem:[%s12780_s1 + $0x350] ss:$8 sps:$4 sm:$0xff]   ;;  %v8369_v44 = vld [vmem:[%s12780_s1 + $0x264] ss:$8 sps:$4 sm:$0xff]  }
  0xab   : > { %1669 = vmatprep.mubr.bf16.mxu1 %v12803_v45  ;;  %13551 = vst [vmem:[#allocation11_spill] sm:$0xff] %v8363_v54  ;;  %13552 = vst [vmem:[#allocation12_spill] sm:$0xff] %v8369_v44  ;;  %v8375_v45 = vld [vmem:[%s12780_s1 + $0x364] ss:$8 sps:$4 sm:$0xff]   ;;  %v8677_v20 = vld [vmem:[%s12780_s1 + $0x320] ss:$8 sps:$4 sm:$0xff]  }
  0xac   : > { %1599 = vmatpush1.bf16.msra.mxu0 %v8357_v55  ;;  %13553 = vst [vmem:[#allocation13_spill] sm:$0xff] %v8375_v45  ;;  %v8381_v55 = vld [vmem:[%s12780_s1 + $0x260] ss:$8 sps:$4 sm:$0xff]   ;;  %13602 = vst [vmem:[#allocation62_spill] sm:$0xff] %v8677_v20 }
  0xad   : > { %1640 = vmatpush1.bf16.msra.mxu1 %v8363_v54  ;;  %1600 = vmatprep.subr.bf16.mxu0 %v8369_v44  ;;  %13554 = vst [vmem:[#allocation14_spill] sm:$0xff] %v8381_v55  ;;  %v8387_v54 = vld [vmem:[%s12780_s1 + $0x360] ss:$8 sps:$4 sm:$0xff]   ;;  %v8393_v44 = vld [vmem:[%s12780_s1 + $0x274] ss:$8 sps:$4 sm:$0xff]  }
  0xae   : > { %1641 = vmatprep.subr.bf16.mxu1 %v8375_v45  ;;  %13555 = vst [vmem:[#allocation15_spill] sm:$0xff] %v8387_v54  ;;  %13556 = vst [vmem:[#allocation16_spill] sm:$0xff] %v8393_v44  ;;  %v8399_v45 = vld [vmem:[%s12780_s1 + $0x374] ss:$8 sps:$4 sm:$0xff]  }
  0xaf   : > { %13557 = vst [vmem:[#allocation17_spill] sm:$0xff] %v8399_v45 }
  0xb0   : > { %1601 = vmatpush1.bf16.msra.mxu0 %v8381_v55  ;;  %v8405_v55 = vld [vmem:[%s12780_s1 + $0x270] ss:$8 sps:$4 sm:$0xff]  }
  0xb1   : > { %1642 = vmatpush1.bf16.msra.mxu1 %v8387_v54  ;;  %1602 = vmatprep.subr.bf16.mxu0 %v8393_v44  ;;  %13558 = vst [vmem:[#allocation18_spill] sm:$0xff] %v8405_v55  ;;  %v8411_v54 = vld [vmem:[%s12780_s1 + $0x370] ss:$8 sps:$4 sm:$0xff]   ;;  %v8417_v44 = vld [vmem:[%s12780_s1 + $0x284] ss:$8 sps:$4 sm:$0xff]  }
  0xb2   : > { %1643 = vmatprep.subr.bf16.mxu1 %v8399_v45  ;;  %13559 = vst [vmem:[#allocation19_spill] sm:$0xff] %v8411_v54  ;;  %13560 = vst [vmem:[#allocation20_spill] sm:$0xff] %v8417_v44  ;;  %v8423_v45 = vld [vmem:[%s12780_s1 + $0x384] ss:$8 sps:$4 sm:$0xff]  }
  0xb3   : > { %13561 = vst [vmem:[#allocation21_spill] sm:$0xff] %v8423_v45 }
  0xb4   : > { %1603 = vmatpush1.bf16.msra.mxu0 %v8405_v55  ;;  %v8429_v55 = vld [vmem:[%s12780_s1 + $0x280] ss:$8 sps:$4 sm:$0xff]  }
  0xb5   : > { %1644 = vmatpush1.bf16.msra.mxu1 %v8411_v54  ;;  %1604 = vmatprep.subr.bf16.mxu0 %v8417_v44  ;;  %13562 = vst [vmem:[#allocation22_spill] sm:$0xff] %v8429_v55  ;;  %v8435_v54 = vld [vmem:[%s12780_s1 + $0x380] ss:$8 sps:$4 sm:$0xff]   ;;  %v8441_v44 = vld [vmem:[%s12780_s1 + $0x294] ss:$8 sps:$4 sm:$0xff]  }
  0xb6   : > { %1645 = vmatprep.subr.bf16.mxu1 %v8423_v45  ;;  %13563 = vst [vmem:[#allocation23_spill] sm:$0xff] %v8435_v54  ;;  %13564 = vst [vmem:[#allocation24_spill] sm:$0xff] %v8441_v44  ;;  %v8447_v45 = vld [vmem:[%s12780_s1 + $0x394] ss:$8 sps:$4 sm:$0xff]  }
  0xb7   : > { %13565 = vst [vmem:[#allocation25_spill] sm:$0xff] %v8447_v45 }
  0xb8   : > { %1605 = vmatpush1.bf16.msra.mxu0 %v8429_v55  ;;  %v8453_v55 = vld [vmem:[%s12780_s1 + $0x290] ss:$8 sps:$4 sm:$0xff]  }
  0xb9   : > { %1646 = vmatpush1.bf16.msra.mxu1 %v8435_v54  ;;  %1606 = vmatprep.subr.bf16.mxu0 %v8441_v44  ;;  %13566 = vst [vmem:[#allocation26_spill] sm:$0xff] %v8453_v55  ;;  %v8459_v54 = vld [vmem:[%s12780_s1 + $0x390] ss:$8 sps:$4 sm:$0xff]   ;;  %v8465_v44 = vld [vmem:[%s12780_s1 + $0x2a4] ss:$8 sps:$4 sm:$0xff]  }
  0xba   : > { %1647 = vmatprep.subr.bf16.mxu1 %v8447_v45  ;;  %13567 = vst [vmem:[#allocation27_spill] sm:$0xff] %v8459_v54  ;;  %13568 = vst [vmem:[#allocation28_spill] sm:$0xff] %v8465_v44  ;;  %v8471_v45 = vld [vmem:[%s12780_s1 + $0x3a4] ss:$8 sps:$4 sm:$0xff]  }
  0xbb   : > { %13569 = vst [vmem:[#allocation29_spill] sm:$0xff] %v8471_v45 }
  0xbc   : > { %1607 = vmatpush1.bf16.msra.mxu0 %v8453_v55  ;;  %v8477_v55 = vld [vmem:[%s12780_s1 + $0x2a0] ss:$8 sps:$4 sm:$0xff]  }
  0xbd   : > { %1648 = vmatpush1.bf16.msra.mxu1 %v8459_v54  ;;  %1608 = vmatprep.subr.bf16.mxu0 %v8465_v44  ;;  %13570 = vst [vmem:[#allocation30_spill] sm:$0xff] %v8477_v55  ;;  %v8483_v54 = vld [vmem:[%s12780_s1 + $0x3a0] ss:$8 sps:$4 sm:$0xff]   ;;  %v8489_v44 = vld [vmem:[%s12780_s1 + $0x2b4] ss:$8 sps:$4 sm:$0xff]  }
  0xbe   : > { %1649 = vmatprep.subr.bf16.mxu1 %v8471_v45  ;;  %13571 = vst [vmem:[#allocation31_spill] sm:$0xff] %v8483_v54  ;;  %13572 = vst [vmem:[#allocation32_spill] sm:$0xff] %v8489_v44  ;;  %v8495_v45 = vld [vmem:[%s12780_s1 + $0x3b4] ss:$8 sps:$4 sm:$0xff]  }
  0xbf   : > { %13573 = vst [vmem:[#allocation33_spill] sm:$0xff] %v8495_v45 }
  0xc0   : > { %1609 = vmatpush1.bf16.msra.mxu0 %v8477_v55  ;;  %v8501_v55 = vld [vmem:[%s12780_s1 + $0x2b0] ss:$8 sps:$4 sm:$0xff]  }
  0xc1   : > { %1650 = vmatpush1.bf16.msra.mxu1 %v8483_v54  ;;  %1610 = vmatprep.subr.bf16.mxu0 %v8489_v44  ;;  %13574 = vst [vmem:[#allocation34_spill] sm:$0xff] %v8501_v55  ;;  %v8507_v54 = vld [vmem:[%s12780_s1 + $0x3b0] ss:$8 sps:$4 sm:$0xff]   ;;  %v8513_v44 = vld [vmem:[%s12780_s1 + $0x2c4] ss:$8 sps:$4 sm:$0xff]  }
  0xc2   : > { %1651 = vmatprep.subr.bf16.mxu1 %v8495_v45  ;;  %13575 = vst [vmem:[#allocation35_spill] sm:$0xff] %v8507_v54  ;;  %13576 = vst [vmem:[#allocation36_spill] sm:$0xff] %v8513_v44  ;;  %v8519_v45 = vld [vmem:[%s12780_s1 + $0x3c4] ss:$8 sps:$4 sm:$0xff]  }
  0xc3   : > { %13577 = vst [vmem:[#allocation37_spill] sm:$0xff] %v8519_v45 }
  0xc4   : > { %1611 = vmatpush1.bf16.msra.mxu0 %v8501_v55  ;;  %v8525_v55 = vld [vmem:[%s12780_s1 + $0x2c0] ss:$8 sps:$4 sm:$0xff]  }
  0xc5   : > { %1652 = vmatpush1.bf16.msra.mxu1 %v8507_v54  ;;  %1612 = vmatprep.subr.bf16.mxu0 %v8513_v44  ;;  %13578 = vst [vmem:[#allocation38_spill] sm:$0xff] %v8525_v55  ;;  %v8531_v54 = vld [vmem:[%s12780_s1 + $0x3c0] ss:$8 sps:$4 sm:$0xff]   ;;  %v8537_v44 = vld [vmem:[%s12780_s1 + $0x2d4] ss:$8 sps:$4 sm:$0xff]  }
  0xc6   : > { %1653 = vmatprep.subr.bf16.mxu1 %v8519_v45  ;;  %13579 = vst [vmem:[#allocation39_spill] sm:$0xff] %v8531_v54  ;;  %13580 = vst [vmem:[#allocation40_spill] sm:$0xff] %v8537_v44  ;;  %v8543_v45 = vld [vmem:[%s12780_s1 + $0x3d4] ss:$8 sps:$4 sm:$0xff]  }
  0xc7   : > { %13581 = vst [vmem:[#allocation41_spill] sm:$0xff] %v8543_v45 }
  0xc8   : > { %1613 = vmatpush1.bf16.msra.mxu0 %v8525_v55  ;;  %v8549_v55 = vld [vmem:[%s12780_s1 + $0x2d0] ss:$8 sps:$4 sm:$0xff]  }
  0xc9   : > { %1654 = vmatpush1.bf16.msra.mxu1 %v8531_v54  ;;  %1614 = vmatprep.subr.bf16.mxu0 %v8537_v44  ;;  %13582 = vst [vmem:[#allocation42_spill] sm:$0xff] %v8549_v55  ;;  %v8555_v54 = vld [vmem:[%s12780_s1 + $0x3d0] ss:$8 sps:$4 sm:$0xff]   ;;  %v8561_v44 = vld [vmem:[%s12780_s1 + $0x2e4] ss:$8 sps:$4 sm:$0xff]  }
  0xca   : > { %1655 = vmatprep.subr.bf16.mxu1 %v8543_v45  ;;  %13583 = vst [vmem:[#allocation43_spill] sm:$0xff] %v8555_v54  ;;  %13584 = vst [vmem:[#allocation44_spill] sm:$0xff] %v8561_v44  ;;  %v8567_v45 = vld [vmem:[%s12780_s1 + $0x3e4] ss:$8 sps:$4 sm:$0xff]  }
  0xcb   : > { %13585 = vst [vmem:[#allocation45_spill] sm:$0xff] %v8567_v45 }
  0xcc   : > { %1615 = vmatpush1.bf16.msra.mxu0 %v8549_v55  ;;  %v8573_v55 = vld [vmem:[%s12780_s1 + $0x2e0] ss:$8 sps:$4 sm:$0xff]  }
  0xcd   : > { %1656 = vmatpush1.bf16.msra.mxu1 %v8555_v54  ;;  %1616 = vmatprep.subr.bf16.mxu0 %v8561_v44  ;;  %13586 = vst [vmem:[#allocation46_spill] sm:$0xff] %v8573_v55  ;;  %v8579_v54 = vld [vmem:[%s12780_s1 + $0x3e0] ss:$8 sps:$4 sm:$0xff]   ;;  %v8585_v44 = vld [vmem:[%s12780_s1 + $0x2f4] ss:$8 sps:$4 sm:$0xff]  }
  0xce   : > { %1657 = vmatprep.subr.bf16.mxu1 %v8567_v45  ;;  %13587 = vst [vmem:[#allocation47_spill] sm:$0xff] %v8579_v54  ;;  %13588 = vst [vmem:[#allocation48_spill] sm:$0xff] %v8585_v44  ;;  %v8591_v45 = vld [vmem:[%s12780_s1 + $0x3f4] ss:$8 sps:$4 sm:$0xff]  }
  0xcf   : > { %13589 = vst [vmem:[#allocation49_spill] sm:$0xff] %v8591_v45 }
  0xd0   : > { %1617 = vmatpush1.bf16.msra.mxu0 %v8573_v55  ;;  %v8597_v55 = vld [vmem:[%s12780_s1 + $0x2f0] ss:$8 sps:$4 sm:$0xff]  }
  0xd1   : > { %1658 = vmatpush1.bf16.msra.mxu1 %v8579_v54  ;;  %1618 = vmatprep.subr.bf16.mxu0 %v8585_v44  ;;  %13590 = vst [vmem:[#allocation50_spill] sm:$0xff] %v8597_v55  ;;  %v8603_v54 = vld [vmem:[%s12780_s1 + $0x3f0] ss:$8 sps:$4 sm:$0xff]   ;;  %v8609_v44 = vld [vmem:[%s12780_s1 + $0x304] ss:$8 sps:$4 sm:$0xff]  }
  0xd2   : > { %1659 = vmatprep.subr.bf16.mxu1 %v8591_v45  ;;  %13591 = vst [vmem:[#allocation51_spill] sm:$0xff] %v8603_v54  ;;  %13592 = vst [vmem:[#allocation52_spill] sm:$0xff] %v8609_v44  ;;  %v8615_v45 = vld [vmem:[%s12780_s1 + $0x404] ss:$8 sps:$4 sm:$0xff]  }
  0xd3   : > { %13593 = vst [vmem:[#allocation53_spill] sm:$0xff] %v8615_v45 }
  0xd4   : > { %1619 = vmatpush1.bf16.msra.mxu0 %v8597_v55  ;;  %v8621_v55 = vld [vmem:[%s12780_s1 + $0x300] ss:$8 sps:$4 sm:$0xff]  }
  0xd5   : > { %1660 = vmatpush1.bf16.msra.mxu1 %v8603_v54  ;;  %1620 = vmatprep.subr.bf16.mxu0 %v8609_v44  ;;  %13594 = vst [vmem:[#allocation54_spill] sm:$0xff] %v8621_v55  ;;  %v8627_v54 = vld [vmem:[%s12780_s1 + $0x400] ss:$8 sps:$4 sm:$0xff]   ;;  %v8633_v44 = vld [vmem:[%s12780_s1 + $0x314] ss:$8 sps:$4 sm:$0xff]  }
  0xd6   : > { %1661 = vmatprep.subr.bf16.mxu1 %v8615_v45  ;;  %13595 = vst [vmem:[#allocation55_spill] sm:$0xff] %v8627_v54  ;;  %13596 = vst [vmem:[#allocation56_spill] sm:$0xff] %v8633_v44  ;;  %v8639_v45 = vld [vmem:[%s12780_s1 + $0x414] ss:$8 sps:$4 sm:$0xff]  }
  0xd7   : > { %13597 = vst [vmem:[#allocation57_spill] sm:$0xff] %v8639_v45 }
  0xd8   : > { %1621 = vmatpush1.bf16.msra.mxu0 %v8621_v55  ;;  %v8645_v55 = vld [vmem:[%s12780_s1 + $0x310] ss:$8 sps:$4 sm:$0xff]  }
  0xd9   : > { %1662 = vmatpush1.bf16.msra.mxu1 %v8627_v54  ;;  %1622 = vmatprep.subr.bf16.mxu0 %v8633_v44  ;;  %13598 = vst [vmem:[#allocation58_spill] sm:$0xff] %v8645_v55  ;;  %v8651_v54 = vld [vmem:[%s12780_s1 + $0x410] ss:$8 sps:$4 sm:$0xff]   ;;  %v8657_v44 = vld [vmem:[%s12780_s1 + $0x324] ss:$8 sps:$4 sm:$0xff]  }
  0xda   : > { %1663 = vmatprep.subr.bf16.mxu1 %v8639_v45  ;;  %13599 = vst [vmem:[#allocation59_spill] sm:$0xff] %v8651_v54  ;;  %13600 = vst [vmem:[#allocation60_spill] sm:$0xff] %v8657_v44  ;;  %v8663_v45 = vld [vmem:[%s12780_s1 + $0x424] ss:$8 sps:$4 sm:$0xff]  }
  0xdb   : > { %13601 = vst [vmem:[#allocation61_spill] sm:$0xff] %v8663_v45 }
  0xdc   : > { %1623 = vmatpush1.bf16.msra.mxu0 %v8645_v55  ;;  %v8668_v55 = vcombine.low %v8255_v34, %v8255_v34  ;;  %v8689_v34 = vld [vmem:[%s12780_s1 + $0x334] ss:$8 sps:$4 sm:$0xff]  }
  0xdd   : > { %1664 = vmatpush1.bf16.msra.mxu1 %v8651_v54  ;;  %1624 = vmatprep.subr.bf16.mxu0 %v8657_v44  ;;  %v8672_v54 = vcombine.low %v8258_v35, %v8258_v35  ;;  %v8683_v44 = vld [vmem:[%s12780_s1 + $0x420] ss:$8 sps:$4 sm:$0xff]   ;;  %13604 = vst [vmem:[#allocation64_spill] sm:$0xff] %v8689_v34  ;;  %v8695_v35 = vld [vmem:[%s12780_s1 + $0x434] ss:$8 sps:$4 sm:$0xff]  }
  0xde   : > { %1665 = vmatprep.subr.bf16.mxu1 %v8663_v45  ;;  %13603 = vst [vmem:[#allocation63_spill] sm:$0xff] %v8683_v44  ;;  %13605 = vst [vmem:[#allocation65_spill] sm:$0xff] %v8695_v35  ;;  %v8721_v45 = vld [vmem:[%s12780_s1 + $0x4] ss:$8 sps:$4 sm:$0xff]  }
  0xdf   : > { %13609 = vst [vmem:[#allocation69_spill] sm:$0xff] %v8721_v45 }
  0xe0   : > { %1625 = vmatpush1.bf16.msra.mxu0 %v8677_v20  ;;  %v8715_v20 = vld [vmem:[%s12780_s1 + $0x444] ss:$8 sps:$4 sm:$0xff]  }
  0xe1   : > { %1666 = vmatpush1.bf16.msra.mxu1 %v8683_v44  ;;  %1626 = vmatprep.subr.bf16.mxu0 %v8689_v34  ;;  %v8703_v44 = vld [vmem:[%s12780_s1 + $0x330] ss:$8 sps:$4 sm:$0xff]   ;;  %13608 = vst [vmem:[#allocation68_spill] sm:$0xff] %v8715_v20 }
  0xe2   : > { %1667 = vmatprep.subr.bf16.mxu1 %v8695_v35  ;;  %13606 = vst [vmem:[#allocation66_spill] sm:$0xff] %v8703_v44  ;;  %v8709_v34 = vld [vmem:[%s12780_s1 + $0x430] ss:$8 sps:$4 sm:$0xff]   ;;  %v13611_v35 = vrot.slane %v8672_v54, 1 }
  0xe3   : > { %13607 = vst [vmem:[#allocation67_spill] sm:$0xff] %v8709_v34 }
  0xe4   : > { %1627 = vmatpush1.bf16.msra.mxu0 %v8703_v44  ;;  %v13610_v44 = vrot.slane %v8668_v55, 1 }
  0xe5   : > { %1668 = vmatpush1.bf16.msra.mxu1 %v8709_v34  ;;  %1678 = vmatprep.subr.bf16.mxu0 %v8715_v20  ;;  %v8731_v34 = vld [vmem:[%s12780_s1 + $0x440] ss:$8 sps:$4 sm:$0xff]  }
  0xe6   : > { %1719 = vmatprep.subr.bf16.mxu1 %v8721_v45  ;;  %13612 = vst [vmem:[#allocation70_spill] sm:$0xff] %v8731_v34  ;;  %v8737_v20 = vld [vmem:[%s12780_s1] ss:$8 sps:$4 sm:$0xff]   ;;  %v13617_v45 = vshrl.u32 %v7830_v48, 16  ;;  %v8776_v48 = vld [vmem:[%s12780_s1 + $0x24] ss:$8 sps:$4 sm:$0xff]  }
  0xe7   : > { %1629 = vmatmul.mubr.bf16.vlgmr.msra.gmra.mrb[12].mxu0 %v13610_v44  ;;  %13613 = vst [vmem:[#allocation71_spill] sm:$0xff] %v8737_v20  ;;  %v8743_v44 = vld [vmem:[%s12780_s1 + $0x454] ss:$8 sps:$4 sm:$0xff]   ;;  %13621 = vst [vmem:[#allocation77_spill] sm:$0xff] %v8776_v48 }
  0xe8   : > { %1670 = vmatmul.mubr.bf16.vlgmr.msra.gmra.mrb[12].mxu1 %v13611_v35  ;;  %1679 = vmatpush1.bf16.msra.mxu0 %v8731_v34  ;;  %13614 = vst [vmem:[#allocation72_spill] sm:$0xff] %v8743_v44  ;;  %v8749_v35 = vld [vmem:[%s12780_s1 + $0x14] ss:$8 sps:$4 sm:$0xff]   ;;  %v13616_v34 = vmov 0  }
  0xe9   : > { %1720 = vmatpush1.bf16.msra.mxu1 %v8737_v20  ;;  %1680 = vmatprep.subr.bf16.mxu0 %v8743_v44  ;;  %13615 = vst [vmem:[#allocation73_spill] sm:$0xff] %v8749_v35  ;;  %v8758_v20 = vld [vmem:[%s12780_s1 + $0x450] ss:$8 sps:$4 sm:$0xff]  }
  0xea   : > { %1721 = vmatprep.subr.bf16.mxu1 %v8749_v35  ;;  %1710 = vmatprep.mubr.bf16.mxu0 %v13616_v34  ;;  %13618 = vst [vmem:[#allocation74_spill] sm:$0xff] %v8758_v20  ;;  %v8764_v44 = vld [vmem:[%s12780_s1 + $0x10] ss:$8 sps:$4 sm:$0xff]   ;;  %v8770_v35 = vld [vmem:[%s12780_s1 + $0x464] ss:$8 sps:$4 sm:$0xff]  }
  0xeb   : > { %1751 = vmatprep.mubr.bf16.mxu1 %v13617_v45  ;;  %13619 = vst [vmem:[#allocation75_spill] sm:$0xff] %v8764_v44  ;;  %13620 = vst [vmem:[#allocation76_spill] sm:$0xff] %v8770_v35  ;;  %v8780_v45 = vld [vmem:[%s7818_s19 + $0x10] ss:$0 sps:$4 sm:$0x22]  }
  0xec   : > { %1681 = vmatpush1.bf16.msra.mxu0 %v8758_v20  ;;  %v8803_v20 = vld [vmem:[%s12780_s1 + $0x34] ss:$8 sps:$4 sm:$0xff]  }
  0xed   : > { %1722 = vmatpush1.bf16.msra.mxu1 %v8764_v44  ;;  %1682 = vmatprep.subr.bf16.mxu0 %v8770_v35  ;;  %v8785_v44 = vld [vmem:[%s12780_s1 + $0x460] ss:$8 sps:$4 sm:$0xff]   ;;  %13625 = vst [vmem:[#allocation81_spill] sm:$0xff] %v8803_v20 }
  0xee   : > { %1723 = vmatprep.subr.bf16.mxu1 %v8776_v48  ;;  %13622 = vst [vmem:[#allocation78_spill] sm:$0xff] %v8785_v44  ;;  %v8791_v35 = vld [vmem:[%s12780_s1 + $0x20] ss:$8 sps:$4 sm:$0xff]   ;;  %v8797_v48 = vld [vmem:[%s12780_s1 + $0x474] ss:$8 sps:$4 sm:$0xff]  }
  0xef   : > { %13623 = vst [vmem:[#allocation79_spill] sm:$0xff] %v8791_v35  ;;  %13624 = vst [vmem:[#allocation80_spill] sm:$0xff] %v8797_v48 }
  0xf0   : > { %1683 = vmatpush1.bf16.msra.mxu0 %v8785_v44  ;;  %v8828_v44 = vld [vmem:[%s12780_s1 + $0x104] ss:$8 sps:$4 sm:$0xff]  }
  0xf1   : > { %1724 = vmatpush1.bf16.msra.mxu1 %v8791_v35  ;;  %1684 = vmatprep.subr.bf16.mxu0 %v8797_v48  ;;  %v8810_v35 = vld [vmem:[%s12780_s1 + $0x470] ss:$8 sps:$4 sm:$0xff]   ;;  %13629 = vst [vmem:[#allocation85_spill] sm:$0xff] %v8828_v44 }
  0xf2   : > { %1725 = vmatprep.subr.bf16.mxu1 %v8803_v20  ;;  %13626 = vst [vmem:[#allocation82_spill] sm:$0xff] %v8810_v35  ;;  %v8816_v48 = vld [vmem:[%s12780_s1 + $0x30] ss:$8 sps:$4 sm:$0xff]   ;;  %v8822_v20 = vld [vmem:[%s12780_s1 + $0x44] ss:$8 sps:$4 sm:$0xff]  }
  0xf3   : > { %13627 = vst [vmem:[#allocation83_spill] sm:$0xff] %v8816_v48  ;;  %13628 = vst [vmem:[#allocation84_spill] sm:$0xff] %v8822_v20 }
  0xf4   : > { %1685 = vmatpush1.bf16.msra.mxu0 %v8810_v35  ;;  %v13630_v35 = vrot.slane %v8780_v45, 1 }
  0xf5   : > { %1726 = vmatpush1.bf16.msra.mxu1 %v8816_v48  ;;  %1760 = vmatprep.subr.bf16.mxu0 %v8828_v44  ;;  %v8837_v48 = vld [vmem:[%s12780_s1 + $0x40] ss:$8 sps:$4 sm:$0xff]   ;;  %v8849_v44 = vld [vmem:[%s12780_s1 + $0x54] ss:$8 sps:$4 sm:$0xff]  }
  0xf6   : > { %1727 = vmatprep.subr.bf16.mxu1 %v8822_v20  ;;  %13631 = vst [vmem:[#allocation86_spill] sm:$0xff] %v8837_v48  ;;  %v8843_v20 = vld [vmem:[%s12780_s1 + $0x100] ss:$8 sps:$4 sm:$0xff]   ;;  %13633 = vst [vmem:[#allocation88_spill] sm:$0xff] %v8849_v44 }
  0xf7   : > { %6117 = vmatmul.mubr.msk.bf16.vlgmr.msra.gmra.mrb[16].mxu0 %vm938_vm0, %v13630_v35  ;;  %13632 = vst [vmem:[#allocation87_spill] sm:$0xff] %v8843_v20  ;;  %v8855_v35 = vld [vmem:[%s12780_s1 + $0x114] ss:$8 sps:$4 sm:$0xff]  }
  0xf8   : > { %1761 = vmatpush1.bf16.msra.mxu0 %v8843_v20  ;;  %13634 = vst [vmem:[#allocation89_spill] sm:$0xff] %v8855_v35  ;;  %v8863_v20 = vld [vmem:[%s12780_s1 + $0x50] ss:$8 sps:$4 sm:$0xff]  }
  0xf9   : > { %1728 = vmatpush1.bf16.msra.mxu1 %v8837_v48  ;;  %1762 = vmatprep.subr.bf16.mxu0 %v8855_v35  ;;  %v13635_v48 = vshrl.u32 %v7836_v51, 16  ;;  %v8875_v35 = vld [vmem:[%s12780_s1 + $0x64] ss:$8 sps:$4 sm:$0xff]  }
  0xfa   : > { %1729 = vmatprep.subr.bf16.mxu1 %v8849_v44  ;;  %v8869_v44 = vld [vmem:[%s12780_s1 + $0x110] ss:$8 sps:$4 sm:$0xff]   ;;  %13637 = vst [vmem:[#allocation91_spill] sm:$0xff] %v8875_v35  ;;  %v8881_v51 = vld [vmem:[%s12780_s1 + $0x124] ss:$8 sps:$4 sm:$0xff]  }
  0xfb   : > { %1792 = vmatprep.mubr.bf16.mxu0 %v13635_v48  ;;  %13636 = vst [vmem:[#allocation90_spill] sm:$0xff] %v8869_v44  ;;  %13638 = vst [vmem:[#allocation92_spill] sm:$0xff] %v8881_v51  ;;  %v8887_v48 = vld [vmem:[%s12780_s1 + $0x60] ss:$8 sps:$4 sm:$0xff]  }
  0xfc   : > { %1763 = vmatpush1.bf16.msra.mxu0 %v8869_v44  ;;  %13639 = vst [vmem:[#allocation93_spill] sm:$0xff] %v8887_v48  ;;  %v8893_v44 = vld [vmem:[%s12780_s1 + $0x120] ss:$8 sps:$4 sm:$0xff]  }
  0xfd   : > { %1730 = vmatpush1.bf16.msra.mxu1 %v8863_v20  ;;  %1764 = vmatprep.subr.bf16.mxu0 %v8881_v51  ;;  %13640 = vst [vmem:[#allocation94_spill] sm:$0xff] %v8893_v44  ;;  %v8905_v51 = vld [vmem:[%s12780_s1 + $0x134] ss:$8 sps:$4 sm:$0xff]  }
  0xfe   : > { %1731 = vmatprep.subr.bf16.mxu1 %v8875_v35  ;;  %v8899_v35 = vld [vmem:[%s12780_s1 + $0x74] ss:$8 sps:$4 sm:$0xff]   ;;  %13642 = vst [vmem:[#allocation96_spill] sm:$0xff] %v8905_v51 }
  0xff   : > { %13641 = vst [vmem:[#allocation95_spill] sm:$0xff] %v8899_v35 }
 0x100   : > { %1765 = vmatpush1.bf16.msra.mxu0 %v8893_v44  ;;  %v8917_v44 = vld [vmem:[%s12780_s1 + $0x130] ss:$8 sps:$4 sm:$0xff]  }
 0x101   : > { %1732 = vmatpush1.bf16.msra.mxu1 %v8887_v48  ;;  %1766 = vmatprep.subr.bf16.mxu0 %v8905_v51  ;;  %v8911_v48 = vld [vmem:[%s12780_s1 + $0x70] ss:$8 sps:$4 sm:$0xff]   ;;  %13644 = vst [vmem:[#allocation98_spill] sm:$0xff] %v8917_v44 }
 0x102   : > { %1733 = vmatprep.subr.bf16.mxu1 %v8899_v35  ;;  %13643 = vst [vmem:[#allocation97_spill] sm:$0xff] %v8911_v48  ;;  %v8923_v35 = vld [vmem:[%s12780_s1 + $0x84] ss:$8 sps:$4 sm:$0xff]  }
 0x103   : > { %13645 = vst [vmem:[#allocation99_spill] sm:$0xff] %v8923_v35 }
 0x104   : > { %1767 = vmatpush1.bf16.msra.mxu0 %v8917_v44 }
 0x105   : > { %1734 = vmatpush1.bf16.msra.mxu1 %v8911_v48  ;;  %1768 = vmatprep.subr.bf16.mxu0 %v8014_v46  ;;  %v13646_v46 = vshrl.u32 %v7892_v6, 16 }
 0x106   : > { %1735 = vmatprep.subr.bf16.mxu1 %v8923_v35 }
 0x108   : > { %1769 = vmatpush1.bf16.msra.mxu0 %v8024_v49 }
 0x109   : > { %1736 = vmatpush1.bf16.msra.mxu1 %v8019_v47  ;;  %1770 = vmatprep.subr.bf16.mxu0 %v8035_v52 }
 0x10a   : > { %1737 = vmatprep.subr.bf16.mxu1 %v8030_v50 }
 0x10c   : > { %1771 = vmatpush1.bf16.msra.mxu0 %v8045_v56 }
 0x10d   : > { %1738 = vmatpush1.bf16.msra.mxu1 %v8040_v53  ;;  %1772 = vmatprep.subr.bf16.mxu0 %v8055_v58 }
 0x10e   : > { %1739 = vmatprep.subr.bf16.mxu1 %v8050_v57 }
 0x110   : > { %1773 = vmatpush1.bf16.msra.mxu0 %v8069_v60  ;;  %v1853_v60 = vshrl.u32 %v8297_v42, 16 }
 0x111   : > { %1740 = vmatpush1.bf16.msra.mxu1 %v8064_v59  ;;  %1774 = vmatprep.subr.bf16.mxu0 %v8079_v62 }
 0x112   : > { %1741 = vmatprep.subr.bf16.mxu1 %v8074_v61  ;;  %v1861_v61 = vshrl.u32 %v8301_v43, 16  ;;  %v8980_v62 = vrot.slane %v1853_v60, 1  ;;  %v13692_v60 = vld [vmem:[#allocation48_spill] sm:$0xff] }
 0x114   : > { %1775 = vmatpush1.bf16.msra.mxu0 %v8093_v0  ;;  %13647 = vst [vmem:[#allocation100_spill] sm:$0xff] %v8980_v62  ;;  %v13649_v0 = vshrl.u32 %v7894_v7, 16 }
 0x115   : > { %1742 = vmatpush1.bf16.msra.mxu1 %v8088_v63  ;;  %1776 = vmatprep.subr.bf16.mxu0 %v8103_v2  ;;  %v8982_v63 = vrot.slane %v1861_v61, 1  ;;  %v13651_v2 = vld [vmem:[#allocation7_spill] sm:$0xff]  ;;  %v13693_v61 = vld [vmem:[#allocation49_spill] sm:$0xff] }
 0x116   : > { %1743 = vmatprep.subr.bf16.mxu1 %v8098_v1  ;;  %v13650_v1 = vshrl.u32 %v7953_v27, 16  ;;  %v13654_v27 = vld [vmem:[#allocation10_spill] sm:$0xff] }
 0x117   : > { %13648 = vst [vmem:[#allocation101_spill] sm:$0xff] %v8982_v63 }
 0x118   : > { %1777 = vmatpush1.bf16.msra.mxu0 %v8117_v4 }
 0x119   : > { %1744 = vmatpush1.bf16.msra.mxu1 %v8112_v3  ;;  %1778 = vmatprep.subr.bf16.mxu0 %v8127_v8  ;;  %v13652_v3 = vld [vmem:[#allocation8_spill] sm:$0xff] }
 0x11a   : > { %1745 = vmatprep.subr.bf16.mxu1 %v8122_v5 }
 0x11c   : > { %1779 = vmatpush1.bf16.msra.mxu0 %v8141_v12  ;;  %v13656_v12 = vld [vmem:[#allocation12_spill] sm:$0xff] }
 0x11d   : > { %1746 = vmatpush1.bf16.msra.mxu1 %v8136_v9  ;;  %1780 = vmatprep.subr.bf16.mxu0 %v8151_v14  ;;  %v13655_v9 = vld [vmem:[#allocation11_spill] sm:$0xff]  ;;  %v13658_v14 = vld [vmem:[#allocation14_spill] sm:$0xff] }
 0x11e   : > { %1747 = vmatprep.subr.bf16.mxu1 %v8146_v13  ;;  %v13657_v13 = vld [vmem:[#allocation13_spill] sm:$0xff] }
 0x120   : > { %1781 = vmatpush1.bf16.msra.mxu0 %v8165_v16  ;;  %v13660_v16 = vld [vmem:[#allocation16_spill] sm:$0xff] }
 0x121   : > { %1748 = vmatpush1.bf16.msra.mxu1 %v8160_v15  ;;  %1782 = vmatprep.subr.bf16.mxu0 %v8175_v18  ;;  %v13659_v15 = vld [vmem:[#allocation15_spill] sm:$0xff]  ;;  %v13662_v18 = vld [vmem:[#allocation18_spill] sm:$0xff] }
 0x122   : > { %1749 = vmatprep.subr.bf16.mxu1 %v8170_v17  ;;  %v13661_v17 = vld [vmem:[#allocation17_spill] sm:$0xff] }
 0x124   : > { %1783 = vmatpush1.bf16.msra.mxu0 %v8189_v21  ;;  %v13664_v21 = vld [vmem:[#allocation20_spill] sm:$0xff] }
 0x125   : > { %1750 = vmatpush1.bf16.msra.mxu1 %v8184_v19  ;;  %1784 = vmatprep.subr.bf16.mxu0 %v8194_v22  ;;  %v13663_v19 = vld [vmem:[#allocation19_spill] sm:$0xff]  ;;  %v13665_v22 = vld [vmem:[#allocation21_spill] sm:$0xff] }
 0x126   : > { %1801 = vmatprep.subr.bf16.mxu1 %v8199_v23  ;;  %v13666_v23 = vld [vmem:[#allocation22_spill] sm:$0xff] }
 0x128   : > { %1752 = vmatmul.mubr.bf16.vlgmr.msra.gmra.mrb[16].mxu1 %v13646_v46  ;;  %1785 = vmatpush1.bf16.msra.mxu0 %v8208_v24  ;;  %v13667_v24 = vld [vmem:[#allocation23_spill] sm:$0xff]  ;;  %v13681_v46 = vld [vmem:[#allocation37_spill] sm:$0xff] }
 0x129   : > { %1802 = vmatpush1.bf16.msra.mxu1 %v8213_v25  ;;  %1786 = vmatprep.subr.bf16.mxu0 %v8218_v26  ;;  %v13668_v25 = vld [vmem:[#allocation24_spill] sm:$0xff]  ;;  %v13669_v26 = vld [vmem:[#allocation25_spill] sm:$0xff] }
 0x12a   : > { %1803 = vmatprep.subr.bf16.mxu1 %v8223_v28  ;;  %v976_v47 = vpop.f32.mrb[0].mxu0  ;;  %1833 = vmatprep.mubr.bf16.mxu1 %v13616_v34  ;;  %v13670_v28 = vld [vmem:[#allocation26_spill] sm:$0xff] }
 0x12b   : > { %v1017_v49 = vpop.f32.mrb[0].mxu1  ;;  %v978_v52 = vpop.f32.mrb[1].mxu0 }
 0x12c   : > { %v1018_v50 = vadd.f32 %v1017_v49, %v976_v47  ;;  %v1019_v53 = vpop.f32.mrb[1].mxu1  ;;  %v980_v57 = vpop.f32.mrb[2].mxu0  ;;  %1787 = vmatpush1.bf16.msra.mxu0 %v8232_v29  ;;  %v13671_v29 = vld [vmem:[#allocation27_spill] sm:$0xff]  ;;  %v13682_v47 = vld [vmem:[#allocation38_spill] sm:$0xff] }
 0x12d   : > { %v1020_v56 = vadd.f32 %v1019_v53, %v978_v52  ;;  %v1021_v58 = vpop.f32.mrb[2].mxu1  ;;  %1804 = vmatpush1.bf16.msra.mxu1 %v8237_v31  ;;  %v981_v6 = vpop.f32.mrb[3].mxu0  ;;  %1788 = vmatprep.subr.bf16.mxu0 %v8243_v32  ;;  %v13672_v31 = vld [vmem:[#allocation28_spill] sm:$0xff]  ;;  %v13673_v32 = vld [vmem:[#allocation29_spill] sm:$0xff]  ;;  %v13683_v49 = vld [vmem:[#allocation39_spill] sm:$0xff] }
 0x12e   : > { %v1022_v59 = vpop.f32.mrb[3].mxu1  ;;  %1805 = vmatprep.subr.bf16.mxu1 %v8248_v33  ;;  %v13674_v33 = vld [vmem:[#allocation30_spill] sm:$0xff]  ;;  %v13685_v52 = vld [vmem:[#allocation41_spill] sm:$0xff]  ;;  %v13688_v57 = vld [vmem:[#allocation44_spill] sm:$0xff] }
 0x12f   : > { %v13686_v53 = vld [vmem:[#allocation42_spill] sm:$0xff]  ;;  %v13689_v58 = vld [vmem:[#allocation45_spill] sm:$0xff]  ;;  %v13691_v59 = vld [vmem:[#allocation47_spill] sm:$0xff] }
 0x130   : > { %1789 = vmatpush1.bf16.msra.mxu0 %v8263_v36  ;;  %v13675_v36 = vld [vmem:[#allocation31_spill] sm:$0xff]  ;;  %v13690_v6 = vld [vmem:[#allocation46_spill] sm:$0xff] }
 0x131   : > { %1806 = vmatpush1.bf16.msra.mxu1 %v8268_v37  ;;  %1790 = vmatprep.subr.bf16.mxu0 %v8274_v38  ;;  %v13676_v37 = vld [vmem:[#allocation32_spill] sm:$0xff]  ;;  %v13677_v38 = vld [vmem:[#allocation33_spill] sm:$0xff] }
 0x132   : > { %1807 = vmatprep.subr.bf16.mxu1 %v8279_v39  ;;  %v13678_v39 = vld [vmem:[#allocation34_spill] sm:$0xff] }
 0x134   : > { %1791 = vmatpush1.bf16.msra.mxu0 %v8288_v40  ;;  %v13679_v40 = vld [vmem:[#allocation35_spill] sm:$0xff] }
 0x135   : > { %1808 = vmatpush1.bf16.msra.mxu1 %v8293_v41  ;;  %1875 = vmatprep.subr.bf16.mxu0 %v8314_v30  ;;  %v13653_v30 = vld [vmem:[#allocation9_spill] sm:$0xff]  ;;  %v13680_v41 = vld [vmem:[#allocation36_spill] sm:$0xff] }
 0x136   : > { %1916 = vmatprep.subr.bf16.mxu1 %v8320_v11 }
 0x137   : > { %1793 = vmatmul.mubr.bf16.vlgmr.msra.gmra.mrb[20].mxu0 %v13649_v0  ;;  %v13694_v0 = vld [vmem:[#allocation50_spill] sm:$0xff] }
 0x138   : > { %6118 = vmatmul.mubr.msk.bf16.vlgmr.msra.gmra.mrb[20].mxu1 %vm938_vm0, %v13650_v1  ;;  %1876 = vmatpush1.bf16.msra.mxu0 %v8329_v10  ;;  %v13695_v1 = vld [vmem:[#allocation51_spill] sm:$0xff] }
 0x139   : > { %1917 = vmatpush1.bf16.msra.mxu1 %v13651_v2  ;;  %1877 = vmatprep.subr.bf16.mxu0 %v13652_v3  ;;  %v13696_v2 = vld [vmem:[#allocation52_spill] sm:$0xff] }
 0x13a   : > { %1918 = vmatprep.subr.bf16.mxu1 %v13653_v30  ;;  %v1058_v11 = vpop.f32.mrb[4].mxu0  ;;  %1907 = vmatprep.mubr.bf16.mxu0 %v8980_v62 }
 0x13b   : > { %1948 = vmatprep.mubr.bf16.mxu1 %v8982_v63  ;;  %v1059_v4 = vadd.f32 %v1058_v11, %v1018_v50  ;;  %v1060_v7 = vpop.f32.mrb[5].mxu0  ;;  %v13684_v50 = vld [vmem:[#allocation40_spill] sm:$0xff]  ;;  %v13697_v11 = vld [vmem:[#allocation53_spill] sm:$0xff] }
 0x13c   : > { %v1061_v5 = vadd.f32 %v1060_v7, %v1020_v56  ;;  %v1062_v8 = vpop.f32.mrb[6].mxu0  ;;  %1878 = vmatpush1.bf16.msra.mxu0 %v13654_v27  ;;  %v13687_v56 = vld [vmem:[#allocation43_spill] sm:$0xff]  ;;  %v13698_v7 = vld [vmem:[#allocation54_spill] sm:$0xff]  ;;  %v13701_v63 = vld [vmem:[#allocation57_spill] sm:$0xff] }
 0x13d   : > { %1919 = vmatpush1.bf16.msra.mxu1 %v13655_v9  ;;  %v1063_v10 = vpop.f32.mrb[7].mxu0  ;;  %1879 = vmatprep.subr.bf16.mxu0 %v13656_v12  ;;  %v13699_v8 = vld [vmem:[#allocation55_spill] sm:$0xff] }
 0x13e   : > { %1920 = vmatprep.subr.bf16.mxu1 %v13657_v13  ;;  %v13700_v10 = vld [vmem:[#allocation56_spill] sm:$0xff] }
 0x140   : > { %1880 = vmatpush1.bf16.msra.mxu0 %v13658_v14 }
 0x141   : > { %1921 = vmatpush1.bf16.msra.mxu1 %v13659_v15  ;;  %1881 = vmatprep.subr.bf16.mxu0 %v13660_v16 }
 0x142   : > { %1922 = vmatprep.subr.bf16.mxu1 %v13661_v17 }
 0x144   : > { %1882 = vmatpush1.bf16.msra.mxu0 %v13662_v18 }
 0x145   : > { %1923 = vmatpush1.bf16.msra.mxu1 %v13663_v19  ;;  %1883 = vmatprep.subr.bf16.mxu0 %v13664_v21 }
 0x146   : > { %1924 = vmatprep.subr.bf16.mxu1 %v13665_v22 }
 0x148   : > { %1884 = vmatpush1.bf16.msra.mxu0 %v13666_v23 }
 0x149   : > { %1925 = vmatpush1.bf16.msra.mxu1 %v13667_v24  ;;  %1885 = vmatprep.subr.bf16.mxu0 %v13668_v25 }
 0x14a   : > { %1926 = vmatprep.subr.bf16.mxu1 %v13669_v26 }
 0x14c   : > { %1886 = vmatpush1.bf16.msra.mxu0 %v13670_v28 }
 0x14d   : > { %1927 = vmatpush1.bf16.msra.mxu1 %v13671_v29  ;;  %1887 = vmatprep.subr.bf16.mxu0 %v13672_v31 }
 0x14e   : > { %1928 = vmatprep.subr.bf16.mxu1 %v13673_v32 }
 0x150   : > { %1888 = vmatpush1.bf16.msra.mxu0 %v13674_v33 }
 0x151   : > { %1929 = vmatpush1.bf16.msra.mxu1 %v13675_v36  ;;  %1889 = vmatprep.subr.bf16.mxu0 %v13676_v37 }
 0x152   : > { %1930 = vmatprep.subr.bf16.mxu1 %v13677_v38 }
 0x154   : > { %1890 = vmatpush1.bf16.msra.mxu0 %v13678_v39 }
 0x155   : > { %1931 = vmatpush1.bf16.msra.mxu1 %v13679_v40  ;;  %1891 = vmatprep.subr.bf16.mxu0 %v13680_v41 }
 0x156   : > { %1932 = vmatprep.subr.bf16.mxu1 %v13681_v46 }
 0x158   : > { %1892 = vmatpush1.bf16.msra.mxu0 %v13682_v47 }
 0x159   : > { %1933 = vmatpush1.bf16.msra.mxu1 %v13683_v49  ;;  %1893 = vmatprep.subr.bf16.mxu0 %v13684_v50 }
 0x15a   : > { %1934 = vmatprep.subr.bf16.mxu1 %v13685_v52 }
 0x15c   : > { %1894 = vmatpush1.bf16.msra.mxu0 %v13686_v53 }
 0x15d   : > { %1935 = vmatpush1.bf16.msra.mxu1 %v13687_v56  ;;  %1895 = vmatprep.subr.bf16.mxu0 %v13688_v57  ;;  %v13724_v57 = vld [vmem:[#allocation76_spill] sm:$0xff]  ;;  %v13725_v56 = vld [vmem:[#allocation77_spill] sm:$0xff] }
 0x15e   : > { %1936 = vmatprep.subr.bf16.mxu1 %v13689_v58  ;;  %v13704_v58 = vld [vmem:[#allocation60_spill] sm:$0xff] }
 0x160   : > { %1896 = vmatpush1.bf16.msra.mxu0 %v13690_v6 }
 0x161   : > { %1937 = vmatpush1.bf16.msra.mxu1 %v13691_v59  ;;  %1897 = vmatprep.subr.bf16.mxu0 %v13692_v60 }
 0x162   : > { %1938 = vmatprep.subr.bf16.mxu1 %v13693_v61 }
 0x164   : > { %1898 = vmatpush1.bf16.msra.mxu0 %v13694_v0  ;;  %v13702_v0 = vld [vmem:[#allocation58_spill] sm:$0xff] }
 0x165   : > { %1939 = vmatpush1.bf16.msra.mxu1 %v13695_v1  ;;  %1899 = vmatprep.subr.bf16.mxu0 %v13696_v2  ;;  %v13703_v1 = vld [vmem:[#allocation59_spill] sm:$0xff] }
 0x166   : > { %1940 = vmatprep.subr.bf16.mxu1 %v13697_v11  ;;  %v13705_v11 = vld [vmem:[#allocation61_spill] sm:$0xff] }
 0x168   : > { %1900 = vmatpush1.bf16.msra.mxu0 %v13698_v7  ;;  %v13706_v7 = vld [vmem:[#allocation62_spill] sm:$0xff] }
 0x169   : > { %1941 = vmatpush1.bf16.msra.mxu1 %v13699_v8  ;;  %1901 = vmatprep.subr.bf16.mxu0 %v13700_v10  ;;  %v1849_v8 = vshrl.u32 %v8668_v55, 16  ;;  %v1857_v10 = vshrl.u32 %v8672_v54, 16 }
 0x16a   : > { %1942 = vmatprep.subr.bf16.mxu1 %v13701_v63  ;;  %v13707_v63 = vld [vmem:[#allocation63_spill] sm:$0xff] }
 0x16b   : > { %v1465_v62 = vpop.f32.mrb[4].mxu1 }
 0x16c   : > { %v1466_v60 = vadd.f32 %v1465_v62, %v1059_v4  ;;  %v1467_v59 = vpop.f32.mrb[5].mxu1  ;;  %1902 = vmatpush1.bf16.msra.mxu0 %v13702_v0  ;;  %v13708_v62 = vld [vmem:[#allocation64_spill] sm:$0xff]  ;;  %v13709_v4 = vld [vmem:[#allocation65_spill] sm:$0xff] }
 0x16d   : > { %v1468_v61 = vadd.f32 %v1467_v59, %v1061_v5  ;;  %v1469_v6 = vpop.f32.mrb[6].mxu1  ;;  %1943 = vmatpush1.bf16.msra.mxu1 %v13703_v1  ;;  %1903 = vmatprep.subr.bf16.mxu0 %v13704_v58  ;;  %v9053_v5 = vrot.slane %v1849_v8, 1  ;;  %v13712_v59 = vld [vmem:[#allocation66_spill] sm:$0xff]  ;;  %v13715_v58 = vld [vmem:[#allocation69_spill] sm:$0xff]  ;;  %v13718_v8 = vld [vmem:[#allocation72_spill] sm:$0xff] }
 0x16e   : > { %v1470_v2 = vpop.f32.mrb[7].mxu1  ;;  %1944 = vmatprep.subr.bf16.mxu1 %v13705_v11  ;;  %v9055_v6 = vrot.slane %v1857_v10, 1  ;;  %v13714_v11 = vld [vmem:[#allocation68_spill] sm:$0xff]  ;;  %v13719_v10 = vld [vmem:[#allocation73_spill] sm:$0xff] }
 0x16f   : > { %13710 = vst [vmem:[#allocation7_spill] sm:$0xff] %v9053_v5  ;;  %v13713_v2 = vld [vmem:[#allocation67_spill] sm:$0xff] }
 0x170   : > { %1904 = vmatpush1.bf16.msra.mxu0 %v13706_v7  ;;  %13711 = vst [vmem:[#allocation8_spill] sm:$0xff] %v9055_v6 }
 0x171   : > { %1945 = vmatpush1.bf16.msra.mxu1 %v13707_v63  ;;  %1905 = vmatprep.subr.bf16.mxu0 %v13708_v62  ;;  %v13716_v63 = vld [vmem:[#allocation70_spill] sm:$0xff]  ;;  %v13717_v62 = vld [vmem:[#allocation71_spill] sm:$0xff] }
 0x172   : > { %1946 = vmatprep.subr.bf16.mxu1 %v13709_v4 }
 0x174   : > { %1906 = vmatpush1.bf16.msra.mxu0 %v13712_v59 }
 0x175   : > { %1947 = vmatpush1.bf16.msra.mxu1 %v13713_v2  ;;  %1957 = vmatprep.subr.bf16.mxu0 %v13714_v11  ;;  %v13720_v11 = vrot.slane %v8297_v42, 1 }
 0x176   : > { %1998 = vmatprep.subr.bf16.mxu1 %v13715_v58 }
 0x177   : > { %1908 = vmatmul.mubr.bf16.vlgmr.msra.gmra.mrb[24].mxu0 %v9053_v5 }
 0x178   : > { %1949 = vmatmul.mubr.bf16.vlgmr.msra.gmra.mrb[24].mxu1 %v9055_v6  ;;  %1958 = vmatpush1.bf16.msra.mxu0 %v13716_v63  ;;  %v13721_v63 = vld [vmem:[#allocation74_spill] sm:$0xff] }
 0x179   : > { %1999 = vmatpush1.bf16.msra.mxu1 %v13717_v62  ;;  %1959 = vmatprep.subr.bf16.mxu0 %v13718_v8  ;;  %v13722_v62 = vld [vmem:[#allocation75_spill] sm:$0xff] }
 0x17a   : > { %2000 = vmatprep.subr.bf16.mxu1 %v13719_v10  ;;  %v1506_v4 = vpop.f32.mrb[8].mxu0  ;;  %1989 = vmatprep.mubr.bf16.mxu0 %v13616_v34 }
 0x17b   : > { %v1547_v59 = vpop.f32.mrb[8].mxu1  ;;  %2030 = vmatprep.mubr.bf16.mxu1 %v13720_v11  ;;  %v1507_v58 = vadd.f32 %v1506_v4, %v1466_v60  ;;  %v1508_v2 = vpop.f32.mrb[9].mxu0  ;;  %v1865_v60 = vshrl.u32 %v8780_v45, 16  ;;  %v13727_v11 = vld [vmem:[#allocation78_spill] sm:$0xff]  ;;  %v13730_v4 = vld [vmem:[#allocation81_spill] sm:$0xff] }
 0x17c   : > { %v1549_v5 = vpop.f32.mrb[9].mxu1  ;;  %v1509_v7 = vadd.f32 %v1508_v2, %v1468_v61  ;;  %v1510_v6 = vpop.f32.mrb[10].mxu0  ;;  %1960 = vmatpush1.bf16.msra.mxu0 %v13721_v63  ;;  %v13728_v61 = vld [vmem:[#allocation79_spill] sm:$0xff] }
 0x17d   : > { %v1551_v1 = vpop.f32.mrb[10].mxu1  ;;  %2001 = vmatpush1.bf16.msra.mxu1 %v13722_v62  ;;  %v9072_v8 = vadd.f32 %v1547_v59, %v1507_v58  ;;  %v1511_v10 = vpop.f32.mrb[11].mxu0  ;;  %1961 = vmatprep.subr.bf16.mxu0 %v13724_v57  ;;  %v9083_v58 = vrot.slane %v1865_v60, 1  ;;  %v13732_v6 = vld [vmem:[#allocation82_spill] sm:$0xff]  ;;  %v13734_v59 = vld [vmem:[#allocation84_spill] sm:$0xff]  ;;  %v13737_v2 = vld [vmem:[#allocation87_spill] sm:$0xff] }
 0x17e   : > { %v1552_v0 = vpop.f32.mrb[11].mxu1  ;;  %2002 = vmatprep.subr.bf16.mxu1 %v13725_v56  ;;  %v9076_v42 = vadd.f32 %v1549_v5, %v1509_v7  ;;  %v13729_v1 = vld [vmem:[#allocation80_spill] sm:$0xff]  ;;  %v13735_v7 = vld [vmem:[#allocation85_spill] sm:$0xff]  ;;  %v13736_v5 = vld [vmem:[#allocation86_spill] sm:$0xff]  ;;  %v13740_v60 = vrot.slane %v8301_v43, 1 }
 0x17f   : > { %13723 = vst [vmem:[#allocation9_spill] sm:$0xff] %v9072_v8  ;;  %13731 = vst [vmem:[#allocation11_spill] sm:$0xff] %v9083_v58  ;;  %v13733_v0 = vld [vmem:[#allocation83_spill] sm:$0xff]  ;;  %v13738_v10 = vld [vmem:[#allocation88_spill] sm:$0xff] }
 0x180   : > { %13726 = vst [vmem:[#allocation10_spill] sm:$0xff] %v9076_v42  ;;  %1962 = vmatpush1.bf16.msra.mxu0 %v13727_v11  ;;  %v13739_v8 = vld [vmem:[#allocation89_spill] sm:$0xff]  ;;  %v13741_v42 = vld [vmem:[#allocation90_spill] sm:$0xff]  ;;  %v9111_v43 = vld [vmem:[%s12780_s1 + $0x144] ss:$8 sps:$4 sm:$0xff]  }
 0x181   : > { %2003 = vmatpush1.bf16.msra.mxu1 %v13728_v61  ;;  %1963 = vmatprep.subr.bf16.mxu0 %v13729_v1  ;;  %13747 = vst [vmem:[#allocation12_spill] sm:$0xff] %v9111_v43 }
 0x182   : > { %2004 = vmatprep.subr.bf16.mxu1 %v13730_v4 }
 0x184   : > { %1964 = vmatpush1.bf16.msra.mxu0 %v13732_v6 }
 0x185   : > { %2005 = vmatpush1.bf16.msra.mxu1 %v13733_v0  ;;  %2039 = vmatprep.subr.bf16.mxu0 %v13735_v7  ;;  %v13743_v7 = vld [vmem:[#allocation92_spill] sm:$0xff] }
 0x186   : > { %2006 = vmatprep.subr.bf16.mxu1 %v13734_v59  ;;  %v13742_v59 = vld [vmem:[#allocation91_spill] sm:$0xff] }
 0x187   : > { %6119 = vmatmul.mubr.msk.bf16.vlgmr.msra.gmra.mrb[28].mxu0 %vm938_vm0, %v9083_v58  ;;  %v13744_v58 = vld [vmem:[#allocation93_spill] sm:$0xff] }
 0x188   : > { %2040 = vmatpush1.bf16.msra.mxu0 %v13737_v2  ;;  %2071 = vmatprep.mubr.bf16.mxu0 %v13740_v60  ;;  %v13746_v2 = vld [vmem:[#allocation95_spill] sm:$0xff] }
 0x189   : > { %2007 = vmatpush1.bf16.msra.mxu1 %v13736_v5  ;;  %2041 = vmatprep.subr.bf16.mxu0 %v13739_v8  ;;  %v13745_v5 = vld [vmem:[#allocation94_spill] sm:$0xff] }
 0x18a   : > { %2008 = vmatprep.subr.bf16.mxu1 %v13738_v10  ;;  %v9117_v60 = vld [vmem:[%s12780_s1 + $0x80] ss:$8 sps:$4 sm:$0xff]  }
 0x18b   : > { %13748 = vst [vmem:[#allocation13_spill] sm:$0xff] %v9117_v60 }
 0x18c   : > { %2042 = vmatpush1.bf16.msra.mxu0 %v13741_v42 }
 0x18d   : > { %2009 = vmatpush1.bf16.msra.mxu1 %v8863_v20  ;;  %2043 = vmatprep.subr.bf16.mxu0 %v13743_v7 }
 0x18e   : > { %2010 = vmatprep.subr.bf16.mxu1 %v13742_v59  ;;  %v13798_v59 = vrot.slane %v8780_v45, 1 }
 0x190   : > { %2044 = vmatpush1.bf16.msra.mxu0 %v13745_v5 }
 0x191   : > { %2011 = vmatpush1.bf16.msra.mxu1 %v13744_v58  ;;  %2045 = vmatprep.subr.bf16.mxu0 %v8905_v51 }
 0x192   : > { %2012 = vmatprep.subr.bf16.mxu1 %v13746_v2 }
 0x194   : > { %2046 = vmatpush1.bf16.msra.mxu0 %v8917_v44  ;;  %v9123_v44 = vld [vmem:[%s12780_s1 + $0x140] ss:$8 sps:$4 sm:$0xff]  }
 0x195   : > { %2013 = vmatpush1.bf16.msra.mxu1 %v8911_v48  ;;  %2047 = vmatprep.subr.bf16.mxu0 %v9111_v43  ;;  %13749 = vst [vmem:[#allocation14_spill] sm:$0xff] %v9123_v44  ;;  %v9135_v43 = vld [vmem:[%s12780_s1 + $0x154] ss:$8 sps:$4 sm:$0xff]  }
 0x196   : > { %2014 = vmatprep.subr.bf16.mxu1 %v8923_v35  ;;  %v9129_v35 = vld [vmem:[%s12780_s1 + $0x94] ss:$8 sps:$4 sm:$0xff]   ;;  %13751 = vst [vmem:[#allocation16_spill] sm:$0xff] %v9135_v43 }
 0x197   : > { %13750 = vst [vmem:[#allocation15_spill] sm:$0xff] %v9129_v35 }
 0x198   : > { %2048 = vmatpush1.bf16.msra.mxu0 %v9123_v44  ;;  %v9147_v44 = vld [vmem:[%s12780_s1 + $0x150] ss:$8 sps:$4 sm:$0xff]  }
 0x199   : > { %2015 = vmatpush1.bf16.msra.mxu1 %v9117_v60  ;;  %2049 = vmatprep.subr.bf16.mxu0 %v9135_v43  ;;  %v9141_v60 = vld [vmem:[%s12780_s1 + $0x90] ss:$8 sps:$4 sm:$0xff]   ;;  %13753 = vst [vmem:[#allocation18_spill] sm:$0xff] %v9147_v44  ;;  %v9159_v43 = vld [vmem:[%s12780_s1 + $0x164] ss:$8 sps:$4 sm:$0xff]  }
 0x19a   : > { %2016 = vmatprep.subr.bf16.mxu1 %v9129_v35  ;;  %13752 = vst [vmem:[#allocation17_spill] sm:$0xff] %v9141_v60  ;;  %v9153_v35 = vld [vmem:[%s12780_s1 + $0xa4] ss:$8 sps:$4 sm:$0xff]   ;;  %13755 = vst [vmem:[#allocation20_spill] sm:$0xff] %v9159_v43 }
 0x19b   : > { %13754 = vst [vmem:[#allocation19_spill] sm:$0xff] %v9153_v35 }
 0x19c   : > { %2050 = vmatpush1.bf16.msra.mxu0 %v9147_v44  ;;  %v9171_v44 = vld [vmem:[%s12780_s1 + $0x160] ss:$8 sps:$4 sm:$0xff]  }
 0x19d   : > { %2017 = vmatpush1.bf16.msra.mxu1 %v9141_v60  ;;  %2051 = vmatprep.subr.bf16.mxu0 %v9159_v43  ;;  %v9165_v60 = vld [vmem:[%s12780_s1 + $0xa0] ss:$8 sps:$4 sm:$0xff]   ;;  %13757 = vst [vmem:[#allocation22_spill] sm:$0xff] %v9171_v44  ;;  %v9183_v43 = vld [vmem:[%s12780_s1 + $0x174] ss:$8 sps:$4 sm:$0xff]  }
 0x19e   : > { %2018 = vmatprep.subr.bf16.mxu1 %v9153_v35  ;;  %13756 = vst [vmem:[#allocation21_spill] sm:$0xff] %v9165_v60  ;;  %v9177_v35 = vld [vmem:[%s12780_s1 + $0xb4] ss:$8 sps:$4 sm:$0xff]   ;;  %13759 = vst [vmem:[#allocation24_spill] sm:$0xff] %v9183_v43 }
 0x19f   : > { %13758 = vst [vmem:[#allocation23_spill] sm:$0xff] %v9177_v35 }
 0x1a0   : > { %2052 = vmatpush1.bf16.msra.mxu0 %v9171_v44  ;;  %v9195_v44 = vld [vmem:[%s12780_s1 + $0x170] ss:$8 sps:$4 sm:$0xff]  }
 0x1a1   : > { %2019 = vmatpush1.bf16.msra.mxu1 %v9165_v60  ;;  %2053 = vmatprep.subr.bf16.mxu0 %v9183_v43  ;;  %v9189_v60 = vld [vmem:[%s12780_s1 + $0xb0] ss:$8 sps:$4 sm:$0xff]   ;;  %13761 = vst [vmem:[#allocation26_spill] sm:$0xff] %v9195_v44  ;;  %v9207_v43 = vld [vmem:[%s12780_s1 + $0x184] ss:$8 sps:$4 sm:$0xff]  }
 0x1a2   : > { %2020 = vmatprep.subr.bf16.mxu1 %v9177_v35  ;;  %13760 = vst [vmem:[#allocation25_spill] sm:$0xff] %v9189_v60  ;;  %v9201_v35 = vld [vmem:[%s12780_s1 + $0xc4] ss:$8 sps:$4 sm:$0xff]   ;;  %13763 = vst [vmem:[#allocation28_spill] sm:$0xff] %v9207_v43 }
 0x1a3   : > { %13762 = vst [vmem:[#allocation27_spill] sm:$0xff] %v9201_v35 }
 0x1a4   : > { %2054 = vmatpush1.bf16.msra.mxu0 %v9195_v44  ;;  %v9219_v44 = vld [vmem:[%s12780_s1 + $0x180] ss:$8 sps:$4 sm:$0xff]  }
 0x1a5   : > { %2021 = vmatpush1.bf16.msra.mxu1 %v9189_v60  ;;  %2055 = vmatprep.subr.bf16.mxu0 %v9207_v43  ;;  %v9213_v60 = vld [vmem:[%s12780_s1 + $0xc0] ss:$8 sps:$4 sm:$0xff]   ;;  %13765 = vst [vmem:[#allocation30_spill] sm:$0xff] %v9219_v44  ;;  %v9231_v43 = vld [vmem:[%s12780_s1 + $0x194] ss:$8 sps:$4 sm:$0xff]  }
 0x1a6   : > { %2022 = vmatprep.subr.bf16.mxu1 %v9201_v35  ;;  %13764 = vst [vmem:[#allocation29_spill] sm:$0xff] %v9213_v60  ;;  %v9225_v35 = vld [vmem:[%s12780_s1 + $0xd4] ss:$8 sps:$4 sm:$0xff]   ;;  %13767 = vst [vmem:[#allocation32_spill] sm:$0xff] %v9231_v43 }
 0x1a7   : > { %13766 = vst [vmem:[#allocation31_spill] sm:$0xff] %v9225_v35 }
 0x1a8   : > { %2056 = vmatpush1.bf16.msra.mxu0 %v9219_v44  ;;  %v9243_v44 = vld [vmem:[%s12780_s1 + $0x190] ss:$8 sps:$4 sm:$0xff]  }
 0x1a9   : > { %2023 = vmatpush1.bf16.msra.mxu1 %v9213_v60  ;;  %2057 = vmatprep.subr.bf16.mxu0 %v9231_v43  ;;  %v9237_v60 = vld [vmem:[%s12780_s1 + $0xd0] ss:$8 sps:$4 sm:$0xff]   ;;  %13769 = vst [vmem:[#allocation34_spill] sm:$0xff] %v9243_v44  ;;  %v9255_v43 = vld [vmem:[%s12780_s1 + $0x1a4] ss:$8 sps:$4 sm:$0xff]  }
 0x1aa   : > { %2024 = vmatprep.subr.bf16.mxu1 %v9225_v35  ;;  %13768 = vst [vmem:[#allocation33_spill] sm:$0xff] %v9237_v60  ;;  %v9249_v35 = vld [vmem:[%s12780_s1 + $0xe4] ss:$8 sps:$4 sm:$0xff]   ;;  %13771 = vst [vmem:[#allocation36_spill] sm:$0xff] %v9255_v43 }
 0x1ab   : > { %13770 = vst [vmem:[#allocation35_spill] sm:$0xff] %v9249_v35 }
 0x1ac   : > { %2058 = vmatpush1.bf16.msra.mxu0 %v9243_v44  ;;  %v9267_v44 = vld [vmem:[%s12780_s1 + $0x1a0] ss:$8 sps:$4 sm:$0xff]  }
 0x1ad   : > { %2025 = vmatpush1.bf16.msra.mxu1 %v9237_v60  ;;  %2059 = vmatprep.subr.bf16.mxu0 %v9255_v43  ;;  %v9261_v60 = vld [vmem:[%s12780_s1 + $0xe0] ss:$8 sps:$4 sm:$0xff]   ;;  %13773 = vst [vmem:[#allocation38_spill] sm:$0xff] %v9267_v44  ;;  %v9279_v43 = vld [vmem:[%s12780_s1 + $0x1b4] ss:$8 sps:$4 sm:$0xff]  }
 0x1ae   : > { %2026 = vmatprep.subr.bf16.mxu1 %v9249_v35  ;;  %13772 = vst [vmem:[#allocation37_spill] sm:$0xff] %v9261_v60  ;;  %v9273_v35 = vld [vmem:[%s12780_s1 + $0xf4] ss:$8 sps:$4 sm:$0xff]   ;;  %13775 = vst [vmem:[#allocation40_spill] sm:$0xff] %v9279_v43 }
 0x1af   : > { %13774 = vst [vmem:[#allocation39_spill] sm:$0xff] %v9273_v35 }
 0x1b0   : > { %2060 = vmatpush1.bf16.msra.mxu0 %v9267_v44  ;;  %v9291_v44 = vld [vmem:[%s12780_s1 + $0x1b0] ss:$8 sps:$4 sm:$0xff]  }
 0x1b1   : > { %2027 = vmatpush1.bf16.msra.mxu1 %v9261_v60  ;;  %2061 = vmatprep.subr.bf16.mxu0 %v9279_v43  ;;  %v9285_v60 = vld [vmem:[%s12780_s1 + $0xf0] ss:$8 sps:$4 sm:$0xff]   ;;  %13777 = vst [vmem:[#allocation42_spill] sm:$0xff] %v9291_v44  ;;  %v9303_v43 = vld [vmem:[%s12780_s1 + $0x204] ss:$8 sps:$4 sm:$0xff]  }
 0x1b2   : > { %2028 = vmatprep.subr.bf16.mxu1 %v9273_v35  ;;  %13776 = vst [vmem:[#allocation41_spill] sm:$0xff] %v9285_v60  ;;  %v9297_v35 = vld [vmem:[%s12780_s1 + $0x1c4] ss:$8 sps:$4 sm:$0xff]   ;;  %13779 = vst [vmem:[#allocation75_spill] sm:$0xff] %v9303_v43 }
 0x1b3   : > { %13778 = vst [vmem:[#allocation74_spill] sm:$0xff] %v9297_v35 }
 0x1b4   : > { %2062 = vmatpush1.bf16.msra.mxu0 %v9291_v44  ;;  %v9311_v44 = vld [vmem:[%s12780_s1 + $0x1c0] ss:$8 sps:$4 sm:$0xff]  }
 0x1b5   : > { %2029 = vmatpush1.bf16.msra.mxu1 %v9285_v60  ;;  %2063 = vmatprep.subr.bf16.mxu0 %v9297_v35  ;;  %v13780_v60 = vrot.slane %v8668_v55, 1  ;;  %13781 = vst [vmem:[#allocation76_spill] sm:$0xff] %v9311_v44  ;;  %v9317_v35 = vld [vmem:[%s12780_s1 + $0x200] ss:$8 sps:$4 sm:$0xff]   ;;  %v9329_v55 = vld [vmem:[%s12780_s1 + $0x214] ss:$8 sps:$4 sm:$0xff]  }
 0x1b6   : > { %2080 = vmatprep.subr.bf16.mxu1 %v9303_v43  ;;  %13782 = vst [vmem:[#allocation77_spill] sm:$0xff] %v9317_v35  ;;  %v9323_v43 = vld [vmem:[%s12780_s1 + $0x1d4] ss:$8 sps:$4 sm:$0xff]   ;;  %13784 = vst [vmem:[#allocation79_spill] sm:$0xff] %v9329_v55 }
 0x1b7   : > { %13783 = vst [vmem:[#allocation78_spill] sm:$0xff] %v9323_v43 }
 0x1b8   : > { %2031 = vmatmul.mubr.bf16.vlgmr.msra.gmra.mrb[28].mxu1 %v13780_v60  ;;  %2064 = vmatpush1.bf16.msra.mxu0 %v9311_v44 }
 0x1b9   : > { %2081 = vmatpush1.bf16.msra.mxu1 %v9317_v35  ;;  %2065 = vmatprep.subr.bf16.mxu0 %v9323_v43  ;;  %v9336_v43 = vld [vmem:[%s12780_s1 + $0x1d0] ss:$8 sps:$4 sm:$0xff]  }
 0x1ba   : > { %2082 = vmatprep.subr.bf16.mxu1 %v9329_v55  ;;  %v1630_v60 = vpop.f32.mrb[12].mxu0  ;;  %2112 = vmatprep.mubr.bf16.mxu1 %v13616_v34  ;;  %13785 = vst [vmem:[#allocation80_spill] sm:$0xff] %v9336_v43  ;;  %v9342_v55 = vld [vmem:[%s12780_s1 + $0x210] ss:$8 sps:$4 sm:$0xff]  }
 0x1bb   : > { %v1671_v44 = vpop.f32.mrb[12].mxu1  ;;  %v1632_v35 = vpop.f32.mrb[13].mxu0  ;;  %13786 = vst [vmem:[#allocation81_spill] sm:$0xff] %v9342_v55 }
 0x1bc   : > { %v1672_v48 = vadd.f32 %v1671_v44, %v1630_v60  ;;  %v1673_v51 = vpop.f32.mrb[13].mxu1  ;;  %v1634_v5 = vpop.f32.mrb[14].mxu0  ;;  %2066 = vmatpush1.bf16.msra.mxu0 %v9336_v43  ;;  %v9416_v43 = vld [vmem:[%s12780_s1 + $0x344] ss:$8 sps:$4 sm:$0xff]  }
 0x1bd   : > { %v1674_v2 = vadd.f32 %v1673_v51, %v1632_v35  ;;  %v1675_v58 = vpop.f32.mrb[14].mxu1  ;;  %2083 = vmatpush1.bf16.msra.mxu1 %v9342_v55  ;;  %v1635_v44 = vpop.f32.mrb[15].mxu0  ;;  %v9348_v35 = vld [vmem:[%s12780_s1 + $0x1e4] ss:$8 sps:$4 sm:$0xff]   ;;  %v9398_v55 = vld [vmem:[%s12780_s1 + $0x1f0] ss:$8 sps:$4 sm:$0xff]  }
 0x1be   : > { %v1676_v60 = vpop.f32.mrb[15].mxu1  ;;  %13787 = vst [vmem:[#allocation82_spill] sm:$0xff] %v9348_v35  ;;  %2067 = vmatprep.subr.bf16.mxu0 %v9348_v35  ;;  %v9354_v51 = vld [vmem:[%s12780_s1 + $0x224] ss:$8 sps:$4 sm:$0xff]   ;;  %v9366_v44 = vld [vmem:[%s12780_s1 + $0x1e0] ss:$8 sps:$4 sm:$0xff]  }
 0x1bf   : > { %13788 = vst [vmem:[#allocation83_spill] sm:$0xff] %v9354_v51  ;;  %2084 = vmatprep.subr.bf16.mxu1 %v9354_v51  ;;  %v9358_v58 = vld [vmem:[%s7818_s19] sm:$0x44]  ;;  %v9361_v5 = vld [vmem:[%s7818_s19 + $0x8] sm:$0x44]  ;;  %13789 = vst [vmem:[#allocation88_spill] sm:$0xff] %v9366_v44 }
 0x1c0   : > { %2068 = vmatpush1.bf16.msra.mxu0 %v9366_v44  ;;  %v9372_v60 = vld [vmem:[%s12780_s1 + $0x220] ss:$8 sps:$4 sm:$0xff]   ;;  %v9378_v51 = vld [vmem:[%s12780_s1 + $0x1f4] ss:$8 sps:$4 sm:$0xff]   ;;  %v9389_v44 = vcombine.high %v9358_v58, %v9358_v58  ;;  %13793 = vst [vmem:[#allocation103_spill] sm:$0xff] %v9398_v55  ;;  %13796 = vst [vmem:[#allocation106_spill] sm:$0xff] %v9416_v43 }
 0x1c1   : > { %13790 = vst [vmem:[#allocation89_spill] sm:$0xff] %v9372_v60  ;;  %2085 = vmatpush1.bf16.msra.mxu1 %v9372_v60  ;;  %13791 = vst [vmem:[#allocation90_spill] sm:$0xff] %v9378_v51  ;;  %2069 = vmatprep.subr.bf16.mxu0 %v9378_v51  ;;  %v9384_v35 = vld [vmem:[%s12780_s1 + $0x234] ss:$8 sps:$4 sm:$0xff]   ;;  %v9393_v60 = vcombine.high %v9361_v5, %v9361_v5  ;;  %v9404_v51 = vld [vmem:[%s12780_s1 + $0x230] ss:$8 sps:$4 sm:$0xff]  }
 0x1c2   : > { %13792 = vst [vmem:[#allocation102_spill] sm:$0xff] %v9384_v35  ;;  %2086 = vmatprep.subr.bf16.mxu1 %v9384_v35  ;;  %13794 = vst [vmem:[#allocation104_spill] sm:$0xff] %v9404_v51  ;;  %v9410_v35 = vld [vmem:[%s12780_s1 + $0x244] ss:$8 sps:$4 sm:$0xff]   ;;  %v13801_v45 = vrot.slane %v9389_v44, 2 }
 0x1c3   : > { %13795 = vst [vmem:[#allocation105_spill] sm:$0xff] %v9410_v35  ;;  %v13092_v7 = vrot.slane %v9393_v60, 2 }
 0x1c4   : > { %2070 = vmatpush1.bf16.msra.mxu0 %v9398_v55  ;;  %v9435_v55 = vld [vmem:[%s12780_s1 + $0x340] ss:$8 sps:$4 sm:$0xff]  }
 0x1c5   : > { %2087 = vmatpush1.bf16.msra.mxu1 %v9404_v51  ;;  %2152 = vmatprep.subr.bf16.mxu0 %v9410_v35  ;;  %v13797_v51 = vrot.slane %v8672_v54, 1  ;;  %v9429_v35 = vld [vmem:[%s12780_s1 + $0x240] ss:$8 sps:$4 sm:$0xff]   ;;  %13800 = vst [vmem:[#allocation108_spill] sm:$0xff] %v9435_v55 }
 0x1c6   : > { %2193 = vmatprep.subr.bf16.mxu1 %v9416_v43  ;;  %13799 = vst [vmem:[#allocation107_spill] sm:$0xff] %v9429_v35 }
 0x1c7   : > { %2072 = vmatmul.mubr.bf16.vlgmr.msra.gmra.mrb[32].mxu0 %v13797_v51 }
 0x1c8   : > { %6120 = vmatmul.mubr.msk.bf16.vlgmr.msra.gmra.mrb[32].mxu1 %vm938_vm0, %v13798_v59  ;;  %2153 = vmatpush1.bf16.msra.mxu0 %v9429_v35 }
 0x1c9   : > { %2194 = vmatpush1.bf16.msra.mxu1 %v9435_v55  ;;  %2154 = vmatprep.subr.bf16.mxu0 %v13652_v3  ;;  %v13803_v3 = vld [vmem:[#allocation44_spill] sm:$0xff] }
 0x1ca   : > { %2195 = vmatprep.subr.bf16.mxu1 %v13653_v30  ;;  %v1712_v54 = vpop.f32.mrb[16].mxu0  ;;  %2184 = vmatprep.mubr.bf16.mxu0 %v13801_v45  ;;  %v13804_v30 = vld [vmem:[#allocation45_spill] sm:$0xff]  ;;  %v13834_v45 = vld [vmem:[#allocation100_spill] sm:$0xff] }
 0x1cb   : > { %2225 = vmatprep.mubr.bf16.mxu1 %v13092_v7  ;;  %v1713_v59 = vadd.f32 %v1712_v54, %v1672_v48  ;;  %v1714_v51 = vpop.f32.mrb[17].mxu0  ;;  %v13802_v48 = vld [vmem:[#allocation43_spill] sm:$0xff]  ;;  %v13903_v7 = vld [vmem:[#allocation8_spill] sm:$0xff] }
 0x1cc   : > { %v1715_v35 = vadd.f32 %v1714_v51, %v1674_v2  ;;  %v1716_v43 = vpop.f32.mrb[18].mxu0  ;;  %2155 = vmatpush1.bf16.msra.mxu0 %v13654_v27  ;;  %v13805_v27 = vld [vmem:[#allocation46_spill] sm:$0xff]  ;;  %v13829_v2 = vld [vmem:[#allocation69_spill] sm:$0xff] }
 0x1cd   : > { %2196 = vmatpush1.bf16.msra.mxu1 %v13655_v9  ;;  %v1717_v55 = vpop.f32.mrb[19].mxu0  ;;  %2156 = vmatprep.subr.bf16.mxu0 %v13656_v12  ;;  %v13806_v9 = vld [vmem:[#allocation47_spill] sm:$0xff]  ;;  %v13807_v12 = vld [vmem:[#allocation48_spill] sm:$0xff]  ;;  %v13830_v43 = vld [vmem:[#allocation70_spill] sm:$0xff] }
 0x1ce   : > { %2197 = vmatprep.subr.bf16.mxu1 %v13657_v13  ;;  %v13808_v13 = vld [vmem:[#allocation49_spill] sm:$0xff]  ;;  %v13831_v55 = vld [vmem:[#allocation71_spill] sm:$0xff] }
 0x1d0   : > { %2157 = vmatpush1.bf16.msra.mxu0 %v13658_v14  ;;  %v13809_v14 = vld [vmem:[#allocation50_spill] sm:$0xff] }
 0x1d1   : > { %2198 = vmatpush1.bf16.msra.mxu1 %v13659_v15  ;;  %2158 = vmatprep.subr.bf16.mxu0 %v13660_v16  ;;  %v13810_v15 = vld [vmem:[#allocation51_spill] sm:$0xff]  ;;  %v13811_v16 = vld [vmem:[#allocation52_spill] sm:$0xff] }
 0x1d2   : > { %2199 = vmatprep.subr.bf16.mxu1 %v13661_v17  ;;  %v13812_v17 = vld [vmem:[#allocation53_spill] sm:$0xff] }
 0x1d4   : > { %2159 = vmatpush1.bf16.msra.mxu0 %v13662_v18  ;;  %v13813_v18 = vld [vmem:[#allocation54_spill] sm:$0xff] }
 0x1d5   : > { %2200 = vmatpush1.bf16.msra.mxu1 %v13663_v19  ;;  %2160 = vmatprep.subr.bf16.mxu0 %v13664_v21  ;;  %v13814_v19 = vld [vmem:[#allocation55_spill] sm:$0xff]  ;;  %v13815_v21 = vld [vmem:[#allocation56_spill] sm:$0xff] }
 0x1d6   : > { %2201 = vmatprep.subr.bf16.mxu1 %v13665_v22  ;;  %v13816_v22 = vld [vmem:[#allocation57_spill] sm:$0xff] }
 0x1d8   : > { %2161 = vmatpush1.bf16.msra.mxu0 %v13666_v23 }
 0x1d9   : > { %2202 = vmatpush1.bf16.msra.mxu1 %v13667_v24  ;;  %2162 = vmatprep.subr.bf16.mxu0 %v13668_v25 }
 0x1da   : > { %2203 = vmatprep.subr.bf16.mxu1 %v13669_v26 }
 0x1dc   : > { %2163 = vmatpush1.bf16.msra.mxu0 %v13670_v28 }
 0x1dd   : > { %2204 = vmatpush1.bf16.msra.mxu1 %v13671_v29  ;;  %2164 = vmatprep.subr.bf16.mxu0 %v13672_v31  ;;  %v13817_v29 = vld [vmem:[#allocation58_spill] sm:$0xff]  ;;  %v13818_v31 = vld [vmem:[#allocation59_spill] sm:$0xff] }
 0x1de   : > { %2205 = vmatprep.subr.bf16.mxu1 %v13673_v32 }
 0x1e0   : > { %2165 = vmatpush1.bf16.msra.mxu0 %v13674_v33  ;;  %v13819_v33 = vld [vmem:[#allocation60_spill] sm:$0xff] }
 0x1e1   : > { %2206 = vmatpush1.bf16.msra.mxu1 %v13675_v36  ;;  %2166 = vmatprep.subr.bf16.mxu0 %v13676_v37  ;;  %v13820_v36 = vld [vmem:[#allocation61_spill] sm:$0xff]  ;;  %v9498_v37 = vcombine.low %v9358_v58, %v9358_v58 }
 0x1e2   : > { %2207 = vmatprep.subr.bf16.mxu1 %v13677_v38  ;;  %v9502_v38 = vcombine.low %v9361_v5, %v9361_v5  ;;  %v13833_v58 = vld [vmem:[#allocation73_spill] sm:$0xff] }
 0x1e4   : > { %2167 = vmatpush1.bf16.msra.mxu0 %v13678_v39  ;;  %13821 = vst [vmem:[#allocation43_spill] sm:$0xff] %v9502_v38  ;;  %v13822_v39 = vld [vmem:[#allocation62_spill] sm:$0xff] }
 0x1e5   : > { %2208 = vmatpush1.bf16.msra.mxu1 %v13679_v40  ;;  %2168 = vmatprep.subr.bf16.mxu0 %v13680_v41  ;;  %v13823_v40 = vld [vmem:[#allocation63_spill] sm:$0xff]  ;;  %v13824_v41 = vld [vmem:[#allocation64_spill] sm:$0xff] }
 0x1e6   : > { %2209 = vmatprep.subr.bf16.mxu1 %v13681_v46  ;;  %v13825_v46 = vld [vmem:[#allocation65_spill] sm:$0xff] }
 0x1e8   : > { %2169 = vmatpush1.bf16.msra.mxu0 %v13682_v47  ;;  %v13091_v47 = vrot.slane %v9498_v37, 2 }
 0x1e9   : > { %2210 = vmatpush1.bf16.msra.mxu1 %v13683_v49  ;;  %2170 = vmatprep.subr.bf16.mxu0 %v13684_v50  ;;  %v13090_v49 = vrot.slane %v9502_v38, 2  ;;  %v13826_v50 = vld [vmem:[#allocation66_spill] sm:$0xff] }
 0x1ea   : > { %2211 = vmatprep.subr.bf16.mxu1 %v13685_v52  ;;  %v13827_v52 = vld [vmem:[#allocation67_spill] sm:$0xff] }
 0x1ec   : > { %2171 = vmatpush1.bf16.msra.mxu0 %v13686_v53  ;;  %v13828_v53 = vld [vmem:[#allocation68_spill] sm:$0xff] }
 0x1ed   : > { %2212 = vmatpush1.bf16.msra.mxu1 %v13802_v48  ;;  %2172 = vmatprep.subr.bf16.mxu0 %v13803_v3 }
 0x1ee   : > { %2213 = vmatprep.subr.bf16.mxu1 %v13804_v30 }
 0x1f0   : > { %2173 = vmatpush1.bf16.msra.mxu0 %v13805_v27 }
 0x1f1   : > { %2214 = vmatpush1.bf16.msra.mxu1 %v13806_v9  ;;  %2174 = vmatprep.subr.bf16.mxu0 %v13807_v12 }
 0x1f2   : > { %2215 = vmatprep.subr.bf16.mxu1 %v13808_v13 }
 0x1f4   : > { %2175 = vmatpush1.bf16.msra.mxu0 %v13809_v14 }
 0x1f5   : > { %2216 = vmatpush1.bf16.msra.mxu1 %v13810_v15  ;;  %2176 = vmatprep.subr.bf16.mxu0 %v13811_v16  ;;  %v9533_v15 = vld [vmem:[%s7818_s19 + $0x10] ss:$0 sps:$4 sm:$0x44]   ;;  %v13846_v16 = vld [vmem:[#allocation95_spill] sm:$0xff] }
 0x1f6   : > { %2217 = vmatprep.subr.bf16.mxu1 %v13812_v17  ;;  %v13847_v17 = vld [vmem:[#allocation96_spill] sm:$0xff] }
 0x1f8   : > { %2177 = vmatpush1.bf16.msra.mxu0 %v13813_v18  ;;  %v13850_v18 = vld [vmem:[#allocation99_spill] sm:$0xff] }
 0x1f9   : > { %2218 = vmatpush1.bf16.msra.mxu1 %v13814_v19  ;;  %2178 = vmatprep.subr.bf16.mxu0 %v13815_v21  ;;  %v13853_v19 = vld [vmem:[#allocation14_spill] sm:$0xff]  ;;  %v13854_v21 = vld [vmem:[#allocation15_spill] sm:$0xff] }
 0x1fa   : > { %2219 = vmatprep.subr.bf16.mxu1 %v13816_v22  ;;  %v13855_v22 = vld [vmem:[#allocation16_spill] sm:$0xff] }
 0x1fb   : > { %v1753_v23 = vpop.f32.mrb[16].mxu1 }
 0x1fc   : > { %v1754_v24 = vadd.f32 %v1753_v23, %v1713_v59  ;;  %v1755_v25 = vpop.f32.mrb[17].mxu1  ;;  %2179 = vmatpush1.bf16.msra.mxu0 %v13817_v29  ;;  %v13856_v23 = vld [vmem:[#allocation17_spill] sm:$0xff]  ;;  %v13861_v29 = vld [vmem:[#allocation22_spill] sm:$0xff] }
 0x1fd   : > { %v1756_v26 = vadd.f32 %v1755_v25, %v1715_v35  ;;  %v1757_v28 = vpop.f32.mrb[18].mxu1  ;;  %2220 = vmatpush1.bf16.msra.mxu1 %v13818_v31  ;;  %2180 = vmatprep.subr.bf16.mxu0 %v13819_v33  ;;  %v13832_v35 = vld [vmem:[#allocation72_spill] sm:$0xff]  ;;  %v13858_v25 = vld [vmem:[#allocation19_spill] sm:$0xff]  ;;  %v13864_v33 = vld [vmem:[#allocation25_spill] sm:$0xff] }
 0x1fe   : > { %v1758_v32 = vpop.f32.mrb[19].mxu1  ;;  %2221 = vmatprep.subr.bf16.mxu1 %v13820_v36  ;;  %v13860_v28 = vld [vmem:[#allocation21_spill] sm:$0xff]  ;;  %v13862_v31 = vld [vmem:[#allocation23_spill] sm:$0xff]  ;;  %v13865_v36 = vld [vmem:[#allocation26_spill] sm:$0xff] }
 0x1ff   : > { %v13863_v32 = vld [vmem:[#allocation24_spill] sm:$0xff] }
 0x200   : > { %2181 = vmatpush1.bf16.msra.mxu0 %v13822_v39  ;;  %v13866_v39 = vld [vmem:[#allocation27_spill] sm:$0xff] }
 0x201   : > { %2222 = vmatpush1.bf16.msra.mxu1 %v13823_v40  ;;  %2182 = vmatprep.subr.bf16.mxu0 %v13824_v41  ;;  %v13867_v40 = vld [vmem:[#allocation28_spill] sm:$0xff]  ;;  %v13868_v41 = vld [vmem:[#allocation29_spill] sm:$0xff] }
 0x202   : > { %2223 = vmatprep.subr.bf16.mxu1 %v13825_v46  ;;  %v13869_v46 = vld [vmem:[#allocation30_spill] sm:$0xff] }
 0x204   : > { %2183 = vmatpush1.bf16.msra.mxu0 %v13826_v50  ;;  %v13870_v50 = vld [vmem:[#allocation31_spill] sm:$0xff] }
 0x205   : > { %2224 = vmatpush1.bf16.msra.mxu1 %v13827_v52  ;;  %2234 = vmatprep.subr.bf16.mxu0 %v13828_v53  ;;  %v13871_v52 = vld [vmem:[#allocation32_spill] sm:$0xff]  ;;  %v13872_v53 = vld [vmem:[#allocation33_spill] sm:$0xff] }
 0x206   : > { %2275 = vmatprep.subr.bf16.mxu1 %v13829_v2  ;;  %v13873_v2 = vld [vmem:[#allocation34_spill] sm:$0xff] }
 0x207   : > { %2185 = vmatmul.mubr.bf16.vlgmr.msra.gmra.mrb[36].mxu0 %v13091_v47 }
 0x208   : > { %2226 = vmatmul.mubr.bf16.vlgmr.msra.gmra.mrb[36].mxu1 %v13090_v49  ;;  %2235 = vmatpush1.bf16.msra.mxu0 %v13830_v43  ;;  %v13874_v43 = vld [vmem:[#allocation35_spill] sm:$0xff] }
 0x209   : > { %2276 = vmatpush1.bf16.msra.mxu1 %v13831_v55  ;;  %2236 = vmatprep.subr.bf16.mxu0 %v13832_v35  ;;  %v13875_v55 = vld [vmem:[#allocation36_spill] sm:$0xff]  ;;  %v13876_v35 = vld [vmem:[#allocation37_spill] sm:$0xff] }
 0x20a   : > { %2277 = vmatprep.subr.bf16.mxu1 %v13833_v58  ;;  %v1794_v5 = vpop.f32.mrb[20].mxu0  ;;  %2266 = vmatprep.mubr.bf16.mxu0 %v13616_v34  ;;  %v13877_v58 = vld [vmem:[#allocation38_spill] sm:$0xff] }
 0x20b   : > { %v1835_v54 = vpop.f32.mrb[20].mxu1  ;;  %2307 = vmatprep.mubr.bf16.mxu1 %v13834_v45  ;;  %v1795_v59 = vadd.f32 %v1794_v5, %v1754_v24  ;;  %v1796_v51 = vpop.f32.mrb[21].mxu0  ;;  %v13857_v24 = vld [vmem:[#allocation18_spill] sm:$0xff]  ;;  %v13878_v5 = vld [vmem:[#allocation39_spill] sm:$0xff]  ;;  %v13880_v45 = vld [vmem:[#allocation41_spill] sm:$0xff] }
 0x20c   : > { %v1837_v48 = vpop.f32.mrb[21].mxu1  ;;  %v1797_v3 = vadd.f32 %v1796_v51, %v1756_v26  ;;  %v1798_v30 = vpop.f32.mrb[22].mxu0  ;;  %2237 = vmatpush1.bf16.msra.mxu0 %v13721_v63  ;;  %v13089_v63 = vrot.slane %v9533_v15, 2  ;;  %v13859_v26 = vld [vmem:[#allocation20_spill] sm:$0xff]  ;;  %v13882_v51 = vld [vmem:[#allocation74_spill] sm:$0xff] }
 0x20d   : > { %v1839_v27 = vpop.f32.mrb[22].mxu1  ;;  %2278 = vmatpush1.bf16.msra.mxu1 %v13722_v62  ;;  %v9526_v9 = vadd.f32 %v1835_v54, %v1795_v59  ;;  %v1799_v12 = vpop.f32.mrb[23].mxu0  ;;  %2238 = vmatprep.subr.bf16.mxu0 %v13724_v57  ;;  %v13837_v57 = vld [vmem:[#allocation84_spill] sm:$0xff]  ;;  %v13839_v62 = vld [vmem:[#allocation86_spill] sm:$0xff] }
 0x20e   : > { %v1840_v13 = vpop.f32.mrb[23].mxu1  ;;  %2279 = vmatprep.subr.bf16.mxu1 %v13725_v56  ;;  %v9530_v14 = vadd.f32 %v1837_v48, %v1797_v3  ;;  %v13838_v56 = vld [vmem:[#allocation85_spill] sm:$0xff]  ;;  %v13879_v54 = vld [vmem:[#allocation40_spill] sm:$0xff]  ;;  %v13881_v59 = vld [vmem:[#allocation42_spill] sm:$0xff] }
 0x20f   : > { %13835 = vst [vmem:[#allocation44_spill] sm:$0xff] %v9526_v9  ;;  %v13883_v48 = vld [vmem:[#allocation75_spill] sm:$0xff]  ;;  %v13885_v30 = vld [vmem:[#allocation76_spill] sm:$0xff]  ;;  %v13886_v27 = vld [vmem:[#allocation77_spill] sm:$0xff] }
 0x210   : > { %13836 = vst [vmem:[#allocation45_spill] sm:$0xff] %v9530_v14  ;;  %2239 = vmatpush1.bf16.msra.mxu0 %v13727_v11  ;;  %v13840_v11 = vld [vmem:[#allocation87_spill] sm:$0xff]  ;;  %v13887_v12 = vld [vmem:[#allocation78_spill] sm:$0xff] }
 0x211   : > { %2280 = vmatpush1.bf16.msra.mxu1 %v13728_v61  ;;  %2240 = vmatprep.subr.bf16.mxu0 %v13729_v1  ;;  %v13841_v61 = vld [vmem:[#allocation101_spill] sm:$0xff]  ;;  %v13842_v1 = vld [vmem:[#allocation91_spill] sm:$0xff] }
 0x212   : > { %2281 = vmatprep.subr.bf16.mxu1 %v13730_v4  ;;  %v13843_v4 = vld [vmem:[#allocation92_spill] sm:$0xff]  ;;  %v13884_v3 = vld [vmem:[#allocation7_spill] sm:$0xff] }
 0x213   : > { %v13888_v13 = vld [vmem:[#allocation79_spill] sm:$0xff] }
 0x214   : > { %2241 = vmatpush1.bf16.msra.mxu0 %v13732_v6  ;;  %v13844_v6 = vld [vmem:[#allocation93_spill] sm:$0xff]  ;;  %v13904_v9 = vld [vmem:[#allocation11_spill] sm:$0xff] }
 0x215   : > { %2282 = vmatpush1.bf16.msra.mxu1 %v13733_v0  ;;  %2316 = vmatprep.subr.bf16.mxu0 %v13838_v56  ;;  %v13845_v0 = vld [vmem:[#allocation94_spill] sm:$0xff]  ;;  %v13905_v14 = vld [vmem:[#allocation107_spill] sm:$0xff] }
 0x216   : > { %2283 = vmatprep.subr.bf16.mxu1 %v13837_v57 }
 0x217   : > { %6126 = vmatmul.mubr.msk.bf16.vlgmr.msra.gmra.mrb[40].mxu0 %vm938_vm0, %v13089_v63  ;;  %v13894_v63 = vld [vmem:[#allocation89_spill] sm:$0xff] }
 0x218   : > { %2317 = vmatpush1.bf16.msra.mxu0 %v13840_v11  ;;  %2348 = vmatprep.mubr.bf16.mxu0 %v13841_v61 }
 0x219   : > { %2284 = vmatpush1.bf16.msra.mxu1 %v13839_v62  ;;  %2318 = vmatprep.subr.bf16.mxu0 %v13739_v8  ;;  %v13849_v8 = vld [vmem:[#allocation98_spill] sm:$0xff] }
 0x21a   : > { %2285 = vmatprep.subr.bf16.mxu1 %v13738_v10  ;;  %v13848_v10 = vld [vmem:[#allocation97_spill] sm:$0xff] }
 0x21c   : > { %2319 = vmatpush1.bf16.msra.mxu0 %v13741_v42  ;;  %v13852_v42 = vld [vmem:[#allocation13_spill] sm:$0xff] }
 0x21d   : > { %2286 = vmatpush1.bf16.msra.mxu1 %v8863_v20  ;;  %2320 = vmatprep.subr.bf16.mxu0 %v13843_v4  ;;  %v13851_v20 = vld [vmem:[#allocation12_spill] sm:$0xff] }
 0x21e   : > { %2287 = vmatprep.subr.bf16.mxu1 %v13842_v1 }
 0x220   : > { %2321 = vmatpush1.bf16.msra.mxu0 %v13845_v0  ;;  %v13889_v0 = vld [vmem:[#allocation80_spill] sm:$0xff] }
 0x221   : > { %2288 = vmatpush1.bf16.msra.mxu1 %v13844_v6  ;;  %2322 = vmatprep.subr.bf16.mxu0 %v13847_v17 }
 0x222   : > { %2289 = vmatprep.subr.bf16.mxu1 %v13846_v16  ;;  %v13890_v16 = vld [vmem:[#allocation81_spill] sm:$0xff] }
 0x224   : > { %2323 = vmatpush1.bf16.msra.mxu0 %v13849_v8  ;;  %v13891_v8 = vld [vmem:[#allocation82_spill] sm:$0xff] }
 0x225   : > { %2290 = vmatpush1.bf16.msra.mxu1 %v13848_v10  ;;  %2324 = vmatprep.subr.bf16.mxu0 %v13851_v20 }
 0x226   : > { %2291 = vmatprep.subr.bf16.mxu1 %v13850_v18  ;;  %v13892_v18 = vld [vmem:[#allocation83_spill] sm:$0xff] }
 0x228   : > { %2325 = vmatpush1.bf16.msra.mxu0 %v13853_v19 }
 0x229   : > { %2292 = vmatpush1.bf16.msra.mxu1 %v13852_v42  ;;  %2326 = vmatprep.subr.bf16.mxu0 %v13855_v22 }
 0x22a   : > { %2293 = vmatprep.subr.bf16.mxu1 %v13854_v21 }
 0x22c   : > { %2327 = vmatpush1.bf16.msra.mxu0 %v13857_v24 }
 0x22d   : > { %2294 = vmatpush1.bf16.msra.mxu1 %v13856_v23  ;;  %2328 = vmatprep.subr.bf16.mxu0 %v13859_v26 }
 0x22e   : > { %2295 = vmatprep.subr.bf16.mxu1 %v13858_v25 }
 0x230   : > { %2329 = vmatpush1.bf16.msra.mxu0 %v13861_v29 }
 0x231   : > { %2296 = vmatpush1.bf16.msra.mxu1 %v13860_v28  ;;  %2330 = vmatprep.subr.bf16.mxu0 %v13863_v32 }
 0x232   : > { %2297 = vmatprep.subr.bf16.mxu1 %v13862_v31 }
 0x234   : > { %2331 = vmatpush1.bf16.msra.mxu0 %v13865_v36 }
 0x235   : > { %2298 = vmatpush1.bf16.msra.mxu1 %v13864_v33  ;;  %2332 = vmatprep.subr.bf16.mxu0 %v13867_v40 }
 0x236   : > { %2299 = vmatprep.subr.bf16.mxu1 %v13866_v39 }
 0x238   : > { %2333 = vmatpush1.bf16.msra.mxu0 %v13869_v46 }
 0x239   : > { %2300 = vmatpush1.bf16.msra.mxu1 %v13868_v41  ;;  %2334 = vmatprep.subr.bf16.mxu0 %v13871_v52 }
 0x23a   : > { %2301 = vmatprep.subr.bf16.mxu1 %v13870_v50 }
 0x23c   : > { %2335 = vmatpush1.bf16.msra.mxu0 %v13873_v2 }
 0x23d   : > { %2302 = vmatpush1.bf16.msra.mxu1 %v13872_v53  ;;  %2336 = vmatprep.subr.bf16.mxu0 %v13875_v55 }
 0x23e   : > { %2303 = vmatprep.subr.bf16.mxu1 %v13874_v43 }
 0x240   : > { %2337 = vmatpush1.bf16.msra.mxu0 %v13877_v58 }
 0x241   : > { %2304 = vmatpush1.bf16.msra.mxu1 %v13876_v35  ;;  %2338 = vmatprep.subr.bf16.mxu0 %v13879_v54 }
 0x242   : > { %2305 = vmatprep.subr.bf16.mxu1 %v13878_v5 }
 0x244   : > { %2339 = vmatpush1.bf16.msra.mxu0 %v13881_v59 }
 0x245   : > { %2306 = vmatpush1.bf16.msra.mxu1 %v13880_v45  ;;  %2340 = vmatprep.subr.bf16.mxu0 %v13882_v51 }
 0x246   : > { %2357 = vmatprep.subr.bf16.mxu1 %v13883_v48 }
 0x248   : > { %2308 = vmatmul.mubr.bf16.vlgmr.msra.gmra.mrb[40].mxu1 %v13884_v3  ;;  %2341 = vmatpush1.bf16.msra.mxu0 %v13885_v30  ;;  %v13893_v3 = vld [vmem:[#allocation88_spill] sm:$0xff] }
 0x249   : > { %2358 = vmatpush1.bf16.msra.mxu1 %v13886_v27  ;;  %2342 = vmatprep.subr.bf16.mxu0 %v13887_v12 }
 0x24a   : > { %2359 = vmatprep.subr.bf16.mxu1 %v13888_v13  ;;  %v1909_v57 = vpop.f32.mrb[24].mxu0  ;;  %2389 = vmatprep.mubr.bf16.mxu1 %v13616_v34 }
 0x24b   : > { %v1950_v56 = vpop.f32.mrb[24].mxu1  ;;  %v1911_v11 = vpop.f32.mrb[25].mxu0 }
 0x24c   : > { %v1951_v62 = vadd.f32 %v1950_v56, %v1909_v57  ;;  %v1952_v61 = vpop.f32.mrb[25].mxu1  ;;  %v1913_v4 = vpop.f32.mrb[26].mxu0  ;;  %2343 = vmatpush1.bf16.msra.mxu0 %v13889_v0  ;;  %v13895_v57 = vld [vmem:[#allocation90_spill] sm:$0xff] }
 0x24d   : > { %v1953_v1 = vadd.f32 %v1952_v61, %v1911_v11  ;;  %v1954_v6 = vpop.f32.mrb[26].mxu1  ;;  %2360 = vmatpush1.bf16.msra.mxu1 %v13890_v16  ;;  %v1914_v17 = vpop.f32.mrb[27].mxu0  ;;  %2344 = vmatprep.subr.bf16.mxu0 %v13891_v8  ;;  %v13896_v56 = vld [vmem:[#allocation102_spill] sm:$0xff]  ;;  %v2409_v11 = vshrl.u32 %v9389_v44, 16  ;;  %v2417_v61 = vshrl.u32 %v9393_v60, 16  ;;  %v13897_v4 = vld [vmem:[#allocation103_spill] sm:$0xff] }
 0x24e   : > { %v1955_v10 = vpop.f32.mrb[27].mxu1  ;;  %2361 = vmatprep.subr.bf16.mxu1 %v13892_v18  ;;  %v13898_v6 = vld [vmem:[#allocation104_spill] sm:$0xff]  ;;  %v13899_v17 = vld [vmem:[#allocation105_spill] sm:$0xff] }
 0x24f   : > { %v13900_v10 = vld [vmem:[#allocation106_spill] sm:$0xff]  ;;  %v9616_v49 = vrot.slane %v2409_v11, 2  ;;  %v9618_v47 = vrot.slane %v2417_v61, 2 }
 0x250   : > { %2345 = vmatpush1.bf16.msra.mxu0 %v13893_v3  ;;  %v9634_v11 = vld [vmem:[%s12780_s1 + $0x354] ss:$8 sps:$4 sm:$0xff]  }
 0x251   : > { %2362 = vmatpush1.bf16.msra.mxu1 %v13894_v63  ;;  %2346 = vmatprep.subr.bf16.mxu0 %v13895_v57  ;;  %13901 = vst [vmem:[#allocation46_spill] sm:$0xff] %v9616_v49  ;;  %13902 = vst [vmem:[#allocation47_spill] sm:$0xff] %v9618_v47 }
 0x252   : > { %2363 = vmatprep.subr.bf16.mxu1 %v13896_v56  ;;  %v13906_v56 = vld [vmem:[#allocation108_spill] sm:$0xff]  ;;  %13908 = vst [vmem:[#allocation49_spill] sm:$0xff] %v9634_v11 }
 0x254   : > { %2347 = vmatpush1.bf16.msra.mxu0 %v13897_v4 }
 0x255   : > { %2364 = vmatpush1.bf16.msra.mxu1 %v13898_v6  ;;  %2431 = vmatprep.subr.bf16.mxu0 %v13899_v17  ;;  %v9628_v6 = vld [vmem:[%s12780_s1 + $0x254] ss:$8 sps:$4 sm:$0xff]  }
 0x256   : > { %2472 = vmatprep.subr.bf16.mxu1 %v13900_v10  ;;  %13907 = vst [vmem:[#allocation48_spill] sm:$0xff] %v9628_v6  ;;  %v10043_v10 = vld [vmem:[%s12780_s1 + $0x450] ss:$8 sps:$4 sm:$0xff]  }
 0x257   : > { %2349 = vmatmul.mubr.bf16.vlgmr.msra.gmra.mrb[44].mxu0 %v13903_v7 }
 0x258   : > { %6127 = vmatmul.mubr.msk.bf16.vlgmr.msra.gmra.mrb[44].mxu1 %vm938_vm0, %v13904_v9  ;;  %2432 = vmatpush1.bf16.msra.mxu0 %v13905_v14 }
 0x259   : > { %2473 = vmatpush1.bf16.msra.mxu1 %v13906_v56  ;;  %2433 = vmatprep.subr.bf16.mxu0 %v9628_v6  ;;  %v9646_v6 = vld [vmem:[%s12780_s1 + $0x250] ss:$8 sps:$4 sm:$0xff]  }
 0x25a   : > { %2474 = vmatprep.subr.bf16.mxu1 %v9634_v11  ;;  %v1991_v7 = vpop.f32.mrb[28].mxu0  ;;  %2463 = vmatprep.mubr.bf16.mxu0 %v9616_v49  ;;  %13909 = vst [vmem:[#allocation50_spill] sm:$0xff] %v9646_v6  ;;  %v9652_v11 = vld [vmem:[%s12780_s1 + $0x350] ss:$8 sps:$4 sm:$0xff]  }
 0x25b   : > { %2504 = vmatprep.mubr.bf16.mxu1 %v9618_v47  ;;  %v9639_v9 = vadd.f32 %v1991_v7, %v1951_v62  ;;  %v1993_v61 = vpop.f32.mrb[29].mxu0  ;;  %13910 = vst [vmem:[#allocation51_spill] sm:$0xff] %v9652_v11  ;;  %v9670_v7 = vld [vmem:[%s12780_s1 + $0x260] ss:$8 sps:$4 sm:$0xff]   ;;  %v9688_v47 = vld [vmem:[%s12780_s1 + $0x374] ss:$8 sps:$4 sm:$0xff]  }
 0x25c   : > { %v9641_v56 = vadd.f32 %v1993_v61, %v1953_v1  ;;  %v1995_v14 = vpop.f32.mrb[30].mxu0  ;;  %2434 = vmatpush1.bf16.msra.mxu0 %v9646_v6  ;;  %v9658_v1 = vld [vmem:[%s12780_s1 + $0x264] ss:$8 sps:$4 sm:$0xff]   ;;  %13913 = vst [vmem:[#allocation54_spill] sm:$0xff] %v9670_v7  ;;  %v9676_v61 = vld [vmem:[%s12780_s1 + $0x360] ss:$8 sps:$4 sm:$0xff]  }
 0x25d   : > { %2475 = vmatpush1.bf16.msra.mxu1 %v9652_v11  ;;  %v1996_v62 = vpop.f32.mrb[31].mxu0  ;;  %13911 = vst [vmem:[#allocation52_spill] sm:$0xff] %v9658_v1  ;;  %2435 = vmatprep.subr.bf16.mxu0 %v9658_v1  ;;  %v9664_v14 = vld [vmem:[%s12780_s1 + $0x364] ss:$8 sps:$4 sm:$0xff]   ;;  %13914 = vst [vmem:[#allocation55_spill] sm:$0xff] %v9676_v61 }
 0x25e   : > { %13912 = vst [vmem:[#allocation53_spill] sm:$0xff] %v9664_v14  ;;  %2476 = vmatprep.subr.bf16.mxu1 %v9664_v14  ;;  %v9682_v62 = vld [vmem:[%s12780_s1 + $0x274] ss:$8 sps:$4 sm:$0xff]   ;;  %13916 = vst [vmem:[#allocation57_spill] sm:$0xff] %v9688_v47  ;;  %v9694_v49 = vld [vmem:[%s12780_s1 + $0x270] ss:$8 sps:$4 sm:$0xff]  }
 0x25f   : > { %13915 = vst [vmem:[#allocation56_spill] sm:$0xff] %v9682_v62  ;;  %13917 = vst [vmem:[#allocation58_spill] sm:$0xff] %v9694_v49  ;;  %v9936_v11 = vld [vmem:[%s12780_s1 + $0x310] ss:$8 sps:$4 sm:$0xff]  }
 0x260   : > { %2436 = vmatpush1.bf16.msra.mxu0 %v9670_v7  ;;  %13957 = vst [vmem:[#allocation21_spill] sm:$0xff] %v9936_v11 }
 0x261   : > { %2477 = vmatpush1.bf16.msra.mxu1 %v9676_v61  ;;  %2437 = vmatprep.subr.bf16.mxu0 %v9682_v62  ;;  %v9700_v61 = vld [vmem:[%s12780_s1 + $0x370] ss:$8 sps:$4 sm:$0xff]   ;;  %v9706_v62 = vld [vmem:[%s12780_s1 + $0x284] ss:$8 sps:$4 sm:$0xff]  }
 0x262   : > { %2478 = vmatprep.subr.bf16.mxu1 %v9688_v47  ;;  %13918 = vst [vmem:[#allocation59_spill] sm:$0xff] %v9700_v61  ;;  %13919 = vst [vmem:[#allocation60_spill] sm:$0xff] %v9706_v62  ;;  %v9712_v47 = vld [vmem:[%s12780_s1 + $0x384] ss:$8 sps:$4 sm:$0xff]  }
 0x263   : > { %13920 = vst [vmem:[#allocation61_spill] sm:$0xff] %v9712_v47 }
 0x264   : > { %2438 = vmatpush1.bf16.msra.mxu0 %v9694_v49  ;;  %v9718_v49 = vld [vmem:[%s12780_s1 + $0x280] ss:$8 sps:$4 sm:$0xff]  }
 0x265   : > { %2479 = vmatpush1.bf16.msra.mxu1 %v9700_v61  ;;  %2439 = vmatprep.subr.bf16.mxu0 %v9706_v62  ;;  %13921 = vst [vmem:[#allocation62_spill] sm:$0xff] %v9718_v49  ;;  %v9724_v61 = vld [vmem:[%s12780_s1 + $0x380] ss:$8 sps:$4 sm:$0xff]   ;;  %v9730_v62 = vld [vmem:[%s12780_s1 + $0x294] ss:$8 sps:$4 sm:$0xff]  }
 0x266   : > { %2480 = vmatprep.subr.bf16.mxu1 %v9712_v47  ;;  %13922 = vst [vmem:[#allocation63_spill] sm:$0xff] %v9724_v61  ;;  %13923 = vst [vmem:[#allocation64_spill] sm:$0xff] %v9730_v62  ;;  %v9736_v47 = vld [vmem:[%s12780_s1 + $0x394] ss:$8 sps:$4 sm:$0xff]  }
 0x267   : > { %13924 = vst [vmem:[#allocation65_spill] sm:$0xff] %v9736_v47 }
 0x268   : > { %2440 = vmatpush1.bf16.msra.mxu0 %v9718_v49  ;;  %v9742_v49 = vld [vmem:[%s12780_s1 + $0x290] ss:$8 sps:$4 sm:$0xff]  }
 0x269   : > { %2481 = vmatpush1.bf16.msra.mxu1 %v9724_v61  ;;  %2441 = vmatprep.subr.bf16.mxu0 %v9730_v62  ;;  %13925 = vst [vmem:[#allocation66_spill] sm:$0xff] %v9742_v49  ;;  %v9748_v61 = vld [vmem:[%s12780_s1 + $0x390] ss:$8 sps:$4 sm:$0xff]   ;;  %v9754_v62 = vld [vmem:[%s12780_s1 + $0x2a4] ss:$8 sps:$4 sm:$0xff]  }
 0x26a   : > { %2482 = vmatprep.subr.bf16.mxu1 %v9736_v47  ;;  %13926 = vst [vmem:[#allocation67_spill] sm:$0xff] %v9748_v61  ;;  %13927 = vst [vmem:[#allocation68_spill] sm:$0xff] %v9754_v62  ;;  %v9760_v47 = vld [vmem:[%s12780_s1 + $0x3a4] ss:$8 sps:$4 sm:$0xff]  }
 0x26b   : > { %13928 = vst [vmem:[#allocation69_spill] sm:$0xff] %v9760_v47 }
 0x26c   : > { %2442 = vmatpush1.bf16.msra.mxu0 %v9742_v49  ;;  %v9766_v49 = vld [vmem:[%s12780_s1 + $0x2a0] ss:$8 sps:$4 sm:$0xff]  }
 0x26d   : > { %2483 = vmatpush1.bf16.msra.mxu1 %v9748_v61  ;;  %2443 = vmatprep.subr.bf16.mxu0 %v9754_v62  ;;  %13929 = vst [vmem:[#allocation70_spill] sm:$0xff] %v9766_v49  ;;  %v9772_v61 = vld [vmem:[%s12780_s1 + $0x3a0] ss:$8 sps:$4 sm:$0xff]   ;;  %v9778_v62 = vld [vmem:[%s12780_s1 + $0x2b4] ss:$8 sps:$4 sm:$0xff]  }
 0x26e   : > { %2484 = vmatprep.subr.bf16.mxu1 %v9760_v47  ;;  %13930 = vst [vmem:[#allocation71_spill] sm:$0xff] %v9772_v61  ;;  %13931 = vst [vmem:[#allocation72_spill] sm:$0xff] %v9778_v62  ;;  %v9784_v47 = vld [vmem:[%s12780_s1 + $0x3b4] ss:$8 sps:$4 sm:$0xff]  }
 0x26f   : > { %13932 = vst [vmem:[#allocation73_spill] sm:$0xff] %v9784_v47 }
 0x270   : > { %2444 = vmatpush1.bf16.msra.mxu0 %v9766_v49  ;;  %v9790_v49 = vld [vmem:[%s12780_s1 + $0x2b0] ss:$8 sps:$4 sm:$0xff]  }
 0x271   : > { %2485 = vmatpush1.bf16.msra.mxu1 %v9772_v61  ;;  %2445 = vmatprep.subr.bf16.mxu0 %v9778_v62  ;;  %13933 = vst [vmem:[#allocation100_spill] sm:$0xff] %v9790_v49  ;;  %v9796_v61 = vld [vmem:[%s12780_s1 + $0x3b0] ss:$8 sps:$4 sm:$0xff]   ;;  %v9802_v62 = vld [vmem:[%s12780_s1 + $0x2c4] ss:$8 sps:$4 sm:$0xff]  }
 0x272   : > { %2486 = vmatprep.subr.bf16.mxu1 %v9784_v47  ;;  %13934 = vst [vmem:[#allocation84_spill] sm:$0xff] %v9796_v61  ;;  %13935 = vst [vmem:[#allocation85_spill] sm:$0xff] %v9802_v62  ;;  %v9808_v47 = vld [vmem:[%s12780_s1 + $0x3c4] ss:$8 sps:$4 sm:$0xff]  }
 0x273   : > { %13936 = vst [vmem:[#allocation86_spill] sm:$0xff] %v9808_v47 }
 0x274   : > { %2446 = vmatpush1.bf16.msra.mxu0 %v9790_v49  ;;  %v9814_v49 = vld [vmem:[%s12780_s1 + $0x2c0] ss:$8 sps:$4 sm:$0xff]  }
 0x275   : > { %2487 = vmatpush1.bf16.msra.mxu1 %v9796_v61  ;;  %2447 = vmatprep.subr.bf16.mxu0 %v9802_v62  ;;  %13937 = vst [vmem:[#allocation87_spill] sm:$0xff] %v9814_v49  ;;  %v9820_v61 = vld [vmem:[%s12780_s1 + $0x3c0] ss:$8 sps:$4 sm:$0xff]   ;;  %v9826_v62 = vld [vmem:[%s12780_s1 + $0x2d4] ss:$8 sps:$4 sm:$0xff]  }
 0x276   : > { %2488 = vmatprep.subr.bf16.mxu1 %v9808_v47  ;;  %13938 = vst [vmem:[#allocation101_spill] sm:$0xff] %v9820_v61  ;;  %13939 = vst [vmem:[#allocation91_spill] sm:$0xff] %v9826_v62  ;;  %v9832_v47 = vld [vmem:[%s12780_s1 + $0x3d4] ss:$8 sps:$4 sm:$0xff]  }
 0x277   : > { %13940 = vst [vmem:[#allocation92_spill] sm:$0xff] %v9832_v47 }
 0x278   : > { %2448 = vmatpush1.bf16.msra.mxu0 %v9814_v49  ;;  %v9838_v49 = vld [vmem:[%s12780_s1 + $0x2d0] ss:$8 sps:$4 sm:$0xff]  }
 0x279   : > { %2489 = vmatpush1.bf16.msra.mxu1 %v9820_v61  ;;  %2449 = vmatprep.subr.bf16.mxu0 %v9826_v62  ;;  %13941 = vst [vmem:[#allocation93_spill] sm:$0xff] %v9838_v49  ;;  %v9844_v61 = vld [vmem:[%s12780_s1 + $0x3d0] ss:$8 sps:$4 sm:$0xff]   ;;  %v9850_v62 = vld [vmem:[%s12780_s1 + $0x2e4] ss:$8 sps:$4 sm:$0xff]  }
 0x27a   : > { %2490 = vmatprep.subr.bf16.mxu1 %v9832_v47  ;;  %13942 = vst [vmem:[#allocation94_spill] sm:$0xff] %v9844_v61  ;;  %13943 = vst [vmem:[#allocation95_spill] sm:$0xff] %v9850_v62  ;;  %v9856_v47 = vld [vmem:[%s12780_s1 + $0x3e4] ss:$8 sps:$4 sm:$0xff]  }
 0x27b   : > { %13944 = vst [vmem:[#allocation96_spill] sm:$0xff] %v9856_v47 }
 0x27c   : > { %2450 = vmatpush1.bf16.msra.mxu0 %v9838_v49  ;;  %v9862_v49 = vld [vmem:[%s12780_s1 + $0x2e0] ss:$8 sps:$4 sm:$0xff]  }
 0x27d   : > { %2491 = vmatpush1.bf16.msra.mxu1 %v9844_v61  ;;  %2451 = vmatprep.subr.bf16.mxu0 %v9850_v62  ;;  %13945 = vst [vmem:[#allocation97_spill] sm:$0xff] %v9862_v49  ;;  %v9868_v61 = vld [vmem:[%s12780_s1 + $0x3e0] ss:$8 sps:$4 sm:$0xff]   ;;  %v9874_v62 = vld [vmem:[%s12780_s1 + $0x2f4] ss:$8 sps:$4 sm:$0xff]  }
 0x27e   : > { %2492 = vmatprep.subr.bf16.mxu1 %v9856_v47  ;;  %13946 = vst [vmem:[#allocation98_spill] sm:$0xff] %v9868_v61  ;;  %13947 = vst [vmem:[#allocation99_spill] sm:$0xff] %v9874_v62  ;;  %v9880_v47 = vld [vmem:[%s12780_s1 + $0x3f4] ss:$8 sps:$4 sm:$0xff]  }
 0x27f   : > { %13948 = vst [vmem:[#allocation12_spill] sm:$0xff] %v9880_v47 }
 0x280   : > { %2452 = vmatpush1.bf16.msra.mxu0 %v9862_v49  ;;  %v9886_v49 = vld [vmem:[%s12780_s1 + $0x2f0] ss:$8 sps:$4 sm:$0xff]  }
 0x281   : > { %2493 = vmatpush1.bf16.msra.mxu1 %v9868_v61  ;;  %2453 = vmatprep.subr.bf16.mxu0 %v9874_v62  ;;  %13949 = vst [vmem:[#allocation13_spill] sm:$0xff] %v9886_v49  ;;  %v9892_v61 = vld [vmem:[%s12780_s1 + $0x3f0] ss:$8 sps:$4 sm:$0xff]   ;;  %v9898_v62 = vld [vmem:[%s12780_s1 + $0x304] ss:$8 sps:$4 sm:$0xff]  }
 0x282   : > { %2494 = vmatprep.subr.bf16.mxu1 %v9880_v47  ;;  %13950 = vst [vmem:[#allocation14_spill] sm:$0xff] %v9892_v61  ;;  %13951 = vst [vmem:[#allocation15_spill] sm:$0xff] %v9898_v62  ;;  %v9904_v47 = vld [vmem:[%s12780_s1 + $0x404] ss:$8 sps:$4 sm:$0xff]  }
 0x283   : > { %13952 = vst [vmem:[#allocation16_spill] sm:$0xff] %v9904_v47 }
 0x284   : > { %2454 = vmatpush1.bf16.msra.mxu0 %v9886_v49  ;;  %v9910_v49 = vld [vmem:[%s12780_s1 + $0x300] ss:$8 sps:$4 sm:$0xff]  }
 0x285   : > { %2495 = vmatpush1.bf16.msra.mxu1 %v9892_v61  ;;  %2455 = vmatprep.subr.bf16.mxu0 %v9898_v62  ;;  %13953 = vst [vmem:[#allocation17_spill] sm:$0xff] %v9910_v49  ;;  %v9916_v61 = vld [vmem:[%s12780_s1 + $0x400] ss:$8 sps:$4 sm:$0xff]   ;;  %v9922_v62 = vld [vmem:[%s12780_s1 + $0x314] ss:$8 sps:$4 sm:$0xff]  }
 0x286   : > { %2496 = vmatprep.subr.bf16.mxu1 %v9904_v47  ;;  %13954 = vst [vmem:[#allocation18_spill] sm:$0xff] %v9916_v61  ;;  %13955 = vst [vmem:[#allocation19_spill] sm:$0xff] %v9922_v62  ;;  %v9928_v47 = vld [vmem:[%s12780_s1 + $0x414] ss:$8 sps:$4 sm:$0xff]  }
 0x287   : > { %13956 = vst [vmem:[#allocation20_spill] sm:$0xff] %v9928_v47 }
 0x288   : > { %2456 = vmatpush1.bf16.msra.mxu0 %v9910_v49 }
 0x289   : > { %2497 = vmatpush1.bf16.msra.mxu1 %v9916_v61  ;;  %2457 = vmatprep.subr.bf16.mxu0 %v9922_v62  ;;  %v9942_v62 = vld [vmem:[%s12780_s1 + $0x410] ss:$8 sps:$4 sm:$0xff]  }
 0x28a   : > { %2498 = vmatprep.subr.bf16.mxu1 %v9928_v47  ;;  %13958 = vst [vmem:[#allocation22_spill] sm:$0xff] %v9942_v62 }
 0x28b   : > { %v2032_v49 = vpop.f32.mrb[28].mxu1 }
 0x28c   : > { %v2033_v7 = vadd.f32 %v2032_v49, %v9639_v9  ;;  %v2034_v14 = vpop.f32.mrb[29].mxu1  ;;  %2458 = vmatpush1.bf16.msra.mxu0 %v9936_v11  ;;  %v9948_v49 = vld [vmem:[%s12780_s1 + $0x324] ss:$8 sps:$4 sm:$0xff]   ;;  %v2405_v9 = vshrl.u32 %v9498_v37, 16 }
 0x28d   : > { %v2035_v61 = vadd.f32 %v2034_v14, %v9641_v56  ;;  %v2036_v1 = vpop.f32.mrb[30].mxu1  ;;  %2499 = vmatpush1.bf16.msra.mxu1 %v9942_v62  ;;  %13959 = vst [vmem:[#allocation23_spill] sm:$0xff] %v9948_v49  ;;  %2459 = vmatprep.subr.bf16.mxu0 %v9948_v49  ;;  %v9954_v56 = vld [vmem:[%s12780_s1 + $0x424] ss:$8 sps:$4 sm:$0xff]   ;;  %v9968_v14 = vld [vmem:[%s12780_s1 + $0x420] ss:$8 sps:$4 sm:$0xff]  }
 0x28e   : > { %v2037_v47 = vpop.f32.mrb[31].mxu1  ;;  %13960 = vst [vmem:[#allocation24_spill] sm:$0xff] %v9954_v56  ;;  %2500 = vmatprep.subr.bf16.mxu1 %v9954_v56  ;;  %v2413_v1 = vshrl.u32 %v9502_v38, 16  ;;  %13962 = vst [vmem:[#allocation26_spill] sm:$0xff] %v9968_v14  ;;  %v9974_v56 = vld [vmem:[%s12780_s1 + $0x334] ss:$8 sps:$4 sm:$0xff]  }
 0x28f   : > { %v9962_v47 = vld [vmem:[%s12780_s1 + $0x320] ss:$8 sps:$4 sm:$0xff]   ;;  %13963 = vst [vmem:[#allocation27_spill] sm:$0xff] %v9974_v56  ;;  %v9980_v49 = vld [vmem:[%s12780_s1 + $0x434] ss:$8 sps:$4 sm:$0xff]  }
 0x290   : > { %13961 = vst [vmem:[#allocation25_spill] sm:$0xff] %v9962_v47  ;;  %2460 = vmatpush1.bf16.msra.mxu0 %v9962_v47  ;;  %13964 = vst [vmem:[#allocation28_spill] sm:$0xff] %v9980_v49  ;;  %v9983_v47 = vrot.slane %v2405_v9, 2  ;;  %v9985_v62 = vrot.slane %v2413_v1, 2  ;;  %v10002_v9 = vld [vmem:[%s12780_s1 + $0x444] ss:$8 sps:$4 sm:$0xff]  }
 0x291   : > { %2501 = vmatpush1.bf16.msra.mxu1 %v9968_v14  ;;  %2461 = vmatprep.subr.bf16.mxu0 %v9974_v56  ;;  %v9990_v14 = vld [vmem:[%s12780_s1 + $0x330] ss:$8 sps:$4 sm:$0xff]   ;;  %13969 = vst [vmem:[#allocation33_spill] sm:$0xff] %v10002_v9  ;;  %v10008_v1 = vld [vmem:[%s12780_s1 + $0x4] ss:$8 sps:$4 sm:$0xff]  }
 0x292   : > { %2502 = vmatprep.subr.bf16.mxu1 %v9980_v49  ;;  %13965 = vst [vmem:[#allocation29_spill] sm:$0xff] %v9983_v47  ;;  %13966 = vst [vmem:[#allocation30_spill] sm:$0xff] %v9985_v62  ;;  %v9996_v56 = vld [vmem:[%s12780_s1 + $0x430] ss:$8 sps:$4 sm:$0xff]  }
 0x293   : > { %13967 = vst [vmem:[#allocation31_spill] sm:$0xff] %v9990_v14  ;;  %13968 = vst [vmem:[#allocation32_spill] sm:$0xff] %v9996_v56 }
 0x294   : > { %2462 = vmatpush1.bf16.msra.mxu0 %v9990_v14  ;;  %13970 = vst [vmem:[#allocation34_spill] sm:$0xff] %v10008_v1 }
 0x295   : > { %2503 = vmatpush1.bf16.msra.mxu1 %v9996_v56  ;;  %2513 = vmatprep.subr.bf16.mxu0 %v10002_v9  ;;  %v10016_v56 = vld [vmem:[%s12780_s1 + $0x440] ss:$8 sps:$4 sm:$0xff]  }
 0x296   : > { %2554 = vmatprep.subr.bf16.mxu1 %v10008_v1  ;;  %13971 = vst [vmem:[#allocation35_spill] sm:$0xff] %v10016_v56  ;;  %v10022_v9 = vld [vmem:[%s12780_s1] ss:$8 sps:$4 sm:$0xff]  }
 0x297   : > { %2464 = vmatmul.mubr.bf16.vlgmr.msra.gmra.mrb[48].mxu0 %v9983_v47  ;;  %13972 = vst [vmem:[#allocation36_spill] sm:$0xff] %v10022_v9  ;;  %v10028_v47 = vld [vmem:[%s12780_s1 + $0x454] ss:$8 sps:$4 sm:$0xff]  }
 0x298   : > { %2505 = vmatmul.mubr.bf16.vlgmr.msra.gmra.mrb[48].mxu1 %v9985_v62  ;;  %2514 = vmatpush1.bf16.msra.mxu0 %v10016_v56  ;;  %13973 = vst [vmem:[#allocation37_spill] sm:$0xff] %v10028_v47  ;;  %v10034_v62 = vld [vmem:[%s12780_s1 + $0x14] ss:$8 sps:$4 sm:$0xff]  }
 0x299   : > { %2555 = vmatpush1.bf16.msra.mxu1 %v10022_v9  ;;  %2515 = vmatprep.subr.bf16.mxu0 %v10028_v47  ;;  %13974 = vst [vmem:[#allocation38_spill] sm:$0xff] %v10034_v62  ;;  %v13975_v9 = vrot.slane %v9389_v44, 2 }
 0x29a   : > { %2556 = vmatprep.subr.bf16.mxu1 %v10034_v62  ;;  %v2073_v56 = vpop.f32.mrb[32].mxu0  ;;  %2545 = vmatprep.mubr.bf16.mxu0 %v13616_v34  ;;  %v10049_v62 = vld [vmem:[%s12780_s1 + $0x10] ss:$8 sps:$4 sm:$0xff]  }
 0x29b   : > { %v2114_v1 = vpop.f32.mrb[32].mxu1  ;;  %2586 = vmatprep.mubr.bf16.mxu1 %v13975_v9  ;;  %v2074_v14 = vadd.f32 %v2073_v56, %v2033_v7  ;;  %v2075_v49 = vpop.f32.mrb[33].mxu0  ;;  %v10078_v9 = vld [vmem:[%s12780_s1 + $0x20] ss:$8 sps:$4 sm:$0xff]  }
 0x29c   : > { %v2116_v11 = vpop.f32.mrb[33].mxu1  ;;  %v2076_v6 = vadd.f32 %v2075_v49, %v2035_v61  ;;  %v2077_v38 = vpop.f32.mrb[34].mxu0  ;;  %2516 = vmatpush1.bf16.msra.mxu0 %v10043_v10  ;;  %v10063_v49 = vld [vmem:[%s12780_s1 + $0x24] ss:$8 sps:$4 sm:$0xff]  }
 0x29d   : > { %v2118_v47 = vpop.f32.mrb[34].mxu1  ;;  %2557 = vmatpush1.bf16.msra.mxu1 %v10049_v62  ;;  %v10052_v44 = vadd.f32 %v2114_v1, %v2074_v14  ;;  %v2078_v7 = vpop.f32.mrb[35].mxu0  ;;  %v10057_v38 = vld [vmem:[%s12780_s1 + $0x464] ss:$8 sps:$4 sm:$0xff]   ;;  %v10072_v14 = vld [vmem:[%s12780_s1 + $0x460] ss:$8 sps:$4 sm:$0xff]  }
 0x29e   : > { %v2119_v61 = vpop.f32.mrb[35].mxu1  ;;  %2517 = vmatprep.subr.bf16.mxu0 %v10057_v38  ;;  %2558 = vmatprep.subr.bf16.mxu1 %v10063_v49  ;;  %v10066_v56 = vadd.f32 %v2116_v11, %v2076_v6  ;;  %v2421_v47 = vshrl.u32 %v9533_v15, 16  ;;  %v10084_v6 = vld [vmem:[%s12780_s1 + $0x474] ss:$8 sps:$4 sm:$0xff]   ;;  %v10098_v7 = vld [vmem:[%s12780_s1 + $0x470] ss:$8 sps:$4 sm:$0xff]  }
 0x29f   : > { %13976 = vst [vmem:[#allocation39_spill] sm:$0xff] %v10052_v44  ;;  %v10090_v11 = vld [vmem:[%s12780_s1 + $0x34] ss:$8 sps:$4 sm:$0xff]   ;;  %v10104_v61 = vld [vmem:[%s12780_s1 + $0x30] ss:$8 sps:$4 sm:$0xff]  }
 0x2a0   : > { %13977 = vst [vmem:[#allocation40_spill] sm:$0xff] %v10066_v56  ;;  %2518 = vmatpush1.bf16.msra.mxu0 %v10072_v14  ;;  %v10093_v1 = vrot.slane %v2421_v47, 2  ;;  %v10110_v44 = vld [vmem:[%s12780_s1 + $0x44] ss:$8 sps:$4 sm:$0xff]   ;;  %v10124_v56 = vld [vmem:[%s12780_s1 + $0x40] ss:$8 sps:$4 sm:$0xff]  }
 0x2a1   : > { %2559 = vmatpush1.bf16.msra.mxu1 %v10078_v9  ;;  %2519 = vmatprep.subr.bf16.mxu0 %v10084_v6  ;;  %13979 = vst [vmem:[#allocation42_spill] sm:$0xff] %v10110_v44  ;;  %v10116_v47 = vld [vmem:[%s12780_s1 + $0x104] ss:$8 sps:$4 sm:$0xff]   ;;  %13981 = vst [vmem:[#allocation75_spill] sm:$0xff] %v10124_v56 }
 0x2a2   : > { %2560 = vmatprep.subr.bf16.mxu1 %v10090_v11  ;;  %13978 = vst [vmem:[#allocation41_spill] sm:$0xff] %v10093_v1  ;;  %13980 = vst [vmem:[#allocation74_spill] sm:$0xff] %v10116_v47 }
 0x2a4   : > { %2520 = vmatpush1.bf16.msra.mxu0 %v10098_v7 }
 0x2a5   : > { %2561 = vmatpush1.bf16.msra.mxu1 %v10104_v61  ;;  %2595 = vmatprep.subr.bf16.mxu0 %v10116_v47  ;;  %v10136_v47 = vld [vmem:[%s12780_s1 + $0x54] ss:$8 sps:$4 sm:$0xff]  }
 0x2a6   : > { %2562 = vmatprep.subr.bf16.mxu1 %v10110_v44  ;;  %v10130_v44 = vld [vmem:[%s12780_s1 + $0x100] ss:$8 sps:$4 sm:$0xff]   ;;  %13983 = vst [vmem:[#allocation76_spill] sm:$0xff] %v10136_v47 }
 0x2a7   : > { %6128 = vmatmul.mubr.msk.bf16.vlgmr.msra.gmra.mrb[52].mxu0 %vm938_vm0, %v10093_v1  ;;  %13982 = vst [vmem:[#allocation7_spill] sm:$0xff] %v10130_v44  ;;  %v10142_v1 = vld [vmem:[%s12780_s1 + $0x114] ss:$8 sps:$4 sm:$0xff]  }
 0x2a8   : > { %2596 = vmatpush1.bf16.msra.mxu0 %v10130_v44  ;;  %13984 = vst [vmem:[#allocation77_spill] sm:$0xff] %v10142_v1  ;;  %v10150_v44 = vld [vmem:[%s12780_s1 + $0x50] ss:$8 sps:$4 sm:$0xff]  }
 0x2a9   : > { %2563 = vmatpush1.bf16.msra.mxu1 %v10124_v56  ;;  %2597 = vmatprep.subr.bf16.mxu0 %v10142_v1  ;;  %v13985_v56 = vrot.slane %v9393_v60, 2  ;;  %v10162_v1 = vld [vmem:[%s12780_s1 + $0x64] ss:$8 sps:$4 sm:$0xff]  }
 0x2aa   : > { %2564 = vmatprep.subr.bf16.mxu1 %v10136_v47  ;;  %v10156_v47 = vld [vmem:[%s12780_s1 + $0x110] ss:$8 sps:$4 sm:$0xff]   ;;  %13987 = vst [vmem:[#allocation79_spill] sm:$0xff] %v10162_v1  ;;  %v10168_v60 = vld [vmem:[%s12780_s1 + $0x124] ss:$8 sps:$4 sm:$0xff]  }
 0x2ab   : > { %2627 = vmatprep.mubr.bf16.mxu0 %v13985_v56  ;;  %13986 = vst [vmem:[#allocation78_spill] sm:$0xff] %v10156_v47  ;;  %13988 = vst [vmem:[#allocation80_spill] sm:$0xff] %v10168_v60  ;;  %v10174_v56 = vld [vmem:[%s12780_s1 + $0x60] ss:$8 sps:$4 sm:$0xff]  }
 0x2ac   : > { %2598 = vmatpush1.bf16.msra.mxu0 %v10156_v47  ;;  %13989 = vst [vmem:[#allocation81_spill] sm:$0xff] %v10174_v56  ;;  %v10180_v47 = vld [vmem:[%s12780_s1 + $0x120] ss:$8 sps:$4 sm:$0xff]  }
 0x2ad   : > { %2565 = vmatpush1.bf16.msra.mxu1 %v10150_v44  ;;  %2599 = vmatprep.subr.bf16.mxu0 %v10168_v60  ;;  %13990 = vst [vmem:[#allocation82_spill] sm:$0xff] %v10180_v47  ;;  %v10192_v60 = vld [vmem:[%s12780_s1 + $0x134] ss:$8 sps:$4 sm:$0xff]  }
 0x2ae   : > { %2566 = vmatprep.subr.bf16.mxu1 %v10162_v1  ;;  %v10186_v1 = vld [vmem:[%s12780_s1 + $0x74] ss:$8 sps:$4 sm:$0xff]   ;;  %13992 = vst [vmem:[#allocation88_spill] sm:$0xff] %v10192_v60 }
 0x2af   : > { %13991 = vst [vmem:[#allocation83_spill] sm:$0xff] %v10186_v1 }
 0x2b0   : > { %2600 = vmatpush1.bf16.msra.mxu0 %v10180_v47  ;;  %v10204_v47 = vld [vmem:[%s12780_s1 + $0x130] ss:$8 sps:$4 sm:$0xff]  }
 0x2b1   : > { %2567 = vmatpush1.bf16.msra.mxu1 %v10174_v56  ;;  %2601 = vmatprep.subr.bf16.mxu0 %v10192_v60  ;;  %v10198_v56 = vld [vmem:[%s12780_s1 + $0x70] ss:$8 sps:$4 sm:$0xff]   ;;  %13994 = vst [vmem:[#allocation90_spill] sm:$0xff] %v10204_v47 }
 0x2b2   : > { %2568 = vmatprep.subr.bf16.mxu1 %v10186_v1  ;;  %13993 = vst [vmem:[#allocation89_spill] sm:$0xff] %v10198_v56  ;;  %v10210_v1 = vld [vmem:[%s12780_s1 + $0x84] ss:$8 sps:$4 sm:$0xff]  }
 0x2b3   : > { %13995 = vst [vmem:[#allocation103_spill] sm:$0xff] %v10210_v1 }
 0x2b4   : > { %2602 = vmatpush1.bf16.msra.mxu0 %v10204_v47 }
 0x2b5   : > { %2569 = vmatpush1.bf16.msra.mxu1 %v10198_v56  ;;  %2603 = vmatprep.subr.bf16.mxu0 %v13851_v20  ;;  %v13996_v20 = vrot.slane %v9498_v37, 2 }
 0x2b6   : > { %2570 = vmatprep.subr.bf16.mxu1 %v10210_v1 }
 0x2b8   : > { %2604 = vmatpush1.bf16.msra.mxu0 %v13853_v19 }
 0x2b9   : > { %2571 = vmatpush1.bf16.msra.mxu1 %v13852_v42  ;;  %2605 = vmatprep.subr.bf16.mxu0 %v13855_v22 }
 0x2ba   : > { %2572 = vmatprep.subr.bf16.mxu1 %v13854_v21 }
 0x2bc   : > { %2606 = vmatpush1.bf16.msra.mxu0 %v13857_v24 }
 0x2bd   : > { %2573 = vmatpush1.bf16.msra.mxu1 %v13856_v23  ;;  %2607 = vmatprep.subr.bf16.mxu0 %v13859_v26 }
 0x2be   : > { %2574 = vmatprep.subr.bf16.mxu1 %v13858_v25 }
 0x2c0   : > { %2608 = vmatpush1.bf16.msra.mxu0 %v13861_v29  ;;  %v10258_v29 = vld [vmem:[%s7818_s19] sm:$0x88] }
 0x2c1   : > { %2575 = vmatpush1.bf16.msra.mxu1 %v13860_v28  ;;  %2609 = vmatprep.subr.bf16.mxu0 %v13863_v32  ;;  %v13997_v32 = vld [vmem:[#allocation102_spill] sm:$0xff] }
 0x2c2   : > { %2576 = vmatprep.subr.bf16.mxu1 %v13862_v31  ;;  %v10261_v31 = vld [vmem:[%s7818_s19 + $0x8] sm:$0x88] }
 0x2c4   : > { %2610 = vmatpush1.bf16.msra.mxu0 %v13865_v36  ;;  %v10273_v36 = vcombine.high %v10261_v31, %v10261_v31 }
 0x2c5   : > { %2577 = vmatpush1.bf16.msra.mxu1 %v13864_v33  ;;  %2611 = vmatprep.subr.bf16.mxu0 %v13867_v40  ;;  %v10269_v33 = vcombine.high %v10258_v29, %v10258_v29  ;;  %v13999_v40 = vld [vmem:[#allocation106_spill] sm:$0xff] }
 0x2c6   : > { %2578 = vmatprep.subr.bf16.mxu1 %v13866_v39  ;;  %v13998_v39 = vld [vmem:[#allocation104_spill] sm:$0xff] }
 0x2c8   : > { %2612 = vmatpush1.bf16.msra.mxu0 %v13869_v46  ;;  %v14000_v46 = vld [vmem:[#allocation43_spill] sm:$0xff] }
 0x2c9   : > { %2579 = vmatpush1.bf16.msra.mxu1 %v13868_v41  ;;  %2613 = vmatprep.subr.bf16.mxu0 %v13871_v52  ;;  %v13255_v41 = vrot.slane %v10273_v36, 3  ;;  %v14002_v52 = vrot.slane %v9533_v15, 2 }
 0x2ca   : > { %2580 = vmatprep.subr.bf16.mxu1 %v13870_v50  ;;  %v14001_v50 = vrot.slane %v14000_v46, 2  ;;  %v14036_v46 = vld [vmem:[#allocation101_spill] sm:$0xff] }
 0x2cc   : > { %2614 = vmatpush1.bf16.msra.mxu0 %v13873_v2  ;;  %v14004_v2 = vld [vmem:[#allocation108_spill] sm:$0xff] }
 0x2cd   : > { %2581 = vmatpush1.bf16.msra.mxu1 %v13872_v53  ;;  %2615 = vmatprep.subr.bf16.mxu0 %v13875_v55  ;;  %v14003_v53 = vld [vmem:[#allocation107_spill] sm:$0xff]  ;;  %v14006_v55 = vld [vmem:[#allocation49_spill] sm:$0xff] }
 0x2ce   : > { %2582 = vmatprep.subr.bf16.mxu1 %v13874_v43  ;;  %v14005_v43 = vld [vmem:[#allocation48_spill] sm:$0xff] }
 0x2d0   : > { %2616 = vmatpush1.bf16.msra.mxu0 %v13877_v58 }
 0x2d1   : > { %2583 = vmatpush1.bf16.msra.mxu1 %v13876_v35  ;;  %2617 = vmatprep.subr.bf16.mxu0 %v13879_v54 }
 0x2d2   : > { %2584 = vmatprep.subr.bf16.mxu1 %v13878_v5 }
 0x2d4   : > { %2618 = vmatpush1.bf16.msra.mxu0 %v13881_v59  ;;  %v14008_v59 = vld [vmem:[#allocation51_spill] sm:$0xff] }
 0x2d5   : > { %2585 = vmatpush1.bf16.msra.mxu1 %v13880_v45  ;;  %2619 = vmatprep.subr.bf16.mxu0 %v13882_v51  ;;  %v14007_v45 = vld [vmem:[#allocation50_spill] sm:$0xff] }
 0x2d6   : > { %2636 = vmatprep.subr.bf16.mxu1 %v13883_v48  ;;  %v14009_v48 = vld [vmem:[#allocation52_spill] sm:$0xff] }
 0x2d8   : > { %2587 = vmatmul.mubr.bf16.vlgmr.msra.gmra.mrb[52].mxu1 %v13996_v20  ;;  %2620 = vmatpush1.bf16.msra.mxu0 %v13885_v30  ;;  %v14010_v30 = vld [vmem:[#allocation53_spill] sm:$0xff] }
 0x2d9   : > { %2637 = vmatpush1.bf16.msra.mxu1 %v13886_v27  ;;  %2621 = vmatprep.subr.bf16.mxu0 %v13887_v12  ;;  %v14011_v27 = vld [vmem:[#allocation54_spill] sm:$0xff]  ;;  %v14012_v12 = vld [vmem:[#allocation55_spill] sm:$0xff]  ;;  %v14022_v20 = vld [vmem:[#allocation65_spill] sm:$0xff] }
 0x2da   : > { %2638 = vmatprep.subr.bf16.mxu1 %v13888_v13  ;;  %v2186_v42 = vpop.f32.mrb[36].mxu0  ;;  %2668 = vmatprep.mubr.bf16.mxu1 %v13616_v34  ;;  %v14013_v13 = vld [vmem:[#allocation56_spill] sm:$0xff] }
 0x2db   : > { %v2227_v19 = vpop.f32.mrb[36].mxu1  ;;  %v2188_v22 = vpop.f32.mrb[37].mxu0 }
 0x2dc   : > { %v2228_v21 = vadd.f32 %v2227_v19, %v2186_v42  ;;  %v2229_v23 = vpop.f32.mrb[37].mxu1  ;;  %v2190_v37 = vpop.f32.mrb[38].mxu0  ;;  %2622 = vmatpush1.bf16.msra.mxu0 %v13889_v0  ;;  %v14014_v0 = vld [vmem:[#allocation57_spill] sm:$0xff]  ;;  %v14023_v42 = vld [vmem:[#allocation66_spill] sm:$0xff]  ;;  %v14024_v19 = vld [vmem:[#allocation67_spill] sm:$0xff] }
 0x2dd   : > { %v2230_v24 = vadd.f32 %v2229_v23, %v2188_v22  ;;  %v2231_v25 = vpop.f32.mrb[38].mxu1  ;;  %2639 = vmatpush1.bf16.msra.mxu1 %v13890_v16  ;;  %v2191_v26 = vpop.f32.mrb[39].mxu0  ;;  %2623 = vmatprep.subr.bf16.mxu0 %v13891_v8  ;;  %v14015_v16 = vld [vmem:[#allocation58_spill] sm:$0xff]  ;;  %v14016_v8 = vld [vmem:[#allocation59_spill] sm:$0xff]  ;;  %v14026_v22 = vld [vmem:[#allocation69_spill] sm:$0xff] }
 0x2de   : > { %v2232_v28 = vpop.f32.mrb[39].mxu1  ;;  %2640 = vmatprep.subr.bf16.mxu1 %v13892_v18  ;;  %v14017_v18 = vld [vmem:[#allocation60_spill] sm:$0xff]  ;;  %v14027_v23 = vld [vmem:[#allocation70_spill] sm:$0xff]  ;;  %v14030_v25 = vld [vmem:[#allocation73_spill] sm:$0xff] }
 0x2df   : > { %v14029_v37 = vld [vmem:[#allocation72_spill] sm:$0xff] }
 0x2e0   : > { %2624 = vmatpush1.bf16.msra.mxu0 %v13893_v3  ;;  %v14018_v3 = vld [vmem:[#allocation61_spill] sm:$0xff]  ;;  %v14031_v26 = vld [vmem:[#allocation100_spill] sm:$0xff] }
 0x2e1   : > { %2641 = vmatpush1.bf16.msra.mxu1 %v13894_v63  ;;  %2625 = vmatprep.subr.bf16.mxu0 %v13895_v57  ;;  %v13256_v63 = vrot.slane %v10269_v33, 3  ;;  %v14019_v57 = vld [vmem:[#allocation62_spill] sm:$0xff]  ;;  %v14032_v28 = vld [vmem:[#allocation84_spill] sm:$0xff] }
 0x2e2   : > { %2642 = vmatprep.subr.bf16.mxu1 %v13997_v32  ;;  %v14033_v32 = vld [vmem:[#allocation85_spill] sm:$0xff] }
 0x2e4   : > { %2626 = vmatpush1.bf16.msra.mxu0 %v13897_v4  ;;  %v14020_v4 = vld [vmem:[#allocation63_spill] sm:$0xff] }
 0x2e5   : > { %2643 = vmatpush1.bf16.msra.mxu1 %v13998_v39  ;;  %2708 = vmatprep.subr.bf16.mxu0 %v13899_v17  ;;  %v14021_v17 = vld [vmem:[#allocation64_spill] sm:$0xff]  ;;  %v14034_v39 = vld [vmem:[#allocation86_spill] sm:$0xff] }
 0x2e6   : > { %2749 = vmatprep.subr.bf16.mxu1 %v13999_v40  ;;  %v14035_v40 = vld [vmem:[#allocation87_spill] sm:$0xff] }
 0x2e7   : > { %2628 = vmatmul.mubr.bf16.vlgmr.msra.gmra.mrb[56].mxu0 %v14001_v50  ;;  %v14037_v50 = vld [vmem:[#allocation91_spill] sm:$0xff] }
 0x2e8   : > { %6129 = vmatmul.mubr.msk.bf16.vlgmr.msra.gmra.mrb[56].mxu1 %vm938_vm0, %v14002_v52  ;;  %2709 = vmatpush1.bf16.msra.mxu0 %v14003_v53  ;;  %v14038_v52 = vld [vmem:[#allocation92_spill] sm:$0xff]  ;;  %v14039_v53 = vld [vmem:[#allocation93_spill] sm:$0xff] }
 0x2e9   : > { %2750 = vmatpush1.bf16.msra.mxu1 %v14004_v2  ;;  %2710 = vmatprep.subr.bf16.mxu0 %v14005_v43  ;;  %v14040_v2 = vld [vmem:[#allocation94_spill] sm:$0xff] }
 0x2ea   : > { %2751 = vmatprep.subr.bf16.mxu1 %v14006_v55  ;;  %v2268_v35 = vpop.f32.mrb[40].mxu0  ;;  %2740 = vmatprep.mubr.bf16.mxu0 %v13256_v63  ;;  %v14046_v63 = vld [vmem:[#allocation12_spill] sm:$0xff] }
 0x2eb   : > { %2781 = vmatprep.mubr.bf16.mxu1 %v13255_v41  ;;  %v2269_v58 = vadd.f32 %v2268_v35, %v2228_v21  ;;  %v2270_v5 = vpop.f32.mrb[41].mxu0  ;;  %v14025_v21 = vld [vmem:[#allocation68_spill] sm:$0xff]  ;;  %v14041_v35 = vld [vmem:[#allocation95_spill] sm:$0xff] }
 0x2ec   : > { %v2271_v15 = vadd.f32 %v2270_v5, %v2230_v24  ;;  %v2272_v54 = vpop.f32.mrb[42].mxu0  ;;  %2711 = vmatpush1.bf16.msra.mxu0 %v14007_v45  ;;  %v14028_v24 = vld [vmem:[#allocation71_spill] sm:$0xff]  ;;  %v14042_v5 = vld [vmem:[#allocation96_spill] sm:$0xff] }
 0x2ed   : > { %2752 = vmatpush1.bf16.msra.mxu1 %v14008_v59  ;;  %v2273_v51 = vpop.f32.mrb[43].mxu0  ;;  %2712 = vmatprep.subr.bf16.mxu0 %v14009_v48  ;;  %v14043_v54 = vld [vmem:[#allocation97_spill] sm:$0xff]  ;;  %v14045_v41 = vld [vmem:[#allocation99_spill] sm:$0xff] }
 0x2ee   : > { %2753 = vmatprep.subr.bf16.mxu1 %v14010_v30  ;;  %v14044_v51 = vld [vmem:[#allocation98_spill] sm:$0xff] }
 0x2f0   : > { %2713 = vmatpush1.bf16.msra.mxu0 %v14011_v27 }
 0x2f1   : > { %2754 = vmatpush1.bf16.msra.mxu1 %v14012_v12  ;;  %2714 = vmatprep.subr.bf16.mxu0 %v14013_v13 }
 0x2f2   : > { %2755 = vmatprep.subr.bf16.mxu1 %v14014_v0 }
 0x2f4   : > { %2715 = vmatpush1.bf16.msra.mxu0 %v14015_v16 }
 0x2f5   : > { %2756 = vmatpush1.bf16.msra.mxu1 %v14016_v8  ;;  %2716 = vmatprep.subr.bf16.mxu0 %v14017_v18 }
 0x2f6   : > { %2757 = vmatprep.subr.bf16.mxu1 %v14018_v3 }
 0x2f8   : > { %2717 = vmatpush1.bf16.msra.mxu0 %v14019_v57 }
 0x2f9   : > { %2758 = vmatpush1.bf16.msra.mxu1 %v14020_v4  ;;  %2718 = vmatprep.subr.bf16.mxu0 %v14021_v17 }
 0x2fa   : > { %2759 = vmatprep.subr.bf16.mxu1 %v14022_v20 }
 0x2fc   : > { %2719 = vmatpush1.bf16.msra.mxu0 %v14023_v42 }
 0x2fd   : > { %2760 = vmatpush1.bf16.msra.mxu1 %v14024_v19  ;;  %2720 = vmatprep.subr.bf16.mxu0 %v14025_v21 }
 0x2fe   : > { %2761 = vmatprep.subr.bf16.mxu1 %v14026_v22 }
 0x300   : > { %2721 = vmatpush1.bf16.msra.mxu0 %v14027_v23 }
 0x301   : > { %2762 = vmatpush1.bf16.msra.mxu1 %v14028_v24  ;;  %2722 = vmatprep.subr.bf16.mxu0 %v14029_v37 }
 0x302   : > { %2763 = vmatprep.subr.bf16.mxu1 %v14030_v25 }
 0x304   : > { %2723 = vmatpush1.bf16.msra.mxu0 %v14031_v26 }
 0x305   : > { %2764 = vmatpush1.bf16.msra.mxu1 %v14032_v28  ;;  %2724 = vmatprep.subr.bf16.mxu0 %v14033_v32  ;;  %v14057_v32 = vld [vmem:[#allocation23_spill] sm:$0xff] }
 0x306   : > { %2765 = vmatprep.subr.bf16.mxu1 %v14034_v39 }
 0x308   : > { %2725 = vmatpush1.bf16.msra.mxu0 %v14035_v40 }
 0x309   : > { %2766 = vmatpush1.bf16.msra.mxu1 %v14036_v46  ;;  %2726 = vmatprep.subr.bf16.mxu0 %v14037_v50  ;;  %v14047_v46 = vld [vmem:[#allocation13_spill] sm:$0xff]  ;;  %v14048_v50 = vld [vmem:[#allocation14_spill] sm:$0xff] }
 0x30a   : > { %2767 = vmatprep.subr.bf16.mxu1 %v14038_v52  ;;  %v14049_v52 = vld [vmem:[#allocation15_spill] sm:$0xff] }
 0x30c   : > { %2727 = vmatpush1.bf16.msra.mxu0 %v14039_v53  ;;  %v14050_v53 = vld [vmem:[#allocation16_spill] sm:$0xff] }
 0x30d   : > { %2768 = vmatpush1.bf16.msra.mxu1 %v14040_v2  ;;  %2728 = vmatprep.subr.bf16.mxu0 %v14041_v35  ;;  %v14051_v2 = vld [vmem:[#allocation17_spill] sm:$0xff]  ;;  %v14052_v35 = vld [vmem:[#allocation18_spill] sm:$0xff] }
 0x30e   : > { %2769 = vmatprep.subr.bf16.mxu1 %v14042_v5  ;;  %v14053_v5 = vld [vmem:[#allocation19_spill] sm:$0xff] }
 0x310   : > { %2729 = vmatpush1.bf16.msra.mxu0 %v14043_v54  ;;  %v14054_v54 = vld [vmem:[#allocation20_spill] sm:$0xff] }
 0x311   : > { %2770 = vmatpush1.bf16.msra.mxu1 %v14044_v51  ;;  %2730 = vmatprep.subr.bf16.mxu0 %v14045_v41 }
 0x312   : > { %2771 = vmatprep.subr.bf16.mxu1 %v14046_v63 }
 0x314   : > { %2731 = vmatpush1.bf16.msra.mxu0 %v14047_v46  ;;  %v14055_v46 = vld [vmem:[#allocation21_spill] sm:$0xff] }
 0x315   : > { %2772 = vmatpush1.bf16.msra.mxu1 %v14048_v50  ;;  %2732 = vmatprep.subr.bf16.mxu0 %v14049_v52  ;;  %v14056_v50 = vld [vmem:[#allocation22_spill] sm:$0xff] }
 0x316   : > { %2773 = vmatprep.subr.bf16.mxu1 %v14050_v53  ;;  %v14058_v53 = vld [vmem:[#allocation24_spill] sm:$0xff] }
 0x318   : > { %2733 = vmatpush1.bf16.msra.mxu0 %v14051_v2 }
 0x319   : > { %2774 = vmatpush1.bf16.msra.mxu1 %v14052_v35  ;;  %2734 = vmatprep.subr.bf16.mxu0 %v14053_v5  ;;  %v10348_v35 = vcombine.low %v10258_v29, %v10258_v29  ;;  %v14066_v29 = vld [vmem:[#allocation32_spill] sm:$0xff] }
 0x31a   : > { %2775 = vmatprep.subr.bf16.mxu1 %v14054_v54  ;;  %v10352_v54 = vcombine.low %v10261_v31, %v10261_v31  ;;  %v14068_v31 = vld [vmem:[#allocation34_spill] sm:$0xff] }
 0x31b   : > { %v2309_v51 = vpop.f32.mrb[40].mxu1  ;;  %14059 = vst [vmem:[#allocation105_spill] sm:$0xff] %v10348_v35 }
 0x31c   : > { %v2310_v41 = vadd.f32 %v2309_v51, %v2269_v58  ;;  %v2311_v40 = vpop.f32.mrb[41].mxu1  ;;  %2735 = vmatpush1.bf16.msra.mxu0 %v14055_v46  ;;  %14060 = vst [vmem:[#allocation8_spill] sm:$0xff] %v10352_v54  ;;  %v14061_v58 = vld [vmem:[#allocation25_spill] sm:$0xff]  ;;  %v13262_v51 = vrot.slane %v10352_v54, 3 }
 0x31d   : > { %v2312_v63 = vadd.f32 %v2311_v40, %v2271_v15  ;;  %v2313_v39 = vpop.f32.mrb[42].mxu1  ;;  %2776 = vmatpush1.bf16.msra.mxu1 %v14056_v50  ;;  %2736 = vmatprep.subr.bf16.mxu0 %v14057_v32  ;;  %v14062_v15 = vld [vmem:[#allocation26_spill] sm:$0xff]  ;;  %v14064_v40 = vld [vmem:[#allocation28_spill] sm:$0xff]  ;;  %v14067_v32 = vld [vmem:[#allocation33_spill] sm:$0xff] }
 0x31e   : > { %v2314_v52 = vpop.f32.mrb[43].mxu1  ;;  %2777 = vmatprep.subr.bf16.mxu1 %v14058_v53  ;;  %v14063_v39 = vld [vmem:[#allocation27_spill] sm:$0xff] }
 0x31f   : > { %v13257_v52 = vrot.slane %v10348_v35, 3  ;;  %v14065_v53 = vld [vmem:[#allocation31_spill] sm:$0xff] }
 0x320   : > { %2737 = vmatpush1.bf16.msra.mxu0 %v14061_v58  ;;  %v14072_v58 = vld [vmem:[#allocation38_spill] sm:$0xff] }
 0x321   : > { %2778 = vmatpush1.bf16.msra.mxu1 %v14062_v15  ;;  %2738 = vmatprep.subr.bf16.mxu0 %v14063_v39  ;;  %v14069_v39 = vld [vmem:[#allocation35_spill] sm:$0xff]  ;;  %v14071_v15 = vld [vmem:[#allocation37_spill] sm:$0xff] }
 0x322   : > { %2779 = vmatprep.subr.bf16.mxu1 %v14064_v40  ;;  %v14070_v40 = vld [vmem:[#allocation36_spill] sm:$0xff] }
 0x324   : > { %2739 = vmatpush1.bf16.msra.mxu0 %v14065_v53 }
 0x325   : > { %2780 = vmatpush1.bf16.msra.mxu1 %v14066_v29  ;;  %2790 = vmatprep.subr.bf16.mxu0 %v14067_v32  ;;  %v14073_v32 = vld [vmem:[#allocation46_spill] sm:$0xff] }
 0x326   : > { %2831 = vmatprep.subr.bf16.mxu1 %v14068_v31 }
 0x327   : > { %2741 = vmatmul.mubr.bf16.vlgmr.msra.gmra.mrb[60].mxu0 %v13257_v52 }
 0x328   : > { %2782 = vmatmul.mubr.bf16.vlgmr.msra.gmra.mrb[60].mxu1 %v13262_v51  ;;  %2791 = vmatpush1.bf16.msra.mxu0 %v14069_v39 }
 0x329   : > { %2832 = vmatpush1.bf16.msra.mxu1 %v14070_v40  ;;  %2792 = vmatprep.subr.bf16.mxu0 %v14071_v15 }
 0x32a   : > { %2833 = vmatprep.subr.bf16.mxu1 %v14072_v58  ;;  %v2350_v53 = vpop.f32.mrb[44].mxu0  ;;  %2822 = vmatprep.mubr.bf16.mxu0 %v13616_v34 }
 0x32b   : > { %v2391_v29 = vpop.f32.mrb[44].mxu1  ;;  %2863 = vmatprep.mubr.bf16.mxu1 %v14073_v32  ;;  %v2351_v31 = vadd.f32 %v2350_v53, %v2310_v41  ;;  %v2352_v52 = vpop.f32.mrb[45].mxu0  ;;  %v10383_v41 = vld [vmem:[%s7818_s19 + $0x10] ss:$0 sps:$4 sm:$0x88]   ;;  %v14076_v32 = vld [vmem:[#allocation42_spill] sm:$0xff] }
 0x32c   : > { %v2393_v35 = vpop.f32.mrb[45].mxu1  ;;  %v2353_v54 = vadd.f32 %v2352_v52, %v2312_v63  ;;  %v2354_v51 = vpop.f32.mrb[46].mxu0  ;;  %2793 = vmatpush1.bf16.msra.mxu0 %v10043_v10  ;;  %v13263_v63 = vrot.slane %v10383_v41, 3  ;;  %v14078_v53 = vld [vmem:[#allocation75_spill] sm:$0xff]  ;;  %v14083_v52 = vld [vmem:[#allocation78_spill] sm:$0xff] }
 0x32d   : > { %v2395_v50 = vpop.f32.mrb[46].mxu1  ;;  %2834 = vmatpush1.bf16.msra.mxu1 %v10049_v62  ;;  %v10376_v15 = vadd.f32 %v2391_v29, %v2351_v31  ;;  %v2355_v58 = vpop.f32.mrb[47].mxu0  ;;  %2794 = vmatprep.subr.bf16.mxu0 %v10057_v38  ;;  %v14084_v51 = vld [vmem:[#allocation79_spill] sm:$0xff]  ;;  %v14085_v29 = vld [vmem:[#allocation80_spill] sm:$0xff]  ;;  %v14086_v31 = vld [vmem:[#allocation81_spill] sm:$0xff] }
 0x32e   : > { %v2396_v40 = vpop.f32.mrb[47].mxu1  ;;  %2835 = vmatprep.subr.bf16.mxu1 %v10063_v49  ;;  %v10380_v39 = vadd.f32 %v2393_v35, %v2353_v54  ;;  %v14077_v50 = vld [vmem:[#allocation74_spill] sm:$0xff]  ;;  %v14079_v35 = vld [vmem:[#allocation7_spill] sm:$0xff]  ;;  %v14080_v54 = vld [vmem:[#allocation76_spill] sm:$0xff] }
 0x32f   : > { %14074 = vst [vmem:[#allocation11_spill] sm:$0xff] %v10376_v15  ;;  %v14081_v58 = vld [vmem:[#allocation77_spill] sm:$0xff]  ;;  %v14082_v40 = vld [vmem:[#allocation47_spill] sm:$0xff] }
 0x330   : > { %14075 = vst [vmem:[#allocation102_spill] sm:$0xff] %v10380_v39  ;;  %2795 = vmatpush1.bf16.msra.mxu0 %v10072_v14  ;;  %v14088_v15 = vld [vmem:[#allocation83_spill] sm:$0xff] }
 0x331   : > { %2836 = vmatpush1.bf16.msra.mxu1 %v10078_v9  ;;  %2796 = vmatprep.subr.bf16.mxu0 %v10084_v6  ;;  %v10422_v39 = vld [vmem:[%s12780_s1 + $0x80] ss:$8 sps:$4 sm:$0xff]  }
 0x332   : > { %2837 = vmatprep.subr.bf16.mxu1 %v10090_v11  ;;  %14090 = vst [vmem:[#allocation106_spill] sm:$0xff] %v10422_v39 }
 0x334   : > { %2797 = vmatpush1.bf16.msra.mxu0 %v10098_v7 }
 0x335   : > { %2838 = vmatpush1.bf16.msra.mxu1 %v10104_v61  ;;  %2872 = vmatprep.subr.bf16.mxu0 %v14077_v50 }
 0x336   : > { %2839 = vmatprep.subr.bf16.mxu1 %v14076_v32 }
 0x337   : > { %6135 = vmatmul.mubr.msk.bf16.vlgmr.msra.gmra.mrb[64].mxu0 %vm938_vm0, %v13263_v63  ;;  %v14087_v63 = vld [vmem:[#allocation82_spill] sm:$0xff] }
 0x338   : > { %2873 = vmatpush1.bf16.msra.mxu0 %v14079_v35  ;;  %2904 = vmatprep.mubr.bf16.mxu0 %v14082_v40  ;;  %v10416_v40 = vld [vmem:[%s12780_s1 + $0x144] ss:$8 sps:$4 sm:$0xff]  }
 0x339   : > { %2840 = vmatpush1.bf16.msra.mxu1 %v14078_v53  ;;  %2874 = vmatprep.subr.bf16.mxu0 %v14081_v58  ;;  %14089 = vst [vmem:[#allocation104_spill] sm:$0xff] %v10416_v40 }
 0x33a   : > { %2841 = vmatprep.subr.bf16.mxu1 %v14080_v54 }
 0x33c   : > { %2875 = vmatpush1.bf16.msra.mxu0 %v14083_v52 }
 0x33d   : > { %2842 = vmatpush1.bf16.msra.mxu1 %v10150_v44  ;;  %2876 = vmatprep.subr.bf16.mxu0 %v14085_v29 }
 0x33e   : > { %2843 = vmatprep.subr.bf16.mxu1 %v14084_v51 }
 0x340   : > { %2877 = vmatpush1.bf16.msra.mxu0 %v14087_v63 }
 0x341   : > { %2844 = vmatpush1.bf16.msra.mxu1 %v14086_v31  ;;  %2878 = vmatprep.subr.bf16.mxu0 %v10192_v60 }
 0x342   : > { %2845 = vmatprep.subr.bf16.mxu1 %v14088_v15 }
 0x344   : > { %2879 = vmatpush1.bf16.msra.mxu0 %v10204_v47  ;;  %v10428_v47 = vld [vmem:[%s12780_s1 + $0x140] ss:$8 sps:$4 sm:$0xff]  }
 0x345   : > { %2846 = vmatpush1.bf16.msra.mxu1 %v10198_v56  ;;  %2880 = vmatprep.subr.bf16.mxu0 %v10416_v40  ;;  %14091 = vst [vmem:[#allocation43_spill] sm:$0xff] %v10428_v47  ;;  %v10440_v40 = vld [vmem:[%s12780_s1 + $0x154] ss:$8 sps:$4 sm:$0xff]  }
 0x346   : > { %2847 = vmatprep.subr.bf16.mxu1 %v10210_v1  ;;  %v10434_v1 = vld [vmem:[%s12780_s1 + $0x94] ss:$8 sps:$4 sm:$0xff]   ;;  %14093 = vst [vmem:[#allocation108_spill] sm:$0xff] %v10440_v40 }
 0x347   : > { %14092 = vst [vmem:[#allocation107_spill] sm:$0xff] %v10434_v1 }
 0x348   : > { %2881 = vmatpush1.bf16.msra.mxu0 %v10428_v47  ;;  %v10452_v47 = vld [vmem:[%s12780_s1 + $0x150] ss:$8 sps:$4 sm:$0xff]  }
 0x349   : > { %2848 = vmatpush1.bf16.msra.mxu1 %v10422_v39  ;;  %2882 = vmatprep.subr.bf16.mxu0 %v10440_v40  ;;  %v10446_v39 = vld [vmem:[%s12780_s1 + $0x90] ss:$8 sps:$4 sm:$0xff]   ;;  %14095 = vst [vmem:[#allocation49_spill] sm:$0xff] %v10452_v47  ;;  %v10464_v40 = vld [vmem:[%s12780_s1 + $0x164] ss:$8 sps:$4 sm:$0xff]  }
 0x34a   : > { %2849 = vmatprep.subr.bf16.mxu1 %v10434_v1  ;;  %14094 = vst [vmem:[#allocation48_spill] sm:$0xff] %v10446_v39  ;;  %v10458_v1 = vld [vmem:[%s12780_s1 + $0xa4] ss:$8 sps:$4 sm:$0xff]   ;;  %14097 = vst [vmem:[#allocation51_spill] sm:$0xff] %v10464_v40 }
 0x34b   : > { %14096 = vst [vmem:[#allocation50_spill] sm:$0xff] %v10458_v1 }
 0x34c   : > { %2883 = vmatpush1.bf16.msra.mxu0 %v10452_v47  ;;  %v10476_v47 = vld [vmem:[%s12780_s1 + $0x160] ss:$8 sps:$4 sm:$0xff]  }
 0x34d   : > { %2850 = vmatpush1.bf16.msra.mxu1 %v10446_v39  ;;  %2884 = vmatprep.subr.bf16.mxu0 %v10464_v40  ;;  %v10470_v39 = vld [vmem:[%s12780_s1 + $0xa0] ss:$8 sps:$4 sm:$0xff]   ;;  %14099 = vst [vmem:[#allocation53_spill] sm:$0xff] %v10476_v47  ;;  %v10488_v40 = vld [vmem:[%s12780_s1 + $0x174] ss:$8 sps:$4 sm:$0xff]  }
 0x34e   : > { %2851 = vmatprep.subr.bf16.mxu1 %v10458_v1  ;;  %14098 = vst [vmem:[#allocation52_spill] sm:$0xff] %v10470_v39  ;;  %v10482_v1 = vld [vmem:[%s12780_s1 + $0xb4] ss:$8 sps:$4 sm:$0xff]   ;;  %14101 = vst [vmem:[#allocation55_spill] sm:$0xff] %v10488_v40 }
 0x34f   : > { %14100 = vst [vmem:[#allocation54_spill] sm:$0xff] %v10482_v1 }
 0x350   : > { %2885 = vmatpush1.bf16.msra.mxu0 %v10476_v47  ;;  %v10500_v47 = vld [vmem:[%s12780_s1 + $0x170] ss:$8 sps:$4 sm:$0xff]  }
 0x351   : > { %2852 = vmatpush1.bf16.msra.mxu1 %v10470_v39  ;;  %2886 = vmatprep.subr.bf16.mxu0 %v10488_v40  ;;  %v10494_v39 = vld [vmem:[%s12780_s1 + $0xb0] ss:$8 sps:$4 sm:$0xff]   ;;  %14103 = vst [vmem:[#allocation57_spill] sm:$0xff] %v10500_v47  ;;  %v10512_v40 = vld [vmem:[%s12780_s1 + $0x184] ss:$8 sps:$4 sm:$0xff]  }
 0x352   : > { %2853 = vmatprep.subr.bf16.mxu1 %v10482_v1  ;;  %14102 = vst [vmem:[#allocation56_spill] sm:$0xff] %v10494_v39  ;;  %v10506_v1 = vld [vmem:[%s12780_s1 + $0xc4] ss:$8 sps:$4 sm:$0xff]   ;;  %14105 = vst [vmem:[#allocation59_spill] sm:$0xff] %v10512_v40 }
 0x353   : > { %14104 = vst [vmem:[#allocation58_spill] sm:$0xff] %v10506_v1 }
 0x354   : > { %2887 = vmatpush1.bf16.msra.mxu0 %v10500_v47  ;;  %v10524_v47 = vld [vmem:[%s12780_s1 + $0x180] ss:$8 sps:$4 sm:$0xff]  }
 0x355   : > { %2854 = vmatpush1.bf16.msra.mxu1 %v10494_v39  ;;  %2888 = vmatprep.subr.bf16.mxu0 %v10512_v40  ;;  %v10518_v39 = vld [vmem:[%s12780_s1 + $0xc0] ss:$8 sps:$4 sm:$0xff]   ;;  %14107 = vst [vmem:[#allocation61_spill] sm:$0xff] %v10524_v47  ;;  %v10536_v40 = vld [vmem:[%s12780_s1 + $0x194] ss:$8 sps:$4 sm:$0xff]  }
 0x356   : > { %2855 = vmatprep.subr.bf16.mxu1 %v10506_v1  ;;  %14106 = vst [vmem:[#allocation60_spill] sm:$0xff] %v10518_v39  ;;  %v10530_v1 = vld [vmem:[%s12780_s1 + $0xd4] ss:$8 sps:$4 sm:$0xff]   ;;  %14109 = vst [vmem:[#allocation63_spill] sm:$0xff] %v10536_v40 }
 0x357   : > { %14108 = vst [vmem:[#allocation62_spill] sm:$0xff] %v10530_v1 }
 0x358   : > { %2889 = vmatpush1.bf16.msra.mxu0 %v10524_v47  ;;  %v10548_v47 = vld [vmem:[%s12780_s1 + $0x190] ss:$8 sps:$4 sm:$0xff]  }
 0x359   : > { %2856 = vmatpush1.bf16.msra.mxu1 %v10518_v39  ;;  %2890 = vmatprep.subr.bf16.mxu0 %v10536_v40  ;;  %v10542_v39 = vld [vmem:[%s12780_s1 + $0xd0] ss:$8 sps:$4 sm:$0xff]   ;;  %14111 = vst [vmem:[#allocation65_spill] sm:$0xff] %v10548_v47  ;;  %v10560_v40 = vld [vmem:[%s12780_s1 + $0x1a4] ss:$8 sps:$4 sm:$0xff]  }
 0x35a   : > { %2857 = vmatprep.subr.bf16.mxu1 %v10530_v1  ;;  %14110 = vst [vmem:[#allocation64_spill] sm:$0xff] %v10542_v39  ;;  %v10554_v1 = vld [vmem:[%s12780_s1 + $0xe4] ss:$8 sps:$4 sm:$0xff]   ;;  %14113 = vst [vmem:[#allocation67_spill] sm:$0xff] %v10560_v40 }
 0x35b   : > { %14112 = vst [vmem:[#allocation66_spill] sm:$0xff] %v10554_v1 }
 0x35c   : > { %2891 = vmatpush1.bf16.msra.mxu0 %v10548_v47  ;;  %v10572_v47 = vld [vmem:[%s12780_s1 + $0x1a0] ss:$8 sps:$4 sm:$0xff]  }
 0x35d   : > { %2858 = vmatpush1.bf16.msra.mxu1 %v10542_v39  ;;  %2892 = vmatprep.subr.bf16.mxu0 %v10560_v40  ;;  %v10566_v39 = vld [vmem:[%s12780_s1 + $0xe0] ss:$8 sps:$4 sm:$0xff]   ;;  %14115 = vst [vmem:[#allocation69_spill] sm:$0xff] %v10572_v47  ;;  %v10584_v40 = vld [vmem:[%s12780_s1 + $0x1b4] ss:$8 sps:$4 sm:$0xff]  }
 0x35e   : > { %2859 = vmatprep.subr.bf16.mxu1 %v10554_v1  ;;  %14114 = vst [vmem:[#allocation68_spill] sm:$0xff] %v10566_v39  ;;  %v10578_v1 = vld [vmem:[%s12780_s1 + $0xf4] ss:$8 sps:$4 sm:$0xff]   ;;  %14117 = vst [vmem:[#allocation71_spill] sm:$0xff] %v10584_v40 }
 0x35f   : > { %14116 = vst [vmem:[#allocation70_spill] sm:$0xff] %v10578_v1 }
 0x360   : > { %2893 = vmatpush1.bf16.msra.mxu0 %v10572_v47  ;;  %v10596_v47 = vld [vmem:[%s12780_s1 + $0x1b0] ss:$8 sps:$4 sm:$0xff]  }
 0x361   : > { %2860 = vmatpush1.bf16.msra.mxu1 %v10566_v39  ;;  %2894 = vmatprep.subr.bf16.mxu0 %v10584_v40  ;;  %v10590_v39 = vld [vmem:[%s12780_s1 + $0xf0] ss:$8 sps:$4 sm:$0xff]   ;;  %14119 = vst [vmem:[#allocation73_spill] sm:$0xff] %v10596_v47  ;;  %v10608_v40 = vld [vmem:[%s12780_s1 + $0x204] ss:$8 sps:$4 sm:$0xff]  }
 0x362   : > { %2861 = vmatprep.subr.bf16.mxu1 %v10578_v1  ;;  %14118 = vst [vmem:[#allocation72_spill] sm:$0xff] %v10590_v39  ;;  %v10602_v1 = vld [vmem:[%s12780_s1 + $0x1c4] ss:$8 sps:$4 sm:$0xff]   ;;  %14121 = vst [vmem:[#allocation84_spill] sm:$0xff] %v10608_v40 }
 0x363   : > { %14120 = vst [vmem:[#allocation100_spill] sm:$0xff] %v10602_v1 }
 0x364   : > { %2895 = vmatpush1.bf16.msra.mxu0 %v10596_v47  ;;  %v10615_v47 = vld [vmem:[%s12780_s1 + $0x1c0] ss:$8 sps:$4 sm:$0xff]  }
 0x365   : > { %2862 = vmatpush1.bf16.msra.mxu1 %v10590_v39  ;;  %2896 = vmatprep.subr.bf16.mxu0 %v10602_v1  ;;  %v14122_v39 = vld [vmem:[#allocation29_spill] sm:$0xff]  ;;  %14123 = vst [vmem:[#allocation17_spill] sm:$0xff] %v10615_v47  ;;  %v10621_v1 = vld [vmem:[%s12780_s1 + $0x200] ss:$8 sps:$4 sm:$0xff]  }
 0x366   : > { %2913 = vmatprep.subr.bf16.mxu1 %v10608_v40  ;;  %14124 = vst [vmem:[#allocation19_spill] sm:$0xff] %v10621_v1  ;;  %v10627_v40 = vld [vmem:[%s12780_s1 + $0x1d4] ss:$8 sps:$4 sm:$0xff]  }
 0x367   : > { %14125 = vst [vmem:[#allocation21_spill] sm:$0xff] %v10627_v40 }
 0x368   : > { %2864 = vmatmul.mubr.bf16.vlgmr.msra.gmra.mrb[64].mxu1 %v14122_v39  ;;  %2897 = vmatpush1.bf16.msra.mxu0 %v10615_v47  ;;  %v10633_v39 = vld [vmem:[%s12780_s1 + $0x214] ss:$8 sps:$4 sm:$0xff]  }
 0x369   : > { %2914 = vmatpush1.bf16.msra.mxu1 %v10621_v1  ;;  %2898 = vmatprep.subr.bf16.mxu0 %v10627_v40  ;;  %14126 = vst [vmem:[#allocation46_spill] sm:$0xff] %v10633_v39  ;;  %v10640_v40 = vld [vmem:[%s12780_s1 + $0x1d0] ss:$8 sps:$4 sm:$0xff]  }
 0x36a   : > { %2915 = vmatprep.subr.bf16.mxu1 %v10633_v39  ;;  %v2465_v47 = vpop.f32.mrb[48].mxu0  ;;  %2945 = vmatprep.mubr.bf16.mxu1 %v13616_v34  ;;  %14127 = vst [vmem:[#allocation42_spill] sm:$0xff] %v10640_v40  ;;  %v10646_v39 = vld [vmem:[%s12780_s1 + $0x210] ss:$8 sps:$4 sm:$0xff]  }
 0x36b   : > { %v2506_v56 = vpop.f32.mrb[48].mxu1  ;;  %v2467_v1 = vpop.f32.mrb[49].mxu0  ;;  %14128 = vst [vmem:[#allocation74_spill] sm:$0xff] %v10646_v39 }
 0x36c   : > { %v2507_v60 = vadd.f32 %v2506_v56, %v2465_v47  ;;  %v2508_v15 = vpop.f32.mrb[49].mxu1  ;;  %v2469_v31 = vpop.f32.mrb[50].mxu0  ;;  %2899 = vmatpush1.bf16.msra.mxu0 %v10640_v40  ;;  %v14139_v40 = vld [vmem:[#allocation30_spill] sm:$0xff] }
 0x36d   : > { %v2509_v63 = vadd.f32 %v2508_v15, %v2467_v1  ;;  %v2510_v29 = vpop.f32.mrb[50].mxu1  ;;  %2916 = vmatpush1.bf16.msra.mxu1 %v10646_v39  ;;  %v2470_v47 = vpop.f32.mrb[51].mxu0  ;;  %v10652_v1 = vld [vmem:[%s12780_s1 + $0x1e4] ss:$8 sps:$4 sm:$0xff]   ;;  %v10670_v31 = vld [vmem:[%s12780_s1 + $0x220] ss:$8 sps:$4 sm:$0xff]  }
 0x36e   : > { %v2511_v56 = vpop.f32.mrb[51].mxu1  ;;  %14129 = vst [vmem:[#allocation75_spill] sm:$0xff] %v10652_v1  ;;  %2900 = vmatprep.subr.bf16.mxu0 %v10652_v1  ;;  %v10658_v15 = vld [vmem:[%s12780_s1 + $0x224] ss:$8 sps:$4 sm:$0xff]   ;;  %v10664_v29 = vld [vmem:[%s12780_s1 + $0x1e0] ss:$8 sps:$4 sm:$0xff]  }
 0x36f   : > { %14130 = vst [vmem:[#allocation7_spill] sm:$0xff] %v10658_v15  ;;  %2917 = vmatprep.subr.bf16.mxu1 %v10658_v15  ;;  %14131 = vst [vmem:[#allocation76_spill] sm:$0xff] %v10664_v29  ;;  %v10676_v47 = vld [vmem:[%s12780_s1 + $0x1f4] ss:$8 sps:$4 sm:$0xff]   ;;  %v2973_v15 = vshrl.u32 %v10273_v36, 16 }
 0x370   : > { %2901 = vmatpush1.bf16.msra.mxu0 %v10664_v29  ;;  %14132 = vst [vmem:[#allocation77_spill] sm:$0xff] %v10670_v31  ;;  %14133 = vst [vmem:[#allocation47_spill] sm:$0xff] %v10676_v47  ;;  %v10682_v56 = vld [vmem:[%s12780_s1 + $0x234] ss:$8 sps:$4 sm:$0xff]   ;;  %v2965_v29 = vshrl.u32 %v10269_v33, 16 }
 0x371   : > { %2918 = vmatpush1.bf16.msra.mxu1 %v10670_v31  ;;  %2902 = vmatprep.subr.bf16.mxu0 %v10676_v47  ;;  %14134 = vst [vmem:[#allocation78_spill] sm:$0xff] %v10682_v56  ;;  %v10690_v31 = vld [vmem:[%s12780_s1 + $0x1f0] ss:$8 sps:$4 sm:$0xff]   ;;  %v10708_v1 = vld [vmem:[%s12780_s1 + $0x344] ss:$8 sps:$4 sm:$0xff]   ;;  %v10713_v39 = vrot.slane %v2973_v15, 3 }
 0x372   : > { %2919 = vmatprep.subr.bf16.mxu1 %v10682_v56  ;;  %14135 = vst [vmem:[#allocation29_spill] sm:$0xff] %v10690_v31  ;;  %v10696_v47 = vld [vmem:[%s12780_s1 + $0x230] ss:$8 sps:$4 sm:$0xff]   ;;  %v10702_v56 = vld [vmem:[%s12780_s1 + $0x244] ss:$8 sps:$4 sm:$0xff]   ;;  %14138 = vst [vmem:[#allocation111_spill] sm:$0xff] %v10708_v1 }
 0x373   : > { %14136 = vst [vmem:[#allocation109_spill] sm:$0xff] %v10696_v47  ;;  %14137 = vst [vmem:[#allocation110_spill] sm:$0xff] %v10702_v56 }
 0x374   : > { %2903 = vmatpush1.bf16.msra.mxu0 %v10690_v31  ;;  %v10711_v31 = vrot.slane %v2965_v29, 3 }
 0x375   : > { %2920 = vmatpush1.bf16.msra.mxu1 %v10696_v47  ;;  %2987 = vmatprep.subr.bf16.mxu0 %v10702_v56  ;;  %v14140_v47 = vld [vmem:[#allocation41_spill] sm:$0xff]  ;;  %v10721_v56 = vld [vmem:[%s12780_s1 + $0x240] ss:$8 sps:$4 sm:$0xff]  }
 0x376   : > { %3028 = vmatprep.subr.bf16.mxu1 %v10708_v1  ;;  %14141 = vst [vmem:[#allocation30_spill] sm:$0xff] %v10721_v56  ;;  %v10727_v1 = vld [vmem:[%s12780_s1 + $0x340] ss:$8 sps:$4 sm:$0xff]  }
 0x377   : > { %2905 = vmatmul.mubr.bf16.vlgmr.msra.gmra.mrb[68].mxu0 %v14139_v40 }
 0x378   : > { %6136 = vmatmul.mubr.msk.bf16.vlgmr.msra.gmra.mrb[68].mxu1 %vm938_vm0, %v14140_v47  ;;  %2988 = vmatpush1.bf16.msra.mxu0 %v10721_v56 }
 0x379   : > { %3029 = vmatpush1.bf16.msra.mxu1 %v10727_v1  ;;  %2989 = vmatprep.subr.bf16.mxu0 %v14005_v43  ;;  %v14143_v43 = vld [vmem:[#allocation86_spill] sm:$0xff] }
 0x37a   : > { %3030 = vmatprep.subr.bf16.mxu1 %v14006_v55  ;;  %v2547_v40 = vpop.f32.mrb[52].mxu0  ;;  %3019 = vmatprep.mubr.bf16.mxu0 %v10711_v31  ;;  %v14144_v55 = vld [vmem:[#allocation87_spill] sm:$0xff] }
 0x37b   : > { %3060 = vmatprep.mubr.bf16.mxu1 %v10713_v39  ;;  %v2548_v15 = vadd.f32 %v2547_v40, %v2507_v60  ;;  %v2549_v29 = vpop.f32.mrb[53].mxu0  ;;  %v14142_v60 = vld [vmem:[#allocation85_spill] sm:$0xff]  ;;  %v14168_v40 = vld [vmem:[#allocation26_spill] sm:$0xff] }
 0x37c   : > { %v2550_v47 = vadd.f32 %v2549_v29, %v2509_v63  ;;  %v2551_v56 = vpop.f32.mrb[54].mxu0  ;;  %2990 = vmatpush1.bf16.msra.mxu0 %v14007_v45  ;;  %v14145_v45 = vld [vmem:[#allocation101_spill] sm:$0xff]  ;;  %v14170_v29 = vld [vmem:[#allocation28_spill] sm:$0xff] }
 0x37d   : > { %3031 = vmatpush1.bf16.msra.mxu1 %v14008_v59  ;;  %v2552_v51 = vpop.f32.mrb[55].mxu0  ;;  %2991 = vmatprep.subr.bf16.mxu0 %v14009_v48  ;;  %v14146_v59 = vld [vmem:[#allocation91_spill] sm:$0xff]  ;;  %v14147_v48 = vld [vmem:[#allocation92_spill] sm:$0xff]  ;;  %v14167_v56 = vld [vmem:[#allocation25_spill] sm:$0xff] }
 0x37e   : > { %3032 = vmatprep.subr.bf16.mxu1 %v14010_v30  ;;  %v14148_v30 = vld [vmem:[#allocation93_spill] sm:$0xff]  ;;  %v14166_v51 = vld [vmem:[#allocation8_spill] sm:$0xff] }
 0x380   : > { %2992 = vmatpush1.bf16.msra.mxu0 %v14011_v27  ;;  %v14149_v27 = vld [vmem:[#allocation94_spill] sm:$0xff] }
 0x381   : > { %3033 = vmatpush1.bf16.msra.mxu1 %v14012_v12  ;;  %2993 = vmatprep.subr.bf16.mxu0 %v14013_v13  ;;  %v14150_v12 = vld [vmem:[#allocation95_spill] sm:$0xff]  ;;  %v14151_v13 = vld [vmem:[#allocation96_spill] sm:$0xff] }
 0x382   : > { %3034 = vmatprep.subr.bf16.mxu1 %v14014_v0  ;;  %v14152_v0 = vld [vmem:[#allocation97_spill] sm:$0xff] }
 0x384   : > { %2994 = vmatpush1.bf16.msra.mxu0 %v14015_v16  ;;  %v14153_v16 = vld [vmem:[#allocation98_spill] sm:$0xff] }
 0x385   : > { %3035 = vmatpush1.bf16.msra.mxu1 %v14016_v8  ;;  %2995 = vmatprep.subr.bf16.mxu0 %v14017_v18  ;;  %v14154_v8 = vld [vmem:[#allocation99_spill] sm:$0xff]  ;;  %v14155_v18 = vld [vmem:[#allocation12_spill] sm:$0xff] }
 0x386   : > { %3036 = vmatprep.subr.bf16.mxu1 %v14018_v3  ;;  %v14156_v3 = vld [vmem:[#allocation13_spill] sm:$0xff] }
 0x388   : > { %2996 = vmatpush1.bf16.msra.mxu0 %v14019_v57  ;;  %v14157_v57 = vld [vmem:[#allocation14_spill] sm:$0xff] }
 0x389   : > { %3037 = vmatpush1.bf16.msra.mxu1 %v14020_v4  ;;  %2997 = vmatprep.subr.bf16.mxu0 %v14021_v17  ;;  %v14158_v4 = vld [vmem:[#allocation15_spill] sm:$0xff]  ;;  %v14159_v17 = vld [vmem:[#allocation16_spill] sm:$0xff] }
 0x38a   : > { %3038 = vmatprep.subr.bf16.mxu1 %v14022_v20  ;;  %v14160_v20 = vld [vmem:[#allocation18_spill] sm:$0xff] }
 0x38c   : > { %2998 = vmatpush1.bf16.msra.mxu0 %v14023_v42  ;;  %v14161_v42 = vld [vmem:[#allocation20_spill] sm:$0xff] }
 0x38d   : > { %3039 = vmatpush1.bf16.msra.mxu1 %v14024_v19  ;;  %2999 = vmatprep.subr.bf16.mxu0 %v14025_v21 }
 0x38e   : > { %3040 = vmatprep.subr.bf16.mxu1 %v14026_v22 }
 0x390   : > { %3000 = vmatpush1.bf16.msra.mxu0 %v14027_v23 }
 0x391   : > { %3041 = vmatpush1.bf16.msra.mxu1 %v14028_v24  ;;  %3001 = vmatprep.subr.bf16.mxu0 %v14029_v37  ;;  %v14162_v37 = vld [vmem:[#allocation22_spill] sm:$0xff] }
 0x392   : > { %3042 = vmatprep.subr.bf16.mxu1 %v14030_v25 }
 0x394   : > { %3002 = vmatpush1.bf16.msra.mxu0 %v14031_v26  ;;  %v14163_v26 = vld [vmem:[#allocation23_spill] sm:$0xff] }
 0x395   : > { %3043 = vmatpush1.bf16.msra.mxu1 %v14032_v28  ;;  %3003 = vmatprep.subr.bf16.mxu0 %v14142_v60  ;;  %v14164_v28 = vld [vmem:[#allocation24_spill] sm:$0xff]  ;;  %v14172_v60 = vld [vmem:[#allocation31_spill] sm:$0xff] }
 0x396   : > { %3044 = vmatprep.subr.bf16.mxu1 %v14143_v43  ;;  %v14173_v43 = vld [vmem:[#allocation32_spill] sm:$0xff] }
 0x398   : > { %3004 = vmatpush1.bf16.msra.mxu0 %v14144_v55  ;;  %v14174_v55 = vld [vmem:[#allocation33_spill] sm:$0xff] }
 0x399   : > { %3045 = vmatpush1.bf16.msra.mxu1 %v14145_v45  ;;  %3005 = vmatprep.subr.bf16.mxu0 %v14146_v59  ;;  %v14175_v45 = vld [vmem:[#allocation34_spill] sm:$0xff]  ;;  %v14176_v59 = vld [vmem:[#allocation35_spill] sm:$0xff] }
 0x39a   : > { %3046 = vmatprep.subr.bf16.mxu1 %v14147_v48  ;;  %v14177_v48 = vld [vmem:[#allocation36_spill] sm:$0xff] }
 0x39c   : > { %3006 = vmatpush1.bf16.msra.mxu0 %v14148_v30  ;;  %v14178_v30 = vld [vmem:[#allocation37_spill] sm:$0xff] }
 0x39d   : > { %3047 = vmatpush1.bf16.msra.mxu1 %v14149_v27  ;;  %3007 = vmatprep.subr.bf16.mxu0 %v14150_v12  ;;  %v14179_v27 = vld [vmem:[#allocation38_spill] sm:$0xff] }
 0x39e   : > { %3048 = vmatprep.subr.bf16.mxu1 %v14151_v13 }
 0x3a0   : > { %3008 = vmatpush1.bf16.msra.mxu0 %v14152_v0  ;;  %v14180_v0 = vrot.slane %v10269_v33, 3 }
 0x3a1   : > { %3049 = vmatpush1.bf16.msra.mxu1 %v14153_v16  ;;  %3009 = vmatprep.subr.bf16.mxu0 %v14154_v8 }
 0x3a2   : > { %3050 = vmatprep.subr.bf16.mxu1 %v14155_v18 }
 0x3a4   : > { %3010 = vmatpush1.bf16.msra.mxu0 %v14156_v3 }
 0x3a5   : > { %3051 = vmatpush1.bf16.msra.mxu1 %v14157_v57  ;;  %3011 = vmatprep.subr.bf16.mxu0 %v14158_v4 }
 0x3a6   : > { %3052 = vmatprep.subr.bf16.mxu1 %v14159_v17 }
 0x3a8   : > { %3012 = vmatpush1.bf16.msra.mxu0 %v14051_v2  ;;  %v14165_v2 = vld [vmem:[#allocation105_spill] sm:$0xff] }
 0x3a9   : > { %3053 = vmatpush1.bf16.msra.mxu1 %v14160_v20  ;;  %3013 = vmatprep.subr.bf16.mxu0 %v14053_v5  ;;  %v2961_v63 = vshrl.u32 %v14165_v2, 16  ;;  %v2969_v5 = vshrl.u32 %v14166_v51, 16 }
 0x3aa   : > { %3054 = vmatprep.subr.bf16.mxu1 %v14161_v42 }
 0x3ab   : > { %v2588_v19 = vpop.f32.mrb[52].mxu1 }
 0x3ac   : > { %v2589_v21 = vadd.f32 %v2588_v19, %v2548_v15  ;;  %v2590_v22 = vpop.f32.mrb[53].mxu1  ;;  %3014 = vmatpush1.bf16.msra.mxu0 %v14055_v46  ;;  %v14169_v15 = vld [vmem:[#allocation27_spill] sm:$0xff]  ;;  %v10792_v46 = vrot.slane %v2961_v63, 3  ;;  %v2977_v19 = vshrl.u32 %v10383_v41, 16 }
 0x3ad   : > { %v2591_v23 = vadd.f32 %v2590_v22, %v2550_v47  ;;  %v2592_v24 = vpop.f32.mrb[54].mxu1  ;;  %3055 = vmatpush1.bf16.msra.mxu1 %v14162_v37  ;;  %3015 = vmatprep.subr.bf16.mxu0 %v14163_v26  ;;  %v10794_v47 = vrot.slane %v2969_v5, 3  ;;  %v14203_v22 = vld [vmem:[#allocation52_spill] sm:$0xff]  ;;  %v14206_v37 = vld [vmem:[#allocation55_spill] sm:$0xff]  ;;  %v14208_v26 = vld [vmem:[#allocation57_spill] sm:$0xff] }
 0x3ae   : > { %v2593_v25 = vpop.f32.mrb[55].mxu1  ;;  %3056 = vmatprep.subr.bf16.mxu1 %v14164_v28  ;;  %v14205_v24 = vld [vmem:[#allocation54_spill] sm:$0xff]  ;;  %v14210_v63 = vld [vmem:[#allocation59_spill] sm:$0xff]  ;;  %v14211_v5 = vld [vmem:[#allocation60_spill] sm:$0xff] }
 0x3af   : > { %14171 = vst [vmem:[#allocation41_spill] sm:$0xff] %v10794_v47  ;;  %v14207_v25 = vld [vmem:[#allocation56_spill] sm:$0xff]  ;;  %v14209_v28 = vld [vmem:[#allocation58_spill] sm:$0xff] }
 0x3b0   : > { %3016 = vmatpush1.bf16.msra.mxu0 %v14167_v56  ;;  %v14212_v56 = vld [vmem:[#allocation61_spill] sm:$0xff] }
 0x3b1   : > { %3057 = vmatpush1.bf16.msra.mxu1 %v14168_v40  ;;  %3017 = vmatprep.subr.bf16.mxu0 %v14169_v15  ;;  %v14213_v40 = vld [vmem:[#allocation62_spill] sm:$0xff]  ;;  %v14214_v15 = vld [vmem:[#allocation63_spill] sm:$0xff] }
 0x3b2   : > { %3058 = vmatprep.subr.bf16.mxu1 %v14170_v29  ;;  %v14215_v29 = vld [vmem:[#allocation64_spill] sm:$0xff] }
 0x3b4   : > { %3018 = vmatpush1.bf16.msra.mxu0 %v14172_v60  ;;  %v14216_v60 = vld [vmem:[#allocation65_spill] sm:$0xff] }
 0x3b5   : > { %3059 = vmatpush1.bf16.msra.mxu1 %v14173_v43  ;;  %3069 = vmatprep.subr.bf16.mxu0 %v14174_v55  ;;  %v14217_v43 = vld [vmem:[#allocation66_spill] sm:$0xff]  ;;  %v14218_v55 = vld [vmem:[#allocation67_spill] sm:$0xff] }
 0x3b6   : > { %3110 = vmatprep.subr.bf16.mxu1 %v14175_v45  ;;  %v14219_v45 = vld [vmem:[#allocation68_spill] sm:$0xff] }
 0x3b7   : > { %3020 = vmatmul.mubr.bf16.vlgmr.msra.gmra.mrb[72].mxu0 %v10792_v46 }
 0x3b8   : > { %3061 = vmatmul.mubr.bf16.vlgmr.msra.gmra.mrb[72].mxu1 %v10794_v47  ;;  %3070 = vmatpush1.bf16.msra.mxu0 %v14176_v59  ;;  %v14220_v59 = vld [vmem:[#allocation69_spill] sm:$0xff]  ;;  %v14245_v47 = vrot.slane %v10383_v41, 3 }
 0x3b9   : > { %3111 = vmatpush1.bf16.msra.mxu1 %v14177_v48  ;;  %3071 = vmatprep.subr.bf16.mxu0 %v14178_v30  ;;  %v14221_v48 = vld [vmem:[#allocation70_spill] sm:$0xff]  ;;  %v14222_v30 = vld [vmem:[#allocation71_spill] sm:$0xff] }
 0x3ba   : > { %3112 = vmatprep.subr.bf16.mxu1 %v14179_v27  ;;  %v2629_v12 = vpop.f32.mrb[56].mxu0  ;;  %3101 = vmatprep.mubr.bf16.mxu0 %v13616_v34  ;;  %v14223_v27 = vld [vmem:[#allocation72_spill] sm:$0xff] }
 0x3bb   : > { %v2670_v13 = vpop.f32.mrb[56].mxu1  ;;  %3142 = vmatprep.mubr.bf16.mxu1 %v14180_v0  ;;  %v2630_v16 = vadd.f32 %v2629_v12, %v2589_v21  ;;  %v2631_v8 = vpop.f32.mrb[57].mxu0  ;;  %v14202_v21 = vld [vmem:[#allocation51_spill] sm:$0xff]  ;;  %v14224_v12 = vld [vmem:[#allocation73_spill] sm:$0xff]  ;;  %v14226_v0 = vld [vmem:[#allocation84_spill] sm:$0xff] }
 0x3bc   : > { %v2672_v18 = vpop.f32.mrb[57].mxu1  ;;  %v2632_v3 = vadd.f32 %v2631_v8, %v2591_v23  ;;  %v2633_v57 = vpop.f32.mrb[58].mxu0  ;;  %3072 = vmatpush1.bf16.msra.mxu0 %v10043_v10  ;;  %v10822_v10 = vrot.slane %v2977_v19, 3  ;;  %v14204_v23 = vld [vmem:[#allocation53_spill] sm:$0xff] }
 0x3bd   : > { %v2674_v4 = vpop.f32.mrb[58].mxu1  ;;  %3113 = vmatpush1.bf16.msra.mxu1 %v10049_v62  ;;  %v10811_v17 = vadd.f32 %v2670_v13, %v2630_v16  ;;  %v2634_v20 = vpop.f32.mrb[59].mxu0  ;;  %3073 = vmatprep.subr.bf16.mxu0 %v10057_v38  ;;  %v14184_v62 = vrot.slane %v10273_v36, 3  ;;  %v14185_v38 = vld [vmem:[#allocation79_spill] sm:$0xff]  ;;  %v14225_v13 = vld [vmem:[#allocation100_spill] sm:$0xff]  ;;  %v14227_v16 = vrot.slane %v14165_v2, 3 }
 0x3be   : > { %v2675_v42 = vpop.f32.mrb[59].mxu1  ;;  %3114 = vmatprep.subr.bf16.mxu1 %v10063_v49  ;;  %v10815_v33 = vadd.f32 %v2672_v18, %v2632_v3  ;;  %14183 = vst [vmem:[#allocation87_spill] sm:$0xff] %v10822_v10  ;;  %v14186_v49 = vld [vmem:[#allocation80_spill] sm:$0xff]  ;;  %v14193_v36 = vld [vmem:[#allocation103_spill] sm:$0xff]  ;;  %v14228_v8 = vld [vmem:[#allocation17_spill] sm:$0xff] }
 0x3bf   : > { %14181 = vst [vmem:[#allocation85_spill] sm:$0xff] %v10811_v17  ;;  %v14229_v18 = vld [vmem:[#allocation19_spill] sm:$0xff]  ;;  %v14230_v3 = vld [vmem:[#allocation21_spill] sm:$0xff]  ;;  %v14231_v57 = vld [vmem:[#allocation46_spill] sm:$0xff] }
 0x3c0   : > { %14182 = vst [vmem:[#allocation86_spill] sm:$0xff] %v10815_v33  ;;  %3074 = vmatpush1.bf16.msra.mxu0 %v10072_v14  ;;  %v14187_v14 = vld [vmem:[#allocation81_spill] sm:$0xff] }
 0x3c1   : > { %3115 = vmatpush1.bf16.msra.mxu1 %v10078_v9  ;;  %3075 = vmatprep.subr.bf16.mxu0 %v10084_v6  ;;  %v14188_v9 = vld [vmem:[#allocation82_spill] sm:$0xff]  ;;  %v14189_v6 = vld [vmem:[#allocation83_spill] sm:$0xff] }
 0x3c2   : > { %3116 = vmatprep.subr.bf16.mxu1 %v10090_v11  ;;  %v14190_v11 = vld [vmem:[#allocation88_spill] sm:$0xff] }
 0x3c4   : > { %3076 = vmatpush1.bf16.msra.mxu0 %v10098_v7  ;;  %v14191_v7 = vld [vmem:[#allocation89_spill] sm:$0xff] }
 0x3c5   : > { %3117 = vmatpush1.bf16.msra.mxu1 %v10104_v61  ;;  %3151 = vmatprep.subr.bf16.mxu0 %v14077_v50  ;;  %v14192_v61 = vld [vmem:[#allocation90_spill] sm:$0xff]  ;;  %v14196_v50 = vld [vmem:[#allocation43_spill] sm:$0xff] }
 0x3c6   : > { %3118 = vmatprep.subr.bf16.mxu1 %v14076_v32  ;;  %v14195_v32 = vld [vmem:[#allocation106_spill] sm:$0xff] }
 0x3c7   : > { %6137 = vmatmul.mubr.msk.bf16.vlgmr.msra.gmra.mrb[76].mxu0 %vm938_vm0, %v10822_v10  ;;  %v14244_v10 = vrot.slane %v14166_v51, 3 }
 0x3c8   : > { %3152 = vmatpush1.bf16.msra.mxu0 %v14079_v35  ;;  %3183 = vmatprep.mubr.bf16.mxu0 %v14184_v62  ;;  %v14198_v35 = vld [vmem:[#allocation108_spill] sm:$0xff] }
 0x3c9   : > { %3119 = vmatpush1.bf16.msra.mxu1 %v14078_v53  ;;  %3153 = vmatprep.subr.bf16.mxu0 %v14081_v58  ;;  %v14197_v53 = vld [vmem:[#allocation107_spill] sm:$0xff]  ;;  %v14200_v58 = vld [vmem:[#allocation49_spill] sm:$0xff] }
 0x3ca   : > { %3120 = vmatprep.subr.bf16.mxu1 %v14080_v54  ;;  %v14199_v54 = vld [vmem:[#allocation48_spill] sm:$0xff] }
 0x3cc   : > { %3154 = vmatpush1.bf16.msra.mxu0 %v14083_v52  ;;  %v14201_v52 = vld [vmem:[#allocation50_spill] sm:$0xff] }
 0x3cd   : > { %3121 = vmatpush1.bf16.msra.mxu1 %v10150_v44  ;;  %3155 = vmatprep.subr.bf16.mxu0 %v14186_v49  ;;  %v14194_v44 = vld [vmem:[#allocation104_spill] sm:$0xff] }
 0x3ce   : > { %3122 = vmatprep.subr.bf16.mxu1 %v14185_v38 }
 0x3d0   : > { %3156 = vmatpush1.bf16.msra.mxu0 %v14188_v9  ;;  %v14233_v9 = vld [vmem:[#allocation74_spill] sm:$0xff] }
 0x3d1   : > { %3123 = vmatpush1.bf16.msra.mxu1 %v14187_v14  ;;  %3157 = vmatprep.subr.bf16.mxu0 %v14190_v11  ;;  %v14232_v14 = vld [vmem:[#allocation42_spill] sm:$0xff] }
 0x3d2   : > { %3124 = vmatprep.subr.bf16.mxu1 %v14189_v6 }
 0x3d4   : > { %3158 = vmatpush1.bf16.msra.mxu0 %v14192_v61  ;;  %v14235_v61 = vld [vmem:[#allocation7_spill] sm:$0xff] }
 0x3d5   : > { %3125 = vmatpush1.bf16.msra.mxu1 %v14191_v7  ;;  %3159 = vmatprep.subr.bf16.mxu0 %v14194_v44  ;;  %v14234_v7 = vld [vmem:[#allocation75_spill] sm:$0xff] }
 0x3d6   : > { %3126 = vmatprep.subr.bf16.mxu1 %v14193_v36  ;;  %v14236_v36 = vld [vmem:[#allocation76_spill] sm:$0xff] }
 0x3d8   : > { %3160 = vmatpush1.bf16.msra.mxu0 %v14196_v50 }
 0x3d9   : > { %3127 = vmatpush1.bf16.msra.mxu1 %v14195_v32  ;;  %3161 = vmatprep.subr.bf16.mxu0 %v14198_v35 }
 0x3da   : > { %3128 = vmatprep.subr.bf16.mxu1 %v14197_v53 }
 0x3dc   : > { %3162 = vmatpush1.bf16.msra.mxu0 %v14200_v58 }
 0x3dd   : > { %3129 = vmatpush1.bf16.msra.mxu1 %v14199_v54  ;;  %3163 = vmatprep.subr.bf16.mxu0 %v14202_v21 }
 0x3de   : > { %3130 = vmatprep.subr.bf16.mxu1 %v14201_v52 }
 0x3e0   : > { %3164 = vmatpush1.bf16.msra.mxu0 %v14204_v23 }
 0x3e1   : > { %3131 = vmatpush1.bf16.msra.mxu1 %v14203_v22  ;;  %3165 = vmatprep.subr.bf16.mxu0 %v14206_v37 }
 0x3e2   : > { %3132 = vmatprep.subr.bf16.mxu1 %v14205_v24 }
 0x3e4   : > { %3166 = vmatpush1.bf16.msra.mxu0 %v14208_v26 }
 0x3e5   : > { %3133 = vmatpush1.bf16.msra.mxu1 %v14207_v25  ;;  %3167 = vmatprep.subr.bf16.mxu0 %v14210_v63 }
 0x3e6   : > { %3134 = vmatprep.subr.bf16.mxu1 %v14209_v28 }
 0x3e8   : > { %3168 = vmatpush1.bf16.msra.mxu0 %v14212_v56 }
 0x3e9   : > { %3135 = vmatpush1.bf16.msra.mxu1 %v14211_v5  ;;  %3169 = vmatprep.subr.bf16.mxu0 %v14214_v15 }
 0x3ea   : > { %3136 = vmatprep.subr.bf16.mxu1 %v14213_v40 }
 0x3ec   : > { %3170 = vmatpush1.bf16.msra.mxu0 %v14216_v60 }
 0x3ed   : > { %3137 = vmatpush1.bf16.msra.mxu1 %v14215_v29  ;;  %3171 = vmatprep.subr.bf16.mxu0 %v14218_v55 }
 0x3ee   : > { %3138 = vmatprep.subr.bf16.mxu1 %v14217_v43 }
 0x3f0   : > { %3172 = vmatpush1.bf16.msra.mxu0 %v14220_v59 }
 0x3f1   : > { %3139 = vmatpush1.bf16.msra.mxu1 %v14219_v45  ;;  %3173 = vmatprep.subr.bf16.mxu0 %v14222_v30 }
 0x3f2   : > { %3140 = vmatprep.subr.bf16.mxu1 %v14221_v48 }
 0x3f4   : > { %3174 = vmatpush1.bf16.msra.mxu0 %v14224_v12 }
 0x3f5   : > { %3141 = vmatpush1.bf16.msra.mxu1 %v14223_v27  ;;  %3175 = vmatprep.subr.bf16.mxu0 %v14225_v13 }
 0x3f6   : > { %3192 = vmatprep.subr.bf16.mxu1 %v14226_v0 }
 0x3f8   : > { %3143 = vmatmul.mubr.bf16.vlgmr.msra.gmra.mrb[76].mxu1 %v14227_v16  ;;  %3176 = vmatpush1.bf16.msra.mxu0 %v14228_v8  ;;  %v14237_v16 = vld [vmem:[#allocation77_spill] sm:$0xff] }
 0x3f9   : > { %3193 = vmatpush1.bf16.msra.mxu1 %v14229_v18  ;;  %3177 = vmatprep.subr.bf16.mxu0 %v14230_v3 }
 0x3fa   : > { %3194 = vmatprep.subr.bf16.mxu1 %v14231_v57  ;;  %v2742_v4 = vpop.f32.mrb[60].mxu0  ;;  %3224 = vmatprep.mubr.bf16.mxu1 %v13616_v34 }
 0x3fb   : > { %v2783_v20 = vpop.f32.mrb[60].mxu1  ;;  %v2744_v19 = vpop.f32.mrb[61].mxu0 }
 0x3fc   : > { %v2784_v42 = vadd.f32 %v2783_v20, %v2742_v4  ;;  %v2785_v62 = vpop.f32.mrb[61].mxu1  ;;  %v2746_v2 = vpop.f32.mrb[62].mxu0  ;;  %3178 = vmatpush1.bf16.msra.mxu0 %v14232_v14  ;;  %v14238_v4 = vld [vmem:[#allocation47_spill] sm:$0xff]  ;;  %v14239_v20 = vld [vmem:[#allocation78_spill] sm:$0xff] }
 0x3fd   : > { %v2786_v38 = vadd.f32 %v2785_v62, %v2744_v19  ;;  %v2787_v49 = vpop.f32.mrb[62].mxu1  ;;  %3195 = vmatpush1.bf16.msra.mxu1 %v14233_v9  ;;  %v2747_v6 = vpop.f32.mrb[63].mxu0  ;;  %3179 = vmatprep.subr.bf16.mxu0 %v14234_v7  ;;  %v10896_v19 = vld [vmem:[%s7818_s19 + $0x14] sm:$0x11]  ;;  %v10899_v62 = vld [vmem:[%s7818_s19 + $0x1c] sm:$0x11] }
 0x3fe   : > { %v2788_v11 = vpop.f32.mrb[63].mxu1  ;;  %3196 = vmatprep.subr.bf16.mxu1 %v14235_v61  ;;  %v14240_v2 = vld [vmem:[#allocation29_spill] sm:$0xff]  ;;  %v14242_v6 = vld [vmem:[#allocation110_spill] sm:$0xff]  ;;  %v6140_v17 = vcombine.high %v10896_v19, %v10896_v19  ;;  %v6142_v33 = vcombine.high %v10899_v62, %v10899_v62 }
 0x3ff   : > { %v14241_v49 = vld [vmem:[#allocation109_spill] sm:$0xff]  ;;  %v14243_v11 = vld [vmem:[#allocation111_spill] sm:$0xff] }
 0x400   : > { %3180 = vmatpush1.bf16.msra.mxu0 %v14236_v36 }
 0x401   : > { %3197 = vmatpush1.bf16.msra.mxu1 %v14237_v16  ;;  %3181 = vmatprep.subr.bf16.mxu0 %v14238_v4 }
 0x402   : > { %3198 = vmatprep.subr.bf16.mxu1 %v14239_v20 }
 0x404   : > { %3182 = vmatpush1.bf16.msra.mxu0 %v14240_v2  ;;  %v14246_v2 = vld [vmem:[#allocation30_spill] sm:$0xff] }
 0x405   : > { %3199 = vmatpush1.bf16.msra.mxu1 %v14241_v49  ;;  %3259 = vmatprep.subr.bf16.mxu0 %v14242_v6  ;;  %v7413_v6 = vld [vmem:[%s12780_s1 + $0x254] ss:$8 sps:$4 sm:$0xff]  }
 0x406   : > { %3300 = vmatprep.subr.bf16.mxu1 %v14243_v11  ;;  %v7414_v11 = vld [vmem:[%s12780_s1 + $0x354] ss:$8 sps:$4 sm:$0xff]  }
 0x407   : > { %3184 = vmatmul.mubr.bf16.vlgmr.msra.gmra.mrb[80].mxu0 %v14244_v10 }
 0x408   : > { %6138 = vmatmul.mubr.msk.bf16.vlgmr.msra.gmra.mrb[80].mxu1 %vm938_vm0, %v14245_v47  ;;  %3260 = vmatpush1.bf16.msra.mxu0 %v14246_v2 }
 0x409   : > { %3301 = vmatpush1.bf16.msra.mxu1 %v10727_v1  ;;  %3261 = vmatprep.subr.bf16.mxu0 %v7413_v6  ;;  %v7415_v1 = vld [vmem:[%s12780_s1 + $0x250] ss:$8 sps:$4 sm:$0xff]  }
 0x40a   : > { %3302 = vmatprep.subr.bf16.mxu1 %v7414_v11  ;;  %v2824_v51 = vpop.f32.mrb[64].mxu0  ;;  %3291 = vmatprep.mubr.bf16.mxu0 %v6140_v17  ;;  %v7416_v6 = vld [vmem:[%s12780_s1 + $0x350] ss:$8 sps:$4 sm:$0xff]   ;;  %v7417_v17 = vld [vmem:[%s12780_s1 + $0x264] ss:$8 sps:$4 sm:$0xff]  }
 0x40b   : > { %3332 = vmatprep.mubr.bf16.mxu1 %v6142_v33  ;;  %v10922_v41 = vadd.f32 %v2824_v51, %v2784_v42  ;;  %v2826_v47 = vpop.f32.mrb[65].mxu0  ;;  %v7418_v33 = vld [vmem:[%s12780_s1 + $0x364] ss:$8 sps:$4 sm:$0xff]   ;;  %v7419_v42 = vld [vmem:[%s12780_s1 + $0x260] ss:$8 sps:$4 sm:$0xff]  }
 0x40c   : > { %v10924_v10 = vadd.f32 %v2826_v47, %v2786_v38  ;;  %v2828_v2 = vpop.f32.mrb[66].mxu0  ;;  %3262 = vmatpush1.bf16.msra.mxu0 %v7415_v1  ;;  %v7420_v38 = vld [vmem:[%s12780_s1 + $0x360] ss:$8 sps:$4 sm:$0xff]   ;;  %v7421_v51 = vld [vmem:[%s12780_s1 + $0x274] ss:$8 sps:$4 sm:$0xff]  }
 0x40d   : > { %3303 = vmatpush1.bf16.msra.mxu1 %v7416_v6  ;;  %v2829_v11 = vpop.f32.mrb[67].mxu0  ;;  %3263 = vmatprep.subr.bf16.mxu0 %v7417_v17  ;;  %v7422_v47 = vld [vmem:[%s12780_s1 + $0x374] ss:$8 sps:$4 sm:$0xff]   ;;  %v7423_v2 = vld [vmem:[%s12780_s1 + $0x270] ss:$8 sps:$4 sm:$0xff]  }
 0x40e   : > { %3304 = vmatprep.subr.bf16.mxu1 %v7418_v33  ;;  %v7424_v1 = vld [vmem:[%s12780_s1 + $0x370] ss:$8 sps:$4 sm:$0xff]   ;;  %v7425_v6 = vld [vmem:[%s12780_s1 + $0x284] ss:$8 sps:$4 sm:$0xff]   ;;  %v7427_v17 = vld [vmem:[%s12780_s1 + $0x280] ss:$8 sps:$4 sm:$0xff]  }
 0x40f   : > { %v7426_v11 = vld [vmem:[%s12780_s1 + $0x384] ss:$8 sps:$4 sm:$0xff]   ;;  %v7428_v33 = vld [vmem:[%s12780_s1 + $0x380] ss:$8 sps:$4 sm:$0xff]  }
 0x410   : > { %3264 = vmatpush1.bf16.msra.mxu0 %v7419_v42  ;;  %v7429_v42 = vld [vmem:[%s12780_s1 + $0x294] ss:$8 sps:$4 sm:$0xff]  }
 0x411   : > { %3305 = vmatpush1.bf16.msra.mxu1 %v7420_v38  ;;  %3265 = vmatprep.subr.bf16.mxu0 %v7421_v51  ;;  %v7430_v38 = vld [vmem:[%s12780_s1 + $0x394] ss:$8 sps:$4 sm:$0xff]   ;;  %v7431_v51 = vld [vmem:[%s12780_s1 + $0x290] ss:$8 sps:$4 sm:$0xff]  }
 0x412   : > { %3306 = vmatprep.subr.bf16.mxu1 %v7422_v47  ;;  %v7432_v47 = vld [vmem:[%s12780_s1 + $0x390] ss:$8 sps:$4 sm:$0xff]  }
 0x414   : > { %3266 = vmatpush1.bf16.msra.mxu0 %v7423_v2  ;;  %v7433_v2 = vld [vmem:[%s12780_s1 + $0x2a4] ss:$8 sps:$4 sm:$0xff]  }
 0x415   : > { %3307 = vmatpush1.bf16.msra.mxu1 %v7424_v1  ;;  %3267 = vmatprep.subr.bf16.mxu0 %v7425_v6  ;;  %v7434_v1 = vld [vmem:[%s12780_s1 + $0x3a4] ss:$8 sps:$4 sm:$0xff]   ;;  %v7435_v6 = vld [vmem:[%s12780_s1 + $0x2a0] ss:$8 sps:$4 sm:$0xff]  }
 0x416   : > { %3308 = vmatprep.subr.bf16.mxu1 %v7426_v11  ;;  %v7436_v11 = vld [vmem:[%s12780_s1 + $0x3a0] ss:$8 sps:$4 sm:$0xff]  }
 0x418   : > { %3268 = vmatpush1.bf16.msra.mxu0 %v7427_v17  ;;  %v7437_v17 = vld [vmem:[%s12780_s1 + $0x2b4] ss:$8 sps:$4 sm:$0xff]  }
 0x419   : > { %3309 = vmatpush1.bf16.msra.mxu1 %v7428_v33  ;;  %3269 = vmatprep.subr.bf16.mxu0 %v7429_v42  ;;  %v7438_v33 = vld [vmem:[%s12780_s1 + $0x3b4] ss:$8 sps:$4 sm:$0xff]   ;;  %v7439_v42 = vld [vmem:[%s12780_s1 + $0x2b0] ss:$8 sps:$4 sm:$0xff]  }
 0x41a   : > { %3310 = vmatprep.subr.bf16.mxu1 %v7430_v38  ;;  %v7440_v38 = vld [vmem:[%s12780_s1 + $0x3b0] ss:$8 sps:$4 sm:$0xff]  }
 0x41c   : > { %3270 = vmatpush1.bf16.msra.mxu0 %v7431_v51  ;;  %v7441_v51 = vld [vmem:[%s12780_s1 + $0x2c4] ss:$8 sps:$4 sm:$0xff]  }
 0x41d   : > { %3311 = vmatpush1.bf16.msra.mxu1 %v7432_v47  ;;  %3271 = vmatprep.subr.bf16.mxu0 %v7433_v2  ;;  %v7442_v47 = vld [vmem:[%s12780_s1 + $0x3c4] ss:$8 sps:$4 sm:$0xff]   ;;  %v7443_v2 = vld [vmem:[%s12780_s1 + $0x2c0] ss:$8 sps:$4 sm:$0xff]  }
 0x41e   : > { %3312 = vmatprep.subr.bf16.mxu1 %v7434_v1  ;;  %v7444_v1 = vld [vmem:[%s12780_s1 + $0x3c0] ss:$8 sps:$4 sm:$0xff]  }
 0x420   : > { %3272 = vmatpush1.bf16.msra.mxu0 %v7435_v6  ;;  %v7445_v6 = vld [vmem:[%s12780_s1 + $0x2d4] ss:$8 sps:$4 sm:$0xff]  }
 0x421   : > { %3313 = vmatpush1.bf16.msra.mxu1 %v7436_v11  ;;  %3273 = vmatprep.subr.bf16.mxu0 %v7437_v17  ;;  %v7446_v11 = vld [vmem:[%s12780_s1 + $0x3d4] ss:$8 sps:$4 sm:$0xff]   ;;  %v7447_v17 = vld [vmem:[%s12780_s1 + $0x2d0] ss:$8 sps:$4 sm:$0xff]  }
 0x422   : > { %3314 = vmatprep.subr.bf16.mxu1 %v7438_v33  ;;  %v7448_v33 = vld [vmem:[%s12780_s1 + $0x3d0] ss:$8 sps:$4 sm:$0xff]  }
 0x424   : > { %3274 = vmatpush1.bf16.msra.mxu0 %v7439_v42  ;;  %v7449_v42 = vld [vmem:[%s12780_s1 + $0x2e4] ss:$8 sps:$4 sm:$0xff]  }
 0x425   : > { %3315 = vmatpush1.bf16.msra.mxu1 %v7440_v38  ;;  %3275 = vmatprep.subr.bf16.mxu0 %v7441_v51  ;;  %v7450_v38 = vld [vmem:[%s12780_s1 + $0x3e4] ss:$8 sps:$4 sm:$0xff]   ;;  %v7451_v51 = vld [vmem:[%s12780_s1 + $0x2e0] ss:$8 sps:$4 sm:$0xff]  }
 0x426   : > { %3316 = vmatprep.subr.bf16.mxu1 %v7442_v47  ;;  %v7452_v47 = vld [vmem:[%s12780_s1 + $0x3e0] ss:$8 sps:$4 sm:$0xff]  }
 0x428   : > { %3276 = vmatpush1.bf16.msra.mxu0 %v7443_v2  ;;  %v7453_v2 = vld [vmem:[%s12780_s1 + $0x2f4] ss:$8 sps:$4 sm:$0xff]  }
 0x429   : > { %3317 = vmatpush1.bf16.msra.mxu1 %v7444_v1  ;;  %3277 = vmatprep.subr.bf16.mxu0 %v7445_v6  ;;  %v7454_v1 = vld [vmem:[%s12780_s1 + $0x3f4] ss:$8 sps:$4 sm:$0xff]   ;;  %v7455_v6 = vld [vmem:[%s12780_s1 + $0x2f0] ss:$8 sps:$4 sm:$0xff]  }
 0x42a   : > { %3318 = vmatprep.subr.bf16.mxu1 %v7446_v11  ;;  %v7456_v11 = vld [vmem:[%s12780_s1 + $0x3f0] ss:$8 sps:$4 sm:$0xff]  }
 0x42c   : > { %3278 = vmatpush1.bf16.msra.mxu0 %v7447_v17  ;;  %v7457_v17 = vld [vmem:[%s12780_s1 + $0x304] ss:$8 sps:$4 sm:$0xff]  }
 0x42d   : > { %3319 = vmatpush1.bf16.msra.mxu1 %v7448_v33  ;;  %3279 = vmatprep.subr.bf16.mxu0 %v7449_v42  ;;  %v7458_v33 = vld [vmem:[%s12780_s1 + $0x404] ss:$8 sps:$4 sm:$0xff]   ;;  %v7459_v42 = vld [vmem:[%s12780_s1 + $0x300] ss:$8 sps:$4 sm:$0xff]  }
 0x42e   : > { %3320 = vmatprep.subr.bf16.mxu1 %v7450_v38  ;;  %v7460_v38 = vld [vmem:[%s12780_s1 + $0x400] ss:$8 sps:$4 sm:$0xff]  }
 0x430   : > { %3280 = vmatpush1.bf16.msra.mxu0 %v7451_v51  ;;  %v7461_v51 = vld [vmem:[%s12780_s1 + $0x314] ss:$8 sps:$4 sm:$0xff]  }
 0x431   : > { %3321 = vmatpush1.bf16.msra.mxu1 %v7452_v47  ;;  %3281 = vmatprep.subr.bf16.mxu0 %v7453_v2  ;;  %v7462_v47 = vld [vmem:[%s12780_s1 + $0x414] ss:$8 sps:$4 sm:$0xff]  }
 0x432   : > { %3322 = vmatprep.subr.bf16.mxu1 %v7454_v1 }
 0x434   : > { %3282 = vmatpush1.bf16.msra.mxu0 %v7455_v6 }
 0x435   : > { %3323 = vmatpush1.bf16.msra.mxu1 %v7456_v11  ;;  %3283 = vmatprep.subr.bf16.mxu0 %v7457_v17 }
 0x436   : > { %3324 = vmatprep.subr.bf16.mxu1 %v7458_v33  ;;  %v7463_v33 = vld [vmem:[%s12780_s1 + $0x310] ss:$8 sps:$4 sm:$0xff]  }
 0x438   : > { %3284 = vmatpush1.bf16.msra.mxu0 %v7459_v42  ;;  %v7464_v42 = vld [vmem:[%s12780_s1 + $0x410] ss:$8 sps:$4 sm:$0xff]  }
 0x439   : > { %3325 = vmatpush1.bf16.msra.mxu1 %v7460_v38  ;;  %3285 = vmatprep.subr.bf16.mxu0 %v7461_v51  ;;  %v7465_v51 = vld [vmem:[%s12780_s1 + $0x324] ss:$8 sps:$4 sm:$0xff]  }
 0x43a   : > { %3326 = vmatprep.subr.bf16.mxu1 %v7462_v47  ;;  %v7468_v47 = vld [vmem:[%s12780_s1 + $0x420] ss:$8 sps:$4 sm:$0xff]  }
 0x43b   : > { %v2865_v2 = vpop.f32.mrb[64].mxu1 }
 0x43c   : > { %v2866_v1 = vadd.f32 %v2865_v2, %v10922_v41  ;;  %v2867_v6 = vpop.f32.mrb[65].mxu1  ;;  %3286 = vmatpush1.bf16.msra.mxu0 %v7463_v33  ;;  %v7466_v41 = vld [vmem:[%s12780_s1 + $0x424] ss:$8 sps:$4 sm:$0xff]   ;;  %v7469_v2 = vld [vmem:[%s12780_s1 + $0x334] ss:$8 sps:$4 sm:$0xff]   ;;  %v6141_v33 = vcombine.low %v10899_v62, %v10899_v62 }
 0x43d   : > { %v2868_v11 = vadd.f32 %v2867_v6, %v10924_v10  ;;  %v2869_v17 = vpop.f32.mrb[66].mxu1  ;;  %3327 = vmatpush1.bf16.msra.mxu1 %v7464_v42  ;;  %3287 = vmatprep.subr.bf16.mxu0 %v7465_v51  ;;  %v7467_v10 = vld [vmem:[%s12780_s1 + $0x320] ss:$8 sps:$4 sm:$0xff]   ;;  %v7470_v6 = vld [vmem:[%s12780_s1 + $0x434] ss:$8 sps:$4 sm:$0xff]  }
 0x43e   : > { %v2870_v38 = vpop.f32.mrb[67].mxu1  ;;  %3328 = vmatprep.subr.bf16.mxu1 %v7466_v41  ;;  %v6139_v17 = vcombine.low %v10896_v19, %v10896_v19  ;;  %v7471_v42 = vld [vmem:[%s12780_s1 + $0x330] ss:$8 sps:$4 sm:$0xff]   ;;  %v7473_v51 = vld [vmem:[%s12780_s1 + $0x444] ss:$8 sps:$4 sm:$0xff]  }
 0x43f   : > { %v7472_v38 = vld [vmem:[%s12780_s1 + $0x430] ss:$8 sps:$4 sm:$0xff]   ;;  %v7474_v19 = vld [vmem:[%s12780_s1 + $0x4] ss:$8 sps:$4 sm:$0xff]   ;;  %v7475_v62 = vld [vmem:[%s12780_s1 + $0x440] ss:$8 sps:$4 sm:$0xff]  }
 0x440   : > { %3288 = vmatpush1.bf16.msra.mxu0 %v7467_v10  ;;  %v7476_v41 = vld [vmem:[%s12780_s1] ss:$8 sps:$4 sm:$0xff]   ;;  %v7477_v10 = vld [vmem:[%s12780_s1 + $0x454] ss:$8 sps:$4 sm:$0xff]  }
 0x441   : > { %3329 = vmatpush1.bf16.msra.mxu1 %v7468_v47  ;;  %3289 = vmatprep.subr.bf16.mxu0 %v7469_v2  ;;  %v7478_v47 = vld [vmem:[%s12780_s1 + $0x14] ss:$8 sps:$4 sm:$0xff]  }
 0x442   : > { %3330 = vmatprep.subr.bf16.mxu1 %v7470_v6 }
 0x444   : > { %3290 = vmatpush1.bf16.msra.mxu0 %v7471_v42 }
 0x445   : > { %3331 = vmatpush1.bf16.msra.mxu1 %v7472_v38  ;;  %3341 = vmatprep.subr.bf16.mxu0 %v7473_v51 }
 0x446   : > { %3382 = vmatprep.subr.bf16.mxu1 %v7474_v19 }
 0x447   : > { %3292 = vmatmul.mubr.bf16.vlgmr.msra.gmra.mrb[84].mxu0 %v6139_v17 }
 0x448   : > { %3333 = vmatmul.mubr.bf16.vlgmr.msra.gmra.mrb[84].mxu1 %v6141_v33  ;;  %3342 = vmatpush1.bf16.msra.mxu0 %v7475_v62  ;;  %v7479_v62 = vld [vmem:[%s12780_s1 + $0x450] ss:$8 sps:$4 sm:$0xff]  }
 0x449   : > { %3383 = vmatpush1.bf16.msra.mxu1 %v7476_v41  ;;  %3343 = vmatprep.subr.bf16.mxu0 %v7477_v10  ;;  %v7480_v41 = vld [vmem:[%s12780_s1 + $0x10] ss:$8 sps:$4 sm:$0xff]  }
 0x44a   : > { %3384 = vmatprep.subr.bf16.mxu1 %v7478_v47  ;;  %v2906_v2 = vpop.f32.mrb[68].mxu0  ;;  %3373 = vmatprep.mubr.bf16.mxu0 %v13616_v34  ;;  %v7482_v47 = vld [vmem:[%s12780_s1 + $0x24] ss:$8 sps:$4 sm:$0xff]  }
 0x44b   : > { %v2947_v6 = vpop.f32.mrb[68].mxu1  ;;  %3414 = vmatprep.mubr.bf16.mxu1 %v10711_v31  ;;  %v2907_v17 = vadd.f32 %v2906_v2, %v2866_v1  ;;  %v2908_v33 = vpop.f32.mrb[69].mxu0 }
 0x44c   : > { %v2949_v42 = vpop.f32.mrb[69].mxu1  ;;  %v2909_v38 = vadd.f32 %v2908_v33, %v2868_v11  ;;  %v2910_v51 = vpop.f32.mrb[70].mxu0  ;;  %3344 = vmatpush1.bf16.msra.mxu0 %v7479_v62  ;;  %v7481_v11 = vld [vmem:[%s12780_s1 + $0x464] ss:$8 sps:$4 sm:$0xff]   ;;  %v7485_v33 = vld [vmem:[%s12780_s1 + $0x474] ss:$8 sps:$4 sm:$0xff]  }
 0x44d   : > { %v2951_v19 = vpop.f32.mrb[70].mxu1  ;;  %3385 = vmatpush1.bf16.msra.mxu1 %v7480_v41  ;;  %v11132_v10 = vadd.f32 %v2947_v6, %v2907_v17  ;;  %v2911_v31 = vpop.f32.mrb[71].mxu0  ;;  %3345 = vmatprep.subr.bf16.mxu0 %v7481_v11  ;;  %v7483_v6 = vld [vmem:[%s12780_s1 + $0x460] ss:$8 sps:$4 sm:$0xff]   ;;  %v7487_v51 = vld [vmem:[%s12780_s1 + $0x470] ss:$8 sps:$4 sm:$0xff]  }
 0x44e   : > { %v2952_v1 = vpop.f32.mrb[71].mxu1  ;;  %3386 = vmatprep.subr.bf16.mxu1 %v7482_v47  ;;  %v11140_v2 = vadd.f32 %v2949_v42, %v2909_v38  ;;  %v7484_v17 = vld [vmem:[%s12780_s1 + $0x20] ss:$8 sps:$4 sm:$0xff]   ;;  %v7486_v42 = vld [vmem:[%s12780_s1 + $0x34] ss:$8 sps:$4 sm:$0xff]  }
 0x44f   : > { %14247 = vst [vmem:[#allocation101_spill] sm:$0xff] %v11132_v10  ;;  %v6836_v38 = vld [vmem:[%s7818_s19 + $0x24] ss:$0 sps:$4 sm:$0x11]   ;;  %v7488_v19 = vld [vmem:[%s12780_s1 + $0x30] ss:$8 sps:$4 sm:$0xff]  }
 0x450   : > { %14248 = vst [vmem:[#allocation91_spill] sm:$0xff] %v11140_v2  ;;  %3346 = vmatpush1.bf16.msra.mxu0 %v7483_v6  ;;  %v7489_v62 = vld [vmem:[%s12780_s1 + $0x44] ss:$8 sps:$4 sm:$0xff]   ;;  %v7491_v31 = vld [vmem:[%s12780_s1 + $0x40] ss:$8 sps:$4 sm:$0xff]  }
 0x451   : > { %3387 = vmatpush1.bf16.msra.mxu1 %v7484_v17  ;;  %3347 = vmatprep.subr.bf16.mxu0 %v7485_v33  ;;  %v7490_v41 = vld [vmem:[%s12780_s1 + $0x104] ss:$8 sps:$4 sm:$0xff]   ;;  %v7492_v1 = vld [vmem:[%s12780_s1 + $0x100] ss:$8 sps:$4 sm:$0xff]   ;;  %v7493_v11 = vld [vmem:[%s12780_s1 + $0x54] ss:$8 sps:$4 sm:$0xff]  }
 0x452   : > { %3388 = vmatprep.subr.bf16.mxu1 %v7486_v42  ;;  %v7494_v47 = vld [vmem:[%s12780_s1 + $0x114] ss:$8 sps:$4 sm:$0xff]   ;;  %v7495_v6 = vld [vmem:[%s12780_s1 + $0x50] ss:$8 sps:$4 sm:$0xff]   ;;  %v7497_v33 = vld [vmem:[%s12780_s1 + $0x64] ss:$8 sps:$4 sm:$0xff]  }
 0x453   : > { %v7496_v17 = vld [vmem:[%s12780_s1 + $0x110] ss:$8 sps:$4 sm:$0xff]   ;;  %v7498_v42 = vld [vmem:[%s12780_s1 + $0x124] ss:$8 sps:$4 sm:$0xff]  }
 0x454   : > { %3348 = vmatpush1.bf16.msra.mxu0 %v7487_v51  ;;  %v7501_v51 = vld [vmem:[%s12780_s1 + $0x74] ss:$8 sps:$4 sm:$0xff]  }
 0x455   : > { %3389 = vmatpush1.bf16.msra.mxu1 %v7488_v19  ;;  %3423 = vmatprep.subr.bf16.mxu0 %v7490_v41  ;;  %v7502_v19 = vld [vmem:[%s12780_s1 + $0x134] ss:$8 sps:$4 sm:$0xff]   ;;  %v7504_v41 = vld [vmem:[%s12780_s1 + $0x130] ss:$8 sps:$4 sm:$0xff]  }
 0x456   : > { %3390 = vmatprep.subr.bf16.mxu1 %v7489_v62  ;;  %v7503_v62 = vld [vmem:[%s12780_s1 + $0x70] ss:$8 sps:$4 sm:$0xff]  }
 0x457   : > { %6144 = vmatmul.mubr.msk.bf16.vlgmr.msra.gmra.mrb[88].mxu0 %vm938_vm0, %v6836_v38  ;;  %v7500_v38 = vld [vmem:[%s12780_s1 + $0x120] ss:$8 sps:$4 sm:$0xff]  }
 0x458   : > { %3424 = vmatpush1.bf16.msra.mxu0 %v7492_v1  ;;  %3455 = vmatprep.mubr.bf16.mxu0 %v10713_v39  ;;  %v7499_v39 = vld [vmem:[%s12780_s1 + $0x60] ss:$8 sps:$4 sm:$0xff]   ;;  %v11379_v1 = vld [vmem:[%s12782_s3 + $0x30] ss:$8 sps:$4 sm:$0xff]  }
 0x459   : > { %3391 = vmatpush1.bf16.msra.mxu1 %v7491_v31  ;;  %3425 = vmatprep.subr.bf16.mxu0 %v7494_v47  ;;  %v7505_v31 = vld [vmem:[%s12780_s1 + $0x84] ss:$8 sps:$4 sm:$0xff]  }
 0x45a   : > { %3392 = vmatprep.subr.bf16.mxu1 %v7493_v11  ;;  %v11384_v11 = vld [vmem:[%s12782_s3 + $0x144] ss:$8 sps:$4 sm:$0xff]  }
 0x45b   : > { %v11390_v47 = vld [vmem:[%s12782_s3 + $0x44] ss:$8 sps:$4 sm:$0xff]  }
 0x45c   : > { %3426 = vmatpush1.bf16.msra.mxu0 %v7496_v17  ;;  %v11403_v17 = vld [vmem:[%s12782_s3 + $0x40] ss:$8 sps:$4 sm:$0xff]  }
 0x45d   : > { %3393 = vmatpush1.bf16.msra.mxu1 %v7495_v6  ;;  %3427 = vmatprep.subr.bf16.mxu0 %v7498_v42  ;;  %v11396_v6 = vld [vmem:[%s12782_s3 + $0x140] ss:$8 sps:$4 sm:$0xff]   ;;  %v11414_v42 = vld [vmem:[%s12782_s3 + $0x54] ss:$8 sps:$4 sm:$0xff]  }
 0x45e   : > { %3394 = vmatprep.subr.bf16.mxu1 %v7497_v33  ;;  %v11408_v33 = vld [vmem:[%s12782_s3 + $0x154] ss:$8 sps:$4 sm:$0xff]  }
 0x460   : > { %3428 = vmatpush1.bf16.msra.mxu0 %v7500_v38  ;;  %v11427_v38 = vld [vmem:[%s12782_s3 + $0x50] ss:$8 sps:$4 sm:$0xff]  }
 0x461   : > { %3395 = vmatpush1.bf16.msra.mxu1 %v7499_v39  ;;  %3429 = vmatprep.subr.bf16.mxu0 %v7502_v19  ;;  %v11420_v39 = vld [vmem:[%s12782_s3 + $0x150] ss:$8 sps:$4 sm:$0xff]   ;;  %v11438_v19 = vld [vmem:[%s12782_s3 + $0x64] ss:$8 sps:$4 sm:$0xff]  }
 0x462   : > { %3396 = vmatprep.subr.bf16.mxu1 %v7501_v51  ;;  %v11432_v51 = vld [vmem:[%s12782_s3 + $0x164] ss:$8 sps:$4 sm:$0xff]  }
 0x464   : > { %3430 = vmatpush1.bf16.msra.mxu0 %v7504_v41  ;;  %v11451_v41 = vld [vmem:[%s12782_s3 + $0x60] ss:$8 sps:$4 sm:$0xff]  }
 0x465   : > { %3397 = vmatpush1.bf16.msra.mxu1 %v7503_v62  ;;  %3431 = vmatprep.subr.bf16.mxu0 %v14194_v44  ;;  %v1555_v44 = vlaneseq  ;;  %v11444_v62 = vld [vmem:[%s12782_s3 + $0x160] ss:$8 sps:$4 sm:$0xff]  }
 0x466   : > { %3398 = vmatprep.subr.bf16.mxu1 %v7505_v31  ;;  %v11456_v31 = vld [vmem:[%s12782_s3 + $0x174] ss:$8 sps:$4 sm:$0xff]  }
 0x468   : > { %3432 = vmatpush1.bf16.msra.mxu0 %v14196_v50 }
 0x469   : > { %3399 = vmatpush1.bf16.msra.mxu1 %v14195_v32  ;;  %3433 = vmatprep.subr.bf16.mxu0 %v14198_v35  ;;  %v11243_v32 = vshrl.u32 %v1555_v44, 7  ;;  %v11462_v44 = vld [vmem:[%s12782_s3 + $0x74] ss:$8 sps:$4 sm:$0xff]  }
 0x46a   : > { %3400 = vmatprep.subr.bf16.mxu1 %v14197_v53  ;;  %v11256_v53 = vld [vmem:[%s12781_s2] sm:$0x3] }
 0x46b   : > { %14249 = vst [vmem:[#allocation92_spill] sm:$0xff] %v11243_v32  ;;  %v11250_v50 = vsub.s32 1, %v11243_v32 }
 0x46c   : > { %3434 = vmatpush1.bf16.msra.mxu0 %v14200_v58 }
 0x46d   : > { %3401 = vmatpush1.bf16.msra.mxu1 %v14199_v54  ;;  %3435 = vmatprep.subr.bf16.mxu0 %v14202_v21  ;;  %14250 = vst [vmem:[#allocation93_spill] sm:$0xff] %v11250_v50 }
 0x46e   : > { %3402 = vmatprep.subr.bf16.mxu1 %v14201_v52 }
 0x470   : > { %3436 = vmatpush1.bf16.msra.mxu0 %v14204_v23 }
 0x471   : > { %3403 = vmatpush1.bf16.msra.mxu1 %v14203_v22  ;;  %3437 = vmatprep.subr.bf16.mxu0 %v14206_v37 }
 0x472   : > { %3404 = vmatprep.subr.bf16.mxu1 %v14205_v24 }
 0x474   : > { %3438 = vmatpush1.bf16.msra.mxu0 %v14208_v26  ;;  %v14252_v26 = vld [vmem:[#allocation45_spill] sm:$0xff] }
 0x475   : > { %3405 = vmatpush1.bf16.msra.mxu1 %v14207_v25  ;;  %3439 = vmatprep.subr.bf16.mxu0 %v14210_v63  ;;  %v14253_v63 = vld [vmem:[#allocation10_spill] sm:$0xff] }
 0x476   : > { %3406 = vmatprep.subr.bf16.mxu1 %v14209_v28 }
 0x478   : > { %3440 = vmatpush1.bf16.msra.mxu0 %v14212_v56  ;;  %v11282_v56 = vld [vmem:[%s12782_s3 + $0x104] ss:$8 sps:$4 sm:$0xff]  }
 0x479   : > { %3407 = vmatpush1.bf16.msra.mxu1 %v14211_v5  ;;  %3441 = vmatprep.subr.bf16.mxu0 %v14214_v15  ;;  %14254 = vst [vmem:[#allocation95_spill] sm:$0xff] %v11282_v56 }
 0x47a   : > { %3408 = vmatprep.subr.bf16.mxu1 %v14213_v40  ;;  %v11287_v40 = vld [vmem:[%s12782_s3 + $0x4] ss:$8 sps:$4 sm:$0xff]  }
 0x47b   : > { %14255 = vst [vmem:[#allocation96_spill] sm:$0xff] %v11287_v40 }
 0x47c   : > { %3442 = vmatpush1.bf16.msra.mxu0 %v14216_v60  ;;  %v14256_v60 = vld [vmem:[#allocation29_spill] sm:$0xff] }
 0x47d   : > { %3409 = vmatpush1.bf16.msra.mxu1 %v14215_v29  ;;  %3443 = vmatprep.subr.bf16.mxu0 %v14218_v55  ;;  %v11300_v55 = vld [vmem:[%s12782_s3] ss:$8 sps:$4 sm:$0xff]  }
 0x47e   : > { %3410 = vmatprep.subr.bf16.mxu1 %v14217_v43  ;;  %v11294_v43 = vld [vmem:[%s12782_s3 + $0x100] ss:$8 sps:$4 sm:$0xff]   ;;  %14257 = vst [vmem:[#allocation97_spill] sm:$0xff] %v11300_v55 }
 0x480   : > { %3444 = vmatpush1.bf16.msra.mxu0 %v14220_v59  ;;  %v11306_v59 = vld [vmem:[%s12782_s3 + $0x114] ss:$8 sps:$4 sm:$0xff]  }
 0x481   : > { %3411 = vmatpush1.bf16.msra.mxu1 %v14219_v45  ;;  %3445 = vmatprep.subr.bf16.mxu0 %v14222_v30 }
 0x482   : > { %3412 = vmatprep.subr.bf16.mxu1 %v14221_v48  ;;  %v11311_v48 = vld [vmem:[%s12782_s3 + $0x14] ss:$8 sps:$4 sm:$0xff]  }
 0x484   : > { %3446 = vmatpush1.bf16.msra.mxu0 %v14224_v12  ;;  %v14259_v12 = vld [vmem:[#allocation87_spill] sm:$0xff] }
 0x485   : > { %3413 = vmatpush1.bf16.msra.mxu1 %v14223_v27  ;;  %3447 = vmatprep.subr.bf16.mxu0 %v14225_v13  ;;  %v14258_v27 = vld [vmem:[#allocation41_spill] sm:$0xff] }
 0x486   : > { %3464 = vmatprep.subr.bf16.mxu1 %v14226_v0  ;;  %v11320_v13 = vld [vmem:[%s12782_s3 + $0x110] ss:$8 sps:$4 sm:$0xff]  }
 0x487   : > { %v11326_v0 = vld [vmem:[%s12782_s3 + $0x10] ss:$8 sps:$4 sm:$0xff]  }
 0x488   : > { %3415 = vmatmul.mubr.bf16.vlgmr.msra.gmra.mrb[88].mxu1 %v10792_v46  ;;  %3448 = vmatpush1.bf16.msra.mxu0 %v14228_v8  ;;  %v11265_v46 = vrot.slane %v11256_v53, %v11250_v50  ;;  %v11331_v8 = vld [vmem:[%s12782_s3 + $0x124] ss:$8 sps:$4 sm:$0xff]  }
 0x489   : > { %3465 = vmatpush1.bf16.msra.mxu1 %v14229_v18  ;;  %3449 = vmatprep.subr.bf16.mxu0 %v14230_v3  ;;  %v11338_v3 = vld [vmem:[%s12782_s3 + $0x24] ss:$8 sps:$4 sm:$0xff]  }
 0x48a   : > { %3466 = vmatprep.subr.bf16.mxu1 %v14231_v57  ;;  %v3021_v35 = vpop.f32.mrb[72].mxu0  ;;  %3496 = vmatprep.mubr.bf16.mxu1 %v13616_v34  ;;  %14251 = vst [vmem:[#allocation94_spill] sm:$0xff] %v11265_v46  ;;  %v1843_v28 = vadd.f32 %v14252_v26, %v11265_v46  ;;  %v1566_v5 = vadd.f32 %v11265_v46, %v14253_v63  ;;  %v11528_v26 = vld [vmem:[%s12782_s3 + $0x1a4] ss:$8 sps:$4 sm:$0xff]   ;;  %v11540_v63 = vld [vmem:[%s12782_s3 + $0x1a0] ss:$8 sps:$4 sm:$0xff]  }
 0x48b   : > { %v3062_v54 = vpop.f32.mrb[72].mxu1  ;;  %v3023_v52 = vpop.f32.mrb[73].mxu0  ;;  %14263 = vst [vmem:[#allocation13_spill] sm:$0xff] %v11528_v26  ;;  %14265 = vst [vmem:[#allocation15_spill] sm:$0xff] %v11540_v63  ;;  %v11615_v34 = vld [vmem:[%s12782_s3 + $0x1d0] ss:$8 sps:$4 sm:$0xff]  }
 0x48c   : > { %v3063_v58 = vadd.f32 %v3062_v54, %v3021_v35  ;;  %v3064_v21 = vpop.f32.mrb[73].mxu1  ;;  %v3025_v23 = vpop.f32.mrb[74].mxu0  ;;  %3450 = vmatpush1.bf16.msra.mxu0 %v14232_v14  ;;  %v1845_v15 = vmax.f32 %v1843_v28, 0.0  ;;  %v1568_v29 = vmax.f32 %v1566_v5, 0.0  ;;  %v11468_v35 = vld [vmem:[%s12782_s3 + $0x170] ss:$8 sps:$4 sm:$0xff]  }
 0x48d   : > { %v3065_v22 = vadd.f32 %v3064_v21, %v3023_v52  ;;  %v3066_v24 = vpop.f32.mrb[74].mxu1  ;;  %3467 = vmatpush1.bf16.msra.mxu1 %v14233_v9  ;;  %v3026_v37 = vpop.f32.mrb[75].mxu0  ;;  %3451 = vmatprep.subr.bf16.mxu0 %v14234_v7  ;;  %v11475_v54 = vld [vmem:[%s12782_s3 + $0x70] ss:$8 sps:$4 sm:$0xff]   ;;  %v11486_v52 = vld [vmem:[%s12782_s3 + $0x84] ss:$8 sps:$4 sm:$0xff]  }
 0x48e   : > { %v3067_v25 = vpop.f32.mrb[75].mxu1  ;;  %3468 = vmatprep.subr.bf16.mxu1 %v14235_v61  ;;  %v1847_v45 = vpack.c.bf16 %v1845_v15, %v1845_v15  ;;  %v1570_v30 = vpack.c.bf16 %v1568_v29, %v1568_v29  ;;  %v11348_v61 = vld [vmem:[%s12782_s3 + $0x120] ss:$8 sps:$4 sm:$0xff]   ;;  %v11504_v23 = vld [vmem:[%s12782_s3 + $0x194] ss:$8 sps:$4 sm:$0xff]   ;;  %14278 = vst [vmem:[#allocation31_spill] sm:$0xff] %v11615_v34 }
 0x48f   : > { %v11492_v21 = vld [vmem:[%s12782_s3 + $0x180] ss:$8 sps:$4 sm:$0xff]   ;;  %v11510_v24 = vld [vmem:[%s12782_s3 + $0x94] ss:$8 sps:$4 sm:$0xff]   ;;  %v11516_v37 = vld [vmem:[%s12782_s3 + $0x190] ss:$8 sps:$4 sm:$0xff]  }
 0x490   : > { %3452 = vmatpush1.bf16.msra.mxu0 %v14236_v36  ;;  %14260 = vst [vmem:[#allocation98_spill] sm:$0xff] %v11510_v24  ;;  %14261 = vst [vmem:[#allocation99_spill] sm:$0xff] %v11516_v37  ;;  %v11523_v25 = vld [vmem:[%s12782_s3 + $0x90] ss:$8 sps:$4 sm:$0xff]   ;;  %v11534_v28 = vld [vmem:[%s12782_s3 + $0xa4] ss:$8 sps:$4 sm:$0xff]  }
 0x491   : > { %3469 = vmatpush1.bf16.msra.mxu1 %v14237_v16  ;;  %3453 = vmatprep.subr.bf16.mxu0 %v14238_v4  ;;  %v11355_v16 = vld [vmem:[%s12782_s3 + $0x20] ss:$8 sps:$4 sm:$0xff]   ;;  %v11360_v4 = vld [vmem:[%s12782_s3 + $0x134] ss:$8 sps:$4 sm:$0xff]   ;;  %14262 = vst [vmem:[#allocation12_spill] sm:$0xff] %v11523_v25  ;;  %14264 = vst [vmem:[#allocation14_spill] sm:$0xff] %v11534_v28 }
 0x492   : > { %3470 = vmatprep.subr.bf16.mxu1 %v14239_v20  ;;  %v11366_v20 = vld [vmem:[%s12782_s3 + $0x34] ss:$8 sps:$4 sm:$0xff]   ;;  %v11547_v5 = vld [vmem:[%s12782_s3 + $0xa0] ss:$8 sps:$4 sm:$0xff]   ;;  %v11627_v50 = vld [vmem:[%s12782_s3 + $0x1e4] ss:$8 sps:$4 sm:$0xff]  }
 0x493   : > { %14266 = vst [vmem:[#allocation16_spill] sm:$0xff] %v11547_v5  ;;  %v11552_v15 = vld [vmem:[%s12782_s3 + $0x1b4] ss:$8 sps:$4 sm:$0xff]   ;;  %14280 = vst [vmem:[#allocation33_spill] sm:$0xff] %v11627_v50 }
 0x494   : > { %3454 = vmatpush1.bf16.msra.mxu0 %v14256_v60  ;;  %14267 = vst [vmem:[#allocation18_spill] sm:$0xff] %v11552_v15  ;;  %v11558_v29 = vld [vmem:[%s12782_s3 + $0xb4] ss:$8 sps:$4 sm:$0xff]   ;;  %v11564_v60 = vld [vmem:[%s12782_s3 + $0x1b0] ss:$8 sps:$4 sm:$0xff]  }
 0x495   : > { %3471 = vmatpush1.bf16.msra.mxu1 %v14241_v49  ;;  %3803 = vmatprep.subr.bf16.mxu0 %v11282_v56  ;;  %v11372_v49 = vld [vmem:[%s12782_s3 + $0x130] ss:$8 sps:$4 sm:$0xff]   ;;  %14268 = vst [vmem:[#allocation20_spill] sm:$0xff] %v11558_v29  ;;  %14269 = vst [vmem:[#allocation22_spill] sm:$0xff] %v11564_v60 }
 0x496   : > { %4004 = vmatprep.subr.bf16.mxu1 %v11287_v40 }
 0x497   : > { %3456 = vmatmul.mubr.bf16.vlgmr.msra.gmra.mrb[92].mxu0 %v14258_v27  ;;  %v11582_v27 = vld [vmem:[%s12782_s3 + $0xc4] ss:$8 sps:$4 sm:$0xff]  }
 0x498   : > { %6145 = vmatmul.mubr.msk.bf16.vlgmr.msra.gmra.mrb[92].mxu1 %vm938_vm0, %v14259_v12  ;;  %3804 = vmatpush1.bf16.msra.mxu0 %v11294_v43  ;;  %14272 = vst [vmem:[#allocation105_spill] sm:$0xff] %v11582_v27  ;;  %v11588_v12 = vld [vmem:[%s12782_s3 + $0x1c0] ss:$8 sps:$4 sm:$0xff]  }
 0x499   : > { %3835 = vmatprep.mubr.bf16.mxu0 %v1847_v45  ;;  %4005 = vmatpush1.bf16.msra.mxu1 %v11300_v55  ;;  %v11571_v45 = vld [vmem:[%s12782_s3 + $0xb0] ss:$8 sps:$4 sm:$0xff]   ;;  %14273 = vst [vmem:[#allocation8_spill] sm:$0xff] %v11588_v12 }
 0x49a   : > { %4036 = vmatprep.mubr.bf16.mxu1 %v1570_v30  ;;  %v3103_v18 = vpop.f32.mrb[76].mxu0  ;;  %3805 = vmatprep.subr.bf16.mxu0 %v11306_v59  ;;  %14270 = vst [vmem:[#allocation23_spill] sm:$0xff] %v11571_v45  ;;  %v11576_v30 = vld [vmem:[%s12782_s3 + $0x1c4] ss:$8 sps:$4 sm:$0xff]  }
 0x49b   : > { %4006 = vmatprep.subr.bf16.mxu1 %v11311_v48  ;;  %v11340_v57 = vadd.f32 %v3103_v18, %v3063_v58  ;;  %v3105_v14 = vpop.f32.mrb[77].mxu0  ;;  %v11480_v58 = vld [vmem:[%s12782_s3 + $0x184] ss:$8 sps:$4 sm:$0xff]   ;;  %14271 = vst [vmem:[#allocation24_spill] sm:$0xff] %v11576_v30  ;;  %v11595_v18 = vld [vmem:[%s12782_s3 + $0xc0] ss:$8 sps:$4 sm:$0xff]  }
 0x49c   : > { %v11342_v9 = vadd.f32 %v3105_v14, %v3065_v22  ;;  %v3107_v7 = vpop.f32.mrb[78].mxu0  ;;  %3806 = vmatpush1.bf16.msra.mxu0 %v11320_v13  ;;  %v11499_v22 = vld [vmem:[%s12782_s3 + $0x80] ss:$8 sps:$4 sm:$0xff]   ;;  %14274 = vst [vmem:[#allocation25_spill] sm:$0xff] %v11595_v18  ;;  %v11600_v14 = vld [vmem:[%s12782_s3 + $0x1d4] ss:$8 sps:$4 sm:$0xff]  }
 0x49d   : > { %4007 = vmatpush1.bf16.msra.mxu1 %v11326_v0  ;;  %v3108_v36 = vpop.f32.mrb[79].mxu0  ;;  %3807 = vmatprep.subr.bf16.mxu0 %v11331_v8  ;;  %14275 = vst [vmem:[#allocation26_spill] sm:$0xff] %v11600_v14  ;;  %v11603_v7 = vsub.s32 0, %v11243_v32  ;;  %v11622_v32 = vld [vmem:[%s12782_s3 + $0xd0] ss:$8 sps:$4 sm:$0xff]  }
 0x49e   : > { %4008 = vmatprep.subr.bf16.mxu1 %v11338_v3  ;;  %v11609_v36 = vld [vmem:[%s12782_s3 + $0xd4] ss:$8 sps:$4 sm:$0xff]   ;;  %14279 = vst [vmem:[#allocation32_spill] sm:$0xff] %v11622_v32 }
 0x49f   : > { %14276 = vst [vmem:[#allocation27_spill] sm:$0xff] %v11603_v7  ;;  %14277 = vst [vmem:[#allocation28_spill] sm:$0xff] %v11609_v36  ;;  %v11631_v10 = vrot.slane %v11256_v53, %v11603_v7  ;;  %v11645_v53 = vld [vmem:[%s12782_s3 + $0x1e0] ss:$8 sps:$4 sm:$0xff]  }
 0x4a0   : > { %3808 = vmatpush1.bf16.msra.mxu0 %v11348_v61  ;;  %14282 = vst [vmem:[#allocation35_spill] sm:$0xff] %v11645_v53  ;;  %v14283_v7 = vld [vmem:[#allocation44_spill] sm:$0xff] }
 0x4a1   : > { %4009 = vmatpush1.bf16.msra.mxu1 %v11355_v16  ;;  %3809 = vmatprep.subr.bf16.mxu0 %v11360_v4 }
 0x4a2   : > { %4010 = vmatprep.subr.bf16.mxu1 %v11366_v20 }
 0x4a4   : > { %3810 = vmatpush1.bf16.msra.mxu0 %v11372_v49 }
 0x4a5   : > { %4011 = vmatpush1.bf16.msra.mxu1 %v11379_v1  ;;  %3811 = vmatprep.subr.bf16.mxu0 %v11384_v11 }
 0x4a6   : > { %4012 = vmatprep.subr.bf16.mxu1 %v11390_v47 }
 0x4a8   : > { %3812 = vmatpush1.bf16.msra.mxu0 %v11396_v6 }
 0x4a9   : > { %4013 = vmatpush1.bf16.msra.mxu1 %v11403_v17  ;;  %3813 = vmatprep.subr.bf16.mxu0 %v11408_v33 }
 0x4aa   : > { %4014 = vmatprep.subr.bf16.mxu1 %v11414_v42 }
 0x4ac   : > { %3814 = vmatpush1.bf16.msra.mxu0 %v11420_v39 }
 0x4ad   : > { %4015 = vmatpush1.bf16.msra.mxu1 %v11427_v38  ;;  %3815 = vmatprep.subr.bf16.mxu0 %v11432_v51 }
 0x4ae   : > { %4016 = vmatprep.subr.bf16.mxu1 %v11438_v19 }
 0x4b0   : > { %3816 = vmatpush1.bf16.msra.mxu0 %v11444_v62 }
 0x4b1   : > { %4017 = vmatpush1.bf16.msra.mxu1 %v11451_v41  ;;  %3817 = vmatprep.subr.bf16.mxu0 %v11456_v31 }
 0x4b2   : > { %4018 = vmatprep.subr.bf16.mxu1 %v11462_v44 }
 0x4b4   : > { %3818 = vmatpush1.bf16.msra.mxu0 %v11468_v35 }
 0x4b5   : > { %4019 = vmatpush1.bf16.msra.mxu1 %v11475_v54  ;;  %3819 = vmatprep.subr.bf16.mxu0 %v11480_v58 }
 0x4b6   : > { %4020 = vmatprep.subr.bf16.mxu1 %v11486_v52 }
 0x4b8   : > { %3820 = vmatpush1.bf16.msra.mxu0 %v11492_v21 }
 0x4b9   : > { %4021 = vmatpush1.bf16.msra.mxu1 %v11499_v22  ;;  %3821 = vmatprep.subr.bf16.mxu0 %v11504_v23 }
 0x4ba   : > { %4022 = vmatprep.subr.bf16.mxu1 %v11510_v24 }
 0x4bc   : > { %3822 = vmatpush1.bf16.msra.mxu0 %v11516_v37 }
 0x4bd   : > { %4023 = vmatpush1.bf16.msra.mxu1 %v11523_v25  ;;  %3823 = vmatprep.subr.bf16.mxu0 %v11528_v26 }
 0x4be   : > { %4024 = vmatprep.subr.bf16.mxu1 %v11534_v28 }
 0x4c0   : > { %3824 = vmatpush1.bf16.msra.mxu0 %v11540_v63 }
 0x4c1   : > { %4025 = vmatpush1.bf16.msra.mxu1 %v11547_v5  ;;  %3825 = vmatprep.subr.bf16.mxu0 %v11552_v15  ;;  %v11755_v15 = vld [vmem:[%s12782_s3 + $0x220] ss:$8 sps:$4 sm:$0xff]  }
 0x4c2   : > { %4026 = vmatprep.subr.bf16.mxu1 %v11558_v29  ;;  %14302 = vst [vmem:[#allocation107_spill] sm:$0xff] %v11755_v15 }
 0x4c4   : > { %3826 = vmatpush1.bf16.msra.mxu0 %v11564_v60 }
 0x4c5   : > { %4027 = vmatpush1.bf16.msra.mxu1 %v11571_v45  ;;  %3827 = vmatprep.subr.bf16.mxu0 %v11576_v30 }
 0x4c6   : > { %4028 = vmatprep.subr.bf16.mxu1 %v11582_v27 }
 0x4c8   : > { %3828 = vmatpush1.bf16.msra.mxu0 %v11588_v12 }
 0x4c9   : > { %4029 = vmatpush1.bf16.msra.mxu1 %v11595_v18  ;;  %3829 = vmatprep.subr.bf16.mxu0 %v11600_v14  ;;  %v11637_v14 = vld [vmem:[%s12782_s3 + $0xe4] ss:$8 sps:$4 sm:$0xff]  }
 0x4ca   : > { %4030 = vmatprep.subr.bf16.mxu1 %v11609_v36  ;;  %14281 = vst [vmem:[#allocation34_spill] sm:$0xff] %v11637_v14  ;;  %v1842_v36 = vadd.f32 %v14283_v7, %v11631_v10 }
 0x4cb   : > { %v3144_v2 = vpop.f32.mrb[76].mxu1 }
 0x4cc   : > { %v3145_v18 = vadd.f32 %v3144_v2, %v11340_v57  ;;  %v3146_v12 = vpop.f32.mrb[77].mxu1  ;;  %3830 = vmatpush1.bf16.msra.mxu0 %v11615_v34  ;;  %v11654_v2 = vld [vmem:[%s12782_s3 + $0xe0] ss:$8 sps:$4 sm:$0xff]   ;;  %v11659_v57 = vld [vmem:[%s12782_s3 + $0x1f4] ss:$8 sps:$4 sm:$0xff]  }
 0x4cd   : > { %v3147_v27 = vadd.f32 %v3146_v12, %v11342_v9  ;;  %v3148_v30 = vpop.f32.mrb[78].mxu1  ;;  %4031 = vmatpush1.bf16.msra.mxu1 %v11622_v32  ;;  %3831 = vmatprep.subr.bf16.mxu0 %v11627_v50  ;;  %14284 = vst [vmem:[#allocation36_spill] sm:$0xff] %v11654_v2  ;;  %14285 = vst [vmem:[#allocation37_spill] sm:$0xff] %v11659_v57  ;;  %v14286_v9 = vld [vmem:[#allocation9_spill] sm:$0xff]  ;;  %v14288_v12 = vld [vmem:[#allocation40_spill] sm:$0xff] }
 0x4ce   : > { %v3149_v45 = vpop.f32.mrb[79].mxu1  ;;  %v1565_v30 = vadd.f32 %v11631_v10, %v14286_v9  ;;  %4032 = vmatprep.subr.bf16.mxu1 %v11637_v14  ;;  %v2122_v7 = vadd.f32 %v14288_v12, %v11265_v46  ;;  %v14289_v50 = vld [vmem:[#allocation102_spill] sm:$0xff]  ;;  %v1844_v9 = vmax.f32 %v1842_v36, 0.0  ;;  %v11695_v36 = vld [vmem:[%s12782_s3 + $0x304] ss:$8 sps:$4 sm:$0xff]  }
 0x4cf   : > { %v11667_v45 = vld [vmem:[%s12782_s3 + $0xf4] ss:$8 sps:$4 sm:$0xff]   ;;  %v2399_v32 = vadd.f32 %v14289_v50, %v11265_v46  ;;  %v11677_v34 = vld [vmem:[%s12782_s3 + $0x1f0] ss:$8 sps:$4 sm:$0xff]   ;;  %v11689_v50 = vld [vmem:[%s12782_s3 + $0x204] ss:$8 sps:$4 sm:$0xff]  }
 0x4d0   : > { %14287 = vst [vmem:[#allocation38_spill] sm:$0xff] %v11667_v45  ;;  %3832 = vmatpush1.bf16.msra.mxu0 %v11645_v53  ;;  %14290 = vst [vmem:[#allocation79_spill] sm:$0xff] %v11677_v34  ;;  %v11684_v14 = vld [vmem:[%s12782_s3 + $0xf0] ss:$8 sps:$4 sm:$0xff]   ;;  %v1567_v12 = vmax.f32 %v1565_v30, 0.0  ;;  %v1846_v46 = vpack.c.bf16 %v1844_v9, %v1844_v9 }
 0x4d1   : > { %4033 = vmatpush1.bf16.msra.mxu1 %v11654_v2  ;;  %3833 = vmatprep.subr.bf16.mxu0 %v11659_v57  ;;  %14291 = vst [vmem:[#allocation80_spill] sm:$0xff] %v11684_v14  ;;  %14292 = vst [vmem:[#allocation81_spill] sm:$0xff] %v11689_v50  ;;  %v2124_v2 = vmax.f32 %v2122_v7, 0.0  ;;  %v2401_v57 = vmax.f32 %v2399_v32, 0.0  ;;  %v11701_v53 = vld [vmem:[%s12782_s3 + $0x200] ss:$8 sps:$4 sm:$0xff]  }
 0x4d2   : > { %4034 = vmatprep.subr.bf16.mxu1 %v11667_v45  ;;  %14293 = vst [vmem:[#allocation82_spill] sm:$0xff] %v11695_v36  ;;  %14294 = vst [vmem:[#allocation83_spill] sm:$0xff] %v11701_v53  ;;  %v11708_v30 = vld [vmem:[%s12782_s3 + $0x300] ss:$8 sps:$4 sm:$0xff]   ;;  %v1569_v45 = vpack.c.bf16 %v1567_v12, %v1567_v12  ;;  %v11714_v32 = vld [vmem:[%s12782_s3 + $0x214] ss:$8 sps:$4 sm:$0xff]  }
 0x4d3   : > { %14295 = vst [vmem:[#allocation88_spill] sm:$0xff] %v11708_v30  ;;  %14296 = vst [vmem:[#allocation89_spill] sm:$0xff] %v11714_v32  ;;  %v11716_v7 = vpack.c.bf16 %v2124_v2, %v2124_v2  ;;  %v11721_v9 = vld [vmem:[%s12782_s3 + $0x314] ss:$8 sps:$4 sm:$0xff]   ;;  %v11729_v12 = vld [vmem:[%s12782_s3 + $0x210] ss:$8 sps:$4 sm:$0xff]  }
 0x4d4   : > { %3834 = vmatpush1.bf16.msra.mxu0 %v11677_v34  ;;  %14297 = vst [vmem:[#allocation90_spill] sm:$0xff] %v11721_v9  ;;  %14298 = vst [vmem:[#allocation103_spill] sm:$0xff] %v11729_v12  ;;  %v11741_v2 = vld [vmem:[%s12782_s3 + $0x224] ss:$8 sps:$4 sm:$0xff]  }
 0x4d5   : > { %4035 = vmatpush1.bf16.msra.mxu1 %v11684_v14  ;;  %4205 = vmatprep.subr.bf16.mxu0 %v11689_v50  ;;  %v11723_v50 = vpack.c.bf16 %v2401_v57, %v2401_v57  ;;  %14300 = vst [vmem:[#allocation106_spill] sm:$0xff] %v11741_v2 }
 0x4d6   : > { %4408 = vmatprep.subr.bf16.mxu1 %v11695_v36 }
 0x4d7   : > { %3836 = vmatmul.mubr.bf16.vlgmr.msra.gmra.mrb[96].mxu0 %v1846_v46  ;;  %v11736_v46 = vld [vmem:[%s12782_s3 + $0x310] ss:$8 sps:$4 sm:$0xff]  }
 0x4d8   : > { %4037 = vmatmul.mubr.bf16.vlgmr.msra.gmra.mrb[96].mxu1 %v1569_v45  ;;  %4206 = vmatpush1.bf16.msra.mxu0 %v11701_v53  ;;  %14299 = vst [vmem:[#allocation104_spill] sm:$0xff] %v11736_v46 }
 0x4d9   : > { %4237 = vmatprep.mubr.bf16.mxu0 %v11716_v7  ;;  %4409 = vmatpush1.bf16.msra.mxu1 %v11708_v30  ;;  %v11748_v30 = vld [vmem:[%s12782_s3 + $0x324] ss:$8 sps:$4 sm:$0xff]  }
 0x4da   : > { %4440 = vmatprep.mubr.bf16.mxu1 %v11723_v50  ;;  %v3185_v57 = vpop.f32.mrb[80].mxu0  ;;  %4207 = vmatprep.subr.bf16.mxu0 %v11714_v32  ;;  %14301 = vst [vmem:[#allocation43_spill] sm:$0xff] %v11748_v30 }
 0x4db   : > { %v3226_v45 = vpop.f32.mrb[80].mxu1  ;;  %v3186_v53 = vadd.f32 %v3185_v57, %v3145_v18  ;;  %v3187_v36 = vpop.f32.mrb[81].mxu0  ;;  %4410 = vmatprep.subr.bf16.mxu1 %v11721_v9  ;;  %v11807_v57 = vld [vmem:[%s12782_s3 + $0x240] ss:$8 sps:$4 sm:$0xff]  }
 0x4dc   : > { %v3228_v14 = vpop.f32.mrb[81].mxu1  ;;  %v3188_v34 = vadd.f32 %v3187_v36, %v3147_v27  ;;  %v3189_v60 = vpop.f32.mrb[82].mxu0  ;;  %4208 = vmatpush1.bf16.msra.mxu0 %v11729_v12  ;;  %v11801_v36 = vld [vmem:[%s12782_s3 + $0x344] ss:$8 sps:$4 sm:$0xff]   ;;  %14312 = vst [vmem:[#allocation56_spill] sm:$0xff] %v11807_v57 }
 0x4dd   : > { %v3230_v29 = vpop.f32.mrb[82].mxu1  ;;  %v11757_v32 = vadd.f32 %v3226_v45, %v3186_v53  ;;  %4411 = vmatpush1.bf16.msra.mxu1 %v11736_v46  ;;  %v3190_v5 = vpop.f32.mrb[83].mxu0  ;;  %4209 = vmatprep.subr.bf16.mxu0 %v11741_v2  ;;  %v11764_v60 = vld [vmem:[%s12782_s3 + $0x320] ss:$8 sps:$4 sm:$0xff]   ;;  %v11783_v53 = vld [vmem:[%s12782_s3 + $0x230] ss:$8 sps:$4 sm:$0xff]  }
 0x4de   : > { %v3231_v18 = vpop.f32.mrb[83].mxu1  ;;  %14304 = vst [vmem:[#allocation48_spill] sm:$0xff] %v11764_v60  ;;  %v11769_v29 = vld [vmem:[%s12782_s3 + $0x234] ss:$8 sps:$4 sm:$0xff]   ;;  %v11771_v27 = vadd.f32 %v3228_v14, %v3188_v34  ;;  %4412 = vmatprep.subr.bf16.mxu1 %v11748_v30  ;;  %14308 = vst [vmem:[#allocation52_spill] sm:$0xff] %v11783_v53 }
 0x4df   : > { %14303 = vst [vmem:[#allocation108_spill] sm:$0xff] %v11757_v32  ;;  %14305 = vst [vmem:[#allocation49_spill] sm:$0xff] %v11769_v29  ;;  %v11777_v5 = vld [vmem:[%s12782_s3 + $0x334] ss:$8 sps:$4 sm:$0xff]   ;;  %v11790_v34 = vld [vmem:[%s12782_s3 + $0x330] ss:$8 sps:$4 sm:$0xff]  }
 0x4e0   : > { %14306 = vst [vmem:[#allocation50_spill] sm:$0xff] %v11771_v27  ;;  %14307 = vst [vmem:[#allocation51_spill] sm:$0xff] %v11777_v5  ;;  %4210 = vmatpush1.bf16.msra.mxu0 %v11755_v15  ;;  %v11795_v14 = vld [vmem:[%s12782_s3 + $0x244] ss:$8 sps:$4 sm:$0xff]   ;;  %v11814_v45 = vld [vmem:[%s12782_s3 + $0x340] ss:$8 sps:$4 sm:$0xff]  }
 0x4e1   : > { %4413 = vmatpush1.bf16.msra.mxu1 %v11764_v60  ;;  %4211 = vmatprep.subr.bf16.mxu0 %v11769_v29  ;;  %14309 = vst [vmem:[#allocation53_spill] sm:$0xff] %v11790_v34  ;;  %14310 = vst [vmem:[#allocation54_spill] sm:$0xff] %v11795_v14  ;;  %v11819_v18 = vld [vmem:[%s12782_s3 + $0x254] ss:$8 sps:$4 sm:$0xff]   ;;  %v11831_v27 = vld [vmem:[%s12782_s3 + $0x250] ss:$8 sps:$4 sm:$0xff]  }
 0x4e2   : > { %4414 = vmatprep.subr.bf16.mxu1 %v11777_v5  ;;  %14311 = vst [vmem:[#allocation55_spill] sm:$0xff] %v11801_v36  ;;  %14313 = vst [vmem:[#allocation57_spill] sm:$0xff] %v11814_v45  ;;  %v11825_v32 = vld [vmem:[%s12782_s3 + $0x354] ss:$8 sps:$4 sm:$0xff]  }
 0x4e3   : > { %14314 = vst [vmem:[#allocation58_spill] sm:$0xff] %v11819_v18  ;;  %14315 = vst [vmem:[#allocation59_spill] sm:$0xff] %v11825_v32 }
 0x4e4   : > { %4212 = vmatpush1.bf16.msra.mxu0 %v11783_v53  ;;  %14316 = vst [vmem:[#allocation60_spill] sm:$0xff] %v11831_v27  ;;  %v14354_v53 = vld [vmem:[#allocation11_spill] sm:$0xff] }
 0x4e5   : > { %4415 = vmatpush1.bf16.msra.mxu1 %v11790_v34  ;;  %4213 = vmatprep.subr.bf16.mxu0 %v11795_v14  ;;  %v11843_v14 = vld [vmem:[%s12782_s3 + $0x264] ss:$8 sps:$4 sm:$0xff]   ;;  %v2398_v5 = vadd.f32 %v14354_v53, %v11631_v10  ;;  %v12082_v53 = vld [vmem:[%s12782_s3 + $0x3f0] ss:$8 sps:$4 sm:$0xff]  }
 0x4e6   : > { %4416 = vmatprep.subr.bf16.mxu1 %v11801_v36  ;;  %v11838_v36 = vld [vmem:[%s12782_s3 + $0x350] ss:$8 sps:$4 sm:$0xff]   ;;  %14318 = vst [vmem:[#allocation62_spill] sm:$0xff] %v11843_v14  ;;  %14357 = vst [vmem:[#allocation40_spill] sm:$0xff] %v12082_v53 }
 0x4e7   : > { %14317 = vst [vmem:[#allocation61_spill] sm:$0xff] %v11838_v36 }
 0x4e8   : > { %4214 = vmatpush1.bf16.msra.mxu0 %v11807_v57  ;;  %v11849_v57 = vld [vmem:[%s12782_s3 + $0x364] ss:$8 sps:$4 sm:$0xff]  }
 0x4e9   : > { %4417 = vmatpush1.bf16.msra.mxu1 %v11814_v45  ;;  %4215 = vmatprep.subr.bf16.mxu0 %v11819_v18  ;;  %14319 = vst [vmem:[#allocation63_spill] sm:$0xff] %v11849_v57  ;;  %v11855_v18 = vld [vmem:[%s12782_s3 + $0x260] ss:$8 sps:$4 sm:$0xff]   ;;  %v11867_v45 = vld [vmem:[%s12782_s3 + $0x274] ss:$8 sps:$4 sm:$0xff]  }
 0x4ea   : > { %4418 = vmatprep.subr.bf16.mxu1 %v11825_v32  ;;  %14320 = vst [vmem:[#allocation64_spill] sm:$0xff] %v11855_v18  ;;  %v11862_v32 = vld [vmem:[%s12782_s3 + $0x360] ss:$8 sps:$4 sm:$0xff]   ;;  %14322 = vst [vmem:[#allocation66_spill] sm:$0xff] %v11867_v45 }
 0x4eb   : > { %14321 = vst [vmem:[#allocation65_spill] sm:$0xff] %v11862_v32 }
 0x4ec   : > { %4216 = vmatpush1.bf16.msra.mxu0 %v11831_v27  ;;  %v11873_v27 = vld [vmem:[%s12782_s3 + $0x374] ss:$8 sps:$4 sm:$0xff]  }
 0x4ed   : > { %4419 = vmatpush1.bf16.msra.mxu1 %v11838_v36  ;;  %4217 = vmatprep.subr.bf16.mxu0 %v11843_v14  ;;  %14323 = vst [vmem:[#allocation67_spill] sm:$0xff] %v11873_v27  ;;  %v11879_v14 = vld [vmem:[%s12782_s3 + $0x270] ss:$8 sps:$4 sm:$0xff]   ;;  %v11891_v36 = vld [vmem:[%s12782_s3 + $0x284] ss:$8 sps:$4 sm:$0xff]  }
 0x4ee   : > { %4420 = vmatprep.subr.bf16.mxu1 %v11849_v57  ;;  %14324 = vst [vmem:[#allocation68_spill] sm:$0xff] %v11879_v14  ;;  %v11886_v57 = vld [vmem:[%s12782_s3 + $0x370] ss:$8 sps:$4 sm:$0xff]   ;;  %14326 = vst [vmem:[#allocation70_spill] sm:$0xff] %v11891_v36 }
 0x4ef   : > { %14325 = vst [vmem:[#allocation69_spill] sm:$0xff] %v11886_v57 }
 0x4f0   : > { %4218 = vmatpush1.bf16.msra.mxu0 %v11855_v18  ;;  %v11897_v18 = vld [vmem:[%s12782_s3 + $0x384] ss:$8 sps:$4 sm:$0xff]  }
 0x4f1   : > { %4421 = vmatpush1.bf16.msra.mxu1 %v11862_v32  ;;  %4219 = vmatprep.subr.bf16.mxu0 %v11867_v45  ;;  %14327 = vst [vmem:[#allocation71_spill] sm:$0xff] %v11897_v18  ;;  %v11903_v45 = vld [vmem:[%s12782_s3 + $0x280] ss:$8 sps:$4 sm:$0xff]   ;;  %v11915_v32 = vld [vmem:[%s12782_s3 + $0x294] ss:$8 sps:$4 sm:$0xff]  }
 0x4f2   : > { %4422 = vmatprep.subr.bf16.mxu1 %v11873_v27  ;;  %14328 = vst [vmem:[#allocation72_spill] sm:$0xff] %v11903_v45  ;;  %v11910_v27 = vld [vmem:[%s12782_s3 + $0x380] ss:$8 sps:$4 sm:$0xff]   ;;  %14330 = vst [vmem:[#allocation100_spill] sm:$0xff] %v11915_v32 }
 0x4f3   : > { %14329 = vst [vmem:[#allocation73_spill] sm:$0xff] %v11910_v27 }
 0x4f4   : > { %4220 = vmatpush1.bf16.msra.mxu0 %v11879_v14  ;;  %v11921_v14 = vld [vmem:[%s12782_s3 + $0x394] ss:$8 sps:$4 sm:$0xff]  }
 0x4f5   : > { %4423 = vmatpush1.bf16.msra.mxu1 %v11886_v57  ;;  %4221 = vmatprep.subr.bf16.mxu0 %v11891_v36  ;;  %14331 = vst [vmem:[#allocation84_spill] sm:$0xff] %v11921_v14  ;;  %v11927_v36 = vld [vmem:[%s12782_s3 + $0x290] ss:$8 sps:$4 sm:$0xff]   ;;  %v11939_v57 = vld [vmem:[%s12782_s3 + $0x2a4] ss:$8 sps:$4 sm:$0xff]  }
 0x4f6   : > { %4424 = vmatprep.subr.bf16.mxu1 %v11897_v18  ;;  %14332 = vst [vmem:[#allocation17_spill] sm:$0xff] %v11927_v36  ;;  %v11934_v18 = vld [vmem:[%s12782_s3 + $0x390] ss:$8 sps:$4 sm:$0xff]   ;;  %14334 = vst [vmem:[#allocation21_spill] sm:$0xff] %v11939_v57 }
 0x4f7   : > { %14333 = vst [vmem:[#allocation19_spill] sm:$0xff] %v11934_v18 }
 0x4f8   : > { %4222 = vmatpush1.bf16.msra.mxu0 %v11903_v45  ;;  %v11945_v45 = vld [vmem:[%s12782_s3 + $0x3a4] ss:$8 sps:$4 sm:$0xff]  }
 0x4f9   : > { %4425 = vmatpush1.bf16.msra.mxu1 %v11910_v27  ;;  %4223 = vmatprep.subr.bf16.mxu0 %v11915_v32  ;;  %14335 = vst [vmem:[#allocation46_spill] sm:$0xff] %v11945_v45  ;;  %v11951_v32 = vld [vmem:[%s12782_s3 + $0x2a0] ss:$8 sps:$4 sm:$0xff]   ;;  %v11963_v27 = vld [vmem:[%s12782_s3 + $0x2b4] ss:$8 sps:$4 sm:$0xff]  }
 0x4fa   : > { %4426 = vmatprep.subr.bf16.mxu1 %v11921_v14  ;;  %14336 = vst [vmem:[#allocation42_spill] sm:$0xff] %v11951_v32  ;;  %v11958_v14 = vld [vmem:[%s12782_s3 + $0x3a0] ss:$8 sps:$4 sm:$0xff]   ;;  %14338 = vst [vmem:[#allocation75_spill] sm:$0xff] %v11963_v27 }
 0x4fb   : > { %14337 = vst [vmem:[#allocation74_spill] sm:$0xff] %v11958_v14 }
 0x4fc   : > { %4224 = vmatpush1.bf16.msra.mxu0 %v11927_v36  ;;  %v11969_v36 = vld [vmem:[%s12782_s3 + $0x3b4] ss:$8 sps:$4 sm:$0xff]  }
 0x4fd   : > { %4427 = vmatpush1.bf16.msra.mxu1 %v11934_v18  ;;  %4225 = vmatprep.subr.bf16.mxu0 %v11939_v57  ;;  %14339 = vst [vmem:[#allocation7_spill] sm:$0xff] %v11969_v36  ;;  %v11975_v57 = vld [vmem:[%s12782_s3 + $0x2b0] ss:$8 sps:$4 sm:$0xff]   ;;  %v11987_v18 = vld [vmem:[%s12782_s3 + $0x2c4] ss:$8 sps:$4 sm:$0xff]  }
 0x4fe   : > { %4428 = vmatprep.subr.bf16.mxu1 %v11945_v45  ;;  %14340 = vst [vmem:[#allocation76_spill] sm:$0xff] %v11975_v57  ;;  %v11982_v45 = vld [vmem:[%s12782_s3 + $0x3b0] ss:$8 sps:$4 sm:$0xff]   ;;  %14342 = vst [vmem:[#allocation47_spill] sm:$0xff] %v11987_v18 }
 0x4ff   : > { %14341 = vst [vmem:[#allocation77_spill] sm:$0xff] %v11982_v45 }
 0x500   : > { %4226 = vmatpush1.bf16.msra.mxu0 %v11951_v32  ;;  %v11993_v32 = vld [vmem:[%s12782_s3 + $0x3c4] ss:$8 sps:$4 sm:$0xff]  }
 0x501   : > { %4429 = vmatpush1.bf16.msra.mxu1 %v11958_v14  ;;  %4227 = vmatprep.subr.bf16.mxu0 %v11963_v27  ;;  %14343 = vst [vmem:[#allocation78_spill] sm:$0xff] %v11993_v32  ;;  %v11999_v27 = vld [vmem:[%s12782_s3 + $0x2c0] ss:$8 sps:$4 sm:$0xff]   ;;  %v12011_v14 = vld [vmem:[%s12782_s3 + $0x2d4] ss:$8 sps:$4 sm:$0xff]  }
 0x502   : > { %4430 = vmatprep.subr.bf16.mxu1 %v11969_v36  ;;  %14344 = vst [vmem:[#allocation109_spill] sm:$0xff] %v11999_v27  ;;  %v12006_v36 = vld [vmem:[%s12782_s3 + $0x3c0] ss:$8 sps:$4 sm:$0xff]   ;;  %14346 = vst [vmem:[#allocation111_spill] sm:$0xff] %v12011_v14 }
 0x503   : > { %14345 = vst [vmem:[#allocation110_spill] sm:$0xff] %v12006_v36 }
 0x504   : > { %4228 = vmatpush1.bf16.msra.mxu0 %v11975_v57  ;;  %v12017_v57 = vld [vmem:[%s12782_s3 + $0x3d4] ss:$8 sps:$4 sm:$0xff]  }
 0x505   : > { %4431 = vmatpush1.bf16.msra.mxu1 %v11982_v45  ;;  %4229 = vmatprep.subr.bf16.mxu0 %v11987_v18  ;;  %14347 = vst [vmem:[#allocation30_spill] sm:$0xff] %v12017_v57  ;;  %v12023_v18 = vld [vmem:[%s12782_s3 + $0x2d0] ss:$8 sps:$4 sm:$0xff]   ;;  %v12035_v45 = vld [vmem:[%s12782_s3 + $0x2e4] ss:$8 sps:$4 sm:$0xff]  }
 0x506   : > { %4432 = vmatprep.subr.bf16.mxu1 %v11993_v32  ;;  %14348 = vst [vmem:[#allocation45_spill] sm:$0xff] %v12023_v18  ;;  %v12030_v32 = vld [vmem:[%s12782_s3 + $0x3d0] ss:$8 sps:$4 sm:$0xff]   ;;  %14350 = vst [vmem:[#allocation29_spill] sm:$0xff] %v12035_v45 }
 0x507   : > { %14349 = vst [vmem:[#allocation10_spill] sm:$0xff] %v12030_v32 }
 0x508   : > { %4230 = vmatpush1.bf16.msra.mxu0 %v11999_v27  ;;  %v12041_v27 = vld [vmem:[%s12782_s3 + $0x3e4] ss:$8 sps:$4 sm:$0xff]  }
 0x509   : > { %4433 = vmatpush1.bf16.msra.mxu1 %v12006_v36  ;;  %4231 = vmatprep.subr.bf16.mxu0 %v12011_v14  ;;  %14351 = vst [vmem:[#allocation41_spill] sm:$0xff] %v12041_v27  ;;  %v12047_v14 = vld [vmem:[%s12782_s3 + $0x2e0] ss:$8 sps:$4 sm:$0xff]  }
 0x50a   : > { %4434 = vmatprep.subr.bf16.mxu1 %v12017_v57  ;;  %14352 = vst [vmem:[#allocation87_spill] sm:$0xff] %v12047_v14  ;;  %v14353_v36 = vld [vmem:[#allocation39_spill] sm:$0xff] }
 0x50b   : > { %v2121_v34 = vadd.f32 %v14353_v36, %v11631_v10  ;;  %v12056_v57 = vld [vmem:[%s12782_s3 + $0x3e0] ss:$8 sps:$4 sm:$0xff]   ;;  %v12069_v36 = vld [vmem:[%s12782_s3 + $0x3f4] ss:$8 sps:$4 sm:$0xff]  }
 0x50c   : > { %4232 = vmatpush1.bf16.msra.mxu0 %v12023_v18  ;;  %v12061_v18 = vld [vmem:[%s12782_s3 + $0x2f4] ss:$8 sps:$4 sm:$0xff]   ;;  %14355 = vst [vmem:[#allocation44_spill] sm:$0xff] %v12069_v36 }
 0x50d   : > { %4435 = vmatpush1.bf16.msra.mxu1 %v12030_v32  ;;  %4233 = vmatprep.subr.bf16.mxu0 %v12035_v45  ;;  %v12075_v45 = vld [vmem:[%s12782_s3 + $0x2f0] ss:$8 sps:$4 sm:$0xff]   ;;  %v2123_v32 = vmax.f32 %v2121_v34, 0.0 }
 0x50e   : > { %4436 = vmatprep.subr.bf16.mxu1 %v12041_v27  ;;  %14356 = vst [vmem:[#allocation9_spill] sm:$0xff] %v12075_v45  ;;  %v2400_v27 = vmax.f32 %v2398_v5, 0.0 }
 0x510   : > { %4234 = vmatpush1.bf16.msra.mxu0 %v12047_v14  ;;  %v12086_v14 = vpack.c.bf16 %v2123_v32, %v2123_v32  ;;  %v12090_v34 = vpack.c.bf16 %v2400_v27, %v2400_v27 }
 0x511   : > { %4437 = vmatpush1.bf16.msra.mxu1 %v12056_v57  ;;  %4235 = vmatprep.subr.bf16.mxu0 %v12061_v18 }
 0x512   : > { %4438 = vmatprep.subr.bf16.mxu1 %v12069_v36 }
 0x514   : > { %4236 = vmatpush1.bf16.msra.mxu0 %v12075_v45 }
 0x515   : > { %4439 = vmatpush1.bf16.msra.mxu1 %v12082_v53  ;;  %4468 = vmatprep.subr.bf16.mxu0 %v11282_v56 }
 0x516   : > { %4509 = vmatprep.subr.bf16.mxu1 %v11287_v40 }
 0x517   : > { %4238 = vmatmul.mubr.bf16.vlgmr.msra.gmra.mrb[100].mxu0 %v12086_v14 }
 0x518   : > { %4441 = vmatmul.mubr.bf16.vlgmr.msra.gmra.mrb[100].mxu1 %v12090_v34  ;;  %4469 = vmatpush1.bf16.msra.mxu0 %v11294_v43 }
 0x519   : > { %4500 = vmatprep.mubr.bf16.mxu0 %v11723_v50  ;;  %4510 = vmatpush1.bf16.msra.mxu1 %v11300_v55 }
 0x51a   : > { %4541 = vmatprep.mubr.bf16.mxu1 %v11716_v7  ;;  %v3293_v32 = vpop.f32.mrb[84].mxu0  ;;  %4470 = vmatprep.subr.bf16.mxu0 %v11306_v59 }
 0x51b   : > { %v3334_v5 = vpop.f32.mrb[84].mxu1  ;;  %v3295_v56 = vpop.f32.mrb[85].mxu0  ;;  %4511 = vmatprep.subr.bf16.mxu1 %v11311_v48 }
 0x51c   : > { %v3335_v27 = vadd.f32 %v3334_v5, %v3293_v32  ;;  %v3336_v53 = vpop.f32.mrb[85].mxu1  ;;  %v3297_v45 = vpop.f32.mrb[86].mxu0  ;;  %4471 = vmatpush1.bf16.msra.mxu0 %v11320_v13  ;;  %v14359_v32 = vld [vmem:[#allocation18_spill] sm:$0xff]  ;;  %v14360_v5 = vld [vmem:[#allocation20_spill] sm:$0xff] }
 0x51d   : > { %v3337_v40 = vadd.f32 %v3336_v53, %v3295_v56  ;;  %v3338_v36 = vpop.f32.mrb[86].mxu1  ;;  %4512 = vmatpush1.bf16.msra.mxu1 %v11326_v0  ;;  %v3298_v50 = vpop.f32.mrb[87].mxu0  ;;  %4472 = vmatprep.subr.bf16.mxu0 %v11331_v8 }
 0x51e   : > { %v3339_v55 = vpop.f32.mrb[87].mxu1  ;;  %4513 = vmatprep.subr.bf16.mxu1 %v11338_v3  ;;  %v14362_v50 = vld [vmem:[#allocation23_spill] sm:$0xff] }
 0x520   : > { %4473 = vmatpush1.bf16.msra.mxu0 %v11348_v61 }
 0x521   : > { %4514 = vmatpush1.bf16.msra.mxu1 %v11355_v16  ;;  %4474 = vmatprep.subr.bf16.mxu0 %v11360_v4 }
 0x522   : > { %4515 = vmatprep.subr.bf16.mxu1 %v11366_v20 }
 0x524   : > { %4475 = vmatpush1.bf16.msra.mxu0 %v11372_v49 }
 0x525   : > { %4516 = vmatpush1.bf16.msra.mxu1 %v11379_v1  ;;  %4476 = vmatprep.subr.bf16.mxu0 %v11384_v11 }
 0x526   : > { %4517 = vmatprep.subr.bf16.mxu1 %v11390_v47 }
 0x528   : > { %4477 = vmatpush1.bf16.msra.mxu0 %v11396_v6 }
 0x529   : > { %4518 = vmatpush1.bf16.msra.mxu1 %v11403_v17  ;;  %4478 = vmatprep.subr.bf16.mxu0 %v11408_v33 }
 0x52a   : > { %v3375_v56 = vpop.f32.mrb[88].mxu0  ;;  %4519 = vmatprep.subr.bf16.mxu1 %v11414_v42 }
 0x52b   : > { %v12117_v55 = vadd.f32 %v3375_v56, %v3335_v27  ;;  %v3377_v7 = vpop.f32.mrb[89].mxu0  ;;  %v14361_v27 = vld [vmem:[#allocation22_spill] sm:$0xff]  ;;  %v14363_v56 = vld [vmem:[#allocation24_spill] sm:$0xff] }
 0x52c   : > { %v12119_v45 = vadd.f32 %v3377_v7, %v3337_v40  ;;  %v3379_v36 = vpop.f32.mrb[90].mxu0  ;;  %4479 = vmatpush1.bf16.msra.mxu0 %v11420_v39  ;;  %v14358_v40 = vld [vmem:[#allocation16_spill] sm:$0xff]  ;;  %v14364_v7 = vld [vmem:[#allocation105_spill] sm:$0xff] }
 0x52d   : > { %4520 = vmatpush1.bf16.msra.mxu1 %v11427_v38  ;;  %v3380_v53 = vpop.f32.mrb[91].mxu0  ;;  %4480 = vmatprep.subr.bf16.mxu0 %v11432_v51  ;;  %v14365_v36 = vld [vmem:[#allocation8_spill] sm:$0xff] }
 0x52e   : > { %4521 = vmatprep.subr.bf16.mxu1 %v11438_v19  ;;  %v14366_v53 = vld [vmem:[#allocation25_spill] sm:$0xff] }
 0x530   : > { %4481 = vmatpush1.bf16.msra.mxu0 %v11444_v62 }
 0x531   : > { %4522 = vmatpush1.bf16.msra.mxu1 %v11451_v41  ;;  %4482 = vmatprep.subr.bf16.mxu0 %v11456_v31 }
 0x532   : > { %4523 = vmatprep.subr.bf16.mxu1 %v11462_v44 }
 0x534   : > { %4483 = vmatpush1.bf16.msra.mxu0 %v11468_v35 }
 0x535   : > { %4524 = vmatpush1.bf16.msra.mxu1 %v11475_v54  ;;  %4484 = vmatprep.subr.bf16.mxu0 %v11480_v58 }
 0x536   : > { %4525 = vmatprep.subr.bf16.mxu1 %v11486_v52 }
 0x538   : > { %4485 = vmatpush1.bf16.msra.mxu0 %v11492_v21 }
 0x539   : > { %4526 = vmatpush1.bf16.msra.mxu1 %v11499_v22  ;;  %4486 = vmatprep.subr.bf16.mxu0 %v11504_v23 }
 0x53a   : > { %4527 = vmatprep.subr.bf16.mxu1 %v11510_v24 }
 0x53c   : > { %4487 = vmatpush1.bf16.msra.mxu0 %v11516_v37  ;;  %v14380_v37 = vld [vmem:[#allocation79_spill] sm:$0xff] }
 0x53d   : > { %4528 = vmatpush1.bf16.msra.mxu1 %v11523_v25  ;;  %4488 = vmatprep.subr.bf16.mxu0 %v11528_v26  ;;  %v14376_v25 = vld [vmem:[#allocation35_spill] sm:$0xff] }
 0x53e   : > { %4529 = vmatprep.subr.bf16.mxu1 %v11534_v28  ;;  %v14367_v28 = vld [vmem:[#allocation26_spill] sm:$0xff] }
 0x540   : > { %4489 = vmatpush1.bf16.msra.mxu0 %v11540_v63  ;;  %v14368_v63 = vld [vmem:[#allocation28_spill] sm:$0xff] }
 0x541   : > { %4530 = vmatpush1.bf16.msra.mxu1 %v14358_v40  ;;  %4490 = vmatprep.subr.bf16.mxu0 %v14359_v32  ;;  %v14369_v40 = vld [vmem:[#allocation31_spill] sm:$0xff]  ;;  %v14370_v32 = vld [vmem:[#allocation32_spill] sm:$0xff] }
 0x542   : > { %4531 = vmatprep.subr.bf16.mxu1 %v14360_v5  ;;  %v14371_v5 = vld [vmem:[#allocation33_spill] sm:$0xff] }
 0x544   : > { %4491 = vmatpush1.bf16.msra.mxu0 %v14361_v27  ;;  %v14372_v27 = vld [vmem:[#allocation34_spill] sm:$0xff] }
 0x545   : > { %4532 = vmatpush1.bf16.msra.mxu1 %v14362_v50  ;;  %4492 = vmatprep.subr.bf16.mxu0 %v14363_v56  ;;  %v14373_v50 = vld [vmem:[#allocation94_spill] sm:$0xff] }
 0x546   : > { %4533 = vmatprep.subr.bf16.mxu1 %v14364_v7  ;;  %v14374_v56 = vld [vmem:[#allocation86_spill] sm:$0xff]  ;;  %v14375_v7 = vld [vmem:[#allocation91_spill] sm:$0xff] }
 0x547   : > { %v2678_v26 = vadd.f32 %v14374_v56, %v14373_v50  ;;  %v14383_v56 = vld [vmem:[#allocation82_spill] sm:$0xff] }
 0x548   : > { %4493 = vmatpush1.bf16.msra.mxu0 %v14365_v36  ;;  %v2955_v36 = vadd.f32 %v14375_v7, %v14373_v50 }
 0x549   : > { %4534 = vmatpush1.bf16.msra.mxu1 %v14366_v53  ;;  %4494 = vmatprep.subr.bf16.mxu0 %v14367_v28  ;;  %v14377_v53 = vld [vmem:[#allocation36_spill] sm:$0xff]  ;;  %v14378_v28 = vld [vmem:[#allocation37_spill] sm:$0xff] }
 0x54a   : > { %4535 = vmatprep.subr.bf16.mxu1 %v14368_v63  ;;  %v14379_v63 = vld [vmem:[#allocation38_spill] sm:$0xff] }
 0x54c   : > { %4495 = vmatpush1.bf16.msra.mxu0 %v14369_v40  ;;  %v2680_v40 = vmax.f32 %v2678_v26, 0.0  ;;  %v14385_v26 = vld [vmem:[#allocation88_spill] sm:$0xff] }
 0x54d   : > { %4536 = vmatpush1.bf16.msra.mxu1 %v14370_v32  ;;  %4496 = vmatprep.subr.bf16.mxu0 %v14371_v5  ;;  %v2957_v32 = vmax.f32 %v2955_v36, 0.0  ;;  %v14381_v5 = vld [vmem:[#allocation80_spill] sm:$0xff] }
 0x54e   : > { %4537 = vmatprep.subr.bf16.mxu1 %v14372_v27  ;;  %v14382_v27 = vld [vmem:[#allocation81_spill] sm:$0xff]  ;;  %v12169_v24 = vpack.c.bf16 %v2680_v40, %v2680_v40 }
 0x54f   : > { %v12172_v7 = vpack.c.bf16 %v2957_v32, %v2957_v32 }
 0x550   : > { %4497 = vmatpush1.bf16.msra.mxu0 %v14376_v25 }
 0x551   : > { %4538 = vmatpush1.bf16.msra.mxu1 %v14377_v53  ;;  %4498 = vmatprep.subr.bf16.mxu0 %v14378_v28  ;;  %v14384_v28 = vld [vmem:[#allocation83_spill] sm:$0xff] }
 0x552   : > { %4539 = vmatprep.subr.bf16.mxu1 %v14379_v63 }
 0x554   : > { %4499 = vmatpush1.bf16.msra.mxu0 %v14380_v37 }
 0x555   : > { %4540 = vmatpush1.bf16.msra.mxu1 %v14381_v5  ;;  %4550 = vmatprep.subr.bf16.mxu0 %v14382_v27  ;;  %v14386_v27 = vld [vmem:[#allocation89_spill] sm:$0xff] }
 0x556   : > { %4593 = vmatprep.subr.bf16.mxu1 %v14383_v56 }
 0x557   : > { %4501 = vmatmul.mubr.bf16.vlgmr.msra.gmra.mrb[104].mxu0 %v12090_v34 }
 0x558   : > { %4542 = vmatmul.mubr.bf16.vlgmr.msra.gmra.mrb[104].mxu1 %v12086_v14  ;;  %4551 = vmatpush1.bf16.msra.mxu0 %v14384_v28  ;;  %v14400_v28 = vld [vmem:[#allocation63_spill] sm:$0xff] }
 0x559   : > { %4582 = vmatprep.mubr.bf16.mxu0 %v12169_v24  ;;  %4594 = vmatpush1.bf16.msra.mxu1 %v14385_v26  ;;  %v14399_v26 = vld [vmem:[#allocation62_spill] sm:$0xff] }
 0x55a   : > { %4625 = vmatprep.mubr.bf16.mxu1 %v12172_v7  ;;  %4552 = vmatprep.subr.bf16.mxu0 %v14386_v27  ;;  %v14396_v27 = vld [vmem:[#allocation60_spill] sm:$0xff] }
 0x55b   : > { %v3416_v36 = vpop.f32.mrb[88].mxu1  ;;  %4595 = vmatprep.subr.bf16.mxu1 %v11721_v9 }
 0x55c   : > { %v3417_v40 = vadd.f32 %v3416_v36, %v12117_v55  ;;  %v3418_v56 = vpop.f32.mrb[89].mxu1  ;;  %4553 = vmatpush1.bf16.msra.mxu0 %v11729_v12  ;;  %v14387_v55 = vld [vmem:[#allocation51_spill] sm:$0xff]  ;;  %v14388_v36 = vld [vmem:[#allocation52_spill] sm:$0xff] }
 0x55d   : > { %v3419_v34 = vadd.f32 %v3418_v56, %v12119_v45  ;;  %v3420_v32 = vpop.f32.mrb[90].mxu1  ;;  %4596 = vmatpush1.bf16.msra.mxu1 %v11736_v46  ;;  %4554 = vmatprep.subr.bf16.mxu0 %v11741_v2  ;;  %v14389_v45 = vld [vmem:[#allocation53_spill] sm:$0xff]  ;;  %v14390_v56 = vld [vmem:[#allocation54_spill] sm:$0xff]  ;;  %v14395_v46 = vld [vmem:[#allocation59_spill] sm:$0xff] }
 0x55e   : > { %v3421_v14 = vpop.f32.mrb[91].mxu1  ;;  %4597 = vmatprep.subr.bf16.mxu1 %v11748_v30  ;;  %v14391_v32 = vld [vmem:[#allocation55_spill] sm:$0xff]  ;;  %v14393_v2 = vld [vmem:[#allocation57_spill] sm:$0xff]  ;;  %v14394_v30 = vld [vmem:[#allocation58_spill] sm:$0xff] }
 0x55f   : > { %v14392_v14 = vld [vmem:[#allocation56_spill] sm:$0xff] }
 0x560   : > { %4555 = vmatpush1.bf16.msra.mxu0 %v11755_v15 }
 0x561   : > { %4598 = vmatpush1.bf16.msra.mxu1 %v11764_v60  ;;  %4556 = vmatprep.subr.bf16.mxu0 %v11769_v29 }
 0x562   : > { %4599 = vmatprep.subr.bf16.mxu1 %v14387_v55 }
 0x564   : > { %4557 = vmatpush1.bf16.msra.mxu0 %v14388_v36 }
 0x565   : > { %4600 = vmatpush1.bf16.msra.mxu1 %v14389_v45  ;;  %4558 = vmatprep.subr.bf16.mxu0 %v14390_v56 }
 0x566   : > { %4601 = vmatprep.subr.bf16.mxu1 %v14391_v32  ;;  %v14398_v32 = vld [vmem:[#allocation61_spill] sm:$0xff] }
 0x568   : > { %4559 = vmatpush1.bf16.msra.mxu0 %v14392_v14 }
 0x569   : > { %4602 = vmatpush1.bf16.msra.mxu1 %v14393_v2  ;;  %4560 = vmatprep.subr.bf16.mxu0 %v14394_v30 }
 0x56a   : > { %v3457_v15 = vpop.f32.mrb[92].mxu0  ;;  %4603 = vmatprep.subr.bf16.mxu1 %v14395_v46 }
 0x56b   : > { %v3498_v60 = vpop.f32.mrb[92].mxu1  ;;  %v3458_v29 = vadd.f32 %v3457_v15, %v3417_v40  ;;  %v3459_v55 = vpop.f32.mrb[93].mxu0  ;;  %v14401_v15 = vld [vmem:[#allocation64_spill] sm:$0xff]  ;;  %v14402_v40 = vld [vmem:[#allocation65_spill] sm:$0xff] }
 0x56c   : > { %v3500_v12 = vpop.f32.mrb[93].mxu1  ;;  %v3460_v36 = vadd.f32 %v3459_v55, %v3419_v34  ;;  %v3461_v9 = vpop.f32.mrb[94].mxu0  ;;  %4561 = vmatpush1.bf16.msra.mxu0 %v14396_v27  ;;  %v14404_v34 = vld [vmem:[#allocation67_spill] sm:$0xff]  ;;  %v14407_v55 = vld [vmem:[#allocation70_spill] sm:$0xff] }
 0x56d   : > { %v3502_v45 = vpop.f32.mrb[94].mxu1  ;;  %v12200_v56 = vadd.f32 %v3498_v60, %v3458_v29  ;;  %4604 = vmatpush1.bf16.msra.mxu1 %v14398_v32  ;;  %v3462_v14 = vpop.f32.mrb[95].mxu0  ;;  %4562 = vmatprep.subr.bf16.mxu0 %v14399_v26  ;;  %v14403_v9 = vld [vmem:[#allocation66_spill] sm:$0xff]  ;;  %v14405_v60 = vld [vmem:[#allocation68_spill] sm:$0xff]  ;;  %v14406_v29 = vld [vmem:[#allocation69_spill] sm:$0xff] }
 0x56e   : > { %v3503_v2 = vpop.f32.mrb[95].mxu1  ;;  %v12204_v30 = vadd.f32 %v3500_v12, %v3460_v36  ;;  %4605 = vmatprep.subr.bf16.mxu1 %v14400_v28  ;;  %v14409_v12 = vld [vmem:[#allocation72_spill] sm:$0xff]  ;;  %v14410_v36 = vld [vmem:[#allocation73_spill] sm:$0xff] }
 0x56f   : > { %14397 = vst [vmem:[#allocation102_spill] sm:$0xff] %v12200_v56  ;;  %v14408_v2 = vld [vmem:[#allocation71_spill] sm:$0xff]  ;;  %v14411_v45 = vld [vmem:[#allocation100_spill] sm:$0xff]  ;;  %v14413_v56 = vld [vmem:[#allocation17_spill] sm:$0xff] }
 0x570   : > { %4563 = vmatpush1.bf16.msra.mxu0 %v14401_v15  ;;  %v14412_v14 = vld [vmem:[#allocation84_spill] sm:$0xff] }
 0x571   : > { %4606 = vmatpush1.bf16.msra.mxu1 %v14402_v40  ;;  %4564 = vmatprep.subr.bf16.mxu0 %v14403_v9  ;;  %v14414_v9 = vld [vmem:[#allocation19_spill] sm:$0xff]  ;;  %v14434_v40 = vld [vmem:[#allocation41_spill] sm:$0xff] }
 0x572   : > { %4607 = vmatprep.subr.bf16.mxu1 %v14404_v34  ;;  %v14415_v34 = vld [vmem:[#allocation21_spill] sm:$0xff] }
 0x574   : > { %4565 = vmatpush1.bf16.msra.mxu0 %v14405_v60  ;;  %v14416_v60 = vld [vmem:[#allocation46_spill] sm:$0xff] }
 0x575   : > { %4608 = vmatpush1.bf16.msra.mxu1 %v14406_v29  ;;  %4566 = vmatprep.subr.bf16.mxu0 %v14407_v55  ;;  %v14417_v29 = vld [vmem:[#allocation42_spill] sm:$0xff] }
 0x576   : > { %4609 = vmatprep.subr.bf16.mxu1 %v14408_v2  ;;  %v14418_v55 = vld [vmem:[#allocation74_spill] sm:$0xff]  ;;  %v14419_v2 = vld [vmem:[#allocation75_spill] sm:$0xff] }
 0x578   : > { %4567 = vmatpush1.bf16.msra.mxu0 %v14409_v12  ;;  %v14420_v12 = vld [vmem:[#allocation7_spill] sm:$0xff] }
 0x579   : > { %4610 = vmatpush1.bf16.msra.mxu1 %v14410_v36  ;;  %4568 = vmatprep.subr.bf16.mxu0 %v14411_v45  ;;  %v14421_v36 = vld [vmem:[#allocation76_spill] sm:$0xff]  ;;  %v14422_v45 = vld [vmem:[#allocation77_spill] sm:$0xff] }
 0x57a   : > { %4611 = vmatprep.subr.bf16.mxu1 %v14412_v14  ;;  %v14423_v14 = vld [vmem:[#allocation47_spill] sm:$0xff] }
 0x57c   : > { %4569 = vmatpush1.bf16.msra.mxu0 %v14413_v56  ;;  %v14424_v56 = vld [vmem:[#allocation78_spill] sm:$0xff] }
 0x57d   : > { %4612 = vmatpush1.bf16.msra.mxu1 %v14414_v9  ;;  %4570 = vmatprep.subr.bf16.mxu0 %v14415_v34  ;;  %v14425_v9 = vld [vmem:[#allocation109_spill] sm:$0xff]  ;;  %v14426_v34 = vld [vmem:[#allocation110_spill] sm:$0xff] }
 0x57e   : > { %4613 = vmatprep.subr.bf16.mxu1 %v14416_v60  ;;  %v14427_v60 = vld [vmem:[#allocation111_spill] sm:$0xff] }
 0x580   : > { %4571 = vmatpush1.bf16.msra.mxu0 %v14417_v29  ;;  %v14428_v29 = vld [vmem:[#allocation30_spill] sm:$0xff] }
 0x581   : > { %4614 = vmatpush1.bf16.msra.mxu1 %v14418_v55  ;;  %4572 = vmatprep.subr.bf16.mxu0 %v14419_v2  ;;  %v14429_v55 = vld [vmem:[#allocation45_spill] sm:$0xff] }
 0x582   : > { %4615 = vmatprep.subr.bf16.mxu1 %v14420_v12  ;;  %v14430_v12 = vld [vmem:[#allocation85_spill] sm:$0xff] }
 0x583   : > { %v2677_v2 = vadd.f32 %v14430_v12, %v11631_v10  ;;  %v14437_v12 = vld [vmem:[#allocation9_spill] sm:$0xff] }
 0x584   : > { %4573 = vmatpush1.bf16.msra.mxu0 %v14421_v36  ;;  %v14431_v36 = vld [vmem:[#allocation10_spill] sm:$0xff] }
 0x585   : > { %4616 = vmatpush1.bf16.msra.mxu1 %v14422_v45  ;;  %4574 = vmatprep.subr.bf16.mxu0 %v14423_v14  ;;  %v14432_v45 = vld [vmem:[#allocation29_spill] sm:$0xff] }
 0x586   : > { %4617 = vmatprep.subr.bf16.mxu1 %v14424_v56  ;;  %v14433_v14 = vld [vmem:[#allocation101_spill] sm:$0xff] }
 0x587   : > { %v2954_v56 = vadd.f32 %v14433_v14, %v11631_v10 }
 0x588   : > { %4575 = vmatpush1.bf16.msra.mxu0 %v14425_v9  ;;  %v14435_v9 = vld [vmem:[#allocation87_spill] sm:$0xff] }
 0x589   : > { %4618 = vmatpush1.bf16.msra.mxu1 %v14426_v34  ;;  %4576 = vmatprep.subr.bf16.mxu0 %v14427_v60  ;;  %v2679_v34 = vmax.f32 %v2677_v2, 0.0  ;;  %v14439_v60 = vld [vmem:[#allocation95_spill] sm:$0xff]  ;;  %v14473_v2 = vld [vmem:[#allocation106_spill] sm:$0xff] }
 0x58a   : > { %4619 = vmatprep.subr.bf16.mxu1 %v14428_v29  ;;  %v14436_v29 = vld [vmem:[#allocation44_spill] sm:$0xff] }
 0x58c   : > { %4577 = vmatpush1.bf16.msra.mxu0 %v14429_v55  ;;  %v2956_v55 = vmax.f32 %v2954_v56, 0.0  ;;  %v14441_v56 = vld [vmem:[#allocation97_spill] sm:$0xff] }
 0x58d   : > { %4620 = vmatpush1.bf16.msra.mxu1 %v14431_v36  ;;  %4578 = vmatprep.subr.bf16.mxu0 %v14432_v45  ;;  %v12248_v36 = vpack.c.bf16 %v2679_v34, %v2679_v34  ;;  %v14438_v45 = vld [vmem:[#allocation40_spill] sm:$0xff]  ;;  %v14465_v34 = vld [vmem:[#allocation81_spill] sm:$0xff] }
 0x58e   : > { %4621 = vmatprep.subr.bf16.mxu1 %v14434_v40  ;;  %v12252_v14 = vpack.c.bf16 %v2956_v55, %v2956_v55  ;;  %v14440_v40 = vld [vmem:[#allocation96_spill] sm:$0xff] }
 0x590   : > { %4579 = vmatpush1.bf16.msra.mxu0 %v14435_v9 }
 0x591   : > { %4622 = vmatpush1.bf16.msra.mxu1 %v12056_v57  ;;  %4580 = vmatprep.subr.bf16.mxu0 %v12061_v18 }
 0x592   : > { %4623 = vmatprep.subr.bf16.mxu1 %v14436_v29 }
 0x594   : > { %4581 = vmatpush1.bf16.msra.mxu0 %v14437_v12 }
 0x595   : > { %4624 = vmatpush1.bf16.msra.mxu1 %v14438_v45  ;;  %4642 = vmatprep.subr.bf16.mxu0 %v14439_v60  ;;  %v14466_v60 = vld [vmem:[#allocation82_spill] sm:$0xff] }
 0x596   : > { %4683 = vmatprep.subr.bf16.mxu1 %v14440_v40 }
 0x597   : > { %4583 = vmatmul.mubr.bf16.vlgmr.msra.gmra.mrb[108].mxu0 %v12248_v36 }
 0x598   : > { %4626 = vmatmul.mubr.bf16.vlgmr.msra.gmra.mrb[108].mxu1 %v12252_v14  ;;  %4643 = vmatpush1.bf16.msra.mxu0 %v11294_v43 }
 0x599   : > { %4674 = vmatprep.mubr.bf16.mxu0 %v12172_v7  ;;  %4684 = vmatpush1.bf16.msra.mxu1 %v14441_v56  ;;  %v14475_v56 = vld [vmem:[#allocation107_spill] sm:$0xff] }
 0x59a   : > { %4715 = vmatprep.mubr.bf16.mxu1 %v12169_v24  ;;  %4644 = vmatprep.subr.bf16.mxu0 %v11306_v59  ;;  %v14464_v24 = vld [vmem:[#allocation37_spill] sm:$0xff] }
 0x59b   : > { %4685 = vmatprep.subr.bf16.mxu1 %v11311_v48 }
 0x59c   : > { %4645 = vmatpush1.bf16.msra.mxu0 %v11320_v13 }
 0x59d   : > { %4686 = vmatpush1.bf16.msra.mxu1 %v11326_v0  ;;  %4646 = vmatprep.subr.bf16.mxu0 %v11331_v8 }
 0x59e   : > { %4687 = vmatprep.subr.bf16.mxu1 %v11338_v3 }
 0x5a0   : > { %4647 = vmatpush1.bf16.msra.mxu0 %v11348_v61 }
 0x5a1   : > { %4688 = vmatpush1.bf16.msra.mxu1 %v11355_v16  ;;  %4648 = vmatprep.subr.bf16.mxu0 %v11360_v4 }
 0x5a2   : > { %4689 = vmatprep.subr.bf16.mxu1 %v11366_v20  ;;  %v14442_v20 = vld [vmem:[#allocation98_spill] sm:$0xff] }
 0x5a4   : > { %4649 = vmatpush1.bf16.msra.mxu0 %v11372_v49  ;;  %v14443_v49 = vld [vmem:[#allocation99_spill] sm:$0xff] }
 0x5a5   : > { %4690 = vmatpush1.bf16.msra.mxu1 %v11379_v1  ;;  %4650 = vmatprep.subr.bf16.mxu0 %v11384_v11  ;;  %v14444_v1 = vld [vmem:[#allocation12_spill] sm:$0xff]  ;;  %v14445_v11 = vld [vmem:[#allocation13_spill] sm:$0xff] }
 0x5a6   : > { %4691 = vmatprep.subr.bf16.mxu1 %v11390_v47  ;;  %v14446_v47 = vld [vmem:[#allocation14_spill] sm:$0xff] }
 0x5a8   : > { %4651 = vmatpush1.bf16.msra.mxu0 %v11396_v6  ;;  %v14447_v6 = vld [vmem:[#allocation15_spill] sm:$0xff] }
 0x5a9   : > { %4692 = vmatpush1.bf16.msra.mxu1 %v11403_v17  ;;  %4652 = vmatprep.subr.bf16.mxu0 %v11408_v33  ;;  %v14448_v17 = vld [vmem:[#allocation16_spill] sm:$0xff]  ;;  %v14449_v33 = vld [vmem:[#allocation18_spill] sm:$0xff] }
 0x5aa   : > { %v3837_v43 = vpop.f32.mrb[96].mxu0  ;;  %4693 = vmatprep.subr.bf16.mxu1 %v11414_v42  ;;  %v14450_v42 = vld [vmem:[#allocation20_spill] sm:$0xff] }
 0x5ab   : > { %v4038_v59 = vpop.f32.mrb[96].mxu1  ;;  %v3839_v48 = vpop.f32.mrb[97].mxu0 }
 0x5ac   : > { %v12279_v13 = vadd.f32 %v4038_v59, %v3837_v43  ;;  %v4040_v0 = vpop.f32.mrb[97].mxu1  ;;  %v3841_v8 = vpop.f32.mrb[98].mxu0  ;;  %4653 = vmatpush1.bf16.msra.mxu0 %v11420_v39  ;;  %v14451_v39 = vld [vmem:[#allocation22_spill] sm:$0xff]  ;;  %v14477_v43 = vld [vmem:[#allocation49_spill] sm:$0xff]  ;;  %v14478_v59 = vld [vmem:[#allocation51_spill] sm:$0xff] }
 0x5ad   : > { %v12282_v3 = vadd.f32 %v4040_v0, %v3839_v48  ;;  %v4042_v61 = vpop.f32.mrb[98].mxu1  ;;  %4694 = vmatpush1.bf16.msra.mxu1 %v11427_v38  ;;  %v3842_v16 = vpop.f32.mrb[99].mxu0  ;;  %4654 = vmatprep.subr.bf16.mxu0 %v11432_v51  ;;  %v14452_v38 = vld [vmem:[#allocation23_spill] sm:$0xff]  ;;  %v14453_v51 = vld [vmem:[#allocation24_spill] sm:$0xff]  ;;  %v14480_v0 = vld [vmem:[#allocation53_spill] sm:$0xff] }
 0x5ae   : > { %v4043_v4 = vpop.f32.mrb[99].mxu1  ;;  %4695 = vmatprep.subr.bf16.mxu1 %v11438_v19  ;;  %v14454_v19 = vld [vmem:[#allocation105_spill] sm:$0xff]  ;;  %v14479_v48 = vld [vmem:[#allocation52_spill] sm:$0xff]  ;;  %v14481_v8 = vld [vmem:[#allocation54_spill] sm:$0xff] }
 0x5af   : > { %v14482_v61 = vld [vmem:[#allocation55_spill] sm:$0xff]  ;;  %v14483_v16 = vld [vmem:[#allocation56_spill] sm:$0xff]  ;;  %v14484_v4 = vld [vmem:[#allocation57_spill] sm:$0xff] }
 0x5b0   : > { %4655 = vmatpush1.bf16.msra.mxu0 %v11444_v62  ;;  %v14455_v62 = vld [vmem:[#allocation8_spill] sm:$0xff] }
 0x5b1   : > { %4696 = vmatpush1.bf16.msra.mxu1 %v11451_v41  ;;  %4656 = vmatprep.subr.bf16.mxu0 %v11456_v31  ;;  %v14456_v41 = vld [vmem:[#allocation25_spill] sm:$0xff]  ;;  %v14457_v31 = vld [vmem:[#allocation26_spill] sm:$0xff] }
 0x5b2   : > { %4697 = vmatprep.subr.bf16.mxu1 %v11462_v44  ;;  %v14458_v44 = vld [vmem:[#allocation28_spill] sm:$0xff] }
 0x5b4   : > { %4657 = vmatpush1.bf16.msra.mxu0 %v11468_v35  ;;  %v14459_v35 = vld [vmem:[#allocation31_spill] sm:$0xff] }
 0x5b5   : > { %4698 = vmatpush1.bf16.msra.mxu1 %v11475_v54  ;;  %4658 = vmatprep.subr.bf16.mxu0 %v11480_v58  ;;  %v14460_v54 = vld [vmem:[#allocation32_spill] sm:$0xff]  ;;  %v14461_v58 = vld [vmem:[#allocation33_spill] sm:$0xff] }
 0x5b6   : > { %4699 = vmatprep.subr.bf16.mxu1 %v11486_v52  ;;  %v14462_v52 = vld [vmem:[#allocation34_spill] sm:$0xff] }
 0x5b8   : > { %4659 = vmatpush1.bf16.msra.mxu0 %v11492_v21  ;;  %v14463_v21 = vld [vmem:[#allocation50_spill] sm:$0xff] }
 0x5b9   : > { %4700 = vmatpush1.bf16.msra.mxu1 %v11499_v22  ;;  %4660 = vmatprep.subr.bf16.mxu0 %v11504_v23  ;;  %v3234_v22 = vadd.f32 %v14463_v21, %v14373_v50  ;;  %v3506_v23 = vadd.f32 %v12204_v30, %v14373_v50  ;;  %v14467_v30 = vld [vmem:[#allocation83_spill] sm:$0xff]  ;;  %v14469_v50 = vld [vmem:[#allocation89_spill] sm:$0xff]  ;;  %v14502_v21 = vld [vmem:[#allocation74_spill] sm:$0xff] }
 0x5ba   : > { %4701 = vmatprep.subr.bf16.mxu1 %v14442_v20  ;;  %v14485_v20 = vld [vmem:[#allocation58_spill] sm:$0xff] }
 0x5bb   : > { %v3236_v7 = vmax.f32 %v3234_v22, 0.0  ;;  %v3508_v40 = vmax.f32 %v3506_v23, 0.0  ;;  %v14503_v22 = vld [vmem:[#allocation75_spill] sm:$0xff] }
 0x5bc   : > { %4661 = vmatpush1.bf16.msra.mxu0 %v14443_v49  ;;  %v14504_v23 = vld [vmem:[#allocation7_spill] sm:$0xff] }
 0x5bd   : > { %4702 = vmatpush1.bf16.msra.mxu1 %v14444_v1  ;;  %4662 = vmatprep.subr.bf16.mxu0 %v14445_v11  ;;  %v3238_v55 = vpack.c.bf16 %v3236_v7, %v3236_v7  ;;  %v14506_v7 = vld [vmem:[#allocation77_spill] sm:$0xff] }
 0x5be   : > { %4703 = vmatprep.subr.bf16.mxu1 %v14446_v47 }
 0x5c0   : > { %4663 = vmatpush1.bf16.msra.mxu0 %v14447_v6 }
 0x5c1   : > { %4704 = vmatpush1.bf16.msra.mxu1 %v14448_v17  ;;  %4664 = vmatprep.subr.bf16.mxu0 %v14449_v33 }
 0x5c2   : > { %4705 = vmatprep.subr.bf16.mxu1 %v14450_v42 }
 0x5c4   : > { %4665 = vmatpush1.bf16.msra.mxu0 %v14451_v39 }
 0x5c5   : > { %4706 = vmatpush1.bf16.msra.mxu1 %v14452_v38  ;;  %4666 = vmatprep.subr.bf16.mxu0 %v14453_v51 }
 0x5c6   : > { %4707 = vmatprep.subr.bf16.mxu1 %v14454_v19  ;;  %v14488_v19 = vld [vmem:[#allocation67_spill] sm:$0xff] }
 0x5c8   : > { %4667 = vmatpush1.bf16.msra.mxu0 %v14455_v62  ;;  %v14490_v62 = vld [vmem:[#allocation69_spill] sm:$0xff] }
 0x5c9   : > { %4708 = vmatpush1.bf16.msra.mxu1 %v14456_v41  ;;  %4668 = vmatprep.subr.bf16.mxu0 %v14457_v31  ;;  %v14492_v41 = vld [vmem:[#allocation71_spill] sm:$0xff]  ;;  %v14494_v31 = vld [vmem:[#allocation73_spill] sm:$0xff] }
 0x5ca   : > { %4709 = vmatprep.subr.bf16.mxu1 %v14458_v44  ;;  %v14497_v44 = vld [vmem:[#allocation17_spill] sm:$0xff] }
 0x5cc   : > { %4669 = vmatpush1.bf16.msra.mxu0 %v14459_v35  ;;  %v14498_v35 = vld [vmem:[#allocation19_spill] sm:$0xff] }
 0x5cd   : > { %4710 = vmatpush1.bf16.msra.mxu1 %v14460_v54  ;;  %4670 = vmatprep.subr.bf16.mxu0 %v14461_v58  ;;  %v14499_v54 = vld [vmem:[#allocation21_spill] sm:$0xff]  ;;  %v14500_v58 = vld [vmem:[#allocation46_spill] sm:$0xff] }
 0x5ce   : > { %4711 = vmatprep.subr.bf16.mxu1 %v14462_v52  ;;  %v14501_v52 = vld [vmem:[#allocation42_spill] sm:$0xff] }
 0x5d0   : > { %4671 = vmatpush1.bf16.msra.mxu0 %v14376_v25  ;;  %v3510_v25 = vpack.c.bf16 %v3508_v40, %v3508_v40  ;;  %v14507_v40 = vld [vmem:[#allocation47_spill] sm:$0xff] }
 0x5d1   : > { %4712 = vmatpush1.bf16.msra.mxu1 %v14377_v53  ;;  %4672 = vmatprep.subr.bf16.mxu0 %v14464_v24  ;;  %v14472_v53 = vld [vmem:[#allocation104_spill] sm:$0xff] }
 0x5d2   : > { %4713 = vmatprep.subr.bf16.mxu1 %v14379_v63  ;;  %v14468_v63 = vld [vmem:[#allocation88_spill] sm:$0xff] }
 0x5d3   : > { %v14505_v24 = vld [vmem:[#allocation76_spill] sm:$0xff] }
 0x5d4   : > { %4673 = vmatpush1.bf16.msra.mxu0 %v14380_v37  ;;  %v14470_v37 = vld [vmem:[#allocation90_spill] sm:$0xff] }
 0x5d5   : > { %4714 = vmatpush1.bf16.msra.mxu1 %v14381_v5  ;;  %4724 = vmatprep.subr.bf16.mxu0 %v14465_v34  ;;  %v14471_v5 = vld [vmem:[#allocation103_spill] sm:$0xff]  ;;  %v14508_v34 = vld [vmem:[#allocation78_spill] sm:$0xff] }
 0x5d6   : > { %4767 = vmatprep.subr.bf16.mxu1 %v14466_v60  ;;  %v12388_v60 = vld [vmem:[%s12783_s4] sm:$0x3] }
 0x5d7   : > { %4675 = vmatmul.mubr.bf16.vlgmr.msra.gmra.mrb[112].mxu0 %v12252_v14  ;;  %v14474_v14 = vld [vmem:[#allocation43_spill] sm:$0xff] }
 0x5d8   : > { %4716 = vmatmul.mubr.bf16.vlgmr.msra.gmra.mrb[112].mxu1 %v12248_v36  ;;  %4725 = vmatpush1.bf16.msra.mxu0 %v14467_v30  ;;  %v14476_v36 = vld [vmem:[#allocation48_spill] sm:$0xff]  ;;  %v14511_v30 = vld [vmem:[#allocation111_spill] sm:$0xff] }
 0x5d9   : > { %4756 = vmatprep.mubr.bf16.mxu0 %v3238_v55  ;;  %4768 = vmatpush1.bf16.msra.mxu1 %v14468_v63  ;;  %v14509_v55 = vld [vmem:[#allocation109_spill] sm:$0xff]  ;;  %v14512_v63 = vld [vmem:[#allocation30_spill] sm:$0xff] }
 0x5da   : > { %4799 = vmatprep.mubr.bf16.mxu1 %v3510_v25  ;;  %4726 = vmatprep.subr.bf16.mxu0 %v14469_v50  ;;  %v14510_v25 = vld [vmem:[#allocation110_spill] sm:$0xff]  ;;  %v14513_v50 = vld [vmem:[#allocation93_spill] sm:$0xff] }
 0x5db   : > { %4769 = vmatprep.subr.bf16.mxu1 %v14470_v37  ;;  %v12396_v37 = vrot.slane %v12388_v60, %v14513_v50 }
 0x5dc   : > { %4727 = vmatpush1.bf16.msra.mxu0 %v14471_v5  ;;  %v14514_v5 = vld [vmem:[#allocation45_spill] sm:$0xff] }
 0x5dd   : > { %4770 = vmatpush1.bf16.msra.mxu1 %v14472_v53  ;;  %4728 = vmatprep.subr.bf16.mxu0 %v14473_v2  ;;  %v14515_v53 = vld [vmem:[#allocation108_spill] sm:$0xff] }
 0x5de   : > { %4771 = vmatprep.subr.bf16.mxu1 %v14474_v14  ;;  %v3233_v2 = vadd.f32 %v14515_v53, %v11631_v10  ;;  %v14516_v14 = vld [vmem:[#allocation10_spill] sm:$0xff] }
 0x5e0   : > { %4729 = vmatpush1.bf16.msra.mxu0 %v14475_v56  ;;  %v14517_v56 = vld [vmem:[#allocation29_spill] sm:$0xff] }
 0x5e1   : > { %4772 = vmatpush1.bf16.msra.mxu1 %v14476_v36  ;;  %4730 = vmatprep.subr.bf16.mxu0 %v14477_v43  ;;  %v14518_v36 = vld [vmem:[#allocation102_spill] sm:$0xff] }
 0x5e2   : > { %4773 = vmatprep.subr.bf16.mxu1 %v14478_v59  ;;  %v3505_v43 = vadd.f32 %v14518_v36, %v11631_v10  ;;  %v14519_v59 = vld [vmem:[#allocation41_spill] sm:$0xff]  ;;  %v7041_v10 = vld [vmem:[%s12784_s5 + $0x60] sm:$0xff]  }
 0x5e4   : > { %4731 = vmatpush1.bf16.msra.mxu0 %v14479_v48 }
 0x5e5   : > { %4774 = vmatpush1.bf16.msra.mxu1 %v14480_v0  ;;  %4732 = vmatprep.subr.bf16.mxu0 %v14481_v8  ;;  %v3235_v0 = vmax.f32 %v3233_v2, 0.0  ;;  %v3507_v8 = vmax.f32 %v3505_v43, 0.0 }
 0x5e6   : > { %4775 = vmatprep.subr.bf16.mxu1 %v14482_v61 }
 0x5e8   : > { %4733 = vmatpush1.bf16.msra.mxu0 %v14483_v16  ;;  %v3237_v16 = vpack.c.bf16 %v3235_v0, %v3235_v0 }
 0x5e9   : > { %4776 = vmatpush1.bf16.msra.mxu1 %v14484_v4  ;;  %4734 = vmatprep.subr.bf16.mxu0 %v14485_v20  ;;  %v7043_v4 = vld [vmem:[%s12784_s5 + $0x70] sm:$0xff]  }
 0x5ea   : > { %v4239_v49 = vpop.f32.mrb[100].mxu0  ;;  %4777 = vmatprep.subr.bf16.mxu1 %v14395_v46  ;;  %v7031_v20 = vld [vmem:[%s12784_s5 + $0x10] sm:$0xff]  }
 0x5eb   : > { %v4246_v1 = vadd.f32 %v4239_v49, %v12279_v13  ;;  %v4442_v11 = vpop.f32.mrb[100].mxu1  ;;  %v4241_v47 = vpop.f32.mrb[101].mxu0  ;;  %v14486_v13 = vld [vmem:[#allocation65_spill] sm:$0xff] }
 0x5ec   : > { %v4247_v6 = vadd.f32 %v4241_v47, %v12282_v3  ;;  %v4444_v17 = vpop.f32.mrb[101].mxu1  ;;  %v4243_v33 = vpop.f32.mrb[102].mxu0  ;;  %4735 = vmatpush1.bf16.msra.mxu0 %v14396_v27  ;;  %v14487_v3 = vld [vmem:[#allocation66_spill] sm:$0xff]  ;;  %v14489_v27 = vld [vmem:[#allocation68_spill] sm:$0xff] }
 0x5ed   : > { %v12356_v42 = vadd.f32 %v4442_v11, %v4246_v1  ;;  %v4446_v39 = vpop.f32.mrb[102].mxu1  ;;  %4778 = vmatpush1.bf16.msra.mxu1 %v14398_v32  ;;  %v4244_v38 = vpop.f32.mrb[103].mxu0  ;;  %4736 = vmatprep.subr.bf16.mxu0 %v14399_v26  ;;  %v14491_v32 = vld [vmem:[#allocation70_spill] sm:$0xff]  ;;  %v14493_v26 = vld [vmem:[#allocation72_spill] sm:$0xff] }
 0x5ee   : > { %v4450_v51 = vadd.f32 %v4444_v17, %v4247_v6  ;;  %v4447_v46 = vpop.f32.mrb[103].mxu1  ;;  %4779 = vmatprep.subr.bf16.mxu1 %v14400_v28  ;;  %v14495_v28 = vld [vmem:[#allocation100_spill] sm:$0xff]  ;;  %v7044_v49 = vld [vmem:[%s12784_s5 + $0x78] sm:$0xff]   ;;  %v7045_v11 = vld [vmem:[%s12784_s5 + $0x80] sm:$0xff]  }
 0x5ef   : > { %v7032_v1 = vld [vmem:[%s12784_s5 + $0x18] sm:$0xff]   ;;  %v7033_v47 = vld [vmem:[%s12784_s5 + $0x20] sm:$0xff]   ;;  %v7046_v6 = vld [vmem:[%s12784_s5 + $0x88] sm:$0xff]  }
 0x5f0   : > { %4737 = vmatpush1.bf16.msra.mxu0 %v14401_v15  ;;  %v14496_v15 = vld [vmem:[#allocation84_spill] sm:$0xff]  ;;  %v4463_v48 = vadd.f32 %v12396_v37, %v4450_v51 }
 0x5f1   : > { %4780 = vmatpush1.bf16.msra.mxu1 %v14486_v13  ;;  %4738 = vmatprep.subr.bf16.mxu0 %v14487_v3  ;;  %v7034_v17 = vld [vmem:[%s12784_s5 + $0x28] sm:$0xff]   ;;  %v7047_v3 = vld [vmem:[%s12784_s5 + $0x90] sm:$0xff]  }
 0x5f2   : > { %4781 = vmatprep.subr.bf16.mxu1 %v14488_v19  ;;  %v4465_v61 = vmax.f32 %v4463_v48, 0.0 }
 0x5f4   : > { %4739 = vmatpush1.bf16.msra.mxu0 %v14489_v27 }
 0x5f5   : > { %4782 = vmatpush1.bf16.msra.mxu1 %v14490_v62  ;;  %4740 = vmatprep.subr.bf16.mxu0 %v14491_v32  ;;  %v7035_v32 = vld [vmem:[%s12784_s5 + $0x30] sm:$0xff]  }
 0x5f6   : > { %4783 = vmatprep.subr.bf16.mxu1 %v14492_v41 }
 0x5f8   : > { %4741 = vmatpush1.bf16.msra.mxu0 %v14493_v26  ;;  %v7048_v26 = vld [vmem:[%s12784_s5 + $0x98] sm:$0xff]  }
 0x5f9   : > { %4784 = vmatpush1.bf16.msra.mxu1 %v14494_v31  ;;  %4742 = vmatprep.subr.bf16.mxu0 %v14495_v28  ;;  %v7036_v31 = vld [vmem:[%s12784_s5 + $0x38] sm:$0xff]   ;;  %v7049_v28 = vld [vmem:[%s12784_s5 + $0xa0] sm:$0xff]  }
 0x5fa   : > { %4785 = vmatprep.subr.bf16.mxu1 %v14496_v15  ;;  %v7037_v15 = vld [vmem:[%s12784_s5 + $0x40] sm:$0xff]  }
 0x5fc   : > { %4743 = vmatpush1.bf16.msra.mxu0 %v14497_v44  ;;  %v7050_v44 = vld [vmem:[%s12784_s5 + $0xa8] sm:$0xff]  }
 0x5fd   : > { %4786 = vmatpush1.bf16.msra.mxu1 %v14498_v35  ;;  %4744 = vmatprep.subr.bf16.mxu0 %v14499_v54  ;;  %v7038_v35 = vld [vmem:[%s12784_s5 + $0x48] sm:$0xff]  }
 0x5fe   : > { %4787 = vmatprep.subr.bf16.mxu1 %v14500_v58  ;;  %v14521_v54 = vld [vmem:[#allocation27_spill] sm:$0xff] }
 0x5ff   : > { %v12495_v58 = vrot.slane %v12388_v60, %v14521_v54 }
 0x600   : > { %4745 = vmatpush1.bf16.msra.mxu0 %v14501_v52  ;;  %v7051_v52 = vld [vmem:[%s12784_s5 + $0xb0] sm:$0xff]  }
 0x601   : > { %4788 = vmatpush1.bf16.msra.mxu1 %v14502_v21  ;;  %4746 = vmatprep.subr.bf16.mxu0 %v14503_v22  ;;  %v7039_v21 = vld [vmem:[%s12784_s5 + $0x50] sm:$0xff]   ;;  %v4462_v22 = vadd.f32 %v12495_v58, %v12356_v42 }
 0x602   : > { %4789 = vmatprep.subr.bf16.mxu1 %v14504_v23  ;;  %v7052_v23 = vld [vmem:[%s12784_s5 + $0xb8] sm:$0xff]  }
 0x604   : > { %4747 = vmatpush1.bf16.msra.mxu0 %v14505_v24  ;;  %v7040_v24 = vld [vmem:[%s12784_s5 + $0x58] sm:$0xff]  }
 0x605   : > { %4790 = vmatpush1.bf16.msra.mxu1 %v14506_v7  ;;  %4748 = vmatprep.subr.bf16.mxu0 %v14507_v40  ;;  %v4464_v7 = vmax.f32 %v4462_v22, 0.0 }
 0x606   : > { %4791 = vmatprep.subr.bf16.mxu1 %v14508_v34 }
 0x607   : > { %v4466_v42 = vpack.c.bf16 %v4464_v7, %v4464_v7 }
 0x608   : > { %4749 = vmatpush1.bf16.msra.mxu0 %v14509_v55 }
 0x609   : > { %4792 = vmatpush1.bf16.msra.mxu1 %v14510_v25  ;;  %4750 = vmatprep.subr.bf16.mxu0 %v14511_v30 }
 0x60a   : > { %4793 = vmatprep.subr.bf16.mxu1 %v14512_v63 }
 0x60c   : > { %4751 = vmatpush1.bf16.msra.mxu0 %v14514_v5 }
 0x60d   : > { %4794 = vmatpush1.bf16.msra.mxu1 %v14516_v14  ;;  %4752 = vmatprep.subr.bf16.mxu0 %v14517_v56 }
 0x60e   : > { %4795 = vmatprep.subr.bf16.mxu1 %v14519_v59 }
 0x610   : > { %4753 = vmatpush1.bf16.msra.mxu0 %v14435_v9  ;;  %v7029_v9 = vld [vmem:[%s12784_s5] sm:$0xff]  }
 0x611   : > { %4796 = vmatpush1.bf16.msra.mxu1 %v12056_v57  ;;  %4754 = vmatprep.subr.bf16.mxu0 %v12061_v18  ;;  %v14520_v57 = vmov 0   ;;  %v3509_v18 = vpack.c.bf16 %v3507_v8, %v3507_v8  ;;  %v7053_v8 = vld [vmem:[%s12784_s5 + $0xc0] sm:$0xff]  }
 0x612   : > { %4797 = vmatprep.subr.bf16.mxu1 %v14436_v29  ;;  %v4467_v29 = vpack.c.bf16 %v4465_v61, %v4465_v61 }
 0x614   : > { %4755 = vmatpush1.bf16.msra.mxu0 %v14437_v12  ;;  %v7042_v12 = vld [vmem:[%s12784_s5 + $0x68] sm:$0xff]  }
 0x615   : > { %4798 = vmatpush1.bf16.msra.mxu1 %v14438_v45  ;;  %4967 = vmatprep.subr.bf16.mxu0 %v14520_v57  ;;  %v7030_v45 = vld [vmem:[%s12784_s5 + $0x8] sm:$0xff]  }
 0x616   : > { %5082 = vmatprep.subr.bf16.mxu1 %v14520_v57 }
 0x617   : > { %4757 = vmatmul.mubr.bf16.vlgmr.msra.gmra.mrb[116].mxu0 %v3237_v16  ;;  %v7055_v16 = vld [vmem:[%s12784_s5 + $0xd0] sm:$0xff]  }
 0x618   : > { %4800 = vmatmul.mubr.bf16.vlgmr.msra.gmra.mrb[116].mxu1 %v3509_v18  ;;  %4968 = vmatpush1.bf16.msra.mxu0 %v7041_v10  ;;  %v7054_v10 = vld [vmem:[%s12784_s5 + $0xc8] sm:$0xff]   ;;  %v7057_v18 = vld [vmem:[%s12784_s5 + $0xe0] sm:$0xff]  }
 0x619   : > { %5083 = vmatpush1.bf16.msra.mxu1 %v7029_v9  ;;  %6443 = vmatprep.mubr.msk.bf16.mxu1 %vm938_vm0, %v4467_v29  ;;  %v7056_v9 = vld [vmem:[%s12784_s5 + $0xd8] sm:$0xff]   ;;  %v7058_v29 = vld [vmem:[%s12784_s5 + $0xe8] sm:$0xff]  }
 0x61a   : > { %5084 = vmatprep.subr.bf16.mxu1 %v14520_v57  ;;  %4969 = vmatprep.subr.bf16.mxu0 %v14520_v57 }
 0x61c   : > { %4970 = vmatpush1.bf16.msra.mxu0 %v7042_v12  ;;  %v7059_v12 = vld [vmem:[%s12784_s5 + $0xf0] sm:$0xff]  }
 0x61d   : > { %5085 = vmatpush1.bf16.msra.mxu1 %v7030_v45  ;;  %4971 = vmatprep.subr.bf16.mxu0 %v14520_v57  ;;  %v7060_v45 = vld [vmem:[%s12784_s5 + $0xf8] sm:$0xff]  }
 0x61e   : > { %5086 = vmatprep.subr.bf16.mxu1 %v14520_v57 }
 0x620   : > { %4972 = vmatpush1.bf16.msra.mxu0 %v7043_v4  ;;  %v7061_v4 = vld [vmem:[%s12784_s5 + $0x100] sm:$0xff]  }
 0x621   : > { %5087 = vmatpush1.bf16.msra.mxu1 %v7031_v20  ;;  %4973 = vmatprep.subr.bf16.mxu0 %v14520_v57  ;;  %v7062_v20 = vld [vmem:[%s12784_s5 + $0x108] sm:$0xff]  }
 0x622   : > { %5088 = vmatprep.subr.bf16.mxu1 %v14520_v57 }
 0x624   : > { %4974 = vmatpush1.bf16.msra.mxu0 %v7044_v49  ;;  %v7063_v49 = vld [vmem:[%s12784_s5 + $0x110] sm:$0xff]  }
 0x625   : > { %5089 = vmatpush1.bf16.msra.mxu1 %v7032_v1  ;;  %4975 = vmatprep.subr.bf16.mxu0 %v14520_v57  ;;  %v7064_v1 = vld [vmem:[%s12784_s5 + $0x118] sm:$0xff]  }
 0x626   : > { %5090 = vmatprep.subr.bf16.mxu1 %v14520_v57 }
 0x628   : > { %4976 = vmatpush1.bf16.msra.mxu0 %v7045_v11 }
 0x629   : > { %5091 = vmatpush1.bf16.msra.mxu1 %v7033_v47  ;;  %4977 = vmatprep.subr.bf16.mxu0 %v14520_v57 }
 0x62a   : > { %v4502_v33 = vpop.f32.mrb[104].mxu0  ;;  %5092 = vmatprep.subr.bf16.mxu1 %v14520_v57 }
 0x62b   : > { %v4543_v39 = vpop.f32.mrb[104].mxu1  ;;  %v4504_v38 = vpop.f32.mrb[105].mxu0 }
 0x62c   : > { %v4544_v51 = vadd.f32 %v4543_v39, %v4502_v33  ;;  %v4545_v46 = vpop.f32.mrb[105].mxu1  ;;  %v4506_v13 = vpop.f32.mrb[106].mxu0  ;;  %4978 = vmatpush1.bf16.msra.mxu0 %v7046_v6 }
 0x62d   : > { %v4546_v19 = vadd.f32 %v4545_v46, %v4504_v38  ;;  %v4547_v27 = vpop.f32.mrb[106].mxu1  ;;  %5093 = vmatpush1.bf16.msra.mxu1 %v7034_v17  ;;  %v4507_v62 = vpop.f32.mrb[107].mxu0  ;;  %4979 = vmatprep.subr.bf16.mxu0 %v14520_v57 }
 0x62e   : > { %v4548_v41 = vpop.f32.mrb[107].mxu1  ;;  %5094 = vmatprep.subr.bf16.mxu1 %v14520_v57  ;;  %v7070_v27 = vld [vmem:[%s12786_s7 + $0x24] ss:$16 sps:$4 sm:$0xff]   ;;  %v7068_v62 = vld [vmem:[%s12786_s7 + $0x20] ss:$16 sps:$4 sm:$0xff]  }
 0x630   : > { %4980 = vmatpush1.bf16.msra.mxu0 %v7047_v3  ;;  %v7065_v3 = vld [vmem:[%s12786_s7] ss:$16 sps:$4 sm:$0xff]  }
 0x631   : > { %5095 = vmatpush1.bf16.msra.mxu1 %v7035_v32  ;;  %4981 = vmatprep.subr.bf16.mxu0 %v14520_v57 }
 0x632   : > { %5096 = vmatprep.subr.bf16.mxu1 %v14520_v57 }
 0x634   : > { %4982 = vmatpush1.bf16.msra.mxu0 %v7048_v26 }
 0x635   : > { %5097 = vmatpush1.bf16.msra.mxu1 %v7036_v31  ;;  %4983 = vmatprep.subr.bf16.mxu0 %v14520_v57 }
 0x636   : > { %5098 = vmatprep.subr.bf16.mxu1 %v14520_v57 }
 0x638   : > { %4984 = vmatpush1.bf16.msra.mxu0 %v7049_v28 }
 0x639   : > { %5099 = vmatpush1.bf16.msra.mxu1 %v7037_v15  ;;  %4985 = vmatprep.subr.bf16.mxu0 %v14520_v57 }
 0x63a   : > { %5100 = vmatprep.subr.bf16.mxu1 %v14520_v57 }
 0x63c   : > { %4986 = vmatpush1.bf16.msra.mxu0 %v7050_v44 }
 0x63d   : > { %5101 = vmatpush1.bf16.msra.mxu1 %v7038_v35  ;;  %4987 = vmatprep.subr.bf16.mxu0 %v14520_v57 }
 0x63e   : > { %5102 = vmatprep.subr.bf16.mxu1 %v14520_v57 }
 0x640   : > { %4988 = vmatpush1.bf16.msra.mxu0 %v7051_v52 }
 0x641   : > { %5103 = vmatpush1.bf16.msra.mxu1 %v7039_v21  ;;  %4989 = vmatprep.subr.bf16.mxu0 %v14520_v57 }
 0x642   : > { %5104 = vmatprep.subr.bf16.mxu1 %v14520_v57 }
 0x644   : > { %4990 = vmatpush1.bf16.msra.mxu0 %v7052_v23 }
 0x645   : > { %5105 = vmatpush1.bf16.msra.mxu1 %v7040_v24  ;;  %5197 = vmatprep.subr.bf16.mxu0 %v14520_v57 }
 0x648   : > { %5115 = vmatmul.mubr.bf16.vlgmr.msra.gmra.mrb[120].mxu1 %v4466_v42 }
 0x649   : > { %5372 = vmatprep.mubr.bf16.mxu1 %v14520_v57 }
 0x66a   : > { %v4584_v40 = vpop.f32.mrb[108].mxu0 }
 0x66b   : > { %v4591_v34 = vadd.f32 %v4584_v40, %v4544_v51  ;;  %v4627_v60 = vpop.f32.mrb[108].mxu1  ;;  %v4586_v55 = vpop.f32.mrb[109].mxu0 }
 0x66c   : > { %v4592_v25 = vadd.f32 %v4586_v55, %v4546_v19  ;;  %v4629_v30 = vpop.f32.mrb[109].mxu1  ;;  %v4588_v63 = vpop.f32.mrb[110].mxu0  ;;  %v7067_v19 = vld [vmem:[%s12786_s7 + $0x4] ss:$16 sps:$4 sm:$0xff]  }
 0x66d   : > { %v4634_v5 = vadd.f32 %v4627_v60, %v4591_v34  ;;  %v4631_v53 = vpop.f32.mrb[110].mxu1  ;;  %v4589_v2 = vpop.f32.mrb[111].mxu0  ;;  %5340 = vmatprep.subr.bf16.mxu1 %v7067_v19  ;;  %v7100_v19 = vld [vmem:[%s12788_s9 + $0x90] sm:$0xff]  }
 0x66e   : > { %v4635_v14 = vadd.f32 %v4629_v30, %v4592_v25  ;;  %v4632_v56 = vpop.f32.mrb[111].mxu1  ;;  %5341 = vmatpush1.bf16.msra.mxu1 %v7065_v3  ;;  %v7073_v53 = vld [vmem:[%s12786_s7 + $0x44] ss:$16 sps:$4 sm:$0xff]  }
 0x66f   : > { %v4636_v36 = vadd.f32 %v4634_v5, %v12495_v58  ;;  %5342 = vmatprep.subr.bf16.mxu1 %v7070_v27  ;;  %v7099_v3 = vld [vmem:[%s12788_s9 + $0x10] sm:$0xff]   ;;  %v7101_v27 = vld [vmem:[%s12788_s9 + $0x58] sm:$0xff]  }
 0x670   : > { %v4637_v43 = vadd.f32 %v4635_v14, %v12396_v37 }
 0x671   : > { %v4638_v59 = vmax.f32 %v4636_v36, 0.0  ;;  %v7076_v36 = vld [vmem:[%s12786_s7 + $0x64] ss:$16 sps:$4 sm:$0xff]  }
 0x672   : > { %v4639_v48 = vmax.f32 %v4637_v43, 0.0  ;;  %5343 = vmatpush1.bf16.msra.mxu1 %v7068_v62  ;;  %v7074_v43 = vld [vmem:[%s12786_s7 + $0x60] ss:$16 sps:$4 sm:$0xff]   ;;  %v7102_v62 = vld [vmem:[%s12788_s9 + $0xd8] sm:$0xff]  }
 0x673   : > { %v4640_v61 = vpack.c.bf16 %v4638_v59, %v4638_v59  ;;  %5344 = vmatprep.subr.bf16.mxu1 %v7073_v53  ;;  %v7079_v59 = vld [vmem:[%s12786_s7 + $0xc] ss:$16 sps:$4 sm:$0xff]   ;;  %v7571_v53 = vmov 1966171168  }
 0x674   : > { %v4641_v0 = vpack.c.bf16 %v4639_v48, %v4639_v48  ;;  %v4890_v48 = vld [vmem:[%s12785_s6] sm:$0x1] }
 0x676   : > { %6430 = vmatprep.mubr.msk.bf16.mxu0 %vm938_vm0, %v4641_v0 }
 0x677   : > { %5000 = vmatmul.mubr.bf16.vlgmr.msra.gmra.mrb[120].mxu0 %v4640_v61 }
 0x678   : > { %5198 = vmatpush1.bf16.msra.mxu0 %v7053_v8 }
 0x679   : > { %5199 = vmatprep.subr.bf16.mxu0 %v14520_v57 }
 0x67c   : > { %5200 = vmatpush1.bf16.msra.mxu0 %v7054_v10 }
 0x67d   : > { %5201 = vmatprep.subr.bf16.mxu0 %v14520_v57 }
 0x680   : > { %5202 = vmatpush1.bf16.msra.mxu0 %v7055_v16 }
 0x681   : > { %5203 = vmatprep.subr.bf16.mxu0 %v14520_v57 }
 0x684   : > { %5204 = vmatpush1.bf16.msra.mxu0 %v7056_v9 }
 0x685   : > { %5205 = vmatprep.subr.bf16.mxu0 %v14520_v57 }
 0x688   : > { %5206 = vmatpush1.bf16.msra.mxu0 %v7057_v18 }
 0x689   : > { %5207 = vmatprep.subr.bf16.mxu0 %v14520_v57 }
 0x68c   : > { %5208 = vmatpush1.bf16.msra.mxu0 %v7058_v29  ;;  %v7077_v29 = vld [vmem:[%s12786_s7 + $0x8] ss:$16 sps:$4 sm:$0xff]  }
 0x68d   : > { %5209 = vmatprep.subr.bf16.mxu0 %v14520_v57 }
 0x690   : > { %5210 = vmatpush1.bf16.msra.mxu0 %v7059_v12 }
 0x691   : > { %5211 = vmatprep.subr.bf16.mxu0 %v14520_v57 }
 0x694   : > { %5212 = vmatpush1.bf16.msra.mxu0 %v7060_v45  ;;  %v7082_v45 = vld [vmem:[%s12786_s7 + $0x2c] ss:$16 sps:$4 sm:$0xff]  }
 0x695   : > { %5213 = vmatprep.subr.bf16.mxu0 %v14520_v57 }
 0x698   : > { %5214 = vmatpush1.bf16.msra.mxu0 %v7061_v4  ;;  %v7080_v4 = vld [vmem:[%s12786_s7 + $0x28] ss:$16 sps:$4 sm:$0xff]  }
 0x699   : > { %5215 = vmatprep.subr.bf16.mxu0 %v14520_v57 }
 0x69c   : > { %5216 = vmatpush1.bf16.msra.mxu0 %v7062_v20  ;;  %v7085_v20 = vld [vmem:[%s12786_s7 + $0x4c] ss:$16 sps:$4 sm:$0xff]  }
 0x69d   : > { %5217 = vmatprep.subr.bf16.mxu0 %v14520_v57 }
 0x6a0   : > { %5218 = vmatpush1.bf16.msra.mxu0 %v7063_v49  ;;  %v7083_v49 = vld [vmem:[%s12786_s7 + $0x48] ss:$16 sps:$4 sm:$0xff]  }
 0x6a1   : > { %5219 = vmatprep.subr.bf16.mxu0 %v14520_v57 }
 0x6a4   : > { %5220 = vmatpush1.bf16.msra.mxu0 %v7064_v1  ;;  %v7088_v1 = vld [vmem:[%s12786_s7 + $0x6c] ss:$16 sps:$4 sm:$0xff]  }
 0x6aa   : > { %v4676_v11 = vpop.f32.mrb[112].mxu0 }
 0x6ab   : > { %v4717_v47 = vpop.f32.mrb[112].mxu1  ;;  %v4678_v6 = vpop.f32.mrb[113].mxu0 }
 0x6ac   : > { %v4718_v17 = vadd.f32 %v4717_v47, %v4676_v11  ;;  %v4719_v33 = vpop.f32.mrb[113].mxu1  ;;  %v4680_v39 = vpop.f32.mrb[114].mxu0  ;;  %v7089_v11 = vld [vmem:[%s12788_s9 + $0x40] sm:$0xff]  }
 0x6ad   : > { %v4720_v38 = vadd.f32 %v4719_v33, %v4678_v6  ;;  %v4721_v51 = vpop.f32.mrb[114].mxu1  ;;  %v4681_v46 = vpop.f32.mrb[115].mxu0  ;;  %v7090_v47 = vld [vmem:[%s12788_s9 + $0xc0] sm:$0xff]   ;;  %v7093_v33 = vld [vmem:[%s12788_s9 + $0x48] sm:$0xff]  }
 0x6ae   : > { %v4722_v13 = vpop.f32.mrb[115].mxu1  ;;  %v7091_v6 = vld [vmem:[%s12788_s9] sm:$0xff]   ;;  %6532 = vmatprep.subr.bf16.mxu0 %v7090_v47  ;;  %v7094_v39 = vld [vmem:[%s12788_s9 + $0xc8] sm:$0xff]   ;;  %v7097_v46 = vld [vmem:[%s12788_s9 + $0x50] sm:$0xff]  }
 0x6af   : > { %v7096_v51 = vld [vmem:[%s12788_s9 + $0x88] sm:$0xff]   ;;  %v7098_v13 = vld [vmem:[%s12788_s9 + $0xd0] sm:$0xff]  }
 0x6ea   : > { %v4758_v32 = vpop.f32.mrb[116].mxu0 }
 0x6eb   : > { %v4765_v41 = vadd.f32 %v4758_v32, %v4718_v17  ;;  %v4801_v26 = vpop.f32.mrb[116].mxu1  ;;  %v4760_v31 = vpop.f32.mrb[117].mxu0  ;;  %v7092_v17 = vld [vmem:[%s12788_s9 + $0x80] sm:$0xff]   ;;  %v7103_v32 = vld [vmem:[%s12788_s9 + $0x18] sm:$0xff]  }
 0x6ec   : > { %v4766_v28 = vadd.f32 %v4760_v31, %v4720_v38  ;;  %v4803_v15 = vpop.f32.mrb[117].mxu1  ;;  %v4762_v44 = vpop.f32.mrb[118].mxu0  ;;  %v7095_v38 = vld [vmem:[%s12788_s9 + $0x8] sm:$0xff]   ;;  %v7106_v31 = vld [vmem:[%s12788_s9 + $0xe0] sm:$0xff]  }
 0x6ed   : > { %v4808_v35 = vadd.f32 %v4801_v26, %v4765_v41  ;;  %v4805_v52 = vpop.f32.mrb[118].mxu1  ;;  %v4763_v21 = vpop.f32.mrb[119].mxu0  ;;  %v7104_v41 = vld [vmem:[%s12788_s9 + $0x98] sm:$0xff]   ;;  %v7105_v26 = vld [vmem:[%s12788_s9 + $0x60] sm:$0xff]   ;;  %v7109_v44 = vld [vmem:[%s12788_s9 + $0x68] sm:$0xff]  }
 0x6ee   : > { %v4809_v22 = vadd.f32 %v4803_v15, %v4766_v28  ;;  %v4806_v23 = vpop.f32.mrb[119].mxu1  ;;  %v7107_v28 = vld [vmem:[%s12788_s9 + $0x20] sm:$0xff]   ;;  %v7111_v52 = vld [vmem:[%s12788_s9 + $0x28] sm:$0xff]  }
 0x6ef   : > { %v4810_v24 = vadd.f32 %v4808_v35, %v12495_v58  ;;  %v7108_v15 = vld [vmem:[%s12788_s9 + $0xa0] sm:$0xff]   ;;  %v7110_v35 = vld [vmem:[%s12788_s9 + $0xe8] sm:$0xff]   ;;  %v7114_v23 = vld [vmem:[%s12788_s9 + $0xf0] sm:$0xff]  }
 0x6f0   : > { %v4811_v7 = vadd.f32 %v4809_v22, %v12396_v37  ;;  %v7071_v37 = vld [vmem:[%s12786_s7 + $0x40] ss:$16 sps:$4 sm:$0xff]   ;;  %v7112_v21 = vld [vmem:[%s12788_s9 + $0xa8] sm:$0xff]  }
 0x6f1   : > { %v4812_v42 = vmax.f32 %v4810_v24, 0.0  ;;  %5345 = vmatpush1.bf16.msra.mxu1 %v7071_v37  ;;  %v7113_v22 = vld [vmem:[%s12788_s9 + $0x70] sm:$0xff]  }
 0x6f2   : > { %v4813_v40 = vmax.f32 %v4811_v7, 0.0  ;;  %5346 = vmatprep.subr.bf16.mxu1 %v7076_v36  ;;  %v7115_v24 = vld [vmem:[%s12788_s9 + $0x30] sm:$0xff]  }
 0x6f3   : > { %v4814_v60 = vpack.c.bf16 %v4812_v42, %v4812_v42  ;;  %v7116_v7 = vld [vmem:[%s12788_s9 + $0xb0] sm:$0xff]   ;;  %v7117_v42 = vld [vmem:[%s12788_s9 + $0x78] sm:$0xff]  }
 0x6f4   : > { %v4815_v34 = vpack.c.bf16 %v4813_v40, %v4813_v40  ;;  %v7118_v40 = vld [vmem:[%s12788_s9 + $0xf8] sm:$0xff]   ;;  %v14522_v37 = vld [vmem:[#allocation92_spill] sm:$0xff] }
 0x6f5   : > { %5347 = vmatpush1.bf16.msra.mxu1 %v7074_v43 }
 0x6f6   : > { %6456 = vmatprep.mubr.msk.bf16.mxu0 %vm938_vm0, %v4815_v34  ;;  %5381 = vmatprep.subr.bf16.mxu1 %v7079_v59  ;;  %v7119_v34 = vld [vmem:[%s12788_s9 + $0x38] sm:$0xff]  }
 0x6f7   : > { %5230 = vmatmul.mubr.bf16.vlgmr.msra.gmra.mrb[124].mxu0 %v4814_v60  ;;  %v7120_v60 = vld [vmem:[%s12788_s9 + $0xb8] sm:$0xff]  }
 0x6f8   : > { %6533 = vmatpush3.bf16.msra.mxu0 %v7092_v17 }
 0x6f9   : > { %6534 = vmatprep.subr.bf16.mxu0 %v7094_v39 }
 0x6fc   : > { %6535 = vmatpush3.bf16.msra.mxu0 %v7096_v51 }
 0x6fd   : > { %6536 = vmatprep.subr.bf16.mxu0 %v7098_v13 }
 0x700   : > { %6537 = vmatpush3.bf16.msra.mxu0 %v7100_v19 }
 0x701   : > { %6538 = vmatprep.subr.bf16.mxu0 %v7102_v62 }
 0x704   : > { %6539 = vmatpush3.bf16.msra.mxu0 %v7104_v41 }
 0x705   : > { %6540 = vmatprep.subr.bf16.mxu0 %v7106_v31 }
 0x708   : > { %6541 = vmatpush3.bf16.msra.mxu0 %v7108_v15 }
 0x709   : > { %6542 = vmatprep.subr.bf16.mxu0 %v7110_v35 }
 0x70c   : > { %6543 = vmatpush3.bf16.msra.mxu0 %v7112_v21 }
 0x70d   : > { %6544 = vmatprep.subr.bf16.mxu0 %v7114_v23 }
 0x710   : > { %6545 = vmatpush3.bf16.msra.mxu0 %v7116_v7 }
 0x711   : > { %6546 = vmatprep.subr.bf16.mxu0 %v7118_v40 }
 0x714   : > { %6547 = vmatpush3.bf16.msra.mxu0 %v7120_v60 }
 0x71b   : > { %v5116_v55 = vpop.f32.mrb[120].mxu1 }
 0x71c   : > { %v5118_v25 = vpop.f32.mrb[121].mxu1 }
 0x71d   : > { %v5119_v30 = vpop.f32.mrb[122].mxu1 }
 0x71e   : > { %v5120_v63 = vpop.f32.mrb[123].mxu1 }
 0x74a   : > { %v5001_v5 = vpop.f32.mrb[120].mxu0 }
 0x74b   : > { %v5117_v2 = vadd.f32 %v5116_v55, %v5001_v5  ;;  %v5003_v58 = vpop.f32.mrb[121].mxu0 }
 0x74c   : > { %v5004_v14 = vpop.f32.mrb[122].mxu0 }
 0x74d   : > { %v5005_v56 = vpop.f32.mrb[123].mxu0 }
 0x7ca   : > { %v5231_v0 = vpop.f32.mrb[124].mxu0 }
 0x7cb   : > { %v5237_v8 = vadd.f32 %v5231_v0, %v5117_v2  ;;  %v5233_v61 = vpop.f32.mrb[125].mxu0  ;;  %v5429_v2 = vunpack.c.l.s4 %v7571_v53 }
 0x7cc   : > { %v5234_v10 = vpop.f32.mrb[126].mxu0 }
 0x7cd   : > { %v5238_v16 = vadd.f32 %v5237_v8, %v4890_v48  ;;  %v5235_v9 = vpop.f32.mrb[127].mxu0  ;;  %v5430_v58 = vunpack.c.0.s8 %v5429_v2  ;;  %v4891_v10 = vld [vmem:[%s12787_s8] sm:$0xf] }
 0x7cf   : > { %v5239_v18 = vmax.f32 %v5238_v16, 0.0  ;;  %v5433_v14 = vsub.s32 %v5430_v58, %v14522_v37 }
 0x7d1   : > { %v5240_v12 = vpack.c.bf16 %v5239_v18, %v5239_v18  ;;  %v5468_v18 = vsub.s32 3, %v14522_v37 }
 0x7d3   : > { %6473 = vmatmul.mubr.msk.bf16.vlgmr.msra.gmra.mrb[124].mxu1 %vm938_vm0, %v5240_v12 }
 0x7d4   : > { %5382 = vmatpush1.bf16.msra.mxu1 %v7077_v29  ;;  %5413 = vmatprep.mubr.bf16.mxu1 %v14520_v57  ;;  %v7086_v57 = vld [vmem:[%s12786_s7 + $0x68] ss:$16 sps:$4 sm:$0xff]   ;;  %v5464_v29 = vsub.s32 2, %v14522_v37 }
 0x7d5   : > { %5383 = vmatprep.subr.bf16.mxu1 %v7082_v45 }
 0x7d8   : > { %5384 = vmatpush1.bf16.msra.mxu1 %v7080_v4 }
 0x7d9   : > { %5385 = vmatprep.subr.bf16.mxu1 %v7085_v20 }
 0x7dc   : > { %5386 = vmatpush1.bf16.msra.mxu1 %v7083_v49 }
 0x7dd   : > { %5387 = vmatprep.subr.bf16.mxu1 %v7088_v1 }
 0x7e0   : > { %5388 = vmatpush1.bf16.msra.mxu1 %v7086_v57 }
 0x7e1   : > { %6510 = vmatprep.subr.bf16.mxu1 %v7089_v11 }
 0x7e3   : > { %6474 = vmatmul.mubr.msk.bf16.vlgmr.msra.gmra.mrb[128].mxu1 %vm938_vm0, %v5240_v12 }
 0x7e4   : > { %6511 = vmatpush3.bf16.msra.mxu1 %v7091_v6 }
 0x7e5   : > { %6512 = vmatprep.subr.bf16.mxu1 %v7093_v33 }
 0x7e8   : > { %6513 = vmatpush3.bf16.msra.mxu1 %v7095_v38 }
 0x7e9   : > { %6514 = vmatprep.subr.bf16.mxu1 %v7097_v46 }
 0x7ec   : > { %6515 = vmatpush3.bf16.msra.mxu1 %v7099_v3 }
 0x7ed   : > { %6516 = vmatprep.subr.bf16.mxu1 %v7101_v27 }
 0x7f0   : > { %6517 = vmatpush3.bf16.msra.mxu1 %v7103_v32 }
 0x7f1   : > { %6518 = vmatprep.subr.bf16.mxu1 %v7105_v26 }
 0x7f4   : > { %6519 = vmatpush3.bf16.msra.mxu1 %v7107_v28 }
 0x7f5   : > { %6520 = vmatprep.subr.bf16.mxu1 %v7109_v44 }
 0x7f8   : > { %6521 = vmatpush3.bf16.msra.mxu1 %v7111_v52 }
 0x7f9   : > { %6522 = vmatprep.subr.bf16.mxu1 %v7113_v22 }
 0x7fc   : > { %6523 = vmatpush3.bf16.msra.mxu1 %v7115_v24 }
 0x7fd   : > { %6524 = vmatprep.subr.bf16.mxu1 %v7117_v42 }
 0x800   : > { %6525 = vmatpush3.bf16.msra.mxu1 %v7119_v34 }
 0x8a6   : > { %v5374_v55 = vpop.f32.mrb[124].mxu1 }
 0x8a7   : > { %v5376_v25 = vpop.f32.mrb[125].mxu1 }
 0x8a8   : > { %v5426_v30 = vcombine.low %v5374_v55, %v5376_v25  ;;  %v5378_v63 = vpop.f32.mrb[126].mxu1 }
 0x8a9   : > { %v5379_v5 = vpop.f32.mrb[127].mxu1 }
 0x8aa   : > { %v5434_v0 = vrot.slane %v5426_v30, %v5433_v14 }
 0x8b6   : > { %v5415_v56 = vpop.f32.mrb[128].mxu1 }
 0x8b7   : > { %v5417_v36 = vpop.f32.mrb[129].mxu1 }
 0x8b8   : > { %v5427_v43 = vcombine.low %v5415_v56, %v5417_v36  ;;  %v5419_v59 = vpop.f32.mrb[130].mxu1 }
 0x8b9   : > { %v5420_v48 = vpop.f32.mrb[131].mxu1 }
 0x8ba   : > { %v5441_v8 = vrot.slane %v5427_v43, %v5433_v14 }
 0x8bc   : > { %v5442_v61 = vcombine.low %v5434_v0, %v5441_v8 }
 0x8be   : > { %v5449_v16 = vrot.slane %v5442_v61, %v5433_v14 }
 0x8c0   : > { %v5451_v9 = vadd.f32 %v5449_v16, %v4891_v10 }
 0x8c2   : > { %v5452_v12 = vmax.f32 %v5451_v9, 0.0 }
 0x8c4   : > { %v5461_v45 = vrot.slane %v5452_v12, %v14513_v50  ;;  %v5469_v4 = vrot.slane %v5452_v12, %v5468_v18  ;;  %v5457_v20 = vrot.slane %v5452_v12, %v14521_v54  ;;  %v5465_v49 = vrot.slane %v5452_v12, %v5464_v29  ;;  %v5542_v50 = vld [vmem:[%s12789_s10] sm:$0x1] }
 0x8c6   : > { %v5475_v1 = vpack.c.bf16 %v5461_v45, %v5461_v45  ;;  %v5477_v57 = vpack.c.bf16 %v5469_v4, %v5469_v4  ;;  %v5474_v11 = vpack.c.bf16 %v5457_v20, %v5457_v20  ;;  %v5476_v47 = vpack.c.bf16 %v5465_v49, %v5465_v49 }
 0x8c8   : > { %5767 = vmatprep.mubr.bf16.mxu1 %v5475_v1  ;;  %5807 = vmatprep.mubr.bf16.mxu0 %v5477_v57 }
 0x8c9   : > { %5768 = vmatmul.mubr.bf16.vlgmr.msra.gmra.mrb[132].mxu1 %v5474_v11  ;;  %5808 = vmatmul.mubr.bf16.vlgmr.msra.gmra.mrb[128].mxu0 %v5476_v47 }
 0x99c   : > { %v6526_v6 = vpop.f32.mrb[132].mxu1  ;;  %v6548_v17 = vpop.f32.mrb[128].mxu0 }
 0x99d   : > { %v6527_v33 = vpop.f32.mrb[133].mxu1  ;;  %v6549_v39 = vpop.f32.mrb[129].mxu0 }
 0x99e   : > { %v6528_v54 = vadd.f32 %v6527_v33, %v6526_v6  ;;  %v6550_v38 = vadd.f32 %v6549_v39, %v6548_v17  ;;  %v6529_v51 = vpop.f32.mrb[134].mxu1  ;;  %v6551_v46 = vpop.f32.mrb[130].mxu0 }
 0x99f   : > { %v6530_v13 = vpop.f32.mrb[135].mxu1  ;;  %v6552_v3 = vpop.f32.mrb[131].mxu0 }
 0x9a0   : > { %v5770_v19 = vadd.f32 %v6528_v54, %v5542_v50 }
 0x9a2   : > { %v5810_v27 = vadd.f32 %v6550_v38, %v5770_v19 }
 0x9a4   : > { %5815 = vst [vmem:[%s378_s15] sm:$0x1] %v5810_v27 }
 0x9a5   : > { %7519 = shalt.err (!%p7516_p3)
}
 0x9a6   : > { %s7520_s30 = scalar_lea.hbm %s12737_s25, 16  ;;  %s7524_s15 = scalar_lea.hbm %s12790_s11, 32 }
 0x9a7   : > { %p7521_p4 = scmp.ne.s32.totalorder %s12737_s25, %s7520_s30  ;;  %p7525_p9 = scmp.lt.u32.totalorder %s12737_s25, %s12790_s11 }
 0x9a8   : > { %p7526_p10 = scmp.lt.u32.totalorder %s7524_s15, %s7520_s30  ;;  %p7528_p12 = scmp.lt.u32.totalorder %s7520_s30, %s12737_s25 }
 0x9a9   : > { %p7522_p7 = pnand %p7521_p4, %p7671_p5 }
 0x9aa   : > { %p7527_p11 = por %p7526_p10, %p7525_p9 }
 0x9ab   : > { %p7523_p8 = pneg %p7522_p7 }
 0x9ac   : > { %p7529_p13 = por %p7528_p12, %p7527_p11 }
 0x9ae   : > { %p7530_p0 = pnand %p7529_p13, %p7523_p8 }
 0x9b0   : > { %7533 = shalt.err (!%p7530_p0)
}
 0x9b1   : > { %6555 = dma.vmem_to_hbm [thread:$0]  (%p7671_p5), %s12739_s16, 16, %s12737_s25, %s5817_s12  }
 0x9b2 PF: > { %p6561_p1 = scmp.ge.s32.totalorder %s7568_s20, 2  ;;  %s5841_s24 = sand.u32 1, %s7556_s17  }
 0x9b3   : > { %s5842_s21 = scalar_lea.sflag [#allocation3], %s5841_s24 }
 0x9b4   : > { %p6558_p2 = pnand %p6561_p1, %p7675_p6 }
 0x9b6   : > { %7551 = dma.done.wait (!%p6558_p2), %s5842_s21, 16  }
 0x9b7   : > { %7553 = vsyncadd (!%p6558_p2), %s5842_s21, 4294967280  ;;  %s14523_s29 = sld [smem:[#allocation5_spill]]  ;;  %s14524_s19 = sld [smem:[#allocation6_spill]] }
 0x9b8   : > { %p21_p3 = scmp.ge.s32.totalorder %s7658_s23, 4   ;;  %s14525_s17 = smov %s7560_s18 }
 0x9b9   : > { %s14527_s20 = smov %s7658_s23 }
 0x9ba   :  { %23 = sbr.rel (!%p21_p3) target bundleno = 3 (0x3), region = 105 }
 0x9bd   : > { %s14526_s18 = smov %s14523_s29 }
 0x9c1   :  { %5846 = vsyncpa [#allocation3], 1 }
 0x9c2   :  { %5848 = vsyncpa [#allocation3 + $0x1], 1 }

</bundles_post_ra>
